<compile_context>
chip_gen: v5e
topology: v5e:2x2
jax: 0.10.0
libtpu: 0.0.40
codegen_flags: <defaults>
</compile_context>

<pallas_src>
import jax
import jax.numpy as jnp
from jax import lax
from jax.experimental import pallas as pl
from jax.experimental.pallas import tpu as pltpu

BOARD = (7, 7)
C_IN = 2                                     # 'basic-nostm' -> 2 input planes
DIM_MIDDLE = 128
DIM_FEATURE = 32
NUM_3X4 = (BOARD[0] - 2) * (BOARD[1] - 3)    # 20
NUM_4X3 = (BOARD[0] - 3) * (BOARD[1] - 2)    # 20
NUM_MAPS = NUM_3X4 + NUM_4X3                 # 40
QMAX = 127.0 / 128.0
MAPS_PER_STEP = 10                           # G: must divide both 20-map halves
STEPS_PER_HALF = NUM_3X4 // MAPS_PER_STEP    # 2 reduction steps per half


def _mish(x):
    # mish(x) = x * tanh(softplus(x)); with u = e^x,
    # tanh(softplus(x)) = u*(u+2) / (u*(u+2) + 2)  -> one EUP exp + one approx
    # EUP reciprocal instead of exp + log1p + tanh.  Clamp the exponent so the
    # ratio saturates to 1 instead of overflowing (mish(x) ~= x for x >= 20).
    u = jnp.exp(jnp.minimum(x, 20.0))
    num = u * (u + 2.0)
    return x * num * pl.reciprocal(num + 2.0, approx=True)


def _nnue_kernel(x1_ref, w1_ref, w2_ref, w3_ref, w4_ref,
                 t1_ref, t2_ref, t3_ref, t4_ref, feat_ref):
    # grid = (half h, reduction step i); all refs are the current step's block
    # of G = MAPS_PER_STEP mappings.  feat_ref is the (B, 32) half-feature
    # output block for half h (resident across the "arbitrary" i axis).
    i = pl.program_id(1)
    B = feat_ref.shape[0]
    DF = DIM_FEATURE
    G = MAPS_PER_STEP

    @pl.when(i == 0)
    def _():
        feat_ref[...] = jnp.zeros((B, DF), jnp.float32)

    def one_mapping(g, acc):
        # ---- layer 1: 2x2 conv on the 3x4 patch -> 6 positions (rows p*B+b) -
        x1 = x1_ref[g]                                    # (6B, 8) bf16
        h1 = jnp.dot(x1, w1_ref[g], preferred_element_type=jnp.float32)
        h1 = _mish(h1 + t1_ref[g]).astype(jnp.bfloat16)   # (6B, 128)

        # ---- layer 2: 2x2 conv on the 2x3 map -> 2 positions ----------------
        # No im2col lane-concat: accumulate 4 aligned partial MXU matmuls; tap
        # k uses layer-1 position offsets {0,1,3,4}[k].
        h2 = jnp.dot(h1[0 * B:2 * B], w2_ref[4 * g + 0],
                     preferred_element_type=jnp.float32)
        h2 += jnp.dot(h1[1 * B:3 * B], w2_ref[4 * g + 1],
                      preferred_element_type=jnp.float32)
        h2 += jnp.dot(h1[3 * B:5 * B], w2_ref[4 * g + 2],
                      preferred_element_type=jnp.float32)
        h2 += jnp.dot(h1[4 * B:6 * B], w2_ref[4 * g + 3],
                      preferred_element_type=jnp.float32)
        h2 = _mish(h2 + t2_ref[g]).astype(jnp.bfloat16)   # (2B, 128)

        # ---- layer 3: 1x2 conv on the 1x2 map -> 1 position ------------------
        h3 = jnp.dot(h2[:B], w3_ref[2 * g + 0], preferred_element_type=jnp.float32)
        h3 += jnp.dot(h2[B:], w3_ref[2 * g + 1], preferred_element_type=jnp.float32)
        h3 = _mish(h3 + t3_ref[g]).astype(jnp.bfloat16)   # (B, 128)

        # ---- layer 4: 1x1 conv, no activation --------------------------------
        h4 = jnp.dot(h3, w4_ref[g], preferred_element_type=jnp.float32) + t4_ref[g]

        # clamp(-1, 127/128) + fake_quant(scale=128), then sum over mappings
        f = jnp.clip(h4, -1.0, QMAX)
        f = jnp.round(f * 128.0) * (1.0 / 128.0)
        return acc + f                                    # (B, 32)

    group = lax.fori_loop(0, G, one_mapping,
                          jnp.zeros((B, DF), jnp.float32), unroll=True)
    feat_ref[...] += group


def init_params(key):
    """Deterministic synthetic parameters (folded eval-mode BN, quantized head)."""
    M, DM, DF, C = NUM_MAPS, DIM_MIDDLE, DIM_FEATURE, C_IN
    keys = list(jax.random.split(key, 40))
    _i = [0]

    def nk():
        k = keys[_i[0]]; _i[0] += 1; return k

    def nrm(shape, std):
        return std * jax.random.normal(nk(), shape, jnp.float32)

    def uni(shape, lo, hi):
        return jax.random.uniform(nk(), shape, jnp.float32, lo, hi)

    eps = 1e-5

    def fold_bn(conv_bias, gamma, beta, mean, var):
        s = gamma / jnp.sqrt(var + eps)
        t = (conv_bias - mean) * s + beta
        return s, t

    # Conv2dBlock stacks, one set per mapping.  4x3 mappings (m >= 20) are
    # stored spatially transposed (their (2,1) third conv becomes (1,2)) to
    # match the transposed patches built by the wrapper.
    W1 = nrm((M, DM, C, 2, 2), (C * 4) ** -0.5)
    W2 = nrm((M, DM, DM, 2, 2), (DM * 4) ** -0.5)
    W3 = nrm((M, DM, DM, 1, 2), (DM * 2) ** -0.5)
    W4 = nrm((M, DF, DM, 1, 1), DM ** -0.5)
    cb = [nrm((M, DM), 0.05), nrm((M, DM), 0.05), nrm((M, DM), 0.05), nrm((M, DF), 0.05)]
    st = []
    for ch, b in zip((DM, DM, DM, DF), cb):
        gamma = uni((M, ch), 0.8, 1.2)
        beta = nrm((M, ch), 0.05)
        mean = nrm((M, ch), 0.1)
        var = uni((M, ch), 0.5, 1.5)
        st.append(fold_bn(b, gamma, beta, mean, var))
    (s1, t1), (s2, t2), (s3, t3), (s4, t4) = st

    # im2col layout: taps ordered (kh, kw), in_ch on the contraction axis,
    # out_ch on the lane axis.  BN scales are folded into the output columns so
    # the kernel only needs the additive terms; weights are stored in bf16.
    w1 = (jnp.transpose(W1, (0, 3, 4, 2, 1)).reshape(M, C * 4, DM)
          * s1[:, None, :]).astype(jnp.bfloat16)                       # (M, 8, 128)
    w2 = (jnp.transpose(W2, (0, 3, 4, 2, 1)) * s2[:, None, None, None, :]
          ).reshape(M * 4, DM, DM).astype(jnp.bfloat16)                # (4M, 128, 128)
    w3 = (jnp.transpose(W3, (0, 3, 4, 2, 1)) * s3[:, None, None, None, :]
          ).reshape(M * 2, DM, DM).astype(jnp.bfloat16)                # (2M, 128, 128)
    w4 = (jnp.transpose(W4[..., 0, 0], (0, 2, 1))
          * s4[:, None, :]).astype(jnp.bfloat16)                       # (M, 128, 32)

    t1 = t1.reshape(M, 1, DM)
    t2 = t2.reshape(M, 1, DM)
    t3 = t3.reshape(M, 1, DM)
    t4 = t4.reshape(M, 1, DF)

    def fq(x, scale, nbits):
        qmin, qmax = -(2 ** (nbits - 1)), 2 ** (nbits - 1) - 1
        return jnp.clip(jnp.round(x * scale), qmin, qmax) / scale

    # Quantized value head (LinearBlock(quant=True)): 8-bit weights @ scale 128
    # are exactly representable in bf16; 32-bit biases stay f32.
    vW1, vB1 = nrm((32, 2 * DF), (2 * DF) ** -0.5), nrm((32,), 0.05)
    vW2, vB2 = nrm((32, 32), 32 ** -0.5), nrm((32,), 0.05)
    vW3, vB3 = nrm((3, 32), 32 ** -0.5), nrm((3,), 0.05)
    vw1 = fq(vW1, 128.0, 8).T.astype(jnp.bfloat16)                     # (64, 32)
    vw2 = fq(vW2, 128.0, 8).T.astype(jnp.bfloat16)                     # (32, 32)
    vw3 = fq(vW3, 128.0, 8).T.astype(jnp.bfloat16)                     # (32, 3)
    vb1 = fq(vB1, 128.0 * 128.0, 32).reshape(1, 32)
    vb2 = fq(vB2, 128.0 * 128.0, 32).reshape(1, 32)
    vb3 = fq(vB3, 128.0 * 128.0, 32).reshape(1, 3)

    return (w1, w2, w3, w4, t1, t2, t3, t4,
            vw1, vb1, vw2, vb2, vw3, vb3)


def flat_nnue_forward(input_plane, params):
    (w1, w2, w3, w4, t1, t2, t3, t4,
     vw1, vb1, vw2, vb2, vw3, vb3) = params

    B0, C, H, W = input_plane.shape
    assert (H, W) == BOARD and C == C_IN

    # Pad the batch to a multiple of 16 so every position-major row slice
    # (p*B..(p+2)*B) is sublane aligned for both f32 and packed bf16 layouts.
    B = ((B0 + 15) // 16) * 16
    if B != B0:
        input_plane = jnp.pad(input_plane, ((0, B - B0), (0, 0), (0, 0), (0, 0)))

    # --------- glue: patch extraction + layer-1 im2col (layout only) ---------
    plane = input_plane.astype(jnp.bfloat16)        # exact: inputs are 0/1
    patches = []
    for y in range(0, H - 2):
        for x in range(0, W - 3):
            patches.append(plane[:, :, y:y + 3, x:x + 4])
    for y in range(0, H - 3):
        for x in range(0, W - 2):
            # spatially transpose 4x3 windows so every mapping is a 3x4 mapping
            patches.append(jnp.transpose(plane[:, :, y:y + 4, x:x + 3],
                                         (0, 1, 3, 2)))
    patches = jnp.stack(patches, axis=0)                       # (40, B, 2, 3, 4)

    cols = []
    for r in range(2):
        for c in range(3):
            win = patches[:, :, :, r:r + 2, c:c + 2]           # (40, B, in, 2, 2)
            cols.append(jnp.transpose(win, (0, 1, 3, 4, 2)).reshape(NUM_MAPS, B, 8))
    x1s = jnp.stack(cols, axis=1).reshape(NUM_MAPS, 6 * B, 8)  # (40, 6B, 8) bf16

    DM, DF = DIM_MIDDLE, DIM_FEATURE
    G, spf = MAPS_PER_STEP, STEPS_PER_HALF
    assert NUM_3X4 % G == 0 and NUM_4X3 % G == 0

    def streamed(shape):
        # block (h, i) holds mapping group h*spf + i along the leading axis
        zeros = (0,) * (len(shape) - 1)
        return pl.BlockSpec(shape, lambda h, i: (h * spf + i,) + zeros)

    grid_spec = pltpu.PrefetchScalarGridSpec(
        num_scalar_prefetch=0,
        grid=(2, spf),                          # (mapping half, reduction step)
        in_specs=[
            streamed((G, 6 * B, 8)),            # x1s bf16   (~15 KiB/step)
            streamed((G, 8, DM)),               # w1  bf16   (~20 KiB/step)
            streamed((G * 4, DM, DM)),          # w2  bf16   (~1.25 MiB/step)
            streamed((G * 2, DM, DM)),          # w3  bf16   (~0.63 MiB/step)
            streamed((G, DM, DF)),              # w4  bf16   (~80 KiB/step)
            streamed((G, 1, DM)),               # t1
            streamed((G, 1, DM)),               # t2
            streamed((G, 1, DM)),               # t3
            streamed((G, 1, DF)),               # t4
        ],
        # per-half (B, 32) output block, resident across the reduction axis
        out_specs=pl.BlockSpec((None, B, DF), lambda h, i: (h, 0, 0)),
    )

    feat_halves = pl.pallas_call(
        _nnue_kernel,
        out_shape=jax.ShapeDtypeStruct((2, B, DF), jnp.float32),
        grid_spec=grid_spec,
        compiler_params=pltpu.CompilerParams(
            # half axis parallel (v7x megacore), reduction axis sequential
            dimension_semantics=("parallel", "arbitrary"),
            vmem_limit_bytes=32 * 1024 * 1024),     # safe on v5e/v6e/v7x
    )(x1s, w1, w2, w3, w4, t1, t2, t3, t4)

    # feature = cat([features3x4, features4x3], dim=1), as in the reference
    feature = jnp.concatenate([feat_halves[0], feat_halves[1]], axis=1)  # (B, 64)

    # ---- value head (3 quantized linears): tiny, lane-sparse -> plain XLA ----
    v = jnp.clip(feature, -1.0, QMAX)
    v = jnp.dot(v, vw1.astype(jnp.float32), precision='highest') + vb1
    v = jnp.clip(v, 0.0, QMAX)
    v = jnp.dot(v, vw2.astype(jnp.float32), precision='highest') + vb2
    v = jnp.clip(v, 0.0, QMAX)
    v = jnp.dot(v, vw3.astype(jnp.float32), precision='highest') + vb3

    value = v[:B0]
    policy = jnp.zeros((B0, H, W), dtype=value.dtype)   # matches the reference module
    return value, policy


if __name__ == "__main__":
    key = jax.random.PRNGKey(0)
    kp, kx = jax.random.split(key)
    params = init_params(kp)
    # synthetic 'basic-nostm' input plane: (B=16, planes=2, 7, 7) of 0/1 stones
    x = jax.random.bernoulli(kx, 0.5, (16, C_IN) + BOARD).astype(jnp.float32)
    value, policy = jax.jit(flat_nnue_forward)(x, params)
    jax.block_until_ready((value, policy))
    print("KERNEL_OK")
</pallas_src>

<mosaic_0001>
module attributes {stable_mosaic.version = 11 : i64} {
  func.func @_nnue_kernel(%arg0: i32, %arg1: i32, %arg2: memref<10x96x8xbf16, #tpu.memory_space<vmem>>, %arg3: memref<10x8x128xbf16, #tpu.memory_space<vmem>>, %arg4: memref<40x128x128xbf16, #tpu.memory_space<vmem>>, %arg5: memref<20x128x128xbf16, #tpu.memory_space<vmem>>, %arg6: memref<10x128x32xbf16, #tpu.memory_space<vmem>>, %arg7: memref<10x1x128xf32, #tpu.memory_space<vmem>>, %arg8: memref<10x1x128xf32, #tpu.memory_space<vmem>>, %arg9: memref<10x1x128xf32, #tpu.memory_space<vmem>>, %arg10: memref<10x1x32xf32, #tpu.memory_space<vmem>>, %arg11: memref<1x16x32xf32, #tpu.memory_space<vmem>>) attributes {dimension_semantics = [#tpu.dimension_semantics<parallel>, #tpu.dimension_semantics<arbitrary>], iteration_bounds = array<i64: 2, 2>, scalar_prefetch = 0 : i64, scratch_operands = 0 : i64, tpu.core_type = #tpu.core_type<tc>, window_params = [{transform_indices = @transform_0, window_bounds = array<i64: 10, 96, 8>}, {transform_indices = @transform_1, window_bounds = array<i64: 10, 8, 128>}, {transform_indices = @transform_2, window_bounds = array<i64: 40, 128, 128>}, {transform_indices = @transform_3, window_bounds = array<i64: 20, 128, 128>}, {transform_indices = @transform_4, window_bounds = array<i64: 10, 128, 32>}, {transform_indices = @transform_5, window_bounds = array<i64: 10, 1, 128>}, {transform_indices = @transform_6, window_bounds = array<i64: 10, 1, 128>}, {transform_indices = @transform_7, window_bounds = array<i64: 10, 1, 128>}, {transform_indices = @transform_8, window_bounds = array<i64: 10, 1, 32>}, {transform_indices = @transform_9, window_bounds = array<i64: 1, 16, 32>}]} {
    %c0_i32 = arith.constant 0 : i32
    %0 = arith.cmpi eq, %arg1, %c0_i32 : i32
    %1 = arith.extui %0 : i1 to i32
    %c0_i32_0 = arith.constant 0 : i32
    %2 = arith.cmpi ne, %1, %c0_i32_0 : i32
    scf.if %2 {
      %cst_597 = arith.constant 0.000000e+00 : f32
      %1240 = vector.broadcast %cst_597 : f32 to vector<16x32xf32>
      %c0_598 = arith.constant 0 : index
      %c0_599 = arith.constant 0 : index
      %c0_600 = arith.constant 0 : index
      %1241 = vector.load %arg11[%c0_598, %c0_599, %c0_600] : memref<1x16x32xf32, #tpu.memory_space<vmem>>, vector<1x16x32xf32>
      %1242 = vector.shape_cast %1241 : vector<1x16x32xf32> to vector<16x32xf32>
      %1243 = vector.shape_cast %1240 : vector<16x32xf32> to vector<1x16x32xf32>
      tpu.vector_store %arg11[%c0_598, %c0_599, %c0_600], %1243 {strides = array<i32>} : memref<1x16x32xf32, #tpu.memory_space<vmem>>, vector<1x16x32xf32>,
    } else {
    }
    %cst = arith.constant 0.000000e+00 : f32
    %3 = vector.broadcast %cst : f32 to vector<16x32xf32>
    %c0_i32_1 = arith.constant 0 : i32
    %4 = arith.index_cast %c0_i32_1 : i32 to index
    %c0 = arith.constant 0 : index
    %c0_2 = arith.constant 0 : index
    %5 = vector.load %arg2[%4, %c0, %c0_2] : memref<10x96x8xbf16, #tpu.memory_space<vmem>>, vector<1x96x8xbf16>
    %6 = vector.shape_cast %5 : vector<1x96x8xbf16> to vector<96x8xbf16>
    %7 = arith.index_cast %c0_i32_1 : i32 to index
    %c0_3 = arith.constant 0 : index
    %c0_4 = arith.constant 0 : index
    %8 = vector.load %arg3[%7, %c0_3, %c0_4] : memref<10x8x128xbf16, #tpu.memory_space<vmem>>, vector<1x8x128xbf16>
    %9 = vector.shape_cast %8 : vector<1x8x128xbf16> to vector<8x128xbf16>
    %cst_5 = arith.constant dense<0.000000e+00> : vector<96x128xf32>
    %10 = tpu.matmul %6, %9, %cst_5 {dimension_numbers = #tpu.dot_dimension_numbers<[1], [0], [0], [1], [0, 0, 1, 1], [], []>} : vector<96x8xbf16>, vector<8x128xbf16>, vector<96x128xf32> -> vector<96x128xf32>
    %11 = arith.index_cast %c0_i32_1 : i32 to index
    %c0_6 = arith.constant 0 : index
    %c0_7 = arith.constant 0 : index
    %12 = vector.load %arg7[%11, %c0_6, %c0_7] : memref<10x1x128xf32, #tpu.memory_space<vmem>>, vector<1x1x128xf32>
    %13 = vector.shape_cast %12 : vector<1x1x128xf32> to vector<1x128xf32>
    %14 = vector.broadcast %13 : vector<1x128xf32> to vector<96x128xf32>
    %15 = arith.addf %10, %14 : vector<96x128xf32>
    %cst_8 = arith.constant 2.000000e+01 : f32
    %16 = vector.broadcast %cst_8 : f32 to vector<96x128xf32>
    %17 = arith.minimumf %15, %16 : vector<96x128xf32>
    %18 = math.exp %17 : vector<96x128xf32>
    %cst_9 = arith.constant 2.000000e+00 : f32
    %19 = vector.broadcast %cst_9 : f32 to vector<96x128xf32>
    %20 = arith.addf %18, %19 : vector<96x128xf32>
    %21 = arith.mulf %18, %20 : vector<96x128xf32>
    %22 = arith.mulf %15, %21 : vector<96x128xf32>
    %cst_10 = arith.constant 2.000000e+00 : f32
    %23 = vector.broadcast %cst_10 : f32 to vector<96x128xf32>
    %24 = arith.addf %21, %23 : vector<96x128xf32>
    %25 = tpu.reciprocal %24 {approx = true} : vector<96x128xf32> -> vector<96x128xf32>
    %26 = arith.mulf %22, %25 : vector<96x128xf32>
    %27 = arith.truncf %26 : vector<96x128xf32> to vector<96x128xbf16>
    %28 = vector.extract_strided_slice %27 {offsets = [0, 0], sizes = [32, 128], strides = [1, 1]} : vector<96x128xbf16> to vector<32x128xbf16>
    %c4_i32 = arith.constant 4 : i32
    %29 = arith.muli %c4_i32, %c0_i32_1 : i32
    %c0_i32_11 = arith.constant 0 : i32
    %30 = arith.addi %29, %c0_i32_11 : i32
    %31 = arith.index_cast %30 : i32 to index
    %c0_12 = arith.constant 0 : index
    %c0_13 = arith.constant 0 : index
    %32 = vector.load %arg4[%31, %c0_12, %c0_13] : memref<40x128x128xbf16, #tpu.memory_space<vmem>>, vector<1x128x128xbf16>
    %33 = vector.shape_cast %32 : vector<1x128x128xbf16> to vector<128x128xbf16>
    %cst_14 = arith.constant dense<0.000000e+00> : vector<32x128xf32>
    %34 = tpu.matmul %28, %33, %cst_14 {dimension_numbers = #tpu.dot_dimension_numbers<[1], [0], [0], [1], [0, 0, 1, 1], [], []>} : vector<32x128xbf16>, vector<128x128xbf16>, vector<32x128xf32> -> vector<32x128xf32>
    %35 = vector.extract_strided_slice %27 {offsets = [16, 0], sizes = [32, 128], strides = [1, 1]} : vector<96x128xbf16> to vector<32x128xbf16>
    %c4_i32_15 = arith.constant 4 : i32
    %36 = arith.muli %c4_i32_15, %c0_i32_1 : i32
    %c1_i32 = arith.constant 1 : i32
    %37 = arith.addi %36, %c1_i32 : i32
    %38 = arith.index_cast %37 : i32 to index
    %c0_16 = arith.constant 0 : index
    %c0_17 = arith.constant 0 : index
    %39 = vector.load %arg4[%38, %c0_16, %c0_17] : memref<40x128x128xbf16, #tpu.memory_space<vmem>>, vector<1x128x128xbf16>
    %40 = vector.shape_cast %39 : vector<1x128x128xbf16> to vector<128x128xbf16>
    %cst_18 = arith.constant dense<0.000000e+00> : vector<32x128xf32>
    %41 = tpu.matmul %35, %40, %cst_18 {dimension_numbers = #tpu.dot_dimension_numbers<[1], [0], [0], [1], [0, 0, 1, 1], [], []>} : vector<32x128xbf16>, vector<128x128xbf16>, vector<32x128xf32> -> vector<32x128xf32>
    %42 = arith.addf %34, %41 : vector<32x128xf32>
    %43 = vector.extract_strided_slice %27 {offsets = [48, 0], sizes = [32, 128], strides = [1, 1]} : vector<96x128xbf16> to vector<32x128xbf16>
    %c4_i32_19 = arith.constant 4 : i32
    %44 = arith.muli %c4_i32_19, %c0_i32_1 : i32
    %c2_i32 = arith.constant 2 : i32
    %45 = arith.addi %44, %c2_i32 : i32
    %46 = arith.index_cast %45 : i32 to index
    %c0_20 = arith.constant 0 : index
    %c0_21 = arith.constant 0 : index
    %47 = vector.load %arg4[%46, %c0_20, %c0_21] : memref<40x128x128xbf16, #tpu.memory_space<vmem>>, vector<1x128x128xbf16>
    %48 = vector.shape_cast %47 : vector<1x128x128xbf16> to vector<128x128xbf16>
    %cst_22 = arith.constant dense<0.000000e+00> : vector<32x128xf32>
    %49 = tpu.matmul %43, %48, %cst_22 {dimension_numbers = #tpu.dot_dimension_numbers<[1], [0], [0], [1], [0, 0, 1, 1], [], []>} : vector<32x128xbf16>, vector<128x128xbf16>, vector<32x128xf32> -> vector<32x128xf32>
    %50 = arith.addf %42, %49 : vector<32x128xf32>
    %51 = vector.extract_strided_slice %27 {offsets = [64, 0], sizes = [32, 128], strides = [1, 1]} : vector<96x128xbf16> to vector<32x128xbf16>
    %c4_i32_23 = arith.constant 4 : i32
    %52 = arith.muli %c4_i32_23, %c0_i32_1 : i32
    %c3_i32 = arith.constant 3 : i32
    %53 = arith.addi %52, %c3_i32 : i32
    %54 = arith.index_cast %53 : i32 to index
    %c0_24 = arith.constant 0 : index
    %c0_25 = arith.constant 0 : index
    %55 = vector.load %arg4[%54, %c0_24, %c0_25] : memref<40x128x128xbf16, #tpu.memory_space<vmem>>, vector<1x128x128xbf16>
    %56 = vector.shape_cast %55 : vector<1x128x128xbf16> to vector<128x128xbf16>
    %cst_26 = arith.constant dense<0.000000e+00> : vector<32x128xf32>
    %57 = tpu.matmul %51, %56, %cst_26 {dimension_numbers = #tpu.dot_dimension_numbers<[1], [0], [0], [1], [0, 0, 1, 1], [], []>} : vector<32x128xbf16>, vector<128x128xbf16>, vector<32x128xf32> -> vector<32x128xf32>
    %58 = arith.addf %50, %57 : vector<32x128xf32>
    %59 = arith.index_cast %c0_i32_1 : i32 to index
    %c0_27 = arith.constant 0 : index
    %c0_28 = arith.constant 0 : index
    %60 = vector.load %arg8[%59, %c0_27, %c0_28] : memref<10x1x128xf32, #tpu.memory_space<vmem>>, vector<1x1x128xf32>
    %61 = vector.shape_cast %60 : vector<1x1x128xf32> to vector<1x128xf32>
    %62 = vector.broadcast %61 : vector<1x128xf32> to vector<32x128xf32>
    %63 = arith.addf %58, %62 : vector<32x128xf32>
    %cst_29 = arith.constant 2.000000e+01 : f32
    %64 = vector.broadcast %cst_29 : f32 to vector<32x128xf32>
    %65 = arith.minimumf %63, %64 : vector<32x128xf32>
    %66 = math.exp %65 : vector<32x128xf32>
    %cst_30 = arith.constant 2.000000e+00 : f32
    %67 = vector.broadcast %cst_30 : f32 to vector<32x128xf32>
    %68 = arith.addf %66, %67 : vector<32x128xf32>
    %69 = arith.mulf %66, %68 : vector<32x128xf32>
    %70 = arith.mulf %63, %69 : vector<32x128xf32>
    %cst_31 = arith.constant 2.000000e+00 : f32
    %71 = vector.broadcast %cst_31 : f32 to vector<32x128xf32>
    %72 = arith.addf %69, %71 : vector<32x128xf32>
    %73 = tpu.reciprocal %72 {approx = true} : vector<32x128xf32> -> vector<32x128xf32>
    %74 = arith.mulf %70, %73 : vector<32x128xf32>
    %75 = arith.truncf %74 : vector<32x128xf32> to vector<32x128xbf16>
    %76 = vector.extract_strided_slice %75 {offsets = [0, 0], sizes = [16, 128], strides = [1, 1]} : vector<32x128xbf16> to vector<16x128xbf16>
    %c2_i32_32 = arith.constant 2 : i32
    %77 = arith.muli %c2_i32_32, %c0_i32_1 : i32
    %c0_i32_33 = arith.constant 0 : i32
    %78 = arith.addi %77, %c0_i32_33 : i32
    %79 = arith.index_cast %78 : i32 to index
    %c0_34 = arith.constant 0 : index
    %c0_35 = arith.constant 0 : index
    %80 = vector.load %arg5[%79, %c0_34, %c0_35] : memref<20x128x128xbf16, #tpu.memory_space<vmem>>, vector<1x128x128xbf16>
    %81 = vector.shape_cast %80 : vector<1x128x128xbf16> to vector<128x128xbf16>
    %cst_36 = arith.constant dense<0.000000e+00> : vector<16x128xf32>
    %82 = tpu.matmul %76, %81, %cst_36 {dimension_numbers = #tpu.dot_dimension_numbers<[1], [0], [0], [1], [0, 0, 1, 1], [], []>} : vector<16x128xbf16>, vector<128x128xbf16>, vector<16x128xf32> -> vector<16x128xf32>
    %83 = vector.extract_strided_slice %75 {offsets = [16, 0], sizes = [16, 128], strides = [1, 1]} : vector<32x128xbf16> to vector<16x128xbf16>
    %c2_i32_37 = arith.constant 2 : i32
    %84 = arith.muli %c2_i32_37, %c0_i32_1 : i32
    %c1_i32_38 = arith.constant 1 : i32
    %85 = arith.addi %84, %c1_i32_38 : i32
    %86 = arith.index_cast %85 : i32 to index
    %c0_39 = arith.constant 0 : index
    %c0_40 = arith.constant 0 : index
    %87 = vector.load %arg5[%86, %c0_39, %c0_40] : memref<20x128x128xbf16, #tpu.memory_space<vmem>>, vector<1x128x128xbf16>
    %88 = vector.shape_cast %87 : vector<1x128x128xbf16> to vector<128x128xbf16>
    %cst_41 = arith.constant dense<0.000000e+00> : vector<16x128xf32>
    %89 = tpu.matmul %83, %88, %cst_41 {dimension_numbers = #tpu.dot_dimension_numbers<[1], [0], [0], [1], [0, 0, 1, 1], [], []>} : vector<16x128xbf16>, vector<128x128xbf16>, vector<16x128xf32> -> vector<16x128xf32>
    %90 = arith.addf %82, %89 : vector<16x128xf32>
    %91 = arith.index_cast %c0_i32_1 : i32 to index
    %c0_42 = arith.constant 0 : index
    %c0_43 = arith.constant 0 : index
    %92 = vector.load %arg9[%91, %c0_42, %c0_43] : memref<10x1x128xf32, #tpu.memory_space<vmem>>, vector<1x1x128xf32>
    %93 = vector.shape_cast %92 : vector<1x1x128xf32> to vector<1x128xf32>
    %94 = vector.broadcast %93 : vector<1x128xf32> to vector<16x128xf32>
    %95 = arith.addf %90, %94 : vector<16x128xf32>
    %cst_44 = arith.constant 2.000000e+01 : f32
    %96 = vector.broadcast %cst_44 : f32 to vector<16x128xf32>
    %97 = arith.minimumf %95, %96 : vector<16x128xf32>
    %98 = math.exp %97 : vector<16x128xf32>
    %cst_45 = arith.constant 2.000000e+00 : f32
    %99 = vector.broadcast %cst_45 : f32 to vector<16x128xf32>
    %100 = arith.addf %98, %99 : vector<16x128xf32>
    %101 = arith.mulf %98, %100 : vector<16x128xf32>
    %102 = arith.mulf %95, %101 : vector<16x128xf32>
    %cst_46 = arith.constant 2.000000e+00 : f32
    %103 = vector.broadcast %cst_46 : f32 to vector<16x128xf32>
    %104 = arith.addf %101, %103 : vector<16x128xf32>
    %105 = tpu.reciprocal %104 {approx = true} : vector<16x128xf32> -> vector<16x128xf32>
    %106 = arith.mulf %102, %105 : vector<16x128xf32>
    %107 = arith.truncf %106 : vector<16x128xf32> to vector<16x128xbf16>
    %108 = arith.index_cast %c0_i32_1 : i32 to index
    %c0_47 = arith.constant 0 : index
    %c0_48 = arith.constant 0 : index
    %109 = vector.load %arg6[%108, %c0_47, %c0_48] : memref<10x128x32xbf16, #tpu.memory_space<vmem>>, vector<1x128x32xbf16>
    %110 = vector.shape_cast %109 : vector<1x128x32xbf16> to vector<128x32xbf16>
    %cst_49 = arith.constant dense<0.000000e+00> : vector<16x32xf32>
    %111 = tpu.matmul %107, %110, %cst_49 {dimension_numbers = #tpu.dot_dimension_numbers<[1], [0], [0], [1], [0, 0, 1, 1], [], []>} : vector<16x128xbf16>, vector<128x32xbf16>, vector<16x32xf32> -> vector<16x32xf32>
    %112 = arith.index_cast %c0_i32_1 : i32 to index
    %c0_50 = arith.constant 0 : index
    %c0_51 = arith.constant 0 : index
    %113 = vector.load %arg10[%112, %c0_50, %c0_51] : memref<10x1x32xf32, #tpu.memory_space<vmem>>, vector<1x1x32xf32>
    %114 = vector.shape_cast %113 : vector<1x1x32xf32> to vector<1x32xf32>
    %115 = vector.broadcast %114 : vector<1x32xf32> to vector<16x32xf32>
    %116 = arith.addf %111, %115 : vector<16x32xf32>
    %cst_52 = arith.constant -1.000000e+00 : f32
    %cst_53 = arith.constant 0.9921875 : f32
    %117 = vector.broadcast %cst_52 : f32 to vector<16x32xf32>
    %118 = arith.maximumf %117, %116 : vector<16x32xf32>
    %119 = vector.broadcast %cst_53 : f32 to vector<16x32xf32>
    %120 = arith.minimumf %119, %118 : vector<16x32xf32>
    %cst_54 = arith.constant 1.280000e+02 : f32
    %121 = vector.broadcast %cst_54 : f32 to vector<16x32xf32>
    %122 = arith.mulf %120, %121 : vector<16x32xf32>
    %123 = math.roundeven %122 : vector<16x32xf32>
    %cst_55 = arith.constant 7.812500e-03 : f32
    %124 = vector.broadcast %cst_55 : f32 to vector<16x32xf32>
    %125 = arith.mulf %123, %124 : vector<16x32xf32>
    %126 = arith.addf %3, %125 : vector<16x32xf32>
    %c1_i32_56 = arith.constant 1 : i32
    %127 = arith.index_cast %c1_i32_56 : i32 to index
    %c0_57 = arith.constant 0 : index
    %c0_58 = arith.constant 0 : index
    %128 = vector.load %arg2[%127, %c0_57, %c0_58] : memref<10x96x8xbf16, #tpu.memory_space<vmem>>, vector<1x96x8xbf16>
    %129 = vector.shape_cast %128 : vector<1x96x8xbf16> to vector<96x8xbf16>
    %130 = arith.index_cast %c1_i32_56 : i32 to index
    %c0_59 = arith.constant 0 : index
    %c0_60 = arith.constant 0 : index
    %131 = vector.load %arg3[%130, %c0_59, %c0_60] : memref<10x8x128xbf16, #tpu.memory_space<vmem>>, vector<1x8x128xbf16>
    %132 = vector.shape_cast %131 : vector<1x8x128xbf16> to vector<8x128xbf16>
    %cst_61 = arith.constant dense<0.000000e+00> : vector<96x128xf32>
    %133 = tpu.matmul %129, %132, %cst_61 {dimension_numbers = #tpu.dot_dimension_numbers<[1], [0], [0], [1], [0, 0, 1, 1], [], []>} : vector<96x8xbf16>, vector<8x128xbf16>, vector<96x128xf32> -> vector<96x128xf32>
    %134 = arith.index_cast %c1_i32_56 : i32 to index
    %c0_62 = arith.constant 0 : index
    %c0_63 = arith.constant 0 : index
    %135 = vector.load %arg7[%134, %c0_62, %c0_63] : memref<10x1x128xf32, #tpu.memory_space<vmem>>, vector<1x1x128xf32>
    %136 = vector.shape_cast %135 : vector<1x1x128xf32> to vector<1x128xf32>
    %137 = vector.broadcast %136 : vector<1x128xf32> to vector<96x128xf32>
    %138 = arith.addf %133, %137 : vector<96x128xf32>
    %cst_64 = arith.constant 2.000000e+01 : f32
    %139 = vector.broadcast %cst_64 : f32 to vector<96x128xf32>
    %140 = arith.minimumf %138, %139 : vector<96x128xf32>
    %141 = math.exp %140 : vector<96x128xf32>
    %cst_65 = arith.constant 2.000000e+00 : f32
    %142 = vector.broadcast %cst_65 : f32 to vector<96x128xf32>
    %143 = arith.addf %141, %142 : vector<96x128xf32>
    %144 = arith.mulf %141, %143 : vector<96x128xf32>
    %145 = arith.mulf %138, %144 : vector<96x128xf32>
    %cst_66 = arith.constant 2.000000e+00 : f32
    %146 = vector.broadcast %cst_66 : f32 to vector<96x128xf32>
    %147 = arith.addf %144, %146 : vector<96x128xf32>
    %148 = tpu.reciprocal %147 {approx = true} : vector<96x128xf32> -> vector<96x128xf32>
    %149 = arith.mulf %145, %148 : vector<96x128xf32>
    %150 = arith.truncf %149 : vector<96x128xf32> to vector<96x128xbf16>
    %151 = vector.extract_strided_slice %150 {offsets = [0, 0], sizes = [32, 128], strides = [1, 1]} : vector<96x128xbf16> to vector<32x128xbf16>
    %c4_i32_67 = arith.constant 4 : i32
    %152 = arith.muli %c4_i32_67, %c1_i32_56 : i32
    %c0_i32_68 = arith.constant 0 : i32
    %153 = arith.addi %152, %c0_i32_68 : i32
    %154 = arith.index_cast %153 : i32 to index
    %c0_69 = arith.constant 0 : index
    %c0_70 = arith.constant 0 : index
    %155 = vector.load %arg4[%154, %c0_69, %c0_70] : memref<40x128x128xbf16, #tpu.memory_space<vmem>>, vector<1x128x128xbf16>
    %156 = vector.shape_cast %155 : vector<1x128x128xbf16> to vector<128x128xbf16>
    %cst_71 = arith.constant dense<0.000000e+00> : vector<32x128xf32>
    %157 = tpu.matmul %151, %156, %cst_71 {dimension_numbers = #tpu.dot_dimension_numbers<[1], [0], [0], [1], [0, 0, 1, 1], [], []>} : vector<32x128xbf16>, vector<128x128xbf16>, vector<32x128xf32> -> vector<32x128xf32>
    %158 = vector.extract_strided_slice %150 {offsets = [16, 0], sizes = [32, 128], strides = [1, 1]} : vector<96x128xbf16> to vector<32x128xbf16>
    %c4_i32_72 = arith.constant 4 : i32
    %159 = arith.muli %c4_i32_72, %c1_i32_56 : i32
    %c1_i32_73 = arith.constant 1 : i32
    %160 = arith.addi %159, %c1_i32_73 : i32
    %161 = arith.index_cast %160 : i32 to index
    %c0_74 = arith.constant 0 : index
    %c0_75 = arith.constant 0 : index
    %162 = vector.load %arg4[%161, %c0_74, %c0_75] : memref<40x128x128xbf16, #tpu.memory_space<vmem>>, vector<1x128x128xbf16>
    %163 = vector.shape_cast %162 : vector<1x128x128xbf16> to vector<128x128xbf16>
    %cst_76 = arith.constant dense<0.000000e+00> : vector<32x128xf32>
    %164 = tpu.matmul %158, %163, %cst_76 {dimension_numbers = #tpu.dot_dimension_numbers<[1], [0], [0], [1], [0, 0, 1, 1], [], []>} : vector<32x128xbf16>, vector<128x128xbf16>, vector<32x128xf32> -> vector<32x128xf32>
    %165 = arith.addf %157, %164 : vector<32x128xf32>
    %166 = vector.extract_strided_slice %150 {offsets = [48, 0], sizes = [32, 128], strides = [1, 1]} : vector<96x128xbf16> to vector<32x128xbf16>
    %c4_i32_77 = arith.constant 4 : i32
    %167 = arith.muli %c4_i32_77, %c1_i32_56 : i32
    %c2_i32_78 = arith.constant 2 : i32
    %168 = arith.addi %167, %c2_i32_78 : i32
    %169 = arith.index_cast %168 : i32 to index
    %c0_79 = arith.constant 0 : index
    %c0_80 = arith.constant 0 : index
    %170 = vector.load %arg4[%169, %c0_79, %c0_80] : memref<40x128x128xbf16, #tpu.memory_space<vmem>>, vector<1x128x128xbf16>
    %171 = vector.shape_cast %170 : vector<1x128x128xbf16> to vector<128x128xbf16>
    %cst_81 = arith.constant dense<0.000000e+00> : vector<32x128xf32>
    %172 = tpu.matmul %166, %171, %cst_81 {dimension_numbers = #tpu.dot_dimension_numbers<[1], [0], [0], [1], [0, 0, 1, 1], [], []>} : vector<32x128xbf16>, vector<128x128xbf16>, vector<32x128xf32> -> vector<32x128xf32>
    %173 = arith.addf %165, %172 : vector<32x128xf32>
    %174 = vector.extract_strided_slice %150 {offsets = [64, 0], sizes = [32, 128], strides = [1, 1]} : vector<96x128xbf16> to vector<32x128xbf16>
    %c4_i32_82 = arith.constant 4 : i32
    %175 = arith.muli %c4_i32_82, %c1_i32_56 : i32
    %c3_i32_83 = arith.constant 3 : i32
    %176 = arith.addi %175, %c3_i32_83 : i32
    %177 = arith.index_cast %176 : i32 to index
    %c0_84 = arith.constant 0 : index
    %c0_85 = arith.constant 0 : index
    %178 = vector.load %arg4[%177, %c0_84, %c0_85] : memref<40x128x128xbf16, #tpu.memory_space<vmem>>, vector<1x128x128xbf16>
    %179 = vector.shape_cast %178 : vector<1x128x128xbf16> to vector<128x128xbf16>
    %cst_86 = arith.constant dense<0.000000e+00> : vector<32x128xf32>
    %180 = tpu.matmul %174, %179, %cst_86 {dimension_numbers = #tpu.dot_dimension_numbers<[1], [0], [0], [1], [0, 0, 1, 1], [], []>} : vector<32x128xbf16>, vector<128x128xbf16>, vector<32x128xf32> -> vector<32x128xf32>
    %181 = arith.addf %173, %180 : vector<32x128xf32>
    %182 = arith.index_cast %c1_i32_56 : i32 to index
    %c0_87 = arith.constant 0 : index
    %c0_88 = arith.constant 0 : index
    %183 = vector.load %arg8[%182, %c0_87, %c0_88] : memref<10x1x128xf32, #tpu.memory_space<vmem>>, vector<1x1x128xf32>
    %184 = vector.shape_cast %183 : vector<1x1x128xf32> to vector<1x128xf32>
    %185 = vector.broadcast %184 : vector<1x128xf32> to vector<32x128xf32>
    %186 = arith.addf %181, %185 : vector<32x128xf32>
    %cst_89 = arith.constant 2.000000e+01 : f32
    %187 = vector.broadcast %cst_89 : f32 to vector<32x128xf32>
    %188 = arith.minimumf %186, %187 : vector<32x128xf32>
    %189 = math.exp %188 : vector<32x128xf32>
    %cst_90 = arith.constant 2.000000e+00 : f32
    %190 = vector.broadcast %cst_90 : f32 to vector<32x128xf32>
    %191 = arith.addf %189, %190 : vector<32x128xf32>
    %192 = arith.mulf %189, %191 : vector<32x128xf32>
    %193 = arith.mulf %186, %192 : vector<32x128xf32>
    %cst_91 = arith.constant 2.000000e+00 : f32
    %194 = vector.broadcast %cst_91 : f32 to vector<32x128xf32>
    %195 = arith.addf %192, %194 : vector<32x128xf32>
    %196 = tpu.reciprocal %195 {approx = true} : vector<32x128xf32> -> vector<32x128xf32>
    %197 = arith.mulf %193, %196 : vector<32x128xf32>
    %198 = arith.truncf %197 : vector<32x128xf32> to vector<32x128xbf16>
    %199 = vector.extract_strided_slice %198 {offsets = [0, 0], sizes = [16, 128], strides = [1, 1]} : vector<32x128xbf16> to vector<16x128xbf16>
    %c2_i32_92 = arith.constant 2 : i32
    %200 = arith.muli %c2_i32_92, %c1_i32_56 : i32
    %c0_i32_93 = arith.constant 0 : i32
    %201 = arith.addi %200, %c0_i32_93 : i32
    %202 = arith.index_cast %201 : i32 to index
    %c0_94 = arith.constant 0 : index
    %c0_95 = arith.constant 0 : index
    %203 = vector.load %arg5[%202, %c0_94, %c0_95] : memref<20x128x128xbf16, #tpu.memory_space<vmem>>, vector<1x128x128xbf16>
    %204 = vector.shape_cast %203 : vector<1x128x128xbf16> to vector<128x128xbf16>
    %cst_96 = arith.constant dense<0.000000e+00> : vector<16x128xf32>
    %205 = tpu.matmul %199, %204, %cst_96 {dimension_numbers = #tpu.dot_dimension_numbers<[1], [0], [0], [1], [0, 0, 1, 1], [], []>} : vector<16x128xbf16>, vector<128x128xbf16>, vector<16x128xf32> -> vector<16x128xf32>
    %206 = vector.extract_strided_slice %198 {offsets = [16, 0], sizes = [16, 128], strides = [1, 1]} : vector<32x128xbf16> to vector<16x128xbf16>
    %c2_i32_97 = arith.constant 2 : i32
    %207 = arith.muli %c2_i32_97, %c1_i32_56 : i32
    %c1_i32_98 = arith.constant 1 : i32
    %208 = arith.addi %207, %c1_i32_98 : i32
    %209 = arith.index_cast %208 : i32 to index
    %c0_99 = arith.constant 0 : index
    %c0_100 = arith.constant 0 : index
    %210 = vector.load %arg5[%209, %c0_99, %c0_100] : memref<20x128x128xbf16, #tpu.memory_space<vmem>>, vector<1x128x128xbf16>
    %211 = vector.shape_cast %210 : vector<1x128x128xbf16> to vector<128x128xbf16>
    %cst_101 = arith.constant dense<0.000000e+00> : vector<16x128xf32>
    %212 = tpu.matmul %206, %211, %cst_101 {dimension_numbers = #tpu.dot_dimension_numbers<[1], [0], [0], [1], [0, 0, 1, 1], [], []>} : vector<16x128xbf16>, vector<128x128xbf16>, vector<16x128xf32> -> vector<16x128xf32>
    %213 = arith.addf %205, %212 : vector<16x128xf32>
    %214 = arith.index_cast %c1_i32_56 : i32 to index
    %c0_102 = arith.constant 0 : index
    %c0_103 = arith.constant 0 : index
    %215 = vector.load %arg9[%214, %c0_102, %c0_103] : memref<10x1x128xf32, #tpu.memory_space<vmem>>, vector<1x1x128xf32>
    %216 = vector.shape_cast %215 : vector<1x1x128xf32> to vector<1x128xf32>
    %217 = vector.broadcast %216 : vector<1x128xf32> to vector<16x128xf32>
    %218 = arith.addf %213, %217 : vector<16x128xf32>
    %cst_104 = arith.constant 2.000000e+01 : f32
    %219 = vector.broadcast %cst_104 : f32 to vector<16x128xf32>
    %220 = arith.minimumf %218, %219 : vector<16x128xf32>
    %221 = math.exp %220 : vector<16x128xf32>
    %cst_105 = arith.constant 2.000000e+00 : f32
    %222 = vector.broadcast %cst_105 : f32 to vector<16x128xf32>
    %223 = arith.addf %221, %222 : vector<16x128xf32>
    %224 = arith.mulf %221, %223 : vector<16x128xf32>
    %225 = arith.mulf %218, %224 : vector<16x128xf32>
    %cst_106 = arith.constant 2.000000e+00 : f32
    %226 = vector.broadcast %cst_106 : f32 to vector<16x128xf32>
    %227 = arith.addf %224, %226 : vector<16x128xf32>
    %228 = tpu.reciprocal %227 {approx = true} : vector<16x128xf32> -> vector<16x128xf32>
    %229 = arith.mulf %225, %228 : vector<16x128xf32>
    %230 = arith.truncf %229 : vector<16x128xf32> to vector<16x128xbf16>
    %231 = arith.index_cast %c1_i32_56 : i32 to index
    %c0_107 = arith.constant 0 : index
    %c0_108 = arith.constant 0 : index
    %232 = vector.load %arg6[%231, %c0_107, %c0_108] : memref<10x128x32xbf16, #tpu.memory_space<vmem>>, vector<1x128x32xbf16>
    %233 = vector.shape_cast %232 : vector<1x128x32xbf16> to vector<128x32xbf16>
    %cst_109 = arith.constant dense<0.000000e+00> : vector<16x32xf32>
    %234 = tpu.matmul %230, %233, %cst_109 {dimension_numbers = #tpu.dot_dimension_numbers<[1], [0], [0], [1], [0, 0, 1, 1], [], []>} : vector<16x128xbf16>, vector<128x32xbf16>, vector<16x32xf32> -> vector<16x32xf32>
    %235 = arith.index_cast %c1_i32_56 : i32 to index
    %c0_110 = arith.constant 0 : index
    %c0_111 = arith.constant 0 : index
    %236 = vector.load %arg10[%235, %c0_110, %c0_111] : memref<10x1x32xf32, #tpu.memory_space<vmem>>, vector<1x1x32xf32>
    %237 = vector.shape_cast %236 : vector<1x1x32xf32> to vector<1x32xf32>
    %238 = vector.broadcast %237 : vector<1x32xf32> to vector<16x32xf32>
    %239 = arith.addf %234, %238 : vector<16x32xf32>
    %cst_112 = arith.constant -1.000000e+00 : f32
    %cst_113 = arith.constant 0.9921875 : f32
    %240 = vector.broadcast %cst_112 : f32 to vector<16x32xf32>
    %241 = arith.maximumf %240, %239 : vector<16x32xf32>
    %242 = vector.broadcast %cst_113 : f32 to vector<16x32xf32>
    %243 = arith.minimumf %242, %241 : vector<16x32xf32>
    %cst_114 = arith.constant 1.280000e+02 : f32
    %244 = vector.broadcast %cst_114 : f32 to vector<16x32xf32>
    %245 = arith.mulf %243, %244 : vector<16x32xf32>
    %246 = math.roundeven %245 : vector<16x32xf32>
    %cst_115 = arith.constant 7.812500e-03 : f32
    %247 = vector.broadcast %cst_115 : f32 to vector<16x32xf32>
    %248 = arith.mulf %246, %247 : vector<16x32xf32>
    %249 = arith.addf %126, %248 : vector<16x32xf32>
    %c2_i32_116 = arith.constant 2 : i32
    %250 = arith.index_cast %c2_i32_116 : i32 to index
    %c0_117 = arith.constant 0 : index
    %c0_118 = arith.constant 0 : index
    %251 = vector.load %arg2[%250, %c0_117, %c0_118] : memref<10x96x8xbf16, #tpu.memory_space<vmem>>, vector<1x96x8xbf16>
    %252 = vector.shape_cast %251 : vector<1x96x8xbf16> to vector<96x8xbf16>
    %253 = arith.index_cast %c2_i32_116 : i32 to index
    %c0_119 = arith.constant 0 : index
    %c0_120 = arith.constant 0 : index
    %254 = vector.load %arg3[%253, %c0_119, %c0_120] : memref<10x8x128xbf16, #tpu.memory_space<vmem>>, vector<1x8x128xbf16>
    %255 = vector.shape_cast %254 : vector<1x8x128xbf16> to vector<8x128xbf16>
    %cst_121 = arith.constant dense<0.000000e+00> : vector<96x128xf32>
    %256 = tpu.matmul %252, %255, %cst_121 {dimension_numbers = #tpu.dot_dimension_numbers<[1], [0], [0], [1], [0, 0, 1, 1], [], []>} : vector<96x8xbf16>, vector<8x128xbf16>, vector<96x128xf32> -> vector<96x128xf32>
    %257 = arith.index_cast %c2_i32_116 : i32 to index
    %c0_122 = arith.constant 0 : index
    %c0_123 = arith.constant 0 : index
    %258 = vector.load %arg7[%257, %c0_122, %c0_123] : memref<10x1x128xf32, #tpu.memory_space<vmem>>, vector<1x1x128xf32>
    %259 = vector.shape_cast %258 : vector<1x1x128xf32> to vector<1x128xf32>
    %260 = vector.broadcast %259 : vector<1x128xf32> to vector<96x128xf32>
    %261 = arith.addf %256, %260 : vector<96x128xf32>
    %cst_124 = arith.constant 2.000000e+01 : f32
    %262 = vector.broadcast %cst_124 : f32 to vector<96x128xf32>
    %263 = arith.minimumf %261, %262 : vector<96x128xf32>
    %264 = math.exp %263 : vector<96x128xf32>
    %cst_125 = arith.constant 2.000000e+00 : f32
    %265 = vector.broadcast %cst_125 : f32 to vector<96x128xf32>
    %266 = arith.addf %264, %265 : vector<96x128xf32>
    %267 = arith.mulf %264, %266 : vector<96x128xf32>
    %268 = arith.mulf %261, %267 : vector<96x128xf32>
    %cst_126 = arith.constant 2.000000e+00 : f32
    %269 = vector.broadcast %cst_126 : f32 to vector<96x128xf32>
    %270 = arith.addf %267, %269 : vector<96x128xf32>
    %271 = tpu.reciprocal %270 {approx = true} : vector<96x128xf32> -> vector<96x128xf32>
    %272 = arith.mulf %268, %271 : vector<96x128xf32>
    %273 = arith.truncf %272 : vector<96x128xf32> to vector<96x128xbf16>
    %274 = vector.extract_strided_slice %273 {offsets = [0, 0], sizes = [32, 128], strides = [1, 1]} : vector<96x128xbf16> to vector<32x128xbf16>
    %c4_i32_127 = arith.constant 4 : i32
    %275 = arith.muli %c4_i32_127, %c2_i32_116 : i32
    %c0_i32_128 = arith.constant 0 : i32
    %276 = arith.addi %275, %c0_i32_128 : i32
    %277 = arith.index_cast %276 : i32 to index
    %c0_129 = arith.constant 0 : index
    %c0_130 = arith.constant 0 : index
    %278 = vector.load %arg4[%277, %c0_129, %c0_130] : memref<40x128x128xbf16, #tpu.memory_space<vmem>>, vector<1x128x128xbf16>
    %279 = vector.shape_cast %278 : vector<1x128x128xbf16> to vector<128x128xbf16>
    %cst_131 = arith.constant dense<0.000000e+00> : vector<32x128xf32>
    %280 = tpu.matmul %274, %279, %cst_131 {dimension_numbers = #tpu.dot_dimension_numbers<[1], [0], [0], [1], [0, 0, 1, 1], [], []>} : vector<32x128xbf16>, vector<128x128xbf16>, vector<32x128xf32> -> vector<32x128xf32>
    %281 = vector.extract_strided_slice %273 {offsets = [16, 0], sizes = [32, 128], strides = [1, 1]} : vector<96x128xbf16> to vector<32x128xbf16>
    %c4_i32_132 = arith.constant 4 : i32
    %282 = arith.muli %c4_i32_132, %c2_i32_116 : i32
    %c1_i32_133 = arith.constant 1 : i32
    %283 = arith.addi %282, %c1_i32_133 : i32
    %284 = arith.index_cast %283 : i32 to index
    %c0_134 = arith.constant 0 : index
    %c0_135 = arith.constant 0 : index
    %285 = vector.load %arg4[%284, %c0_134, %c0_135] : memref<40x128x128xbf16, #tpu.memory_space<vmem>>, vector<1x128x128xbf16>
    %286 = vector.shape_cast %285 : vector<1x128x128xbf16> to vector<128x128xbf16>
    %cst_136 = arith.constant dense<0.000000e+00> : vector<32x128xf32>
    %287 = tpu.matmul %281, %286, %cst_136 {dimension_numbers = #tpu.dot_dimension_numbers<[1], [0], [0], [1], [0, 0, 1, 1], [], []>} : vector<32x128xbf16>, vector<128x128xbf16>, vector<32x128xf32> -> vector<32x128xf32>
    %288 = arith.addf %280, %287 : vector<32x128xf32>
    %289 = vector.extract_strided_slice %273 {offsets = [48, 0], sizes = [32, 128], strides = [1, 1]} : vector<96x128xbf16> to vector<32x128xbf16>
    %c4_i32_137 = arith.constant 4 : i32
    %290 = arith.muli %c4_i32_137, %c2_i32_116 : i32
    %c2_i32_138 = arith.constant 2 : i32
    %291 = arith.addi %290, %c2_i32_138 : i32
    %292 = arith.index_cast %291 : i32 to index
    %c0_139 = arith.constant 0 : index
    %c0_140 = arith.constant 0 : index
    %293 = vector.load %arg4[%292, %c0_139, %c0_140] : memref<40x128x128xbf16, #tpu.memory_space<vmem>>, vector<1x128x128xbf16>
    %294 = vector.shape_cast %293 : vector<1x128x128xbf16> to vector<128x128xbf16>
    %cst_141 = arith.constant dense<0.000000e+00> : vector<32x128xf32>
    %295 = tpu.matmul %289, %294, %cst_141 {dimension_numbers = #tpu.dot_dimension_numbers<[1], [0], [0], [1], [0, 0, 1, 1], [], []>} : vector<32x128xbf16>, vector<128x128xbf16>, vector<32x128xf32> -> vector<32x128xf32>
    %296 = arith.addf %288, %295 : vector<32x128xf32>
    %297 = vector.extract_strided_slice %273 {offsets = [64, 0], sizes = [32, 128], strides = [1, 1]} : vector<96x128xbf16> to vector<32x128xbf16>
    %c4_i32_142 = arith.constant 4 : i32
    %298 = arith.muli %c4_i32_142, %c2_i32_116 : i32
    %c3_i32_143 = arith.constant 3 : i32
    %299 = arith.addi %298, %c3_i32_143 : i32
    %300 = arith.index_cast %299 : i32 to index
    %c0_144 = arith.constant 0 : index
    %c0_145 = arith.constant 0 : index
    %301 = vector.load %arg4[%300, %c0_144, %c0_145] : memref<40x128x128xbf16, #tpu.memory_space<vmem>>, vector<1x128x128xbf16>
    %302 = vector.shape_cast %301 : vector<1x128x128xbf16> to vector<128x128xbf16>
    %cst_146 = arith.constant dense<0.000000e+00> : vector<32x128xf32>
    %303 = tpu.matmul %297, %302, %cst_146 {dimension_numbers = #tpu.dot_dimension_numbers<[1], [0], [0], [1], [0, 0, 1, 1], [], []>} : vector<32x128xbf16>, vector<128x128xbf16>, vector<32x128xf32> -> vector<32x128xf32>
    %304 = arith.addf %296, %303 : vector<32x128xf32>
    %305 = arith.index_cast %c2_i32_116 : i32 to index
    %c0_147 = arith.constant 0 : index
    %c0_148 = arith.constant 0 : index
    %306 = vector.load %arg8[%305, %c0_147, %c0_148] : memref<10x1x128xf32, #tpu.memory_space<vmem>>, vector<1x1x128xf32>
    %307 = vector.shape_cast %306 : vector<1x1x128xf32> to vector<1x128xf32>
    %308 = vector.broadcast %307 : vector<1x128xf32> to vector<32x128xf32>
    %309 = arith.addf %304, %308 : vector<32x128xf32>
    %cst_149 = arith.constant 2.000000e+01 : f32
    %310 = vector.broadcast %cst_149 : f32 to vector<32x128xf32>
    %311 = arith.minimumf %309, %310 : vector<32x128xf32>
    %312 = math.exp %311 : vector<32x128xf32>
    %cst_150 = arith.constant 2.000000e+00 : f32
    %313 = vector.broadcast %cst_150 : f32 to vector<32x128xf32>
    %314 = arith.addf %312, %313 : vector<32x128xf32>
    %315 = arith.mulf %312, %314 : vector<32x128xf32>
    %316 = arith.mulf %309, %315 : vector<32x128xf32>
    %cst_151 = arith.constant 2.000000e+00 : f32
    %317 = vector.broadcast %cst_151 : f32 to vector<32x128xf32>
    %318 = arith.addf %315, %317 : vector<32x128xf32>
    %319 = tpu.reciprocal %318 {approx = true} : vector<32x128xf32> -> vector<32x128xf32>
    %320 = arith.mulf %316, %319 : vector<32x128xf32>
    %321 = arith.truncf %320 : vector<32x128xf32> to vector<32x128xbf16>
    %322 = vector.extract_strided_slice %321 {offsets = [0, 0], sizes = [16, 128], strides = [1, 1]} : vector<32x128xbf16> to vector<16x128xbf16>
    %c2_i32_152 = arith.constant 2 : i32
    %323 = arith.muli %c2_i32_152, %c2_i32_116 : i32
    %c0_i32_153 = arith.constant 0 : i32
    %324 = arith.addi %323, %c0_i32_153 : i32
    %325 = arith.index_cast %324 : i32 to index
    %c0_154 = arith.constant 0 : index
    %c0_155 = arith.constant 0 : index
    %326 = vector.load %arg5[%325, %c0_154, %c0_155] : memref<20x128x128xbf16, #tpu.memory_space<vmem>>, vector<1x128x128xbf16>
    %327 = vector.shape_cast %326 : vector<1x128x128xbf16> to vector<128x128xbf16>
    %cst_156 = arith.constant dense<0.000000e+00> : vector<16x128xf32>
    %328 = tpu.matmul %322, %327, %cst_156 {dimension_numbers = #tpu.dot_dimension_numbers<[1], [0], [0], [1], [0, 0, 1, 1], [], []>} : vector<16x128xbf16>, vector<128x128xbf16>, vector<16x128xf32> -> vector<16x128xf32>
    %329 = vector.extract_strided_slice %321 {offsets = [16, 0], sizes = [16, 128], strides = [1, 1]} : vector<32x128xbf16> to vector<16x128xbf16>
    %c2_i32_157 = arith.constant 2 : i32
    %330 = arith.muli %c2_i32_157, %c2_i32_116 : i32
    %c1_i32_158 = arith.constant 1 : i32
    %331 = arith.addi %330, %c1_i32_158 : i32
    %332 = arith.index_cast %331 : i32 to index
    %c0_159 = arith.constant 0 : index
    %c0_160 = arith.constant 0 : index
    %333 = vector.load %arg5[%332, %c0_159, %c0_160] : memref<20x128x128xbf16, #tpu.memory_space<vmem>>, vector<1x128x128xbf16>
    %334 = vector.shape_cast %333 : vector<1x128x128xbf16> to vector<128x128xbf16>
    %cst_161 = arith.constant dense<0.000000e+00> : vector<16x128xf32>
    %335 = tpu.matmul %329, %334, %cst_161 {dimension_numbers = #tpu.dot_dimension_numbers<[1], [0], [0], [1], [0, 0, 1, 1], [], []>} : vector<16x128xbf16>, vector<128x128xbf16>, vector<16x128xf32> -> vector<16x128xf32>
    %336 = arith.addf %328, %335 : vector<16x128xf32>
    %337 = arith.index_cast %c2_i32_116 : i32 to index
    %c0_162 = arith.constant 0 : index
    %c0_163 = arith.constant 0 : index
    %338 = vector.load %arg9[%337, %c0_162, %c0_163] : memref<10x1x128xf32, #tpu.memory_space<vmem>>, vector<1x1x128xf32>
    %339 = vector.shape_cast %338 : vector<1x1x128xf32> to vector<1x128xf32>
    %340 = vector.broadcast %339 : vector<1x128xf32> to vector<16x128xf32>
    %341 = arith.addf %336, %340 : vector<16x128xf32>
    %cst_164 = arith.constant 2.000000e+01 : f32
    %342 = vector.broadcast %cst_164 : f32 to vector<16x128xf32>
    %343 = arith.minimumf %341, %342 : vector<16x128xf32>
    %344 = math.exp %343 : vector<16x128xf32>
    %cst_165 = arith.constant 2.000000e+00 : f32
    %345 = vector.broadcast %cst_165 : f32 to vector<16x128xf32>
    %346 = arith.addf %344, %345 : vector<16x128xf32>
    %347 = arith.mulf %344, %346 : vector<16x128xf32>
    %348 = arith.mulf %341, %347 : vector<16x128xf32>
    %cst_166 = arith.constant 2.000000e+00 : f32
    %349 = vector.broadcast %cst_166 : f32 to vector<16x128xf32>
    %350 = arith.addf %347, %349 : vector<16x128xf32>
    %351 = tpu.reciprocal %350 {approx = true} : vector<16x128xf32> -> vector<16x128xf32>
    %352 = arith.mulf %348, %351 : vector<16x128xf32>
    %353 = arith.truncf %352 : vector<16x128xf32> to vector<16x128xbf16>
    %354 = arith.index_cast %c2_i32_116 : i32 to index
    %c0_167 = arith.constant 0 : index
    %c0_168 = arith.constant 0 : index
    %355 = vector.load %arg6[%354, %c0_167, %c0_168] : memref<10x128x32xbf16, #tpu.memory_space<vmem>>, vector<1x128x32xbf16>
    %356 = vector.shape_cast %355 : vector<1x128x32xbf16> to vector<128x32xbf16>
    %cst_169 = arith.constant dense<0.000000e+00> : vector<16x32xf32>
    %357 = tpu.matmul %353, %356, %cst_169 {dimension_numbers = #tpu.dot_dimension_numbers<[1], [0], [0], [1], [0, 0, 1, 1], [], []>} : vector<16x128xbf16>, vector<128x32xbf16>, vector<16x32xf32> -> vector<16x32xf32>
    %358 = arith.index_cast %c2_i32_116 : i32 to index
    %c0_170 = arith.constant 0 : index
    %c0_171 = arith.constant 0 : index
    %359 = vector.load %arg10[%358, %c0_170, %c0_171] : memref<10x1x32xf32, #tpu.memory_space<vmem>>, vector<1x1x32xf32>
    %360 = vector.shape_cast %359 : vector<1x1x32xf32> to vector<1x32xf32>
    %361 = vector.broadcast %360 : vector<1x32xf32> to vector<16x32xf32>
    %362 = arith.addf %357, %361 : vector<16x32xf32>
    %cst_172 = arith.constant -1.000000e+00 : f32
    %cst_173 = arith.constant 0.9921875 : f32
    %363 = vector.broadcast %cst_172 : f32 to vector<16x32xf32>
    %364 = arith.maximumf %363, %362 : vector<16x32xf32>
    %365 = vector.broadcast %cst_173 : f32 to vector<16x32xf32>
    %366 = arith.minimumf %365, %364 : vector<16x32xf32>
    %cst_174 = arith.constant 1.280000e+02 : f32
    %367 = vector.broadcast %cst_174 : f32 to vector<16x32xf32>
    %368 = arith.mulf %366, %367 : vector<16x32xf32>
    %369 = math.roundeven %368 : vector<16x32xf32>
    %cst_175 = arith.constant 7.812500e-03 : f32
    %370 = vector.broadcast %cst_175 : f32 to vector<16x32xf32>
    %371 = arith.mulf %369, %370 : vector<16x32xf32>
    %372 = arith.addf %249, %371 : vector<16x32xf32>
    %c3_i32_176 = arith.constant 3 : i32
    %373 = arith.index_cast %c3_i32_176 : i32 to index
    %c0_177 = arith.constant 0 : index
    %c0_178 = arith.constant 0 : index
    %374 = vector.load %arg2[%373, %c0_177, %c0_178] : memref<10x96x8xbf16, #tpu.memory_space<vmem>>, vector<1x96x8xbf16>
    %375 = vector.shape_cast %374 : vector<1x96x8xbf16> to vector<96x8xbf16>
    %376 = arith.index_cast %c3_i32_176 : i32 to index
    %c0_179 = arith.constant 0 : index
    %c0_180 = arith.constant 0 : index
    %377 = vector.load %arg3[%376, %c0_179, %c0_180] : memref<10x8x128xbf16, #tpu.memory_space<vmem>>, vector<1x8x128xbf16>
    %378 = vector.shape_cast %377 : vector<1x8x128xbf16> to vector<8x128xbf16>
    %cst_181 = arith.constant dense<0.000000e+00> : vector<96x128xf32>
    %379 = tpu.matmul %375, %378, %cst_181 {dimension_numbers = #tpu.dot_dimension_numbers<[1], [0], [0], [1], [0, 0, 1, 1], [], []>} : vector<96x8xbf16>, vector<8x128xbf16>, vector<96x128xf32> -> vector<96x128xf32>
    %380 = arith.index_cast %c3_i32_176 : i32 to index
    %c0_182 = arith.constant 0 : index
    %c0_183 = arith.constant 0 : index
    %381 = vector.load %arg7[%380, %c0_182, %c0_183] : memref<10x1x128xf32, #tpu.memory_space<vmem>>, vector<1x1x128xf32>
    %382 = vector.shape_cast %381 : vector<1x1x128xf32> to vector<1x128xf32>
    %383 = vector.broadcast %382 : vector<1x128xf32> to vector<96x128xf32>
    %384 = arith.addf %379, %383 : vector<96x128xf32>
    %cst_184 = arith.constant 2.000000e+01 : f32
    %385 = vector.broadcast %cst_184 : f32 to vector<96x128xf32>
    %386 = arith.minimumf %384, %385 : vector<96x128xf32>
    %387 = math.exp %386 : vector<96x128xf32>
    %cst_185 = arith.constant 2.000000e+00 : f32
    %388 = vector.broadcast %cst_185 : f32 to vector<96x128xf32>
    %389 = arith.addf %387, %388 : vector<96x128xf32>
    %390 = arith.mulf %387, %389 : vector<96x128xf32>
    %391 = arith.mulf %384, %390 : vector<96x128xf32>
    %cst_186 = arith.constant 2.000000e+00 : f32
    %392 = vector.broadcast %cst_186 : f32 to vector<96x128xf32>
    %393 = arith.addf %390, %392 : vector<96x128xf32>
    %394 = tpu.reciprocal %393 {approx = true} : vector<96x128xf32> -> vector<96x128xf32>
    %395 = arith.mulf %391, %394 : vector<96x128xf32>
    %396 = arith.truncf %395 : vector<96x128xf32> to vector<96x128xbf16>
    %397 = vector.extract_strided_slice %396 {offsets = [0, 0], sizes = [32, 128], strides = [1, 1]} : vector<96x128xbf16> to vector<32x128xbf16>
    %c4_i32_187 = arith.constant 4 : i32
    %398 = arith.muli %c4_i32_187, %c3_i32_176 : i32
    %c0_i32_188 = arith.constant 0 : i32
    %399 = arith.addi %398, %c0_i32_188 : i32
    %400 = arith.index_cast %399 : i32 to index
    %c0_189 = arith.constant 0 : index
    %c0_190 = arith.constant 0 : index
    %401 = vector.load %arg4[%400, %c0_189, %c0_190] : memref<40x128x128xbf16, #tpu.memory_space<vmem>>, vector<1x128x128xbf16>
    %402 = vector.shape_cast %401 : vector<1x128x128xbf16> to vector<128x128xbf16>
    %cst_191 = arith.constant dense<0.000000e+00> : vector<32x128xf32>
    %403 = tpu.matmul %397, %402, %cst_191 {dimension_numbers = #tpu.dot_dimension_numbers<[1], [0], [0], [1], [0, 0, 1, 1], [], []>} : vector<32x128xbf16>, vector<128x128xbf16>, vector<32x128xf32> -> vector<32x128xf32>
    %404 = vector.extract_strided_slice %396 {offsets = [16, 0], sizes = [32, 128], strides = [1, 1]} : vector<96x128xbf16> to vector<32x128xbf16>
    %c4_i32_192 = arith.constant 4 : i32
    %405 = arith.muli %c4_i32_192, %c3_i32_176 : i32
    %c1_i32_193 = arith.constant 1 : i32
    %406 = arith.addi %405, %c1_i32_193 : i32
    %407 = arith.index_cast %406 : i32 to index
    %c0_194 = arith.constant 0 : index
    %c0_195 = arith.constant 0 : index
    %408 = vector.load %arg4[%407, %c0_194, %c0_195] : memref<40x128x128xbf16, #tpu.memory_space<vmem>>, vector<1x128x128xbf16>
    %409 = vector.shape_cast %408 : vector<1x128x128xbf16> to vector<128x128xbf16>
    %cst_196 = arith.constant dense<0.000000e+00> : vector<32x128xf32>
    %410 = tpu.matmul %404, %409, %cst_196 {dimension_numbers = #tpu.dot_dimension_numbers<[1], [0], [0], [1], [0, 0, 1, 1], [], []>} : vector<32x128xbf16>, vector<128x128xbf16>, vector<32x128xf32> -> vector<32x128xf32>
    %411 = arith.addf %403, %410 : vector<32x128xf32>
    %412 = vector.extract_strided_slice %396 {offsets = [48, 0], sizes = [32, 128], strides = [1, 1]} : vector<96x128xbf16> to vector<32x128xbf16>
    %c4_i32_197 = arith.constant 4 : i32
    %413 = arith.muli %c4_i32_197, %c3_i32_176 : i32
    %c2_i32_198 = arith.constant 2 : i32
    %414 = arith.addi %413, %c2_i32_198 : i32
    %415 = arith.index_cast %414 : i32 to index
    %c0_199 = arith.constant 0 : index
    %c0_200 = arith.constant 0 : index
    %416 = vector.load %arg4[%415, %c0_199, %c0_200] : memref<40x128x128xbf16, #tpu.memory_space<vmem>>, vector<1x128x128xbf16>
    %417 = vector.shape_cast %416 : vector<1x128x128xbf16> to vector<128x128xbf16>
    %cst_201 = arith.constant dense<0.000000e+00> : vector<32x128xf32>
    %418 = tpu.matmul %412, %417, %cst_201 {dimension_numbers = #tpu.dot_dimension_numbers<[1], [0], [0], [1], [0, 0, 1, 1], [], []>} : vector<32x128xbf16>, vector<128x128xbf16>, vector<32x128xf32> -> vector<32x128xf32>
    %419 = arith.addf %411, %418 : vector<32x128xf32>
    %420 = vector.extract_strided_slice %396 {offsets = [64, 0], sizes = [32, 128], strides = [1, 1]} : vector<96x128xbf16> to vector<32x128xbf16>
    %c4_i32_202 = arith.constant 4 : i32
    %421 = arith.muli %c4_i32_202, %c3_i32_176 : i32
    %c3_i32_203 = arith.constant 3 : i32
    %422 = arith.addi %421, %c3_i32_203 : i32
    %423 = arith.index_cast %422 : i32 to index
    %c0_204 = arith.constant 0 : index
    %c0_205 = arith.constant 0 : index
    %424 = vector.load %arg4[%423, %c0_204, %c0_205] : memref<40x128x128xbf16, #tpu.memory_space<vmem>>, vector<1x128x128xbf16>
    %425 = vector.shape_cast %424 : vector<1x128x128xbf16> to vector<128x128xbf16>
    %cst_206 = arith.constant dense<0.000000e+00> : vector<32x128xf32>
    %426 = tpu.matmul %420, %425, %cst_206 {dimension_numbers = #tpu.dot_dimension_numbers<[1], [0], [0], [1], [0, 0, 1, 1], [], []>} : vector<32x128xbf16>, vector<128x128xbf16>, vector<32x128xf32> -> vector<32x128xf32>
    %427 = arith.addf %419, %426 : vector<32x128xf32>
    %428 = arith.index_cast %c3_i32_176 : i32 to index
    %c0_207 = arith.constant 0 : index
    %c0_208 = arith.constant 0 : index
    %429 = vector.load %arg8[%428, %c0_207, %c0_208] : memref<10x1x128xf32, #tpu.memory_space<vmem>>, vector<1x1x128xf32>
    %430 = vector.shape_cast %429 : vector<1x1x128xf32> to vector<1x128xf32>
    %431 = vector.broadcast %430 : vector<1x128xf32> to vector<32x128xf32>
    %432 = arith.addf %427, %431 : vector<32x128xf32>
    %cst_209 = arith.constant 2.000000e+01 : f32
    %433 = vector.broadcast %cst_209 : f32 to vector<32x128xf32>
    %434 = arith.minimumf %432, %433 : vector<32x128xf32>
    %435 = math.exp %434 : vector<32x128xf32>
    %cst_210 = arith.constant 2.000000e+00 : f32
    %436 = vector.broadcast %cst_210 : f32 to vector<32x128xf32>
    %437 = arith.addf %435, %436 : vector<32x128xf32>
    %438 = arith.mulf %435, %437 : vector<32x128xf32>
    %439 = arith.mulf %432, %438 : vector<32x128xf32>
    %cst_211 = arith.constant 2.000000e+00 : f32
    %440 = vector.broadcast %cst_211 : f32 to vector<32x128xf32>
    %441 = arith.addf %438, %440 : vector<32x128xf32>
    %442 = tpu.reciprocal %441 {approx = true} : vector<32x128xf32> -> vector<32x128xf32>
    %443 = arith.mulf %439, %442 : vector<32x128xf32>
    %444 = arith.truncf %443 : vector<32x128xf32> to vector<32x128xbf16>
    %445 = vector.extract_strided_slice %444 {offsets = [0, 0], sizes = [16, 128], strides = [1, 1]} : vector<32x128xbf16> to vector<16x128xbf16>
    %c2_i32_212 = arith.constant 2 : i32
    %446 = arith.muli %c2_i32_212, %c3_i32_176 : i32
    %c0_i32_213 = arith.constant 0 : i32
    %447 = arith.addi %446, %c0_i32_213 : i32
    %448 = arith.index_cast %447 : i32 to index
    %c0_214 = arith.constant 0 : index
    %c0_215 = arith.constant 0 : index
    %449 = vector.load %arg5[%448, %c0_214, %c0_215] : memref<20x128x128xbf16, #tpu.memory_space<vmem>>, vector<1x128x128xbf16>
    %450 = vector.shape_cast %449 : vector<1x128x128xbf16> to vector<128x128xbf16>
    %cst_216 = arith.constant dense<0.000000e+00> : vector<16x128xf32>
    %451 = tpu.matmul %445, %450, %cst_216 {dimension_numbers = #tpu.dot_dimension_numbers<[1], [0], [0], [1], [0, 0, 1, 1], [], []>} : vector<16x128xbf16>, vector<128x128xbf16>, vector<16x128xf32> -> vector<16x128xf32>
    %452 = vector.extract_strided_slice %444 {offsets = [16, 0], sizes = [16, 128], strides = [1, 1]} : vector<32x128xbf16> to vector<16x128xbf16>
    %c2_i32_217 = arith.constant 2 : i32
    %453 = arith.muli %c2_i32_217, %c3_i32_176 : i32
    %c1_i32_218 = arith.constant 1 : i32
    %454 = arith.addi %453, %c1_i32_218 : i32
    %455 = arith.index_cast %454 : i32 to index
    %c0_219 = arith.constant 0 : index
    %c0_220 = arith.constant 0 : index
    %456 = vector.load %arg5[%455, %c0_219, %c0_220] : memref<20x128x128xbf16, #tpu.memory_space<vmem>>, vector<1x128x128xbf16>
    %457 = vector.shape_cast %456 : vector<1x128x128xbf16> to vector<128x128xbf16>
    %cst_221 = arith.constant dense<0.000000e+00> : vector<16x128xf32>
    %458 = tpu.matmul %452, %457, %cst_221 {dimension_numbers = #tpu.dot_dimension_numbers<[1], [0], [0], [1], [0, 0, 1, 1], [], []>} : vector<16x128xbf16>, vector<128x128xbf16>, vector<16x128xf32> -> vector<16x128xf32>
    %459 = arith.addf %451, %458 : vector<16x128xf32>
    %460 = arith.index_cast %c3_i32_176 : i32 to index
    %c0_222 = arith.constant 0 : index
    %c0_223 = arith.constant 0 : index
    %461 = vector.load %arg9[%460, %c0_222, %c0_223] : memref<10x1x128xf32, #tpu.memory_space<vmem>>, vector<1x1x128xf32>
    %462 = vector.shape_cast %461 : vector<1x1x128xf32> to vector<1x128xf32>
    %463 = vector.broadcast %462 : vector<1x128xf32> to vector<16x128xf32>
    %464 = arith.addf %459, %463 : vector<16x128xf32>
    %cst_224 = arith.constant 2.000000e+01 : f32
    %465 = vector.broadcast %cst_224 : f32 to vector<16x128xf32>
    %466 = arith.minimumf %464, %465 : vector<16x128xf32>
    %467 = math.exp %466 : vector<16x128xf32>
    %cst_225 = arith.constant 2.000000e+00 : f32
    %468 = vector.broadcast %cst_225 : f32 to vector<16x128xf32>
    %469 = arith.addf %467, %468 : vector<16x128xf32>
    %470 = arith.mulf %467, %469 : vector<16x128xf32>
    %471 = arith.mulf %464, %470 : vector<16x128xf32>
    %cst_226 = arith.constant 2.000000e+00 : f32
    %472 = vector.broadcast %cst_226 : f32 to vector<16x128xf32>
    %473 = arith.addf %470, %472 : vector<16x128xf32>
    %474 = tpu.reciprocal %473 {approx = true} : vector<16x128xf32> -> vector<16x128xf32>
    %475 = arith.mulf %471, %474 : vector<16x128xf32>
    %476 = arith.truncf %475 : vector<16x128xf32> to vector<16x128xbf16>
    %477 = arith.index_cast %c3_i32_176 : i32 to index
    %c0_227 = arith.constant 0 : index
    %c0_228 = arith.constant 0 : index
    %478 = vector.load %arg6[%477, %c0_227, %c0_228] : memref<10x128x32xbf16, #tpu.memory_space<vmem>>, vector<1x128x32xbf16>
    %479 = vector.shape_cast %478 : vector<1x128x32xbf16> to vector<128x32xbf16>
    %cst_229 = arith.constant dense<0.000000e+00> : vector<16x32xf32>
    %480 = tpu.matmul %476, %479, %cst_229 {dimension_numbers = #tpu.dot_dimension_numbers<[1], [0], [0], [1], [0, 0, 1, 1], [], []>} : vector<16x128xbf16>, vector<128x32xbf16>, vector<16x32xf32> -> vector<16x32xf32>
    %481 = arith.index_cast %c3_i32_176 : i32 to index
    %c0_230 = arith.constant 0 : index
    %c0_231 = arith.constant 0 : index
    %482 = vector.load %arg10[%481, %c0_230, %c0_231] : memref<10x1x32xf32, #tpu.memory_space<vmem>>, vector<1x1x32xf32>
    %483 = vector.shape_cast %482 : vector<1x1x32xf32> to vector<1x32xf32>
    %484 = vector.broadcast %483 : vector<1x32xf32> to vector<16x32xf32>
    %485 = arith.addf %480, %484 : vector<16x32xf32>
    %cst_232 = arith.constant -1.000000e+00 : f32
    %cst_233 = arith.constant 0.9921875 : f32
    %486 = vector.broadcast %cst_232 : f32 to vector<16x32xf32>
    %487 = arith.maximumf %486, %485 : vector<16x32xf32>
    %488 = vector.broadcast %cst_233 : f32 to vector<16x32xf32>
    %489 = arith.minimumf %488, %487 : vector<16x32xf32>
    %cst_234 = arith.constant 1.280000e+02 : f32
    %490 = vector.broadcast %cst_234 : f32 to vector<16x32xf32>
    %491 = arith.mulf %489, %490 : vector<16x32xf32>
    %492 = math.roundeven %491 : vector<16x32xf32>
    %cst_235 = arith.constant 7.812500e-03 : f32
    %493 = vector.broadcast %cst_235 : f32 to vector<16x32xf32>
    %494 = arith.mulf %492, %493 : vector<16x32xf32>
    %495 = arith.addf %372, %494 : vector<16x32xf32>
    %c4_i32_236 = arith.constant 4 : i32
    %496 = arith.index_cast %c4_i32_236 : i32 to index
    %c0_237 = arith.constant 0 : index
    %c0_238 = arith.constant 0 : index
    %497 = vector.load %arg2[%496, %c0_237, %c0_238] : memref<10x96x8xbf16, #tpu.memory_space<vmem>>, vector<1x96x8xbf16>
    %498 = vector.shape_cast %497 : vector<1x96x8xbf16> to vector<96x8xbf16>
    %499 = arith.index_cast %c4_i32_236 : i32 to index
    %c0_239 = arith.constant 0 : index
    %c0_240 = arith.constant 0 : index
    %500 = vector.load %arg3[%499, %c0_239, %c0_240] : memref<10x8x128xbf16, #tpu.memory_space<vmem>>, vector<1x8x128xbf16>
    %501 = vector.shape_cast %500 : vector<1x8x128xbf16> to vector<8x128xbf16>
    %cst_241 = arith.constant dense<0.000000e+00> : vector<96x128xf32>
    %502 = tpu.matmul %498, %501, %cst_241 {dimension_numbers = #tpu.dot_dimension_numbers<[1], [0], [0], [1], [0, 0, 1, 1], [], []>} : vector<96x8xbf16>, vector<8x128xbf16>, vector<96x128xf32> -> vector<96x128xf32>
    %503 = arith.index_cast %c4_i32_236 : i32 to index
    %c0_242 = arith.constant 0 : index
    %c0_243 = arith.constant 0 : index
    %504 = vector.load %arg7[%503, %c0_242, %c0_243] : memref<10x1x128xf32, #tpu.memory_space<vmem>>, vector<1x1x128xf32>
    %505 = vector.shape_cast %504 : vector<1x1x128xf32> to vector<1x128xf32>
    %506 = vector.broadcast %505 : vector<1x128xf32> to vector<96x128xf32>
    %507 = arith.addf %502, %506 : vector<96x128xf32>
    %cst_244 = arith.constant 2.000000e+01 : f32
    %508 = vector.broadcast %cst_244 : f32 to vector<96x128xf32>
    %509 = arith.minimumf %507, %508 : vector<96x128xf32>
    %510 = math.exp %509 : vector<96x128xf32>
    %cst_245 = arith.constant 2.000000e+00 : f32
    %511 = vector.broadcast %cst_245 : f32 to vector<96x128xf32>
    %512 = arith.addf %510, %511 : vector<96x128xf32>
    %513 = arith.mulf %510, %512 : vector<96x128xf32>
    %514 = arith.mulf %507, %513 : vector<96x128xf32>
    %cst_246 = arith.constant 2.000000e+00 : f32
    %515 = vector.broadcast %cst_246 : f32 to vector<96x128xf32>
    %516 = arith.addf %513, %515 : vector<96x128xf32>
    %517 = tpu.reciprocal %516 {approx = true} : vector<96x128xf32> -> vector<96x128xf32>
    %518 = arith.mulf %514, %517 : vector<96x128xf32>
    %519 = arith.truncf %518 : vector<96x128xf32> to vector<96x128xbf16>
    %520 = vector.extract_strided_slice %519 {offsets = [0, 0], sizes = [32, 128], strides = [1, 1]} : vector<96x128xbf16> to vector<32x128xbf16>
    %c4_i32_247 = arith.constant 4 : i32
    %521 = arith.muli %c4_i32_247, %c4_i32_236 : i32
    %c0_i32_248 = arith.constant 0 : i32
    %522 = arith.addi %521, %c0_i32_248 : i32
    %523 = arith.index_cast %522 : i32 to index
    %c0_249 = arith.constant 0 : index
    %c0_250 = arith.constant 0 : index
    %524 = vector.load %arg4[%523, %c0_249, %c0_250] : memref<40x128x128xbf16, #tpu.memory_space<vmem>>, vector<1x128x128xbf16>
    %525 = vector.shape_cast %524 : vector<1x128x128xbf16> to vector<128x128xbf16>
    %cst_251 = arith.constant dense<0.000000e+00> : vector<32x128xf32>
    %526 = tpu.matmul %520, %525, %cst_251 {dimension_numbers = #tpu.dot_dimension_numbers<[1], [0], [0], [1], [0, 0, 1, 1], [], []>} : vector<32x128xbf16>, vector<128x128xbf16>, vector<32x128xf32> -> vector<32x128xf32>
    %527 = vector.extract_strided_slice %519 {offsets = [16, 0], sizes = [32, 128], strides = [1, 1]} : vector<96x128xbf16> to vector<32x128xbf16>
    %c4_i32_252 = arith.constant 4 : i32
    %528 = arith.muli %c4_i32_252, %c4_i32_236 : i32
    %c1_i32_253 = arith.constant 1 : i32
    %529 = arith.addi %528, %c1_i32_253 : i32
    %530 = arith.index_cast %529 : i32 to index
    %c0_254 = arith.constant 0 : index
    %c0_255 = arith.constant 0 : index
    %531 = vector.load %arg4[%530, %c0_254, %c0_255] : memref<40x128x128xbf16, #tpu.memory_space<vmem>>, vector<1x128x128xbf16>
    %532 = vector.shape_cast %531 : vector<1x128x128xbf16> to vector<128x128xbf16>
    %cst_256 = arith.constant dense<0.000000e+00> : vector<32x128xf32>
    %533 = tpu.matmul %527, %532, %cst_256 {dimension_numbers = #tpu.dot_dimension_numbers<[1], [0], [0], [1], [0, 0, 1, 1], [], []>} : vector<32x128xbf16>, vector<128x128xbf16>, vector<32x128xf32> -> vector<32x128xf32>
    %534 = arith.addf %526, %533 : vector<32x128xf32>
    %535 = vector.extract_strided_slice %519 {offsets = [48, 0], sizes = [32, 128], strides = [1, 1]} : vector<96x128xbf16> to vector<32x128xbf16>
    %c4_i32_257 = arith.constant 4 : i32
    %536 = arith.muli %c4_i32_257, %c4_i32_236 : i32
    %c2_i32_258 = arith.constant 2 : i32
    %537 = arith.addi %536, %c2_i32_258 : i32
    %538 = arith.index_cast %537 : i32 to index
    %c0_259 = arith.constant 0 : index
    %c0_260 = arith.constant 0 : index
    %539 = vector.load %arg4[%538, %c0_259, %c0_260] : memref<40x128x128xbf16, #tpu.memory_space<vmem>>, vector<1x128x128xbf16>
    %540 = vector.shape_cast %539 : vector<1x128x128xbf16> to vector<128x128xbf16>
    %cst_261 = arith.constant dense<0.000000e+00> : vector<32x128xf32>
    %541 = tpu.matmul %535, %540, %cst_261 {dimension_numbers = #tpu.dot_dimension_numbers<[1], [0], [0], [1], [0, 0, 1, 1], [], []>} : vector<32x128xbf16>, vector<128x128xbf16>, vector<32x128xf32> -> vector<32x128xf32>
    %542 = arith.addf %534, %541 : vector<32x128xf32>
    %543 = vector.extract_strided_slice %519 {offsets = [64, 0], sizes = [32, 128], strides = [1, 1]} : vector<96x128xbf16> to vector<32x128xbf16>
    %c4_i32_262 = arith.constant 4 : i32
    %544 = arith.muli %c4_i32_262, %c4_i32_236 : i32
    %c3_i32_263 = arith.constant 3 : i32
    %545 = arith.addi %544, %c3_i32_263 : i32
    %546 = arith.index_cast %545 : i32 to index
    %c0_264 = arith.constant 0 : index
    %c0_265 = arith.constant 0 : index
    %547 = vector.load %arg4[%546, %c0_264, %c0_265] : memref<40x128x128xbf16, #tpu.memory_space<vmem>>, vector<1x128x128xbf16>
    %548 = vector.shape_cast %547 : vector<1x128x128xbf16> to vector<128x128xbf16>
    %cst_266 = arith.constant dense<0.000000e+00> : vector<32x128xf32>
    %549 = tpu.matmul %543, %548, %cst_266 {dimension_numbers = #tpu.dot_dimension_numbers<[1], [0], [0], [1], [0, 0, 1, 1], [], []>} : vector<32x128xbf16>, vector<128x128xbf16>, vector<32x128xf32> -> vector<32x128xf32>
    %550 = arith.addf %542, %549 : vector<32x128xf32>
    %551 = arith.index_cast %c4_i32_236 : i32 to index
    %c0_267 = arith.constant 0 : index
    %c0_268 = arith.constant 0 : index
    %552 = vector.load %arg8[%551, %c0_267, %c0_268] : memref<10x1x128xf32, #tpu.memory_space<vmem>>, vector<1x1x128xf32>
    %553 = vector.shape_cast %552 : vector<1x1x128xf32> to vector<1x128xf32>
    %554 = vector.broadcast %553 : vector<1x128xf32> to vector<32x128xf32>
    %555 = arith.addf %550, %554 : vector<32x128xf32>
    %cst_269 = arith.constant 2.000000e+01 : f32
    %556 = vector.broadcast %cst_269 : f32 to vector<32x128xf32>
    %557 = arith.minimumf %555, %556 : vector<32x128xf32>
    %558 = math.exp %557 : vector<32x128xf32>
    %cst_270 = arith.constant 2.000000e+00 : f32
    %559 = vector.broadcast %cst_270 : f32 to vector<32x128xf32>
    %560 = arith.addf %558, %559 : vector<32x128xf32>
    %561 = arith.mulf %558, %560 : vector<32x128xf32>
    %562 = arith.mulf %555, %561 : vector<32x128xf32>
    %cst_271 = arith.constant 2.000000e+00 : f32
    %563 = vector.broadcast %cst_271 : f32 to vector<32x128xf32>
    %564 = arith.addf %561, %563 : vector<32x128xf32>
    %565 = tpu.reciprocal %564 {approx = true} : vector<32x128xf32> -> vector<32x128xf32>
    %566 = arith.mulf %562, %565 : vector<32x128xf32>
    %567 = arith.truncf %566 : vector<32x128xf32> to vector<32x128xbf16>
    %568 = vector.extract_strided_slice %567 {offsets = [0, 0], sizes = [16, 128], strides = [1, 1]} : vector<32x128xbf16> to vector<16x128xbf16>
    %c2_i32_272 = arith.constant 2 : i32
    %569 = arith.muli %c2_i32_272, %c4_i32_236 : i32
    %c0_i32_273 = arith.constant 0 : i32
    %570 = arith.addi %569, %c0_i32_273 : i32
    %571 = arith.index_cast %570 : i32 to index
    %c0_274 = arith.constant 0 : index
    %c0_275 = arith.constant 0 : index
    %572 = vector.load %arg5[%571, %c0_274, %c0_275] : memref<20x128x128xbf16, #tpu.memory_space<vmem>>, vector<1x128x128xbf16>
    %573 = vector.shape_cast %572 : vector<1x128x128xbf16> to vector<128x128xbf16>
    %cst_276 = arith.constant dense<0.000000e+00> : vector<16x128xf32>
    %574 = tpu.matmul %568, %573, %cst_276 {dimension_numbers = #tpu.dot_dimension_numbers<[1], [0], [0], [1], [0, 0, 1, 1], [], []>} : vector<16x128xbf16>, vector<128x128xbf16>, vector<16x128xf32> -> vector<16x128xf32>
    %575 = vector.extract_strided_slice %567 {offsets = [16, 0], sizes = [16, 128], strides = [1, 1]} : vector<32x128xbf16> to vector<16x128xbf16>
    %c2_i32_277 = arith.constant 2 : i32
    %576 = arith.muli %c2_i32_277, %c4_i32_236 : i32
    %c1_i32_278 = arith.constant 1 : i32
    %577 = arith.addi %576, %c1_i32_278 : i32
    %578 = arith.index_cast %577 : i32 to index
    %c0_279 = arith.constant 0 : index
    %c0_280 = arith.constant 0 : index
    %579 = vector.load %arg5[%578, %c0_279, %c0_280] : memref<20x128x128xbf16, #tpu.memory_space<vmem>>, vector<1x128x128xbf16>
    %580 = vector.shape_cast %579 : vector<1x128x128xbf16> to vector<128x128xbf16>
    %cst_281 = arith.constant dense<0.000000e+00> : vector<16x128xf32>
    %581 = tpu.matmul %575, %580, %cst_281 {dimension_numbers = #tpu.dot_dimension_numbers<[1], [0], [0], [1], [0, 0, 1, 1], [], []>} : vector<16x128xbf16>, vector<128x128xbf16>, vector<16x128xf32> -> vector<16x128xf32>
    %582 = arith.addf %574, %581 : vector<16x128xf32>
    %583 = arith.index_cast %c4_i32_236 : i32 to index
    %c0_282 = arith.constant 0 : index
    %c0_283 = arith.constant 0 : index
    %584 = vector.load %arg9[%583, %c0_282, %c0_283] : memref<10x1x128xf32, #tpu.memory_space<vmem>>, vector<1x1x128xf32>
    %585 = vector.shape_cast %584 : vector<1x1x128xf32> to vector<1x128xf32>
    %586 = vector.broadcast %585 : vector<1x128xf32> to vector<16x128xf32>
    %587 = arith.addf %582, %586 : vector<16x128xf32>
    %cst_284 = arith.constant 2.000000e+01 : f32
    %588 = vector.broadcast %cst_284 : f32 to vector<16x128xf32>
    %589 = arith.minimumf %587, %588 : vector<16x128xf32>
    %590 = math.exp %589 : vector<16x128xf32>
    %cst_285 = arith.constant 2.000000e+00 : f32
    %591 = vector.broadcast %cst_285 : f32 to vector<16x128xf32>
    %592 = arith.addf %590, %591 : vector<16x128xf32>
    %593 = arith.mulf %590, %592 : vector<16x128xf32>
    %594 = arith.mulf %587, %593 : vector<16x128xf32>
    %cst_286 = arith.constant 2.000000e+00 : f32
    %595 = vector.broadcast %cst_286 : f32 to vector<16x128xf32>
    %596 = arith.addf %593, %595 : vector<16x128xf32>
    %597 = tpu.reciprocal %596 {approx = true} : vector<16x128xf32> -> vector<16x128xf32>
    %598 = arith.mulf %594, %597 : vector<16x128xf32>
    %599 = arith.truncf %598 : vector<16x128xf32> to vector<16x128xbf16>
    %600 = arith.index_cast %c4_i32_236 : i32 to index
    %c0_287 = arith.constant 0 : index
    %c0_288 = arith.constant 0 : index
    %601 = vector.load %arg6[%600, %c0_287, %c0_288] : memref<10x128x32xbf16, #tpu.memory_space<vmem>>, vector<1x128x32xbf16>
    %602 = vector.shape_cast %601 : vector<1x128x32xbf16> to vector<128x32xbf16>
    %cst_289 = arith.constant dense<0.000000e+00> : vector<16x32xf32>
    %603 = tpu.matmul %599, %602, %cst_289 {dimension_numbers = #tpu.dot_dimension_numbers<[1], [0], [0], [1], [0, 0, 1, 1], [], []>} : vector<16x128xbf16>, vector<128x32xbf16>, vector<16x32xf32> -> vector<16x32xf32>
    %604 = arith.index_cast %c4_i32_236 : i32 to index
    %c0_290 = arith.constant 0 : index
    %c0_291 = arith.constant 0 : index
    %605 = vector.load %arg10[%604, %c0_290, %c0_291] : memref<10x1x32xf32, #tpu.memory_space<vmem>>, vector<1x1x32xf32>
    %606 = vector.shape_cast %605 : vector<1x1x32xf32> to vector<1x32xf32>
    %607 = vector.broadcast %606 : vector<1x32xf32> to vector<16x32xf32>
    %608 = arith.addf %603, %607 : vector<16x32xf32>
    %cst_292 = arith.constant -1.000000e+00 : f32
    %cst_293 = arith.constant 0.9921875 : f32
    %609 = vector.broadcast %cst_292 : f32 to vector<16x32xf32>
    %610 = arith.maximumf %609, %608 : vector<16x32xf32>
    %611 = vector.broadcast %cst_293 : f32 to vector<16x32xf32>
    %612 = arith.minimumf %611, %610 : vector<16x32xf32>
    %cst_294 = arith.constant 1.280000e+02 : f32
    %613 = vector.broadcast %cst_294 : f32 to vector<16x32xf32>
    %614 = arith.mulf %612, %613 : vector<16x32xf32>
    %615 = math.roundeven %614 : vector<16x32xf32>
    %cst_295 = arith.constant 7.812500e-03 : f32
    %616 = vector.broadcast %cst_295 : f32 to vector<16x32xf32>
    %617 = arith.mulf %615, %616 : vector<16x32xf32>
    %618 = arith.addf %495, %617 : vector<16x32xf32>
    %c5_i32 = arith.constant 5 : i32
    %619 = arith.index_cast %c5_i32 : i32 to index
    %c0_296 = arith.constant 0 : index
    %c0_297 = arith.constant 0 : index
    %620 = vector.load %arg2[%619, %c0_296, %c0_297] : memref<10x96x8xbf16, #tpu.memory_space<vmem>>, vector<1x96x8xbf16>
    %621 = vector.shape_cast %620 : vector<1x96x8xbf16> to vector<96x8xbf16>
    %622 = arith.index_cast %c5_i32 : i32 to index
    %c0_298 = arith.constant 0 : index
    %c0_299 = arith.constant 0 : index
    %623 = vector.load %arg3[%622, %c0_298, %c0_299] : memref<10x8x128xbf16, #tpu.memory_space<vmem>>, vector<1x8x128xbf16>
    %624 = vector.shape_cast %623 : vector<1x8x128xbf16> to vector<8x128xbf16>
    %cst_300 = arith.constant dense<0.000000e+00> : vector<96x128xf32>
    %625 = tpu.matmul %621, %624, %cst_300 {dimension_numbers = #tpu.dot_dimension_numbers<[1], [0], [0], [1], [0, 0, 1, 1], [], []>} : vector<96x8xbf16>, vector<8x128xbf16>, vector<96x128xf32> -> vector<96x128xf32>
    %626 = arith.index_cast %c5_i32 : i32 to index
    %c0_301 = arith.constant 0 : index
    %c0_302 = arith.constant 0 : index
    %627 = vector.load %arg7[%626, %c0_301, %c0_302] : memref<10x1x128xf32, #tpu.memory_space<vmem>>, vector<1x1x128xf32>
    %628 = vector.shape_cast %627 : vector<1x1x128xf32> to vector<1x128xf32>
    %629 = vector.broadcast %628 : vector<1x128xf32> to vector<96x128xf32>
    %630 = arith.addf %625, %629 : vector<96x128xf32>
    %cst_303 = arith.constant 2.000000e+01 : f32
    %631 = vector.broadcast %cst_303 : f32 to vector<96x128xf32>
    %632 = arith.minimumf %630, %631 : vector<96x128xf32>
    %633 = math.exp %632 : vector<96x128xf32>
    %cst_304 = arith.constant 2.000000e+00 : f32
    %634 = vector.broadcast %cst_304 : f32 to vector<96x128xf32>
    %635 = arith.addf %633, %634 : vector<96x128xf32>
    %636 = arith.mulf %633, %635 : vector<96x128xf32>
    %637 = arith.mulf %630, %636 : vector<96x128xf32>
    %cst_305 = arith.constant 2.000000e+00 : f32
    %638 = vector.broadcast %cst_305 : f32 to vector<96x128xf32>
    %639 = arith.addf %636, %638 : vector<96x128xf32>
    %640 = tpu.reciprocal %639 {approx = true} : vector<96x128xf32> -> vector<96x128xf32>
    %641 = arith.mulf %637, %640 : vector<96x128xf32>
    %642 = arith.truncf %641 : vector<96x128xf32> to vector<96x128xbf16>
    %643 = vector.extract_strided_slice %642 {offsets = [0, 0], sizes = [32, 128], strides = [1, 1]} : vector<96x128xbf16> to vector<32x128xbf16>
    %c4_i32_306 = arith.constant 4 : i32
    %644 = arith.muli %c4_i32_306, %c5_i32 : i32
    %c0_i32_307 = arith.constant 0 : i32
    %645 = arith.addi %644, %c0_i32_307 : i32
    %646 = arith.index_cast %645 : i32 to index
    %c0_308 = arith.constant 0 : index
    %c0_309 = arith.constant 0 : index
    %647 = vector.load %arg4[%646, %c0_308, %c0_309] : memref<40x128x128xbf16, #tpu.memory_space<vmem>>, vector<1x128x128xbf16>
    %648 = vector.shape_cast %647 : vector<1x128x128xbf16> to vector<128x128xbf16>
    %cst_310 = arith.constant dense<0.000000e+00> : vector<32x128xf32>
    %649 = tpu.matmul %643, %648, %cst_310 {dimension_numbers = #tpu.dot_dimension_numbers<[1], [0], [0], [1], [0, 0, 1, 1], [], []>} : vector<32x128xbf16>, vector<128x128xbf16>, vector<32x128xf32> -> vector<32x128xf32>
    %650 = vector.extract_strided_slice %642 {offsets = [16, 0], sizes = [32, 128], strides = [1, 1]} : vector<96x128xbf16> to vector<32x128xbf16>
    %c4_i32_311 = arith.constant 4 : i32
    %651 = arith.muli %c4_i32_311, %c5_i32 : i32
    %c1_i32_312 = arith.constant 1 : i32
    %652 = arith.addi %651, %c1_i32_312 : i32
    %653 = arith.index_cast %652 : i32 to index
    %c0_313 = arith.constant 0 : index
    %c0_314 = arith.constant 0 : index
    %654 = vector.load %arg4[%653, %c0_313, %c0_314] : memref<40x128x128xbf16, #tpu.memory_space<vmem>>, vector<1x128x128xbf16>
    %655 = vector.shape_cast %654 : vector<1x128x128xbf16> to vector<128x128xbf16>
    %cst_315 = arith.constant dense<0.000000e+00> : vector<32x128xf32>
    %656 = tpu.matmul %650, %655, %cst_315 {dimension_numbers = #tpu.dot_dimension_numbers<[1], [0], [0], [1], [0, 0, 1, 1], [], []>} : vector<32x128xbf16>, vector<128x128xbf16>, vector<32x128xf32> -> vector<32x128xf32>
    %657 = arith.addf %649, %656 : vector<32x128xf32>
    %658 = vector.extract_strided_slice %642 {offsets = [48, 0], sizes = [32, 128], strides = [1, 1]} : vector<96x128xbf16> to vector<32x128xbf16>
    %c4_i32_316 = arith.constant 4 : i32
    %659 = arith.muli %c4_i32_316, %c5_i32 : i32
    %c2_i32_317 = arith.constant 2 : i32
    %660 = arith.addi %659, %c2_i32_317 : i32
    %661 = arith.index_cast %660 : i32 to index
    %c0_318 = arith.constant 0 : index
    %c0_319 = arith.constant 0 : index
    %662 = vector.load %arg4[%661, %c0_318, %c0_319] : memref<40x128x128xbf16, #tpu.memory_space<vmem>>, vector<1x128x128xbf16>
    %663 = vector.shape_cast %662 : vector<1x128x128xbf16> to vector<128x128xbf16>
    %cst_320 = arith.constant dense<0.000000e+00> : vector<32x128xf32>
    %664 = tpu.matmul %658, %663, %cst_320 {dimension_numbers = #tpu.dot_dimension_numbers<[1], [0], [0], [1], [0, 0, 1, 1], [], []>} : vector<32x128xbf16>, vector<128x128xbf16>, vector<32x128xf32> -> vector<32x128xf32>
    %665 = arith.addf %657, %664 : vector<32x128xf32>
    %666 = vector.extract_strided_slice %642 {offsets = [64, 0], sizes = [32, 128], strides = [1, 1]} : vector<96x128xbf16> to vector<32x128xbf16>
    %c4_i32_321 = arith.constant 4 : i32
    %667 = arith.muli %c4_i32_321, %c5_i32 : i32
    %c3_i32_322 = arith.constant 3 : i32
    %668 = arith.addi %667, %c3_i32_322 : i32
    %669 = arith.index_cast %668 : i32 to index
    %c0_323 = arith.constant 0 : index
    %c0_324 = arith.constant 0 : index
    %670 = vector.load %arg4[%669, %c0_323, %c0_324] : memref<40x128x128xbf16, #tpu.memory_space<vmem>>, vector<1x128x128xbf16>
    %671 = vector.shape_cast %670 : vector<1x128x128xbf16> to vector<128x128xbf16>
    %cst_325 = arith.constant dense<0.000000e+00> : vector<32x128xf32>
    %672 = tpu.matmul %666, %671, %cst_325 {dimension_numbers = #tpu.dot_dimension_numbers<[1], [0], [0], [1], [0, 0, 1, 1], [], []>} : vector<32x128xbf16>, vector<128x128xbf16>, vector<32x128xf32> -> vector<32x128xf32>
    %673 = arith.addf %665, %672 : vector<32x128xf32>
    %674 = arith.index_cast %c5_i32 : i32 to index
    %c0_326 = arith.constant 0 : index
    %c0_327 = arith.constant 0 : index
    %675 = vector.load %arg8[%674, %c0_326, %c0_327] : memref<10x1x128xf32, #tpu.memory_space<vmem>>, vector<1x1x128xf32>
    %676 = vector.shape_cast %675 : vector<1x1x128xf32> to vector<1x128xf32>
    %677 = vector.broadcast %676 : vector<1x128xf32> to vector<32x128xf32>
    %678 = arith.addf %673, %677 : vector<32x128xf32>
    %cst_328 = arith.constant 2.000000e+01 : f32
    %679 = vector.broadcast %cst_328 : f32 to vector<32x128xf32>
    %680 = arith.minimumf %678, %679 : vector<32x128xf32>
    %681 = math.exp %680 : vector<32x128xf32>
    %cst_329 = arith.constant 2.000000e+00 : f32
    %682 = vector.broadcast %cst_329 : f32 to vector<32x128xf32>
    %683 = arith.addf %681, %682 : vector<32x128xf32>
    %684 = arith.mulf %681, %683 : vector<32x128xf32>
    %685 = arith.mulf %678, %684 : vector<32x128xf32>
    %cst_330 = arith.constant 2.000000e+00 : f32
    %686 = vector.broadcast %cst_330 : f32 to vector<32x128xf32>
    %687 = arith.addf %684, %686 : vector<32x128xf32>
    %688 = tpu.reciprocal %687 {approx = true} : vector<32x128xf32> -> vector<32x128xf32>
    %689 = arith.mulf %685, %688 : vector<32x128xf32>
    %690 = arith.truncf %689 : vector<32x128xf32> to vector<32x128xbf16>
    %691 = vector.extract_strided_slice %690 {offsets = [0, 0], sizes = [16, 128], strides = [1, 1]} : vector<32x128xbf16> to vector<16x128xbf16>
    %c2_i32_331 = arith.constant 2 : i32
    %692 = arith.muli %c2_i32_331, %c5_i32 : i32
    %c0_i32_332 = arith.constant 0 : i32
    %693 = arith.addi %692, %c0_i32_332 : i32
    %694 = arith.index_cast %693 : i32 to index
    %c0_333 = arith.constant 0 : index
    %c0_334 = arith.constant 0 : index
    %695 = vector.load %arg5[%694, %c0_333, %c0_334] : memref<20x128x128xbf16, #tpu.memory_space<vmem>>, vector<1x128x128xbf16>
    %696 = vector.shape_cast %695 : vector<1x128x128xbf16> to vector<128x128xbf16>
    %cst_335 = arith.constant dense<0.000000e+00> : vector<16x128xf32>
    %697 = tpu.matmul %691, %696, %cst_335 {dimension_numbers = #tpu.dot_dimension_numbers<[1], [0], [0], [1], [0, 0, 1, 1], [], []>} : vector<16x128xbf16>, vector<128x128xbf16>, vector<16x128xf32> -> vector<16x128xf32>
    %698 = vector.extract_strided_slice %690 {offsets = [16, 0], sizes = [16, 128], strides = [1, 1]} : vector<32x128xbf16> to vector<16x128xbf16>
    %c2_i32_336 = arith.constant 2 : i32
    %699 = arith.muli %c2_i32_336, %c5_i32 : i32
    %c1_i32_337 = arith.constant 1 : i32
    %700 = arith.addi %699, %c1_i32_337 : i32
    %701 = arith.index_cast %700 : i32 to index
    %c0_338 = arith.constant 0 : index
    %c0_339 = arith.constant 0 : index
    %702 = vector.load %arg5[%701, %c0_338, %c0_339] : memref<20x128x128xbf16, #tpu.memory_space<vmem>>, vector<1x128x128xbf16>
    %703 = vector.shape_cast %702 : vector<1x128x128xbf16> to vector<128x128xbf16>
    %cst_340 = arith.constant dense<0.000000e+00> : vector<16x128xf32>
    %704 = tpu.matmul %698, %703, %cst_340 {dimension_numbers = #tpu.dot_dimension_numbers<[1], [0], [0], [1], [0, 0, 1, 1], [], []>} : vector<16x128xbf16>, vector<128x128xbf16>, vector<16x128xf32> -> vector<16x128xf32>
    %705 = arith.addf %697, %704 : vector<16x128xf32>
    %706 = arith.index_cast %c5_i32 : i32 to index
    %c0_341 = arith.constant 0 : index
    %c0_342 = arith.constant 0 : index
    %707 = vector.load %arg9[%706, %c0_341, %c0_342] : memref<10x1x128xf32, #tpu.memory_space<vmem>>, vector<1x1x128xf32>
    %708 = vector.shape_cast %707 : vector<1x1x128xf32> to vector<1x128xf32>
    %709 = vector.broadcast %708 : vector<1x128xf32> to vector<16x128xf32>
    %710 = arith.addf %705, %709 : vector<16x128xf32>
    %cst_343 = arith.constant 2.000000e+01 : f32
    %711 = vector.broadcast %cst_343 : f32 to vector<16x128xf32>
    %712 = arith.minimumf %710, %711 : vector<16x128xf32>
    %713 = math.exp %712 : vector<16x128xf32>
    %cst_344 = arith.constant 2.000000e+00 : f32
    %714 = vector.broadcast %cst_344 : f32 to vector<16x128xf32>
    %715 = arith.addf %713, %714 : vector<16x128xf32>
    %716 = arith.mulf %713, %715 : vector<16x128xf32>
    %717 = arith.mulf %710, %716 : vector<16x128xf32>
    %cst_345 = arith.constant 2.000000e+00 : f32
    %718 = vector.broadcast %cst_345 : f32 to vector<16x128xf32>
    %719 = arith.addf %716, %718 : vector<16x128xf32>
    %720 = tpu.reciprocal %719 {approx = true} : vector<16x128xf32> -> vector<16x128xf32>
    %721 = arith.mulf %717, %720 : vector<16x128xf32>
    %722 = arith.truncf %721 : vector<16x128xf32> to vector<16x128xbf16>
    %723 = arith.index_cast %c5_i32 : i32 to index
    %c0_346 = arith.constant 0 : index
    %c0_347 = arith.constant 0 : index
    %724 = vector.load %arg6[%723, %c0_346, %c0_347] : memref<10x128x32xbf16, #tpu.memory_space<vmem>>, vector<1x128x32xbf16>
    %725 = vector.shape_cast %724 : vector<1x128x32xbf16> to vector<128x32xbf16>
    %cst_348 = arith.constant dense<0.000000e+00> : vector<16x32xf32>
    %726 = tpu.matmul %722, %725, %cst_348 {dimension_numbers = #tpu.dot_dimension_numbers<[1], [0], [0], [1], [0, 0, 1, 1], [], []>} : vector<16x128xbf16>, vector<128x32xbf16>, vector<16x32xf32> -> vector<16x32xf32>
    %727 = arith.index_cast %c5_i32 : i32 to index
    %c0_349 = arith.constant 0 : index
    %c0_350 = arith.constant 0 : index
    %728 = vector.load %arg10[%727, %c0_349, %c0_350] : memref<10x1x32xf32, #tpu.memory_space<vmem>>, vector<1x1x32xf32>
    %729 = vector.shape_cast %728 : vector<1x1x32xf32> to vector<1x32xf32>
    %730 = vector.broadcast %729 : vector<1x32xf32> to vector<16x32xf32>
    %731 = arith.addf %726, %730 : vector<16x32xf32>
    %cst_351 = arith.constant -1.000000e+00 : f32
    %cst_352 = arith.constant 0.9921875 : f32
    %732 = vector.broadcast %cst_351 : f32 to vector<16x32xf32>
    %733 = arith.maximumf %732, %731 : vector<16x32xf32>
    %734 = vector.broadcast %cst_352 : f32 to vector<16x32xf32>
    %735 = arith.minimumf %734, %733 : vector<16x32xf32>
    %cst_353 = arith.constant 1.280000e+02 : f32
    %736 = vector.broadcast %cst_353 : f32 to vector<16x32xf32>
    %737 = arith.mulf %735, %736 : vector<16x32xf32>
    %738 = math.roundeven %737 : vector<16x32xf32>
    %cst_354 = arith.constant 7.812500e-03 : f32
    %739 = vector.broadcast %cst_354 : f32 to vector<16x32xf32>
    %740 = arith.mulf %738, %739 : vector<16x32xf32>
    %741 = arith.addf %618, %740 : vector<16x32xf32>
    %c6_i32 = arith.constant 6 : i32
    %742 = arith.index_cast %c6_i32 : i32 to index
    %c0_355 = arith.constant 0 : index
    %c0_356 = arith.constant 0 : index
    %743 = vector.load %arg2[%742, %c0_355, %c0_356] : memref<10x96x8xbf16, #tpu.memory_space<vmem>>, vector<1x96x8xbf16>
    %744 = vector.shape_cast %743 : vector<1x96x8xbf16> to vector<96x8xbf16>
    %745 = arith.index_cast %c6_i32 : i32 to index
    %c0_357 = arith.constant 0 : index
    %c0_358 = arith.constant 0 : index
    %746 = vector.load %arg3[%745, %c0_357, %c0_358] : memref<10x8x128xbf16, #tpu.memory_space<vmem>>, vector<1x8x128xbf16>
    %747 = vector.shape_cast %746 : vector<1x8x128xbf16> to vector<8x128xbf16>
    %cst_359 = arith.constant dense<0.000000e+00> : vector<96x128xf32>
    %748 = tpu.matmul %744, %747, %cst_359 {dimension_numbers = #tpu.dot_dimension_numbers<[1], [0], [0], [1], [0, 0, 1, 1], [], []>} : vector<96x8xbf16>, vector<8x128xbf16>, vector<96x128xf32> -> vector<96x128xf32>
    %749 = arith.index_cast %c6_i32 : i32 to index
    %c0_360 = arith.constant 0 : index
    %c0_361 = arith.constant 0 : index
    %750 = vector.load %arg7[%749, %c0_360, %c0_361] : memref<10x1x128xf32, #tpu.memory_space<vmem>>, vector<1x1x128xf32>
    %751 = vector.shape_cast %750 : vector<1x1x128xf32> to vector<1x128xf32>
    %752 = vector.broadcast %751 : vector<1x128xf32> to vector<96x128xf32>
    %753 = arith.addf %748, %752 : vector<96x128xf32>
    %cst_362 = arith.constant 2.000000e+01 : f32
    %754 = vector.broadcast %cst_362 : f32 to vector<96x128xf32>
    %755 = arith.minimumf %753, %754 : vector<96x128xf32>
    %756 = math.exp %755 : vector<96x128xf32>
    %cst_363 = arith.constant 2.000000e+00 : f32
    %757 = vector.broadcast %cst_363 : f32 to vector<96x128xf32>
    %758 = arith.addf %756, %757 : vector<96x128xf32>
    %759 = arith.mulf %756, %758 : vector<96x128xf32>
    %760 = arith.mulf %753, %759 : vector<96x128xf32>
    %cst_364 = arith.constant 2.000000e+00 : f32
    %761 = vector.broadcast %cst_364 : f32 to vector<96x128xf32>
    %762 = arith.addf %759, %761 : vector<96x128xf32>
    %763 = tpu.reciprocal %762 {approx = true} : vector<96x128xf32> -> vector<96x128xf32>
    %764 = arith.mulf %760, %763 : vector<96x128xf32>
    %765 = arith.truncf %764 : vector<96x128xf32> to vector<96x128xbf16>
    %766 = vector.extract_strided_slice %765 {offsets = [0, 0], sizes = [32, 128], strides = [1, 1]} : vector<96x128xbf16> to vector<32x128xbf16>
    %c4_i32_365 = arith.constant 4 : i32
    %767 = arith.muli %c4_i32_365, %c6_i32 : i32
    %c0_i32_366 = arith.constant 0 : i32
    %768 = arith.addi %767, %c0_i32_366 : i32
    %769 = arith.index_cast %768 : i32 to index
    %c0_367 = arith.constant 0 : index
    %c0_368 = arith.constant 0 : index
    %770 = vector.load %arg4[%769, %c0_367, %c0_368] : memref<40x128x128xbf16, #tpu.memory_space<vmem>>, vector<1x128x128xbf16>
    %771 = vector.shape_cast %770 : vector<1x128x128xbf16> to vector<128x128xbf16>
    %cst_369 = arith.constant dense<0.000000e+00> : vector<32x128xf32>
    %772 = tpu.matmul %766, %771, %cst_369 {dimension_numbers = #tpu.dot_dimension_numbers<[1], [0], [0], [1], [0, 0, 1, 1], [], []>} : vector<32x128xbf16>, vector<128x128xbf16>, vector<32x128xf32> -> vector<32x128xf32>
    %773 = vector.extract_strided_slice %765 {offsets = [16, 0], sizes = [32, 128], strides = [1, 1]} : vector<96x128xbf16> to vector<32x128xbf16>
    %c4_i32_370 = arith.constant 4 : i32
    %774 = arith.muli %c4_i32_370, %c6_i32 : i32
    %c1_i32_371 = arith.constant 1 : i32
    %775 = arith.addi %774, %c1_i32_371 : i32
    %776 = arith.index_cast %775 : i32 to index
    %c0_372 = arith.constant 0 : index
    %c0_373 = arith.constant 0 : index
    %777 = vector.load %arg4[%776, %c0_372, %c0_373] : memref<40x128x128xbf16, #tpu.memory_space<vmem>>, vector<1x128x128xbf16>
    %778 = vector.shape_cast %777 : vector<1x128x128xbf16> to vector<128x128xbf16>
    %cst_374 = arith.constant dense<0.000000e+00> : vector<32x128xf32>
    %779 = tpu.matmul %773, %778, %cst_374 {dimension_numbers = #tpu.dot_dimension_numbers<[1], [0], [0], [1], [0, 0, 1, 1], [], []>} : vector<32x128xbf16>, vector<128x128xbf16>, vector<32x128xf32> -> vector<32x128xf32>
    %780 = arith.addf %772, %779 : vector<32x128xf32>
    %781 = vector.extract_strided_slice %765 {offsets = [48, 0], sizes = [32, 128], strides = [1, 1]} : vector<96x128xbf16> to vector<32x128xbf16>
    %c4_i32_375 = arith.constant 4 : i32
    %782 = arith.muli %c4_i32_375, %c6_i32 : i32
    %c2_i32_376 = arith.constant 2 : i32
    %783 = arith.addi %782, %c2_i32_376 : i32
    %784 = arith.index_cast %783 : i32 to index
    %c0_377 = arith.constant 0 : index
    %c0_378 = arith.constant 0 : index
    %785 = vector.load %arg4[%784, %c0_377, %c0_378] : memref<40x128x128xbf16, #tpu.memory_space<vmem>>, vector<1x128x128xbf16>
    %786 = vector.shape_cast %785 : vector<1x128x128xbf16> to vector<128x128xbf16>
    %cst_379 = arith.constant dense<0.000000e+00> : vector<32x128xf32>
    %787 = tpu.matmul %781, %786, %cst_379 {dimension_numbers = #tpu.dot_dimension_numbers<[1], [0], [0], [1], [0, 0, 1, 1], [], []>} : vector<32x128xbf16>, vector<128x128xbf16>, vector<32x128xf32> -> vector<32x128xf32>
    %788 = arith.addf %780, %787 : vector<32x128xf32>
    %789 = vector.extract_strided_slice %765 {offsets = [64, 0], sizes = [32, 128], strides = [1, 1]} : vector<96x128xbf16> to vector<32x128xbf16>
    %c4_i32_380 = arith.constant 4 : i32
    %790 = arith.muli %c4_i32_380, %c6_i32 : i32
    %c3_i32_381 = arith.constant 3 : i32
    %791 = arith.addi %790, %c3_i32_381 : i32
    %792 = arith.index_cast %791 : i32 to index
    %c0_382 = arith.constant 0 : index
    %c0_383 = arith.constant 0 : index
    %793 = vector.load %arg4[%792, %c0_382, %c0_383] : memref<40x128x128xbf16, #tpu.memory_space<vmem>>, vector<1x128x128xbf16>
    %794 = vector.shape_cast %793 : vector<1x128x128xbf16> to vector<128x128xbf16>
    %cst_384 = arith.constant dense<0.000000e+00> : vector<32x128xf32>
    %795 = tpu.matmul %789, %794, %cst_384 {dimension_numbers = #tpu.dot_dimension_numbers<[1], [0], [0], [1], [0, 0, 1, 1], [], []>} : vector<32x128xbf16>, vector<128x128xbf16>, vector<32x128xf32> -> vector<32x128xf32>
    %796 = arith.addf %788, %795 : vector<32x128xf32>
    %797 = arith.index_cast %c6_i32 : i32 to index
    %c0_385 = arith.constant 0 : index
    %c0_386 = arith.constant 0 : index
    %798 = vector.load %arg8[%797, %c0_385, %c0_386] : memref<10x1x128xf32, #tpu.memory_space<vmem>>, vector<1x1x128xf32>
    %799 = vector.shape_cast %798 : vector<1x1x128xf32> to vector<1x128xf32>
    %800 = vector.broadcast %799 : vector<1x128xf32> to vector<32x128xf32>
    %801 = arith.addf %796, %800 : vector<32x128xf32>
    %cst_387 = arith.constant 2.000000e+01 : f32
    %802 = vector.broadcast %cst_387 : f32 to vector<32x128xf32>
    %803 = arith.minimumf %801, %802 : vector<32x128xf32>
    %804 = math.exp %803 : vector<32x128xf32>
    %cst_388 = arith.constant 2.000000e+00 : f32
    %805 = vector.broadcast %cst_388 : f32 to vector<32x128xf32>
    %806 = arith.addf %804, %805 : vector<32x128xf32>
    %807 = arith.mulf %804, %806 : vector<32x128xf32>
    %808 = arith.mulf %801, %807 : vector<32x128xf32>
    %cst_389 = arith.constant 2.000000e+00 : f32
    %809 = vector.broadcast %cst_389 : f32 to vector<32x128xf32>
    %810 = arith.addf %807, %809 : vector<32x128xf32>
    %811 = tpu.reciprocal %810 {approx = true} : vector<32x128xf32> -> vector<32x128xf32>
    %812 = arith.mulf %808, %811 : vector<32x128xf32>
    %813 = arith.truncf %812 : vector<32x128xf32> to vector<32x128xbf16>
    %814 = vector.extract_strided_slice %813 {offsets = [0, 0], sizes = [16, 128], strides = [1, 1]} : vector<32x128xbf16> to vector<16x128xbf16>
    %c2_i32_390 = arith.constant 2 : i32
    %815 = arith.muli %c2_i32_390, %c6_i32 : i32
    %c0_i32_391 = arith.constant 0 : i32
    %816 = arith.addi %815, %c0_i32_391 : i32
    %817 = arith.index_cast %816 : i32 to index
    %c0_392 = arith.constant 0 : index
    %c0_393 = arith.constant 0 : index
    %818 = vector.load %arg5[%817, %c0_392, %c0_393] : memref<20x128x128xbf16, #tpu.memory_space<vmem>>, vector<1x128x128xbf16>
    %819 = vector.shape_cast %818 : vector<1x128x128xbf16> to vector<128x128xbf16>
    %cst_394 = arith.constant dense<0.000000e+00> : vector<16x128xf32>
    %820 = tpu.matmul %814, %819, %cst_394 {dimension_numbers = #tpu.dot_dimension_numbers<[1], [0], [0], [1], [0, 0, 1, 1], [], []>} : vector<16x128xbf16>, vector<128x128xbf16>, vector<16x128xf32> -> vector<16x128xf32>
    %821 = vector.extract_strided_slice %813 {offsets = [16, 0], sizes = [16, 128], strides = [1, 1]} : vector<32x128xbf16> to vector<16x128xbf16>
    %c2_i32_395 = arith.constant 2 : i32
    %822 = arith.muli %c2_i32_395, %c6_i32 : i32
    %c1_i32_396 = arith.constant 1 : i32
    %823 = arith.addi %822, %c1_i32_396 : i32
    %824 = arith.index_cast %823 : i32 to index
    %c0_397 = arith.constant 0 : index
    %c0_398 = arith.constant 0 : index
    %825 = vector.load %arg5[%824, %c0_397, %c0_398] : memref<20x128x128xbf16, #tpu.memory_space<vmem>>, vector<1x128x128xbf16>
    %826 = vector.shape_cast %825 : vector<1x128x128xbf16> to vector<128x128xbf16>
    %cst_399 = arith.constant dense<0.000000e+00> : vector<16x128xf32>
    %827 = tpu.matmul %821, %826, %cst_399 {dimension_numbers = #tpu.dot_dimension_numbers<[1], [0], [0], [1], [0, 0, 1, 1], [], []>} : vector<16x128xbf16>, vector<128x128xbf16>, vector<16x128xf32> -> vector<16x128xf32>
    %828 = arith.addf %820, %827 : vector<16x128xf32>
    %829 = arith.index_cast %c6_i32 : i32 to index
    %c0_400 = arith.constant 0 : index
    %c0_401 = arith.constant 0 : index
    %830 = vector.load %arg9[%829, %c0_400, %c0_401] : memref<10x1x128xf32, #tpu.memory_space<vmem>>, vector<1x1x128xf32>
    %831 = vector.shape_cast %830 : vector<1x1x128xf32> to vector<1x128xf32>
    %832 = vector.broadcast %831 : vector<1x128xf32> to vector<16x128xf32>
    %833 = arith.addf %828, %832 : vector<16x128xf32>
    %cst_402 = arith.constant 2.000000e+01 : f32
    %834 = vector.broadcast %cst_402 : f32 to vector<16x128xf32>
    %835 = arith.minimumf %833, %834 : vector<16x128xf32>
    %836 = math.exp %835 : vector<16x128xf32>
    %cst_403 = arith.constant 2.000000e+00 : f32
    %837 = vector.broadcast %cst_403 : f32 to vector<16x128xf32>
    %838 = arith.addf %836, %837 : vector<16x128xf32>
    %839 = arith.mulf %836, %838 : vector<16x128xf32>
    %840 = arith.mulf %833, %839 : vector<16x128xf32>
    %cst_404 = arith.constant 2.000000e+00 : f32
    %841 = vector.broadcast %cst_404 : f32 to vector<16x128xf32>
    %842 = arith.addf %839, %841 : vector<16x128xf32>
    %843 = tpu.reciprocal %842 {approx = true} : vector<16x128xf32> -> vector<16x128xf32>
    %844 = arith.mulf %840, %843 : vector<16x128xf32>
    %845 = arith.truncf %844 : vector<16x128xf32> to vector<16x128xbf16>
    %846 = arith.index_cast %c6_i32 : i32 to index
    %c0_405 = arith.constant 0 : index
    %c0_406 = arith.constant 0 : index
    %847 = vector.load %arg6[%846, %c0_405, %c0_406] : memref<10x128x32xbf16, #tpu.memory_space<vmem>>, vector<1x128x32xbf16>
    %848 = vector.shape_cast %847 : vector<1x128x32xbf16> to vector<128x32xbf16>
    %cst_407 = arith.constant dense<0.000000e+00> : vector<16x32xf32>
    %849 = tpu.matmul %845, %848, %cst_407 {dimension_numbers = #tpu.dot_dimension_numbers<[1], [0], [0], [1], [0, 0, 1, 1], [], []>} : vector<16x128xbf16>, vector<128x32xbf16>, vector<16x32xf32> -> vector<16x32xf32>
    %850 = arith.index_cast %c6_i32 : i32 to index
    %c0_408 = arith.constant 0 : index
    %c0_409 = arith.constant 0 : index
    %851 = vector.load %arg10[%850, %c0_408, %c0_409] : memref<10x1x32xf32, #tpu.memory_space<vmem>>, vector<1x1x32xf32>
    %852 = vector.shape_cast %851 : vector<1x1x32xf32> to vector<1x32xf32>
    %853 = vector.broadcast %852 : vector<1x32xf32> to vector<16x32xf32>
    %854 = arith.addf %849, %853 : vector<16x32xf32>
    %cst_410 = arith.constant -1.000000e+00 : f32
    %cst_411 = arith.constant 0.9921875 : f32
    %855 = vector.broadcast %cst_410 : f32 to vector<16x32xf32>
    %856 = arith.maximumf %855, %854 : vector<16x32xf32>
    %857 = vector.broadcast %cst_411 : f32 to vector<16x32xf32>
    %858 = arith.minimumf %857, %856 : vector<16x32xf32>
    %cst_412 = arith.constant 1.280000e+02 : f32
    %859 = vector.broadcast %cst_412 : f32 to vector<16x32xf32>
    %860 = arith.mulf %858, %859 : vector<16x32xf32>
    %861 = math.roundeven %860 : vector<16x32xf32>
    %cst_413 = arith.constant 7.812500e-03 : f32
    %862 = vector.broadcast %cst_413 : f32 to vector<16x32xf32>
    %863 = arith.mulf %861, %862 : vector<16x32xf32>
    %864 = arith.addf %741, %863 : vector<16x32xf32>
    %c7_i32 = arith.constant 7 : i32
    %865 = arith.index_cast %c7_i32 : i32 to index
    %c0_414 = arith.constant 0 : index
    %c0_415 = arith.constant 0 : index
    %866 = vector.load %arg2[%865, %c0_414, %c0_415] : memref<10x96x8xbf16, #tpu.memory_space<vmem>>, vector<1x96x8xbf16>
    %867 = vector.shape_cast %866 : vector<1x96x8xbf16> to vector<96x8xbf16>
    %868 = arith.index_cast %c7_i32 : i32 to index
    %c0_416 = arith.constant 0 : index
    %c0_417 = arith.constant 0 : index
    %869 = vector.load %arg3[%868, %c0_416, %c0_417] : memref<10x8x128xbf16, #tpu.memory_space<vmem>>, vector<1x8x128xbf16>
    %870 = vector.shape_cast %869 : vector<1x8x128xbf16> to vector<8x128xbf16>
    %cst_418 = arith.constant dense<0.000000e+00> : vector<96x128xf32>
    %871 = tpu.matmul %867, %870, %cst_418 {dimension_numbers = #tpu.dot_dimension_numbers<[1], [0], [0], [1], [0, 0, 1, 1], [], []>} : vector<96x8xbf16>, vector<8x128xbf16>, vector<96x128xf32> -> vector<96x128xf32>
    %872 = arith.index_cast %c7_i32 : i32 to index
    %c0_419 = arith.constant 0 : index
    %c0_420 = arith.constant 0 : index
    %873 = vector.load %arg7[%872, %c0_419, %c0_420] : memref<10x1x128xf32, #tpu.memory_space<vmem>>, vector<1x1x128xf32>
    %874 = vector.shape_cast %873 : vector<1x1x128xf32> to vector<1x128xf32>
    %875 = vector.broadcast %874 : vector<1x128xf32> to vector<96x128xf32>
    %876 = arith.addf %871, %875 : vector<96x128xf32>
    %cst_421 = arith.constant 2.000000e+01 : f32
    %877 = vector.broadcast %cst_421 : f32 to vector<96x128xf32>
    %878 = arith.minimumf %876, %877 : vector<96x128xf32>
    %879 = math.exp %878 : vector<96x128xf32>
    %cst_422 = arith.constant 2.000000e+00 : f32
    %880 = vector.broadcast %cst_422 : f32 to vector<96x128xf32>
    %881 = arith.addf %879, %880 : vector<96x128xf32>
    %882 = arith.mulf %879, %881 : vector<96x128xf32>
    %883 = arith.mulf %876, %882 : vector<96x128xf32>
    %cst_423 = arith.constant 2.000000e+00 : f32
    %884 = vector.broadcast %cst_423 : f32 to vector<96x128xf32>
    %885 = arith.addf %882, %884 : vector<96x128xf32>
    %886 = tpu.reciprocal %885 {approx = true} : vector<96x128xf32> -> vector<96x128xf32>
    %887 = arith.mulf %883, %886 : vector<96x128xf32>
    %888 = arith.truncf %887 : vector<96x128xf32> to vector<96x128xbf16>
    %889 = vector.extract_strided_slice %888 {offsets = [0, 0], sizes = [32, 128], strides = [1, 1]} : vector<96x128xbf16> to vector<32x128xbf16>
    %c4_i32_424 = arith.constant 4 : i32
    %890 = arith.muli %c4_i32_424, %c7_i32 : i32
    %c0_i32_425 = arith.constant 0 : i32
    %891 = arith.addi %890, %c0_i32_425 : i32
    %892 = arith.index_cast %891 : i32 to index
    %c0_426 = arith.constant 0 : index
    %c0_427 = arith.constant 0 : index
    %893 = vector.load %arg4[%892, %c0_426, %c0_427] : memref<40x128x128xbf16, #tpu.memory_space<vmem>>, vector<1x128x128xbf16>
    %894 = vector.shape_cast %893 : vector<1x128x128xbf16> to vector<128x128xbf16>
    %cst_428 = arith.constant dense<0.000000e+00> : vector<32x128xf32>
    %895 = tpu.matmul %889, %894, %cst_428 {dimension_numbers = #tpu.dot_dimension_numbers<[1], [0], [0], [1], [0, 0, 1, 1], [], []>} : vector<32x128xbf16>, vector<128x128xbf16>, vector<32x128xf32> -> vector<32x128xf32>
    %896 = vector.extract_strided_slice %888 {offsets = [16, 0], sizes = [32, 128], strides = [1, 1]} : vector<96x128xbf16> to vector<32x128xbf16>
    %c4_i32_429 = arith.constant 4 : i32
    %897 = arith.muli %c4_i32_429, %c7_i32 : i32
    %c1_i32_430 = arith.constant 1 : i32
    %898 = arith.addi %897, %c1_i32_430 : i32
    %899 = arith.index_cast %898 : i32 to index
    %c0_431 = arith.constant 0 : index
    %c0_432 = arith.constant 0 : index
    %900 = vector.load %arg4[%899, %c0_431, %c0_432] : memref<40x128x128xbf16, #tpu.memory_space<vmem>>, vector<1x128x128xbf16>
    %901 = vector.shape_cast %900 : vector<1x128x128xbf16> to vector<128x128xbf16>
    %cst_433 = arith.constant dense<0.000000e+00> : vector<32x128xf32>
    %902 = tpu.matmul %896, %901, %cst_433 {dimension_numbers = #tpu.dot_dimension_numbers<[1], [0], [0], [1], [0, 0, 1, 1], [], []>} : vector<32x128xbf16>, vector<128x128xbf16>, vector<32x128xf32> -> vector<32x128xf32>
    %903 = arith.addf %895, %902 : vector<32x128xf32>
    %904 = vector.extract_strided_slice %888 {offsets = [48, 0], sizes = [32, 128], strides = [1, 1]} : vector<96x128xbf16> to vector<32x128xbf16>
    %c4_i32_434 = arith.constant 4 : i32
    %905 = arith.muli %c4_i32_434, %c7_i32 : i32
    %c2_i32_435 = arith.constant 2 : i32
    %906 = arith.addi %905, %c2_i32_435 : i32
    %907 = arith.index_cast %906 : i32 to index
    %c0_436 = arith.constant 0 : index
    %c0_437 = arith.constant 0 : index
    %908 = vector.load %arg4[%907, %c0_436, %c0_437] : memref<40x128x128xbf16, #tpu.memory_space<vmem>>, vector<1x128x128xbf16>
    %909 = vector.shape_cast %908 : vector<1x128x128xbf16> to vector<128x128xbf16>
    %cst_438 = arith.constant dense<0.000000e+00> : vector<32x128xf32>
    %910 = tpu.matmul %904, %909, %cst_438 {dimension_numbers = #tpu.dot_dimension_numbers<[1], [0], [0], [1], [0, 0, 1, 1], [], []>} : vector<32x128xbf16>, vector<128x128xbf16>, vector<32x128xf32> -> vector<32x128xf32>
    %911 = arith.addf %903, %910 : vector<32x128xf32>
    %912 = vector.extract_strided_slice %888 {offsets = [64, 0], sizes = [32, 128], strides = [1, 1]} : vector<96x128xbf16> to vector<32x128xbf16>
    %c4_i32_439 = arith.constant 4 : i32
    %913 = arith.muli %c4_i32_439, %c7_i32 : i32
    %c3_i32_440 = arith.constant 3 : i32
    %914 = arith.addi %913, %c3_i32_440 : i32
    %915 = arith.index_cast %914 : i32 to index
    %c0_441 = arith.constant 0 : index
    %c0_442 = arith.constant 0 : index
    %916 = vector.load %arg4[%915, %c0_441, %c0_442] : memref<40x128x128xbf16, #tpu.memory_space<vmem>>, vector<1x128x128xbf16>
    %917 = vector.shape_cast %916 : vector<1x128x128xbf16> to vector<128x128xbf16>
    %cst_443 = arith.constant dense<0.000000e+00> : vector<32x128xf32>
    %918 = tpu.matmul %912, %917, %cst_443 {dimension_numbers = #tpu.dot_dimension_numbers<[1], [0], [0], [1], [0, 0, 1, 1], [], []>} : vector<32x128xbf16>, vector<128x128xbf16>, vector<32x128xf32> -> vector<32x128xf32>
    %919 = arith.addf %911, %918 : vector<32x128xf32>
    %920 = arith.index_cast %c7_i32 : i32 to index
    %c0_444 = arith.constant 0 : index
    %c0_445 = arith.constant 0 : index
    %921 = vector.load %arg8[%920, %c0_444, %c0_445] : memref<10x1x128xf32, #tpu.memory_space<vmem>>, vector<1x1x128xf32>
    %922 = vector.shape_cast %921 : vector<1x1x128xf32> to vector<1x128xf32>
    %923 = vector.broadcast %922 : vector<1x128xf32> to vector<32x128xf32>
    %924 = arith.addf %919, %923 : vector<32x128xf32>
    %cst_446 = arith.constant 2.000000e+01 : f32
    %925 = vector.broadcast %cst_446 : f32 to vector<32x128xf32>
    %926 = arith.minimumf %924, %925 : vector<32x128xf32>
    %927 = math.exp %926 : vector<32x128xf32>
    %cst_447 = arith.constant 2.000000e+00 : f32
    %928 = vector.broadcast %cst_447 : f32 to vector<32x128xf32>
    %929 = arith.addf %927, %928 : vector<32x128xf32>
    %930 = arith.mulf %927, %929 : vector<32x128xf32>
    %931 = arith.mulf %924, %930 : vector<32x128xf32>
    %cst_448 = arith.constant 2.000000e+00 : f32
    %932 = vector.broadcast %cst_448 : f32 to vector<32x128xf32>
    %933 = arith.addf %930, %932 : vector<32x128xf32>
    %934 = tpu.reciprocal %933 {approx = true} : vector<32x128xf32> -> vector<32x128xf32>
    %935 = arith.mulf %931, %934 : vector<32x128xf32>
    %936 = arith.truncf %935 : vector<32x128xf32> to vector<32x128xbf16>
    %937 = vector.extract_strided_slice %936 {offsets = [0, 0], sizes = [16, 128], strides = [1, 1]} : vector<32x128xbf16> to vector<16x128xbf16>
    %c2_i32_449 = arith.constant 2 : i32
    %938 = arith.muli %c2_i32_449, %c7_i32 : i32
    %c0_i32_450 = arith.constant 0 : i32
    %939 = arith.addi %938, %c0_i32_450 : i32
    %940 = arith.index_cast %939 : i32 to index
    %c0_451 = arith.constant 0 : index
    %c0_452 = arith.constant 0 : index
    %941 = vector.load %arg5[%940, %c0_451, %c0_452] : memref<20x128x128xbf16, #tpu.memory_space<vmem>>, vector<1x128x128xbf16>
    %942 = vector.shape_cast %941 : vector<1x128x128xbf16> to vector<128x128xbf16>
    %cst_453 = arith.constant dense<0.000000e+00> : vector<16x128xf32>
    %943 = tpu.matmul %937, %942, %cst_453 {dimension_numbers = #tpu.dot_dimension_numbers<[1], [0], [0], [1], [0, 0, 1, 1], [], []>} : vector<16x128xbf16>, vector<128x128xbf16>, vector<16x128xf32> -> vector<16x128xf32>
    %944 = vector.extract_strided_slice %936 {offsets = [16, 0], sizes = [16, 128], strides = [1, 1]} : vector<32x128xbf16> to vector<16x128xbf16>
    %c2_i32_454 = arith.constant 2 : i32
    %945 = arith.muli %c2_i32_454, %c7_i32 : i32
    %c1_i32_455 = arith.constant 1 : i32
    %946 = arith.addi %945, %c1_i32_455 : i32
    %947 = arith.index_cast %946 : i32 to index
    %c0_456 = arith.constant 0 : index
    %c0_457 = arith.constant 0 : index
    %948 = vector.load %arg5[%947, %c0_456, %c0_457] : memref<20x128x128xbf16, #tpu.memory_space<vmem>>, vector<1x128x128xbf16>
    %949 = vector.shape_cast %948 : vector<1x128x128xbf16> to vector<128x128xbf16>
    %cst_458 = arith.constant dense<0.000000e+00> : vector<16x128xf32>
    %950 = tpu.matmul %944, %949, %cst_458 {dimension_numbers = #tpu.dot_dimension_numbers<[1], [0], [0], [1], [0, 0, 1, 1], [], []>} : vector<16x128xbf16>, vector<128x128xbf16>, vector<16x128xf32> -> vector<16x128xf32>
    %951 = arith.addf %943, %950 : vector<16x128xf32>
    %952 = arith.index_cast %c7_i32 : i32 to index
    %c0_459 = arith.constant 0 : index
    %c0_460 = arith.constant 0 : index
    %953 = vector.load %arg9[%952, %c0_459, %c0_460] : memref<10x1x128xf32, #tpu.memory_space<vmem>>, vector<1x1x128xf32>
    %954 = vector.shape_cast %953 : vector<1x1x128xf32> to vector<1x128xf32>
    %955 = vector.broadcast %954 : vector<1x128xf32> to vector<16x128xf32>
    %956 = arith.addf %951, %955 : vector<16x128xf32>
    %cst_461 = arith.constant 2.000000e+01 : f32
    %957 = vector.broadcast %cst_461 : f32 to vector<16x128xf32>
    %958 = arith.minimumf %956, %957 : vector<16x128xf32>
    %959 = math.exp %958 : vector<16x128xf32>
    %cst_462 = arith.constant 2.000000e+00 : f32
    %960 = vector.broadcast %cst_462 : f32 to vector<16x128xf32>
    %961 = arith.addf %959, %960 : vector<16x128xf32>
    %962 = arith.mulf %959, %961 : vector<16x128xf32>
    %963 = arith.mulf %956, %962 : vector<16x128xf32>
    %cst_463 = arith.constant 2.000000e+00 : f32
    %964 = vector.broadcast %cst_463 : f32 to vector<16x128xf32>
    %965 = arith.addf %962, %964 : vector<16x128xf32>
    %966 = tpu.reciprocal %965 {approx = true} : vector<16x128xf32> -> vector<16x128xf32>
    %967 = arith.mulf %963, %966 : vector<16x128xf32>
    %968 = arith.truncf %967 : vector<16x128xf32> to vector<16x128xbf16>
    %969 = arith.index_cast %c7_i32 : i32 to index
    %c0_464 = arith.constant 0 : index
    %c0_465 = arith.constant 0 : index
    %970 = vector.load %arg6[%969, %c0_464, %c0_465] : memref<10x128x32xbf16, #tpu.memory_space<vmem>>, vector<1x128x32xbf16>
    %971 = vector.shape_cast %970 : vector<1x128x32xbf16> to vector<128x32xbf16>
    %cst_466 = arith.constant dense<0.000000e+00> : vector<16x32xf32>
    %972 = tpu.matmul %968, %971, %cst_466 {dimension_numbers = #tpu.dot_dimension_numbers<[1], [0], [0], [1], [0, 0, 1, 1], [], []>} : vector<16x128xbf16>, vector<128x32xbf16>, vector<16x32xf32> -> vector<16x32xf32>
    %973 = arith.index_cast %c7_i32 : i32 to index
    %c0_467 = arith.constant 0 : index
    %c0_468 = arith.constant 0 : index
    %974 = vector.load %arg10[%973, %c0_467, %c0_468] : memref<10x1x32xf32, #tpu.memory_space<vmem>>, vector<1x1x32xf32>
    %975 = vector.shape_cast %974 : vector<1x1x32xf32> to vector<1x32xf32>
    %976 = vector.broadcast %975 : vector<1x32xf32> to vector<16x32xf32>
    %977 = arith.addf %972, %976 : vector<16x32xf32>
    %cst_469 = arith.constant -1.000000e+00 : f32
    %cst_470 = arith.constant 0.9921875 : f32
    %978 = vector.broadcast %cst_469 : f32 to vector<16x32xf32>
    %979 = arith.maximumf %978, %977 : vector<16x32xf32>
    %980 = vector.broadcast %cst_470 : f32 to vector<16x32xf32>
    %981 = arith.minimumf %980, %979 : vector<16x32xf32>
    %cst_471 = arith.constant 1.280000e+02 : f32
    %982 = vector.broadcast %cst_471 : f32 to vector<16x32xf32>
    %983 = arith.mulf %981, %982 : vector<16x32xf32>
    %984 = math.roundeven %983 : vector<16x32xf32>
    %cst_472 = arith.constant 7.812500e-03 : f32
    %985 = vector.broadcast %cst_472 : f32 to vector<16x32xf32>
    %986 = arith.mulf %984, %985 : vector<16x32xf32>
    %987 = arith.addf %864, %986 : vector<16x32xf32>
    %c8_i32 = arith.constant 8 : i32
    %988 = arith.index_cast %c8_i32 : i32 to index
    %c0_473 = arith.constant 0 : index
    %c0_474 = arith.constant 0 : index
    %989 = vector.load %arg2[%988, %c0_473, %c0_474] : memref<10x96x8xbf16, #tpu.memory_space<vmem>>, vector<1x96x8xbf16>
    %990 = vector.shape_cast %989 : vector<1x96x8xbf16> to vector<96x8xbf16>
    %991 = arith.index_cast %c8_i32 : i32 to index
    %c0_475 = arith.constant 0 : index
    %c0_476 = arith.constant 0 : index
    %992 = vector.load %arg3[%991, %c0_475, %c0_476] : memref<10x8x128xbf16, #tpu.memory_space<vmem>>, vector<1x8x128xbf16>
    %993 = vector.shape_cast %992 : vector<1x8x128xbf16> to vector<8x128xbf16>
    %cst_477 = arith.constant dense<0.000000e+00> : vector<96x128xf32>
    %994 = tpu.matmul %990, %993, %cst_477 {dimension_numbers = #tpu.dot_dimension_numbers<[1], [0], [0], [1], [0, 0, 1, 1], [], []>} : vector<96x8xbf16>, vector<8x128xbf16>, vector<96x128xf32> -> vector<96x128xf32>
    %995 = arith.index_cast %c8_i32 : i32 to index
    %c0_478 = arith.constant 0 : index
    %c0_479 = arith.constant 0 : index
    %996 = vector.load %arg7[%995, %c0_478, %c0_479] : memref<10x1x128xf32, #tpu.memory_space<vmem>>, vector<1x1x128xf32>
    %997 = vector.shape_cast %996 : vector<1x1x128xf32> to vector<1x128xf32>
    %998 = vector.broadcast %997 : vector<1x128xf32> to vector<96x128xf32>
    %999 = arith.addf %994, %998 : vector<96x128xf32>
    %cst_480 = arith.constant 2.000000e+01 : f32
    %1000 = vector.broadcast %cst_480 : f32 to vector<96x128xf32>
    %1001 = arith.minimumf %999, %1000 : vector<96x128xf32>
    %1002 = math.exp %1001 : vector<96x128xf32>
    %cst_481 = arith.constant 2.000000e+00 : f32
    %1003 = vector.broadcast %cst_481 : f32 to vector<96x128xf32>
    %1004 = arith.addf %1002, %1003 : vector<96x128xf32>
    %1005 = arith.mulf %1002, %1004 : vector<96x128xf32>
    %1006 = arith.mulf %999, %1005 : vector<96x128xf32>
    %cst_482 = arith.constant 2.000000e+00 : f32
    %1007 = vector.broadcast %cst_482 : f32 to vector<96x128xf32>
    %1008 = arith.addf %1005, %1007 : vector<96x128xf32>
    %1009 = tpu.reciprocal %1008 {approx = true} : vector<96x128xf32> -> vector<96x128xf32>
    %1010 = arith.mulf %1006, %1009 : vector<96x128xf32>
    %1011 = arith.truncf %1010 : vector<96x128xf32> to vector<96x128xbf16>
    %1012 = vector.extract_strided_slice %1011 {offsets = [0, 0], sizes = [32, 128], strides = [1, 1]} : vector<96x128xbf16> to vector<32x128xbf16>
    %c4_i32_483 = arith.constant 4 : i32
    %1013 = arith.muli %c4_i32_483, %c8_i32 : i32
    %c0_i32_484 = arith.constant 0 : i32
    %1014 = arith.addi %1013, %c0_i32_484 : i32
    %1015 = arith.index_cast %1014 : i32 to index
    %c0_485 = arith.constant 0 : index
    %c0_486 = arith.constant 0 : index
    %1016 = vector.load %arg4[%1015, %c0_485, %c0_486] : memref<40x128x128xbf16, #tpu.memory_space<vmem>>, vector<1x128x128xbf16>
    %1017 = vector.shape_cast %1016 : vector<1x128x128xbf16> to vector<128x128xbf16>
    %cst_487 = arith.constant dense<0.000000e+00> : vector<32x128xf32>
    %1018 = tpu.matmul %1012, %1017, %cst_487 {dimension_numbers = #tpu.dot_dimension_numbers<[1], [0], [0], [1], [0, 0, 1, 1], [], []>} : vector<32x128xbf16>, vector<128x128xbf16>, vector<32x128xf32> -> vector<32x128xf32>
    %1019 = vector.extract_strided_slice %1011 {offsets = [16, 0], sizes = [32, 128], strides = [1, 1]} : vector<96x128xbf16> to vector<32x128xbf16>
    %c4_i32_488 = arith.constant 4 : i32
    %1020 = arith.muli %c4_i32_488, %c8_i32 : i32
    %c1_i32_489 = arith.constant 1 : i32
    %1021 = arith.addi %1020, %c1_i32_489 : i32
    %1022 = arith.index_cast %1021 : i32 to index
    %c0_490 = arith.constant 0 : index
    %c0_491 = arith.constant 0 : index
    %1023 = vector.load %arg4[%1022, %c0_490, %c0_491] : memref<40x128x128xbf16, #tpu.memory_space<vmem>>, vector<1x128x128xbf16>
    %1024 = vector.shape_cast %1023 : vector<1x128x128xbf16> to vector<128x128xbf16>
    %cst_492 = arith.constant dense<0.000000e+00> : vector<32x128xf32>
    %1025 = tpu.matmul %1019, %1024, %cst_492 {dimension_numbers = #tpu.dot_dimension_numbers<[1], [0], [0], [1], [0, 0, 1, 1], [], []>} : vector<32x128xbf16>, vector<128x128xbf16>, vector<32x128xf32> -> vector<32x128xf32>
    %1026 = arith.addf %1018, %1025 : vector<32x128xf32>
    %1027 = vector.extract_strided_slice %1011 {offsets = [48, 0], sizes = [32, 128], strides = [1, 1]} : vector<96x128xbf16> to vector<32x128xbf16>
    %c4_i32_493 = arith.constant 4 : i32
    %1028 = arith.muli %c4_i32_493, %c8_i32 : i32
    %c2_i32_494 = arith.constant 2 : i32
    %1029 = arith.addi %1028, %c2_i32_494 : i32
    %1030 = arith.index_cast %1029 : i32 to index
    %c0_495 = arith.constant 0 : index
    %c0_496 = arith.constant 0 : index
    %1031 = vector.load %arg4[%1030, %c0_495, %c0_496] : memref<40x128x128xbf16, #tpu.memory_space<vmem>>, vector<1x128x128xbf16>
    %1032 = vector.shape_cast %1031 : vector<1x128x128xbf16> to vector<128x128xbf16>
    %cst_497 = arith.constant dense<0.000000e+00> : vector<32x128xf32>
    %1033 = tpu.matmul %1027, %1032, %cst_497 {dimension_numbers = #tpu.dot_dimension_numbers<[1], [0], [0], [1], [0, 0, 1, 1], [], []>} : vector<32x128xbf16>, vector<128x128xbf16>, vector<32x128xf32> -> vector<32x128xf32>
    %1034 = arith.addf %1026, %1033 : vector<32x128xf32>
    %1035 = vector.extract_strided_slice %1011 {offsets = [64, 0], sizes = [32, 128], strides = [1, 1]} : vector<96x128xbf16> to vector<32x128xbf16>
    %c4_i32_498 = arith.constant 4 : i32
    %1036 = arith.muli %c4_i32_498, %c8_i32 : i32
    %c3_i32_499 = arith.constant 3 : i32
    %1037 = arith.addi %1036, %c3_i32_499 : i32
    %1038 = arith.index_cast %1037 : i32 to index
    %c0_500 = arith.constant 0 : index
    %c0_501 = arith.constant 0 : index
    %1039 = vector.load %arg4[%1038, %c0_500, %c0_501] : memref<40x128x128xbf16, #tpu.memory_space<vmem>>, vector<1x128x128xbf16>
    %1040 = vector.shape_cast %1039 : vector<1x128x128xbf16> to vector<128x128xbf16>
    %cst_502 = arith.constant dense<0.000000e+00> : vector<32x128xf32>
    %1041 = tpu.matmul %1035, %1040, %cst_502 {dimension_numbers = #tpu.dot_dimension_numbers<[1], [0], [0], [1], [0, 0, 1, 1], [], []>} : vector<32x128xbf16>, vector<128x128xbf16>, vector<32x128xf32> -> vector<32x128xf32>
    %1042 = arith.addf %1034, %1041 : vector<32x128xf32>
    %1043 = arith.index_cast %c8_i32 : i32 to index
    %c0_503 = arith.constant 0 : index
    %c0_504 = arith.constant 0 : index
    %1044 = vector.load %arg8[%1043, %c0_503, %c0_504] : memref<10x1x128xf32, #tpu.memory_space<vmem>>, vector<1x1x128xf32>
    %1045 = vector.shape_cast %1044 : vector<1x1x128xf32> to vector<1x128xf32>
    %1046 = vector.broadcast %1045 : vector<1x128xf32> to vector<32x128xf32>
    %1047 = arith.addf %1042, %1046 : vector<32x128xf32>
    %cst_505 = arith.constant 2.000000e+01 : f32
    %1048 = vector.broadcast %cst_505 : f32 to vector<32x128xf32>
    %1049 = arith.minimumf %1047, %1048 : vector<32x128xf32>
    %1050 = math.exp %1049 : vector<32x128xf32>
    %cst_506 = arith.constant 2.000000e+00 : f32
    %1051 = vector.broadcast %cst_506 : f32 to vector<32x128xf32>
    %1052 = arith.addf %1050, %1051 : vector<32x128xf32>
    %1053 = arith.mulf %1050, %1052 : vector<32x128xf32>
    %1054 = arith.mulf %1047, %1053 : vector<32x128xf32>
    %cst_507 = arith.constant 2.000000e+00 : f32
    %1055 = vector.broadcast %cst_507 : f32 to vector<32x128xf32>
    %1056 = arith.addf %1053, %1055 : vector<32x128xf32>
    %1057 = tpu.reciprocal %1056 {approx = true} : vector<32x128xf32> -> vector<32x128xf32>
    %1058 = arith.mulf %1054, %1057 : vector<32x128xf32>
    %1059 = arith.truncf %1058 : vector<32x128xf32> to vector<32x128xbf16>
    %1060 = vector.extract_strided_slice %1059 {offsets = [0, 0], sizes = [16, 128], strides = [1, 1]} : vector<32x128xbf16> to vector<16x128xbf16>
    %c2_i32_508 = arith.constant 2 : i32
    %1061 = arith.muli %c2_i32_508, %c8_i32 : i32
    %c0_i32_509 = arith.constant 0 : i32
    %1062 = arith.addi %1061, %c0_i32_509 : i32
    %1063 = arith.index_cast %1062 : i32 to index
    %c0_510 = arith.constant 0 : index
    %c0_511 = arith.constant 0 : index
    %1064 = vector.load %arg5[%1063, %c0_510, %c0_511] : memref<20x128x128xbf16, #tpu.memory_space<vmem>>, vector<1x128x128xbf16>
    %1065 = vector.shape_cast %1064 : vector<1x128x128xbf16> to vector<128x128xbf16>
    %cst_512 = arith.constant dense<0.000000e+00> : vector<16x128xf32>
    %1066 = tpu.matmul %1060, %1065, %cst_512 {dimension_numbers = #tpu.dot_dimension_numbers<[1], [0], [0], [1], [0, 0, 1, 1], [], []>} : vector<16x128xbf16>, vector<128x128xbf16>, vector<16x128xf32> -> vector<16x128xf32>
    %1067 = vector.extract_strided_slice %1059 {offsets = [16, 0], sizes = [16, 128], strides = [1, 1]} : vector<32x128xbf16> to vector<16x128xbf16>
    %c2_i32_513 = arith.constant 2 : i32
    %1068 = arith.muli %c2_i32_513, %c8_i32 : i32
    %c1_i32_514 = arith.constant 1 : i32
    %1069 = arith.addi %1068, %c1_i32_514 : i32
    %1070 = arith.index_cast %1069 : i32 to index
    %c0_515 = arith.constant 0 : index
    %c0_516 = arith.constant 0 : index
    %1071 = vector.load %arg5[%1070, %c0_515, %c0_516] : memref<20x128x128xbf16, #tpu.memory_space<vmem>>, vector<1x128x128xbf16>
    %1072 = vector.shape_cast %1071 : vector<1x128x128xbf16> to vector<128x128xbf16>
    %cst_517 = arith.constant dense<0.000000e+00> : vector<16x128xf32>
    %1073 = tpu.matmul %1067, %1072, %cst_517 {dimension_numbers = #tpu.dot_dimension_numbers<[1], [0], [0], [1], [0, 0, 1, 1], [], []>} : vector<16x128xbf16>, vector<128x128xbf16>, vector<16x128xf32> -> vector<16x128xf32>
    %1074 = arith.addf %1066, %1073 : vector<16x128xf32>
    %1075 = arith.index_cast %c8_i32 : i32 to index
    %c0_518 = arith.constant 0 : index
    %c0_519 = arith.constant 0 : index
    %1076 = vector.load %arg9[%1075, %c0_518, %c0_519] : memref<10x1x128xf32, #tpu.memory_space<vmem>>, vector<1x1x128xf32>
    %1077 = vector.shape_cast %1076 : vector<1x1x128xf32> to vector<1x128xf32>
    %1078 = vector.broadcast %1077 : vector<1x128xf32> to vector<16x128xf32>
    %1079 = arith.addf %1074, %1078 : vector<16x128xf32>
    %cst_520 = arith.constant 2.000000e+01 : f32
    %1080 = vector.broadcast %cst_520 : f32 to vector<16x128xf32>
    %1081 = arith.minimumf %1079, %1080 : vector<16x128xf32>
    %1082 = math.exp %1081 : vector<16x128xf32>
    %cst_521 = arith.constant 2.000000e+00 : f32
    %1083 = vector.broadcast %cst_521 : f32 to vector<16x128xf32>
    %1084 = arith.addf %1082, %1083 : vector<16x128xf32>
    %1085 = arith.mulf %1082, %1084 : vector<16x128xf32>
    %1086 = arith.mulf %1079, %1085 : vector<16x128xf32>
    %cst_522 = arith.constant 2.000000e+00 : f32
    %1087 = vector.broadcast %cst_522 : f32 to vector<16x128xf32>
    %1088 = arith.addf %1085, %1087 : vector<16x128xf32>
    %1089 = tpu.reciprocal %1088 {approx = true} : vector<16x128xf32> -> vector<16x128xf32>
    %1090 = arith.mulf %1086, %1089 : vector<16x128xf32>
    %1091 = arith.truncf %1090 : vector<16x128xf32> to vector<16x128xbf16>
    %1092 = arith.index_cast %c8_i32 : i32 to index
    %c0_523 = arith.constant 0 : index
    %c0_524 = arith.constant 0 : index
    %1093 = vector.load %arg6[%1092, %c0_523, %c0_524] : memref<10x128x32xbf16, #tpu.memory_space<vmem>>, vector<1x128x32xbf16>
    %1094 = vector.shape_cast %1093 : vector<1x128x32xbf16> to vector<128x32xbf16>
    %cst_525 = arith.constant dense<0.000000e+00> : vector<16x32xf32>
    %1095 = tpu.matmul %1091, %1094, %cst_525 {dimension_numbers = #tpu.dot_dimension_numbers<[1], [0], [0], [1], [0, 0, 1, 1], [], []>} : vector<16x128xbf16>, vector<128x32xbf16>, vector<16x32xf32> -> vector<16x32xf32>
    %1096 = arith.index_cast %c8_i32 : i32 to index
    %c0_526 = arith.constant 0 : index
    %c0_527 = arith.constant 0 : index
    %1097 = vector.load %arg10[%1096, %c0_526, %c0_527] : memref<10x1x32xf32, #tpu.memory_space<vmem>>, vector<1x1x32xf32>
    %1098 = vector.shape_cast %1097 : vector<1x1x32xf32> to vector<1x32xf32>
    %1099 = vector.broadcast %1098 : vector<1x32xf32> to vector<16x32xf32>
    %1100 = arith.addf %1095, %1099 : vector<16x32xf32>
    %cst_528 = arith.constant -1.000000e+00 : f32
    %cst_529 = arith.constant 0.9921875 : f32
    %1101 = vector.broadcast %cst_528 : f32 to vector<16x32xf32>
    %1102 = arith.maximumf %1101, %1100 : vector<16x32xf32>
    %1103 = vector.broadcast %cst_529 : f32 to vector<16x32xf32>
    %1104 = arith.minimumf %1103, %1102 : vector<16x32xf32>
    %cst_530 = arith.constant 1.280000e+02 : f32
    %1105 = vector.broadcast %cst_530 : f32 to vector<16x32xf32>
    %1106 = arith.mulf %1104, %1105 : vector<16x32xf32>
    %1107 = math.roundeven %1106 : vector<16x32xf32>
    %cst_531 = arith.constant 7.812500e-03 : f32
    %1108 = vector.broadcast %cst_531 : f32 to vector<16x32xf32>
    %1109 = arith.mulf %1107, %1108 : vector<16x32xf32>
    %1110 = arith.addf %987, %1109 : vector<16x32xf32>
    %c9_i32 = arith.constant 9 : i32
    %1111 = arith.index_cast %c9_i32 : i32 to index
    %c0_532 = arith.constant 0 : index
    %c0_533 = arith.constant 0 : index
    %1112 = vector.load %arg2[%1111, %c0_532, %c0_533] : memref<10x96x8xbf16, #tpu.memory_space<vmem>>, vector<1x96x8xbf16>
    %1113 = vector.shape_cast %1112 : vector<1x96x8xbf16> to vector<96x8xbf16>
    %1114 = arith.index_cast %c9_i32 : i32 to index
    %c0_534 = arith.constant 0 : index
    %c0_535 = arith.constant 0 : index
    %1115 = vector.load %arg3[%1114, %c0_534, %c0_535] : memref<10x8x128xbf16, #tpu.memory_space<vmem>>, vector<1x8x128xbf16>
    %1116 = vector.shape_cast %1115 : vector<1x8x128xbf16> to vector<8x128xbf16>
    %cst_536 = arith.constant dense<0.000000e+00> : vector<96x128xf32>
    %1117 = tpu.matmul %1113, %1116, %cst_536 {dimension_numbers = #tpu.dot_dimension_numbers<[1], [0], [0], [1], [0, 0, 1, 1], [], []>} : vector<96x8xbf16>, vector<8x128xbf16>, vector<96x128xf32> -> vector<96x128xf32>
    %1118 = arith.index_cast %c9_i32 : i32 to index
    %c0_537 = arith.constant 0 : index
    %c0_538 = arith.constant 0 : index
    %1119 = vector.load %arg7[%1118, %c0_537, %c0_538] : memref<10x1x128xf32, #tpu.memory_space<vmem>>, vector<1x1x128xf32>
    %1120 = vector.shape_cast %1119 : vector<1x1x128xf32> to vector<1x128xf32>
    %1121 = vector.broadcast %1120 : vector<1x128xf32> to vector<96x128xf32>
    %1122 = arith.addf %1117, %1121 : vector<96x128xf32>
    %cst_539 = arith.constant 2.000000e+01 : f32
    %1123 = vector.broadcast %cst_539 : f32 to vector<96x128xf32>
    %1124 = arith.minimumf %1122, %1123 : vector<96x128xf32>
    %1125 = math.exp %1124 : vector<96x128xf32>
    %cst_540 = arith.constant 2.000000e+00 : f32
    %1126 = vector.broadcast %cst_540 : f32 to vector<96x128xf32>
    %1127 = arith.addf %1125, %1126 : vector<96x128xf32>
    %1128 = arith.mulf %1125, %1127 : vector<96x128xf32>
    %1129 = arith.mulf %1122, %1128 : vector<96x128xf32>
    %cst_541 = arith.constant 2.000000e+00 : f32
    %1130 = vector.broadcast %cst_541 : f32 to vector<96x128xf32>
    %1131 = arith.addf %1128, %1130 : vector<96x128xf32>
    %1132 = tpu.reciprocal %1131 {approx = true} : vector<96x128xf32> -> vector<96x128xf32>
    %1133 = arith.mulf %1129, %1132 : vector<96x128xf32>
    %1134 = arith.truncf %1133 : vector<96x128xf32> to vector<96x128xbf16>
    %1135 = vector.extract_strided_slice %1134 {offsets = [0, 0], sizes = [32, 128], strides = [1, 1]} : vector<96x128xbf16> to vector<32x128xbf16>
    %c4_i32_542 = arith.constant 4 : i32
    %1136 = arith.muli %c4_i32_542, %c9_i32 : i32
    %c0_i32_543 = arith.constant 0 : i32
    %1137 = arith.addi %1136, %c0_i32_543 : i32
    %1138 = arith.index_cast %1137 : i32 to index
    %c0_544 = arith.constant 0 : index
    %c0_545 = arith.constant 0 : index
    %1139 = vector.load %arg4[%1138, %c0_544, %c0_545] : memref<40x128x128xbf16, #tpu.memory_space<vmem>>, vector<1x128x128xbf16>
    %1140 = vector.shape_cast %1139 : vector<1x128x128xbf16> to vector<128x128xbf16>
    %cst_546 = arith.constant dense<0.000000e+00> : vector<32x128xf32>
    %1141 = tpu.matmul %1135, %1140, %cst_546 {dimension_numbers = #tpu.dot_dimension_numbers<[1], [0], [0], [1], [0, 0, 1, 1], [], []>} : vector<32x128xbf16>, vector<128x128xbf16>, vector<32x128xf32> -> vector<32x128xf32>
    %1142 = vector.extract_strided_slice %1134 {offsets = [16, 0], sizes = [32, 128], strides = [1, 1]} : vector<96x128xbf16> to vector<32x128xbf16>
    %c4_i32_547 = arith.constant 4 : i32
    %1143 = arith.muli %c4_i32_547, %c9_i32 : i32
    %c1_i32_548 = arith.constant 1 : i32
    %1144 = arith.addi %1143, %c1_i32_548 : i32
    %1145 = arith.index_cast %1144 : i32 to index
    %c0_549 = arith.constant 0 : index
    %c0_550 = arith.constant 0 : index
    %1146 = vector.load %arg4[%1145, %c0_549, %c0_550] : memref<40x128x128xbf16, #tpu.memory_space<vmem>>, vector<1x128x128xbf16>
    %1147 = vector.shape_cast %1146 : vector<1x128x128xbf16> to vector<128x128xbf16>
    %cst_551 = arith.constant dense<0.000000e+00> : vector<32x128xf32>
    %1148 = tpu.matmul %1142, %1147, %cst_551 {dimension_numbers = #tpu.dot_dimension_numbers<[1], [0], [0], [1], [0, 0, 1, 1], [], []>} : vector<32x128xbf16>, vector<128x128xbf16>, vector<32x128xf32> -> vector<32x128xf32>
    %1149 = arith.addf %1141, %1148 : vector<32x128xf32>
    %1150 = vector.extract_strided_slice %1134 {offsets = [48, 0], sizes = [32, 128], strides = [1, 1]} : vector<96x128xbf16> to vector<32x128xbf16>
    %c4_i32_552 = arith.constant 4 : i32
    %1151 = arith.muli %c4_i32_552, %c9_i32 : i32
    %c2_i32_553 = arith.constant 2 : i32
    %1152 = arith.addi %1151, %c2_i32_553 : i32
    %1153 = arith.index_cast %1152 : i32 to index
    %c0_554 = arith.constant 0 : index
    %c0_555 = arith.constant 0 : index
    %1154 = vector.load %arg4[%1153, %c0_554, %c0_555] : memref<40x128x128xbf16, #tpu.memory_space<vmem>>, vector<1x128x128xbf16>
    %1155 = vector.shape_cast %1154 : vector<1x128x128xbf16> to vector<128x128xbf16>
    %cst_556 = arith.constant dense<0.000000e+00> : vector<32x128xf32>
    %1156 = tpu.matmul %1150, %1155, %cst_556 {dimension_numbers = #tpu.dot_dimension_numbers<[1], [0], [0], [1], [0, 0, 1, 1], [], []>} : vector<32x128xbf16>, vector<128x128xbf16>, vector<32x128xf32> -> vector<32x128xf32>
    %1157 = arith.addf %1149, %1156 : vector<32x128xf32>
    %1158 = vector.extract_strided_slice %1134 {offsets = [64, 0], sizes = [32, 128], strides = [1, 1]} : vector<96x128xbf16> to vector<32x128xbf16>
    %c4_i32_557 = arith.constant 4 : i32
    %1159 = arith.muli %c4_i32_557, %c9_i32 : i32
    %c3_i32_558 = arith.constant 3 : i32
    %1160 = arith.addi %1159, %c3_i32_558 : i32
    %1161 = arith.index_cast %1160 : i32 to index
    %c0_559 = arith.constant 0 : index
    %c0_560 = arith.constant 0 : index
    %1162 = vector.load %arg4[%1161, %c0_559, %c0_560] : memref<40x128x128xbf16, #tpu.memory_space<vmem>>, vector<1x128x128xbf16>
    %1163 = vector.shape_cast %1162 : vector<1x128x128xbf16> to vector<128x128xbf16>
    %cst_561 = arith.constant dense<0.000000e+00> : vector<32x128xf32>
    %1164 = tpu.matmul %1158, %1163, %cst_561 {dimension_numbers = #tpu.dot_dimension_numbers<[1], [0], [0], [1], [0, 0, 1, 1], [], []>} : vector<32x128xbf16>, vector<128x128xbf16>, vector<32x128xf32> -> vector<32x128xf32>
    %1165 = arith.addf %1157, %1164 : vector<32x128xf32>
    %1166 = arith.index_cast %c9_i32 : i32 to index
    %c0_562 = arith.constant 0 : index
    %c0_563 = arith.constant 0 : index
    %1167 = vector.load %arg8[%1166, %c0_562, %c0_563] : memref<10x1x128xf32, #tpu.memory_space<vmem>>, vector<1x1x128xf32>
    %1168 = vector.shape_cast %1167 : vector<1x1x128xf32> to vector<1x128xf32>
    %1169 = vector.broadcast %1168 : vector<1x128xf32> to vector<32x128xf32>
    %1170 = arith.addf %1165, %1169 : vector<32x128xf32>
    %cst_564 = arith.constant 2.000000e+01 : f32
    %1171 = vector.broadcast %cst_564 : f32 to vector<32x128xf32>
    %1172 = arith.minimumf %1170, %1171 : vector<32x128xf32>
    %1173 = math.exp %1172 : vector<32x128xf32>
    %cst_565 = arith.constant 2.000000e+00 : f32
    %1174 = vector.broadcast %cst_565 : f32 to vector<32x128xf32>
    %1175 = arith.addf %1173, %1174 : vector<32x128xf32>
    %1176 = arith.mulf %1173, %1175 : vector<32x128xf32>
    %1177 = arith.mulf %1170, %1176 : vector<32x128xf32>
    %cst_566 = arith.constant 2.000000e+00 : f32
    %1178 = vector.broadcast %cst_566 : f32 to vector<32x128xf32>
    %1179 = arith.addf %1176, %1178 : vector<32x128xf32>
    %1180 = tpu.reciprocal %1179 {approx = true} : vector<32x128xf32> -> vector<32x128xf32>
    %1181 = arith.mulf %1177, %1180 : vector<32x128xf32>
    %1182 = arith.truncf %1181 : vector<32x128xf32> to vector<32x128xbf16>
    %1183 = vector.extract_strided_slice %1182 {offsets = [0, 0], sizes = [16, 128], strides = [1, 1]} : vector<32x128xbf16> to vector<16x128xbf16>
    %c2_i32_567 = arith.constant 2 : i32
    %1184 = arith.muli %c2_i32_567, %c9_i32 : i32
    %c0_i32_568 = arith.constant 0 : i32
    %1185 = arith.addi %1184, %c0_i32_568 : i32
    %1186 = arith.index_cast %1185 : i32 to index
    %c0_569 = arith.constant 0 : index
    %c0_570 = arith.constant 0 : index
    %1187 = vector.load %arg5[%1186, %c0_569, %c0_570] : memref<20x128x128xbf16, #tpu.memory_space<vmem>>, vector<1x128x128xbf16>
    %1188 = vector.shape_cast %1187 : vector<1x128x128xbf16> to vector<128x128xbf16>
    %cst_571 = arith.constant dense<0.000000e+00> : vector<16x128xf32>
    %1189 = tpu.matmul %1183, %1188, %cst_571 {dimension_numbers = #tpu.dot_dimension_numbers<[1], [0], [0], [1], [0, 0, 1, 1], [], []>} : vector<16x128xbf16>, vector<128x128xbf16>, vector<16x128xf32> -> vector<16x128xf32>
    %1190 = vector.extract_strided_slice %1182 {offsets = [16, 0], sizes = [16, 128], strides = [1, 1]} : vector<32x128xbf16> to vector<16x128xbf16>
    %c2_i32_572 = arith.constant 2 : i32
    %1191 = arith.muli %c2_i32_572, %c9_i32 : i32
    %c1_i32_573 = arith.constant 1 : i32
    %1192 = arith.addi %1191, %c1_i32_573 : i32
    %1193 = arith.index_cast %1192 : i32 to index
    %c0_574 = arith.constant 0 : index
    %c0_575 = arith.constant 0 : index
    %1194 = vector.load %arg5[%1193, %c0_574, %c0_575] : memref<20x128x128xbf16, #tpu.memory_space<vmem>>, vector<1x128x128xbf16>
    %1195 = vector.shape_cast %1194 : vector<1x128x128xbf16> to vector<128x128xbf16>
    %cst_576 = arith.constant dense<0.000000e+00> : vector<16x128xf32>
    %1196 = tpu.matmul %1190, %1195, %cst_576 {dimension_numbers = #tpu.dot_dimension_numbers<[1], [0], [0], [1], [0, 0, 1, 1], [], []>} : vector<16x128xbf16>, vector<128x128xbf16>, vector<16x128xf32> -> vector<16x128xf32>
    %1197 = arith.addf %1189, %1196 : vector<16x128xf32>
    %1198 = arith.index_cast %c9_i32 : i32 to index
    %c0_577 = arith.constant 0 : index
    %c0_578 = arith.constant 0 : index
    %1199 = vector.load %arg9[%1198, %c0_577, %c0_578] : memref<10x1x128xf32, #tpu.memory_space<vmem>>, vector<1x1x128xf32>
    %1200 = vector.shape_cast %1199 : vector<1x1x128xf32> to vector<1x128xf32>
    %1201 = vector.broadcast %1200 : vector<1x128xf32> to vector<16x128xf32>
    %1202 = arith.addf %1197, %1201 : vector<16x128xf32>
    %cst_579 = arith.constant 2.000000e+01 : f32
    %1203 = vector.broadcast %cst_579 : f32 to vector<16x128xf32>
    %1204 = arith.minimumf %1202, %1203 : vector<16x128xf32>
    %1205 = math.exp %1204 : vector<16x128xf32>
    %cst_580 = arith.constant 2.000000e+00 : f32
    %1206 = vector.broadcast %cst_580 : f32 to vector<16x128xf32>
    %1207 = arith.addf %1205, %1206 : vector<16x128xf32>
    %1208 = arith.mulf %1205, %1207 : vector<16x128xf32>
    %1209 = arith.mulf %1202, %1208 : vector<16x128xf32>
    %cst_581 = arith.constant 2.000000e+00 : f32
    %1210 = vector.broadcast %cst_581 : f32 to vector<16x128xf32>
    %1211 = arith.addf %1208, %1210 : vector<16x128xf32>
    %1212 = tpu.reciprocal %1211 {approx = true} : vector<16x128xf32> -> vector<16x128xf32>
    %1213 = arith.mulf %1209, %1212 : vector<16x128xf32>
    %1214 = arith.truncf %1213 : vector<16x128xf32> to vector<16x128xbf16>
    %1215 = arith.index_cast %c9_i32 : i32 to index
    %c0_582 = arith.constant 0 : index
    %c0_583 = arith.constant 0 : index
    %1216 = vector.load %arg6[%1215, %c0_582, %c0_583] : memref<10x128x32xbf16, #tpu.memory_space<vmem>>, vector<1x128x32xbf16>
    %1217 = vector.shape_cast %1216 : vector<1x128x32xbf16> to vector<128x32xbf16>
    %cst_584 = arith.constant dense<0.000000e+00> : vector<16x32xf32>
    %1218 = tpu.matmul %1214, %1217, %cst_584 {dimension_numbers = #tpu.dot_dimension_numbers<[1], [0], [0], [1], [0, 0, 1, 1], [], []>} : vector<16x128xbf16>, vector<128x32xbf16>, vector<16x32xf32> -> vector<16x32xf32>
    %1219 = arith.index_cast %c9_i32 : i32 to index
    %c0_585 = arith.constant 0 : index
    %c0_586 = arith.constant 0 : index
    %1220 = vector.load %arg10[%1219, %c0_585, %c0_586] : memref<10x1x32xf32, #tpu.memory_space<vmem>>, vector<1x1x32xf32>
    %1221 = vector.shape_cast %1220 : vector<1x1x32xf32> to vector<1x32xf32>
    %1222 = vector.broadcast %1221 : vector<1x32xf32> to vector<16x32xf32>
    %1223 = arith.addf %1218, %1222 : vector<16x32xf32>
    %cst_587 = arith.constant -1.000000e+00 : f32
    %cst_588 = arith.constant 0.9921875 : f32
    %1224 = vector.broadcast %cst_587 : f32 to vector<16x32xf32>
    %1225 = arith.maximumf %1224, %1223 : vector<16x32xf32>
    %1226 = vector.broadcast %cst_588 : f32 to vector<16x32xf32>
    %1227 = arith.minimumf %1226, %1225 : vector<16x32xf32>
    %cst_589 = arith.constant 1.280000e+02 : f32
    %1228 = vector.broadcast %cst_589 : f32 to vector<16x32xf32>
    %1229 = arith.mulf %1227, %1228 : vector<16x32xf32>
    %1230 = math.roundeven %1229 : vector<16x32xf32>
    %cst_590 = arith.constant 7.812500e-03 : f32
    %1231 = vector.broadcast %cst_590 : f32 to vector<16x32xf32>
    %1232 = arith.mulf %1230, %1231 : vector<16x32xf32>
    %1233 = arith.addf %1110, %1232 : vector<16x32xf32>
    %c10_i32 = arith.constant 10 : i32
    %c0_591 = arith.constant 0 : index
    %c0_592 = arith.constant 0 : index
    %c0_593 = arith.constant 0 : index
    %1234 = vector.load %arg11[%c0_591, %c0_592, %c0_593] : memref<1x16x32xf32, #tpu.memory_space<vmem>>, vector<1x16x32xf32>
    %1235 = vector.shape_cast %1234 : vector<1x16x32xf32> to vector<16x32xf32>
    %1236 = arith.addf %1235, %1233 : vector<16x32xf32>
    %c0_594 = arith.constant 0 : index
    %c0_595 = arith.constant 0 : index
    %c0_596 = arith.constant 0 : index
    %1237 = vector.load %arg11[%c0_594, %c0_595, %c0_596] : memref<1x16x32xf32, #tpu.memory_space<vmem>>, vector<1x16x32xf32>
    %1238 = vector.shape_cast %1237 : vector<1x16x32xf32> to vector<16x32xf32>
    %1239 = vector.shape_cast %1236 : vector<16x32xf32> to vector<1x16x32xf32>
    tpu.vector_store %arg11[%c0_594, %c0_595, %c0_596], %1239 {strides = array<i32>} : memref<1x16x32xf32, #tpu.memory_space<vmem>>, vector<1x16x32xf32>,
    return
  }
  func.func @transform_0(%arg0: i32, %arg1: i32) -> (i32, i32, i32) {
    %c2_i32 = arith.constant 2 : i32
    %0 = arith.muli %arg0, %c2_i32 : i32
    %1 = arith.addi %0, %arg1 : i32
    %c0_i32 = arith.constant 0 : i32
    %c0_i32_0 = arith.constant 0 : i32
    %c0_i32_1 = arith.constant 0 : i32
    return %1, %c0_i32, %c0_i32_0 : i32, i32, i32
  }
  func.func @transform_1(%arg0: i32, %arg1: i32) -> (i32, i32, i32) {
    %c2_i32 = arith.constant 2 : i32
    %0 = arith.muli %arg0, %c2_i32 : i32
    %1 = arith.addi %0, %arg1 : i32
    %c0_i32 = arith.constant 0 : i32
    %c0_i32_0 = arith.constant 0 : i32
    %c0_i32_1 = arith.constant 0 : i32
    return %1, %c0_i32, %c0_i32_0 : i32, i32, i32
  }
  func.func @transform_2(%arg0: i32, %arg1: i32) -> (i32, i32, i32) {
    %c2_i32 = arith.constant 2 : i32
    %0 = arith.muli %arg0, %c2_i32 : i32
    %1 = arith.addi %0, %arg1 : i32
    %c0_i32 = arith.constant 0 : i32
    %c0_i32_0 = arith.constant 0 : i32
    %c0_i32_1 = arith.constant 0 : i32
    return %1, %c0_i32, %c0_i32_0 : i32, i32, i32
  }
  func.func @transform_3(%arg0: i32, %arg1: i32) -> (i32, i32, i32) {
    %c2_i32 = arith.constant 2 : i32
    %0 = arith.muli %arg0, %c2_i32 : i32
    %1 = arith.addi %0, %arg1 : i32
    %c0_i32 = arith.constant 0 : i32
    %c0_i32_0 = arith.constant 0 : i32
    %c0_i32_1 = arith.constant 0 : i32
    return %1, %c0_i32, %c0_i32_0 : i32, i32, i32
  }
  func.func @transform_4(%arg0: i32, %arg1: i32) -> (i32, i32, i32) {
    %c2_i32 = arith.constant 2 : i32
    %0 = arith.muli %arg0, %c2_i32 : i32
    %1 = arith.addi %0, %arg1 : i32
    %c0_i32 = arith.constant 0 : i32
    %c0_i32_0 = arith.constant 0 : i32
    %c0_i32_1 = arith.constant 0 : i32
    return %1, %c0_i32, %c0_i32_0 : i32, i32, i32
  }
  func.func @transform_5(%arg0: i32, %arg1: i32) -> (i32, i32, i32) {
    %c2_i32 = arith.constant 2 : i32
    %0 = arith.muli %arg0, %c2_i32 : i32
    %1 = arith.addi %0, %arg1 : i32
    %c0_i32 = arith.constant 0 : i32
    %c0_i32_0 = arith.constant 0 : i32
    %c0_i32_1 = arith.constant 0 : i32
    return %1, %c0_i32, %c0_i32_0 : i32, i32, i32
  }
  func.func @transform_6(%arg0: i32, %arg1: i32) -> (i32, i32, i32) {
    %c2_i32 = arith.constant 2 : i32
    %0 = arith.muli %arg0, %c2_i32 : i32
    %1 = arith.addi %0, %arg1 : i32
    %c0_i32 = arith.constant 0 : i32
    %c0_i32_0 = arith.constant 0 : i32
    %c0_i32_1 = arith.constant 0 : i32
    return %1, %c0_i32, %c0_i32_0 : i32, i32, i32
  }
  func.func @transform_7(%arg0: i32, %arg1: i32) -> (i32, i32, i32) {
    %c2_i32 = arith.constant 2 : i32
    %0 = arith.muli %arg0, %c2_i32 : i32
    %1 = arith.addi %0, %arg1 : i32
    %c0_i32 = arith.constant 0 : i32
    %c0_i32_0 = arith.constant 0 : i32
    %c0_i32_1 = arith.constant 0 : i32
    return %1, %c0_i32, %c0_i32_0 : i32, i32, i32
  }
  func.func @transform_8(%arg0: i32, %arg1: i32) -> (i32, i32, i32) {
    %c2_i32 = arith.constant 2 : i32
    %0 = arith.muli %arg0, %c2_i32 : i32
    %1 = arith.addi %0, %arg1 : i32
    %c0_i32 = arith.constant 0 : i32
    %c0_i32_0 = arith.constant 0 : i32
    %c0_i32_1 = arith.constant 0 : i32
    return %1, %c0_i32, %c0_i32_0 : i32, i32, i32
  }
  func.func @transform_9(%arg0: i32, %arg1: i32) -> (i32, i32, i32) {
    %c0_i32 = arith.constant 0 : i32
    %c0_i32_0 = arith.constant 0 : i32
    %c0_i32_1 = arith.constant 0 : i32
    return %arg0, %c0_i32, %c0_i32_0 : i32, i32, i32
  }
}

</mosaic_0001>

<bundles_post_ra>
// kernel: flat_nnue_forward.1
= control target key start
LH: loop header
LB: loop body
LE: loop exit
PB: predicated region body
PF: predicated region fallthrough
CT: control target
= control target key end

     0   :  { %s17284_s0 = inlined_call_operand.vmem [shape: bf16[40,96,8], index: 0, kind: input, shape index: {}]   ;;  %s17285_s1 = inlined_call_operand.vmem [shape: bf16[40,8,128], index: 1, kind: input, shape index: {}]   ;;  %s17286_s2 = inlined_call_operand.vmem [shape: bf16[160,128,128], index: 2, kind: input, shape index: {}]   ;;  %s17287_s3 = inlined_call_operand.hbm [shape: bf16[80,128,128], index: 3, kind: input, shape index: {}]   ;;  %s17288_s4 = inlined_call_operand.vmem [shape: bf16[40,128,32], index: 4, kind: input, shape index: {}]   ;;  %s17289_s5 = inlined_call_operand.vmem [shape: f32[40,1,128], index: 5, kind: input, shape index: {}]   ;;  %s17290_s6 = inlined_call_operand.vmem [shape: f32[40,1,128], index: 6, kind: input, shape index: {}]   ;;  %s17291_s7 = inlined_call_operand.vmem [shape: f32[40,1,128], index: 7, kind: input, shape index: {}]   ;;  %s17292_s8 = inlined_call_operand.vmem [shape: f32[40,1,32], index: 8, kind: input, shape index: {}]   ;;  %s17293_s9 = inlined_call_operand.vmem [shape: f32[2,16,32], index: 9, kind: output, shape index: {}]  }
   0x1   :  { %17299 = sst [smem:[#allocation11_spill]] %s17284_s0 }
   0x2   :  { %17300 = sst [smem:[#allocation12_spill]] %s17285_s1 }
   0x3   :  { %17301 = sst [smem:[#allocation13_spill]] %s17287_s3 }
   0x4   :  { %17302 = sst [smem:[#allocation14_spill]] %s17293_s9 }
   0x5   :  { %14 = vsyncpa [#allocation3], 0 }
   0x6   :  { %16 = vsyncpa [#allocation3 + $0x1], 0  ;;  %s15935_s30 = smov 0   ;;  %s15937_s10 = smov 0  }
   0x7   :  { %s15939_s11 = smov 0   ;;  %s15941_s12 = smov 0  }
   0x8   :  { %s15943_s13 = smov 0   ;;  %s15945_s14 = smov 0  }
   0x9   :  { %s15947_s15 = smov 0   ;;  %s15949_s16 = smov 0  }
   0xa LB: > { %17303 = sst [smem:[#allocation5_spill]] %s15860_s11  ;;  %s10344_s17 = sadd.s32 4294967295, %s15880_s16   ;;  %s15880_s16 = sphi %s15949_s16, %s22_s16   ;;  %s15876_s15 = sphi %s15947_s15, %s17329_s15   ;;  %s15872_s14 = sphi %s15945_s14, %s17328_s14   ;;  %s15868_s13 = sphi %s15943_s13, %s17327_s13   ;;  %s15864_s12 = sphi %s15941_s12, %s17326_s12   ;;  %s15860_s11 = sphi %s15939_s11, %s17325_s11   ;;  %s15856_s10 = sphi %s15937_s10, %s17331_s10   ;;  %s15852_s30 = sphi %s15935_s30, %s17330_s30  }
   0xb   : > { %17304 = sst [smem:[#allocation6_spill]] %s15872_s14  ;;  %s31_s18 = sadd.s32 1, %s15872_s14 }
   0xc   : > { %17305 = sst [smem:[#allocation7_spill]] %s15876_s15  ;;  %p32_p0 = scmp.ge.s32.totalorder %s31_s18, 2 }
   0xd   : > { %s34_s19 = sadd.s32 1, %s15876_s15  ;;  %s10352_s20 = sshll.u32 %s15876_s15, 1 }
   0xe   : > { %s135_s21 = sadd.s32 1, %s15860_s11  ;;  %s17333_s18 = smov (%p32_p0, %s31_s18), 0 }
   0xf   : > { %17306 = sst [smem:[#allocation8_spill]] %s17333_s18  ;;  %s17335_s19 = smov (!%p32_p0, %s34_s19), %s15876_s15 }
  0x10   : > { %s129_s22 = sadd.s32 %s15872_s14, %s10352_s20  ;;  %p142_p1 = scmp.ne.s32.totalorder %s15860_s11, %s15856_s10 }
  0x11   : > { %p36_p2 = scmp.ge.s32.totalorder %s17335_s19, 2  ;;  %p143_p3 = scmp.eq.s32.totalorder %s15880_s16, 0 }
  0x12   : > { %p148_p4 = scmp.ne.s32.totalorder %s15856_s10, %s15852_s30  ;;  %p149_p5 = scmp.eq.s32.totalorder %s10344_s17, 0 }
  0x13   : > { %s17337_s19 = smov (%p36_p2, %s17335_s19), 0  ;;  %p144_p6 = por %p143_p3, %p142_p1 }
  0x14   : > { %17307 = sst [smem:[#allocation9_spill]] %s17337_s19  ;;  %p15988_p7 = por %p149_p5, %p148_p4 }
  0x15   : > { %s10353_s24 = sshll.u32 %s17337_s19, 1  ;;  %p14949_p8 = scmp.lt.s32.totalorder %s15880_s16, 4 }
  0x16   : > { %s131_s25 = sadd.s32 %s10353_s24, %s17333_s18  ;;  %s389_s27 = sand.u32 1, %s15860_s11  }
  0x17   : > { %s132_s26 = ssub.s32 %s129_s22, %s131_s25  ;;  %s14780_s28 = smul.u32 1280, %s389_s27 }
  0x18   : > { %p133_p9 = scmp.eq.s32.totalorder %s132_s26, 0  ;;  %p14946_p10 = pnand %p14949_p8, %p144_p6 }
  0x19   : > { %s14779_s30 = smul.u32 1280, %s129_s22  ;;  %s393_s17 = scalar_lea.vmem [#allocation2], %s14780_s28 }
  0x1a   : > { %s15997_s29 = scalar_select %p133_p9, %s15860_s11, %s135_s21  }
  0x1b   : > { %s404_s20 = sshll.u32 %s393_s17, 4  ;;  %s17310_s3 = sld [smem:[#allocation13_spill]]  ;;  %s405_s20 = int_to_ptr.vmem [resolvable:$true] %s404_s20 }
  0x1c   : > { %17309 = sst [smem:[#allocation10_spill]] %s15997_s29  ;;  %s390_s24 = scalar_lea.sflag [#allocation3], %s389_s27 }
  0x1d   : > { %s15882_s25 = smov 64   ;;  %s15883_s18 = smov 4  }
  0x1e   : > { %p10369_p11 = scmp.ge.s32.totalorder %s15880_s16, 1  ;;  %p474_p12 = scmp.lt.s32.totalorder %s15880_s16, 5 }
  0x20   : > { %p475_p13 = pnand %p10369_p11, %p474_p12 }
  0x21   : > { %s401_s9 = scalar_lea.hbm %s17310_s3, %s14779_s30  ;;  %s480_s21 = sand.u32 (!%p475_p13), 1, %s15856_s10  }
  0x22   : > { %s402_s19 = sshll.u32 %s401_s9, 4  ;;  %478 = sbr.rel (%p475_p13) target bundleno = 4782 (0x12ae), region = 56  ;;  %s403_s19 = int_to_ptr.hbm [resolvable:$true] %s402_s19 }
  0x23   : > { %14948 = dma.hbm_to_vmem [thread:$0]  (!%p14946_p10), %s403_s19, 20480, %s405_s20, %s390_s24, %s15882_s25, %s15882_s25, %s15883_s18  }
  0x24   : > { %s14781_s22 = smul.u32 (!%p475_p13), 1280, %s480_s21  ;;  %s481_s26 = scalar_lea.sflag (!%p475_p13), [#allocation3], %s480_s21 }
  0x26   : > { %s16005_s28 = scalar_lea.vmem (!%p475_p13), [#allocation2], %s14781_s22 }
  0x27   : > { %15847 = dma.done.wait (%p15988_p7), %s481_s26, 20480  }
  0x28   : > { %15849 = vsyncadd (%p15988_p7), %s481_s26, 4294946816  ;;  %s10370_s9 = sshll.u32 %s15868_s13, 1  ;;  %p657_p2 = scmp.lt.s32.totalorder %s15868_s13, 1 }
  0x29   : > { %s576_s14 = sadd.s32 %s15864_s12, %s10370_s9  ;;  %s17311_s1 = sld [smem:[#allocation12_spill]] }
  0x2a   : > { %s577_s15 = smul.u32 10, %s576_s14  ;;  %s17312_s0 = sld [smem:[#allocation11_spill]] }
  0x2b   : > { %s598_s18 = smul.u32 40, %s576_s14  ;;  %s17343_s13 = smov (!%p657_p2, %s15868_s13), 1 }
  0x2c   : > { %p578_p0 = scmp.lt.s32.totalorder %s577_s15, 39  ;;  %s14158_s29 = sshll.u32 %s17343_s13, 4 }
  0x2d   : > { %p599_p1 = scmp.lt.s32.totalorder %s598_s18, 159  ;;  %p10386_p3 = scmp.ne.s32.totalorder %s15864_s12, 0 }
  0x2e   : > { %s17339_s15 = smov (!%p578_p0, %s577_s15), 39 }
  0x2f   : > { %s17341_s18 = smov (!%p599_p1, %s598_s18), 159  ;;  %s14782_s19 = smul.u32 48, %s17339_s15 }
  0x30   : > { %s10373_s27 = sshll.u32 %s17339_s15, 2  ;;  %s14156_s20 = sshll.u32 %s17341_s18, 6 }
  0x31   : > { %s16017_s23 = scalar_lea.vmem %s17311_s1, %s10373_s27  ;;  %s16022_s21 = scalar_lea.vmem %s17312_s0, %s14782_s19 }
  0x32   : > { %s16027_s9 = scalar_lea.vmem %s17286_s2, %s14156_s20  ;;  %s14157_s14 = sshll.u32 %s17339_s15, 6 }
  0x33   : > { %s16032_s11 = scalar_lea.vmem %s17289_s5, %s17339_s15  ;;  %s16037_s18 = scalar_lea.vmem %s17288_s4, %s14157_s14 }
  0x34   : > { %s16042_s19 = scalar_lea.vmem %s17290_s6, %s17339_s15  ;;  %s16047_s20 = scalar_lea.vmem %s17291_s7, %s17339_s15 }
  0x35   : > { %s16052_s3 = scalar_lea.vmem %s17292_s8, %s17339_s15  ;;  %s17313_s27 = sld [smem:[#allocation14_spill]] }
  0x37   : > { %666 = sbr.rel (%p10386_p3) target bundleno = 63 (0x3f), region = 64 }
  0x3b   : > { %s16060_s1 = scalar_lea.vmem %s17313_s27, %s14158_s29 }
  0x3c   : > { %vm667_vm0 = vcmask 261120   ;;  %v15884_v0 = vmov 0.0  }
  0x3d   : > { %668 = vst.msk [vmem:[%s16060_s1] sm:$0xff] %vm667_vm0, %v15884_v0 }
  0x3e   : > { %669 = vst.msk [vmem:[%s16060_s1 + $0x8] sm:$0xff] %vm667_vm0, %v15884_v0 }
  0x3f PF: > { %v682_v1 = vld [vmem:[%s16017_s23] sm:$0xf]  ;;  %vm736_vm1 = vcmask 1043456   ;;  %vm717_vm2 = vcmask 64512   ;;  %v14160_v4 = vld [vmem:[%s16022_s21 + $0x8] sm:$0xff]  ;;  %v14161_v5 = vld [vmem:[%s16022_s21 + $0x10] sm:$0xff] }
  0x40   : > { %v14159_v2 = vld [vmem:[%s16022_s21] sm:$0xff]  ;;  %v738_v3 = vsel %vm736_vm1, %v682_v1, 0  ;;  %v14162_v6 = vld [vmem:[%s16022_s21 + $0x18] sm:$0xff]  ;;  %v14164_v8 = vld [vmem:[%s16022_s21 + $0x28] sm:$0xff] }
  0x41   : > { %747 = vmatpush.bf16.msra.mxu0 %v738_v3  ;;  %v14163_v7 = vld [vmem:[%s16022_s21 + $0x20] sm:$0xff]  ;;  %v14172_v9 = vld [vmem:[%s16027_s9 + $0x38] sm:$0xff]  ;;  %v14171_v10 = vld [vmem:[%s16027_s9 + $0x30] sm:$0xff] }
  0x42   : > { %1065 = vmatpush.bf16.msra.mxu2 %v14172_v9  ;;  %v14170_v11 = vld [vmem:[%s16027_s9 + $0x28] sm:$0xff]  ;;  %v14169_v12 = vld [vmem:[%s16027_s9 + $0x20] sm:$0xff]  ;;  %v14180_v13 = vld [vmem:[%s16027_s9 + $0x78] sm:$0xff] }
  0x43   : > { %v14168_v14 = vld [vmem:[%s16027_s9 + $0x18] sm:$0xff]  ;;  %992 = vmatpush.bf16.msra.mxu1 %v14180_v13  ;;  %v16086_v15 = vld [vmem:[%s16032_s11] ss:$0 sm:$0xff]  ;;  %v14179_v16 = vld [vmem:[%s16027_s9 + $0x70] sm:$0xff] }
  0x44   : > { %10411 = vmatmul.msk.bf16.vlgmr.msra.gmra.mxu0 %vm717_vm2, %v14159_v2  ;;  %v14167_v17 = vld [vmem:[%s16027_s9 + $0x10] sm:$0xff]  ;;  %v14178_v20 = vld [vmem:[%s16027_s9 + $0x68] sm:$0xff]  ;;  %v14177_v24 = vld [vmem:[%s16027_s9 + $0x60] sm:$0xff] }
  0x45   : > { %v14166_v21 = vld [vmem:[%s16027_s9 + $0x8] sm:$0xff]  ;;  %v14165_v25 = vld [vmem:[%s16027_s9] sm:$0xff]  ;;  %v14176_v28 = vld [vmem:[%s16027_s9 + $0x58] sm:$0xff] }
  0x46   : > { %1066 = vmatpush.bf16.msra.mxu2 %v14171_v10  ;;  %v14175_v33 = vld [vmem:[%s16027_s9 + $0x50] sm:$0xff]  ;;  %v14174_v38 = vld [vmem:[%s16027_s9 + $0x48] sm:$0xff]  ;;  %v14173_v43 = vld [vmem:[%s16027_s9 + $0x40] sm:$0xff] }
  0x47   : > { %993 = vmatpush.bf16.msra.mxu1 %v14179_v16  ;;  %v14188_v48 = vld [vmem:[%s16027_s9 + $0xb8] sm:$0xff]  ;;  %v14187_v55 = vld [vmem:[%s16027_s9 + $0xb0] sm:$0xff]  ;;  %v14186_v63 = vld [vmem:[%s16027_s9 + $0xa8] sm:$0xff] }
  0x48   : > { %1161 = vmatpush.bf16.msra.mxu3 %v14188_v48  ;;  %v14196_v16 = vld [vmem:[%s16027_s9 + $0xf8] sm:$0xff] }
  0x4a   : > { %1067 = vmatpush.bf16.msra.mxu2 %v14170_v11 }
  0x4b   : > { %994 = vmatpush.bf16.msra.mxu1 %v14178_v20 }
  0x4c   : > { %1162 = vmatpush.bf16.msra.mxu3 %v14187_v55 }
  0x4e   : > { %1068 = vmatpush.bf16.msra.mxu2 %v14169_v12 }
  0x4f   : > { %995 = vmatpush.bf16.msra.mxu1 %v14177_v24  ;;  %v14195_v24 = vld [vmem:[%s16027_s9 + $0xf0] sm:$0xff] }
  0x50   : > { %1163 = vmatpush.bf16.msra.mxu3 %v14186_v63 }
  0x52   : > { %1069 = vmatpush.bf16.msra.mxu2 %v14168_v14 }
  0x53   : > { %996 = vmatpush.bf16.msra.mxu1 %v14176_v28 }
  0x54   : > { %10412 = vmatmul.msk.bf16.gmra.mxu0 %vm717_vm2, %v14160_v4 }
  0x56   : > { %1070 = vmatpush.bf16.msra.mxu2 %v14167_v17  ;;  %v14184_v17 = vld [vmem:[%s16027_s9 + $0x98] sm:$0xff] }
  0x57   : > { %997 = vmatpush.bf16.msra.mxu1 %v14175_v33  ;;  %v14194_v33 = vld [vmem:[%s16027_s9 + $0xe8] sm:$0xff] }
  0x5a   : > { %1071 = vmatpush.bf16.msra.mxu2 %v14166_v21 }
  0x5b   : > { %998 = vmatpush.bf16.msra.mxu1 %v14174_v38 }
  0x5e   : > { %1072 = vmatpush.bf16.msra.mxu2 %v14165_v25  ;;  %v14183_v25 = vld [vmem:[%s16027_s9 + $0x90] sm:$0xff] }
  0x5f   : > { %999 = vmatpush.bf16.msra.mxu1 %v14173_v43  ;;  %v14181_v43 = vld [vmem:[%s16027_s9 + $0x80] sm:$0xff] }
  0x63   : > { %1255 = vmatpush.bf16.msrb.mxu1 %v14196_v16 }
  0x64   : > { %10413 = vmatmul.msk.bf16.gmra.mxu0 %vm717_vm2, %v14161_v5 }
  0x67   : > { %1256 = vmatpush.bf16.msrb.mxu1 %v14195_v24 }
  0x6b   : > { %1257 = vmatpush.bf16.msrb.mxu1 %v14194_v33 }
  0x74   : > { %10414 = vmatmul.msk.bf16.gmra.mxu0 %vm717_vm2, %v14162_v6 }
  0x84   : > { %10415 = vmatmul.msk.bf16.gmra.mxu0 %vm717_vm2, %v14163_v7  ;;  %v14185_v7 = vld [vmem:[%s16027_s9 + $0xa0] sm:$0xff] }
  0x85   : > { %1164 = vmatpush.bf16.msra.mxu3 %v14185_v7 }
  0x89   : > { %1165 = vmatpush.bf16.msra.mxu3 %v14184_v17 }
  0x8d   : > { %1166 = vmatpush.bf16.msra.mxu3 %v14183_v25 }
  0x94   : > { %10416 = vmatmul.msk.bf16.gmra.mxu0 %vm717_vm2, %v14164_v8 }
  0xc1   : > { %v749_v18 = vpop.f32.mrf.mxu0 }
  0xc2   : > { %v750_v19 = vadd.f32 %v16086_v15, %v749_v18 }
  0xc4   : > { %v779_v22 = vmin.f32 %v750_v19, 20.0 }
  0xc6   : > { %v791_v23 = vmul.f32 1.442695, %v779_v22 }
  0xc8   : > { %15057 = vpow2.f32 %v791_v23 }
  0xc9   : > { %v751_v26 = vpop.f32.mrf.mxu0 }
  0xca   : > { %v752_v27 = vadd.f32 %v16086_v15, %v751_v26 }
  0xcc   : > { %v780_v29 = vmin.f32 %v752_v27, 20.0 }
  0xce   : > { %v15058_v30 = vpop.eup %15057  ;;  %v793_v31 = vmul.f32 1.442695, %v780_v29 }
  0xcf   : > { %v815_v32 = vadd.f32 2.0, %v15058_v30 }
  0xd0   : > { %15059 = vpow2.f32 %v793_v31 }
  0xd1   : > { %v827_v34 = vmul.f32 %v15058_v30, %v815_v32  ;;  %v754_v35 = vpop.f32.mrf.mxu0 }
  0xd2   : > { %v16099_v36 = vadd.f32 %v16086_v15, %v754_v35 }
  0xd3   : > { %v851_v37 = vadd.f32 2.0, %v827_v34  ;;  %v839_v52 = vmul.f32 %v827_v34, %v750_v19  ;;  %v14182_v34 = vld [vmem:[%s16027_s9 + $0x88] sm:$0xff] }
  0xd4   : > { %v781_v39 = vmin.f32 %v16099_v36, 20.0  ;;  %1167 = vmatpush.bf16.msra.mxu3 %v14182_v34 }
  0xd5   : > { %15061 = vrcp.f32 %v851_v37 }
  0xd6   : > { %v15060_v40 = vpop.eup %15059  ;;  %v795_v41 = vmul.f32 1.442695, %v781_v39 }
  0xd7   : > { %v816_v42 = vadd.f32 2.0, %v15060_v40 }
  0xd8   : > { %15063 = vpow2.f32 %v795_v41  ;;  %1168 = vmatpush.bf16.msra.mxu3 %v14181_v43 }
  0xd9   : > { %v828_v44 = vmul.f32 %v15060_v40, %v816_v42  ;;  %v756_v45 = vpop.f32.mrf.mxu0  ;;  %v14193_v42 = vld [vmem:[%s16027_s9 + $0xe0] sm:$0xff] }
  0xda   : > { %v757_v46 = vadd.f32 %v16086_v15, %v756_v45  ;;  %1258 = vmatpush.bf16.msrb.mxu1 %v14193_v42 }
  0xdb   : > { %v852_v47 = vadd.f32 2.0, %v828_v44  ;;  %v15062_v50 = vpop.eup %15061  ;;  %v840_v59 = vmul.f32 %v828_v44, %v752_v27 }
  0xdc   : > { %v782_v49 = vmin.f32 %v757_v46, 20.0  ;;  %v875_v56 = vmul.f32 %v15062_v50, %v839_v52 }
  0xdd   : > { %15065 = vrcp.f32 %v852_v47 }
  0xde   : > { %v15064_v51 = vpop.eup %15063  ;;  %v797_v53 = vmul.f32 1.442695, %v782_v49  ;;  %v887_v2 = vpack.c.bf16 %v875_v56, %v875_v56 }
  0xdf   : > { %v817_v54 = vadd.f32 2.0, %v15064_v51 }
  0xe0   : > { %15067 = vpow2.f32 %v797_v53  ;;  %v1013_v8 = vunpack.c.l.b16 %v887_v2 }
  0xe1   : > { %v829_v57 = vmul.f32 %v15064_v51, %v817_v54  ;;  %v759_v58 = vpop.f32.mrf.mxu0  ;;  %v14192_v51 = vld [vmem:[%s16027_s9 + $0xd8] sm:$0xff] }
  0xe2   : > { %v16108_v60 = vadd.f32 %v16086_v15, %v759_v58  ;;  %1259 = vmatpush.bf16.msrb.mxu1 %v14192_v51  ;;  %v14191_v58 = vld [vmem:[%s16027_s9 + $0xd0] sm:$0xff] }
  0xe3   : > { %v15066_v61 = vpop.eup %15065  ;;  %v853_v62 = vadd.f32 2.0, %v829_v57  ;;  %v841_v21 = vmul.f32 %v829_v57, %v16099_v36 }
  0xe4   : > { %v783_v0 = vmin.f32 %v16108_v60, 20.0  ;;  %v876_v1 = vmul.f32 %v15066_v61, %v840_v59 }
  0xe5   : > { %15069 = vrcp.f32 %v853_v62 }
  0xe6   : > { %v15068_v3 = vpop.eup %15067  ;;  %v799_v4 = vmul.f32 1.442695, %v783_v0  ;;  %v888_v5 = vpack.c.bf16 %v876_v1, %v876_v1  ;;  %1260 = vmatpush.bf16.msrb.mxu1 %v14191_v58 }
  0xe7   : > { %v818_v6 = vadd.f32 2.0, %v15068_v3 }
  0xe8   : > { %15071 = vpow2.f32 %v799_v4  ;;  %v1014_v9 = vunpack.c.l.b16 %v888_v5 }
  0xe9   : > { %v830_v10 = vmul.f32 %v15068_v3, %v818_v6  ;;  %v761_v11 = vpop.f32.mrf.mxu0  ;;  %v14190_v3 = vld [vmem:[%s16027_s9 + $0xc8] sm:$0xff] }
  0xea   : > { %v16114_v12 = vadd.f32 %v16086_v15, %v761_v11  ;;  %v1015_v13 = vpack.c.b16 %v1014_v9, %v1013_v8  ;;  %1261 = vmatpush.bf16.msrb.mxu1 %v14190_v3 }
  0xeb   : > { %v854_v14 = vadd.f32 2.0, %v830_v10  ;;  %v15070_v19 = vpop.eup %15069  ;;  %v842_v29 = vmul.f32 %v830_v10, %v757_v46  ;;  %v14189_v10 = vld [vmem:[%s16027_s9 + $0xc0] sm:$0xff] }
  0xec   : > { %v784_v18 = vmin.f32 %v16114_v12, 20.0  ;;  %1073 = vmatmul.bf16.vlgmr.msra.gmra.mxu2 %v1015_v13  ;;  %v877_v26 = vmul.f32 %v15070_v19, %v841_v21 }
  0xed   : > { %15073 = vrcp.f32 %v854_v14 }
  0xee   : > { %v15072_v20 = vpop.eup %15071  ;;  %v801_v22 = vmul.f32 1.442695, %v784_v18  ;;  %v889_v37 = vpack.c.bf16 %v877_v26, %v877_v26  ;;  %1262 = vmatpush.bf16.msrb.mxu1 %v14189_v10 }
  0xef   : > { %v819_v23 = vadd.f32 2.0, %v15072_v20 }
  0xf0   : > { %15075 = vpow2.f32 %v801_v22  ;;  %v936_v44 = vunpack.c.l.b16 %v889_v37 }
  0xf1   : > { %v831_v27 = vmul.f32 %v15072_v20, %v819_v23  ;;  %v764_v28 = vpop.f32.mrf.mxu0 }
  0xf2   : > { %v16123_v30 = vadd.f32 %v16086_v15, %v764_v28 }
  0xf3   : > { %v15074_v31 = vpop.eup %15073  ;;  %v855_v32 = vadd.f32 2.0, %v831_v27  ;;  %v843_v55 = vmul.f32 %v831_v27, %v16108_v60 }
  0xf4   : > { %v785_v35 = vmin.f32 %v16123_v30, 20.0  ;;  %v878_v36 = vmul.f32 %v15074_v31, %v842_v29 }
  0xf5   : > { %15077 = vrcp.f32 %v855_v32 }
  0xf6   : > { %v15076_v38 = vpop.eup %15075  ;;  %v803_v39 = vmul.f32 1.442695, %v785_v35  ;;  %v890_v40 = vpack.c.bf16 %v878_v36, %v878_v36 }
  0xf7   : > { %v820_v41 = vadd.f32 2.0, %v15076_v38 }
  0xf8   : > { %15079 = vpow2.f32 %v803_v39  ;;  %v937_v45 = vunpack.c.l.b16 %v890_v40 }
  0xf9   : > { %v832_v46 = vmul.f32 %v15076_v38, %v820_v41  ;;  %v766_v47 = vpop.f32.mrf.mxu0 }
  0xfa   : > { %v767_v48 = vadd.f32 %v16086_v15, %v766_v47  ;;  %v940_v49 = vpack.c.b16 %v937_v45, %v936_v44 }
  0xfb   : > { %v856_v50 = vadd.f32 2.0, %v832_v46  ;;  %v15078_v53 = vpop.eup %15077  ;;  %v844_v63 = vmul.f32 %v832_v46, %v16114_v12 }
  0xfc   : > { %v786_v52 = vmin.f32 %v767_v48, 20.0  ;;  %1000 = vmatmul.bf16.vlgmr.msra.gmra.mxu1 %v940_v49  ;;  %1078 = vmatmul.bf16.gmra.mxu2 %v940_v49  ;;  %v879_v59 = vmul.f32 %v15078_v53, %v843_v55 }
  0xfd   : > { %15081 = vrcp.f32 %v856_v50 }
  0xfe   : > { %v15080_v54 = vpop.eup %15079  ;;  %v805_v56 = vmul.f32 1.442695, %v786_v52  ;;  %v891_v6 = vpack.c.bf16 %v879_v59, %v879_v59 }
  0xff   : > { %v821_v57 = vadd.f32 2.0, %v15080_v54 }
 0x100   : > { %15083 = vpow2.f32 %v805_v56  ;;  %v938_v11 = vunpack.c.l.b16 %v891_v6 }
 0x101   : > { %v833_v61 = vmul.f32 %v15080_v54, %v821_v57  ;;  %v769_v62 = vpop.f32.mrf.mxu0 }
 0x102   : > { %v770_v0 = vadd.f32 %v16086_v15, %v769_v62 }
 0x103   : > { %v15082_v1 = vpop.eup %15081  ;;  %v857_v2 = vadd.f32 2.0, %v833_v61  ;;  %v845_v22 = vmul.f32 %v833_v61, %v16123_v30 }
 0x104   : > { %v787_v4 = vmin.f32 %v770_v0, 20.0  ;;  %v880_v5 = vmul.f32 %v15082_v1, %v844_v63 }
 0x105   : > { %15085 = vrcp.f32 %v857_v2 }
 0x106   : > { %v15084_v60 = vpop.eup %15083  ;;  %v807_v7 = vmul.f32 1.442695, %v787_v4  ;;  %v892_v8 = vpack.c.bf16 %v880_v5, %v880_v5 }
 0x107   : > { %v822_v9 = vadd.f32 2.0, %v15084_v60 }
 0x108   : > { %15087 = vpow2.f32 %v807_v7  ;;  %v939_v13 = vunpack.c.l.b16 %v892_v8 }
 0x109   : > { %v834_v14 = vmul.f32 %v15084_v60, %v822_v9  ;;  %v771_v12 = vpop.f32.mrf.mxu0 }
 0x10a   : > { %v772_v16 = vadd.f32 %v16086_v15, %v771_v12  ;;  %v941_v17 = vpack.c.b16 %v939_v13, %v938_v11 }
 0x10b   : > { %v858_v18 = vadd.f32 2.0, %v834_v14  ;;  %v15086_v20 = vpop.eup %15085  ;;  %v846_v28 = vmul.f32 %v834_v14, %v767_v48 }
 0x10c   : > { %v788_v19 = vmin.f32 %v772_v16, 20.0  ;;  %1005 = vmatmul.bf16.gmra.mxu1 %v941_v17  ;;  %v881_v25 = vmul.f32 %v15086_v20, %v845_v22 }
 0x10d   : > { %15089 = vrcp.f32 %v858_v18  ;;  %v14203_v18 = vld [vmem:[%s16005_s28 + $0x30] sm:$0xff] }
 0x10e   : > { %v15088_v21 = vpop.eup %15087  ;;  %v809_v23 = vmul.f32 1.442695, %v788_v19  ;;  %v893_v35 = vpack.c.bf16 %v881_v25, %v881_v25  ;;  %v14202_v19 = vld [vmem:[%s16005_s28 + $0x28] sm:$0xff]  ;;  %v14200_v25 = vld [vmem:[%s16005_s28 + $0x18] sm:$0xff] }
 0x10f   : > { %v823_v24 = vadd.f32 2.0, %v15088_v21 }
 0x110   : > { %15091 = vpow2.f32 %v809_v23  ;;  %v1105_v30 = vunpack.c.l.b16 %v893_v35  ;;  %v14201_v23 = vld [vmem:[%s16005_s28 + $0x20] sm:$0xff] }
 0x111   : > { %v835_v26 = vmul.f32 %v15088_v21, %v823_v24  ;;  %v774_v27 = vpop.f32.mrf.mxu0  ;;  %v14212_v24 = vld [vmem:[%s16005_s28 + $0x78] sm:$0xff] }
 0x112   : > { %v775_v29 = vadd.f32 %v16086_v15, %v774_v27  ;;  %1413 = vmatpush.bf16.msrb.mxu2 %v14212_v24 }
 0x113   : > { %v15090_v31 = vpop.eup %15089  ;;  %v859_v32 = vadd.f32 2.0, %v835_v26  ;;  %v847_v49 = vmul.f32 %v835_v26, %v770_v0 }
 0x114   : > { %v789_v33 = vmin.f32 %v775_v29, 20.0  ;;  %v882_v34 = vmul.f32 %v15090_v31, %v846_v28 }
 0x115   : > { %15093 = vrcp.f32 %v859_v32 }
 0x116   : > { %v15092_v36 = vpop.eup %15091  ;;  %v811_v37 = vmul.f32 1.442695, %v789_v33  ;;  %v894_v38 = vpack.c.bf16 %v882_v34, %v882_v34  ;;  %v14211_v33 = vld [vmem:[%s16005_s28 + $0x70] sm:$0xff] }
 0x117   : > { %v824_v39 = vadd.f32 2.0, %v15092_v36  ;;  %v14199_v34 = vld [vmem:[%s16005_s28 + $0x10] sm:$0xff]  ;;  %1414 = vmatpush.bf16.msrb.mxu2 %v14211_v33 }
 0x118   : > { %15095 = vpow2.f32 %v811_v37  ;;  %v1106_v40 = vunpack.c.l.b16 %v894_v38  ;;  %v14210_v37 = vld [vmem:[%s16005_s28 + $0x68] sm:$0xff] }
 0x119   : > { %v836_v41 = vmul.f32 %v15092_v36, %v824_v39  ;;  %v776_v42 = vpop.f32.mrf.mxu0  ;;  %v14198_v38 = vld [vmem:[%s16005_s28 + $0x8] sm:$0xff] }
 0x11a   : > { %v777_v43 = vadd.f32 %v16086_v15, %v776_v42  ;;  %v1109_v44 = vpack.c.b16 %v1106_v40, %v1105_v30 }
 0x11b   : > { %v860_v45 = vadd.f32 2.0, %v836_v41  ;;  %v15094_v47 = vpop.eup %15093  ;;  %v848_v54 = vmul.f32 %v836_v41, %v772_v16  ;;  %v14204_v16 = vld [vmem:[%s16005_s28 + $0x38] sm:$0xff]  ;;  %1415 = vmatpush.bf16.msrb.mxu2 %v14210_v37 }
 0x11c   : > { %v790_v46 = vmin.f32 %v777_v43, 20.0  ;;  %1169 = vmatmul.bf16.vlgmr.msra.gmra.mxu3 %v1109_v44  ;;  %v883_v52 = vmul.f32 %v15094_v47, %v847_v49  ;;  %v14197_v44 = vld [vmem:[%s16005_s28] sm:$0xff]  ;;  %v14208_v49 = vld [vmem:[%s16005_s28 + $0x58] sm:$0xff] }
 0x11d   : > { %15097 = vrcp.f32 %v860_v45  ;;  %1481 = vmatpush.bf16.msrb.mxu3 %v14204_v16 }
 0x11e   : > { %v15096_v48 = vpop.eup %15095  ;;  %v813_v50 = vmul.f32 1.442695, %v790_v46  ;;  %v895_v58 = vpack.c.bf16 %v883_v52, %v883_v52  ;;  %v14207_v52 = vld [vmem:[%s16005_s28 + $0x50] sm:$0xff] }
 0x11f   : > { %v825_v51 = vadd.f32 2.0, %v15096_v48 }
 0x120   : > { %15099 = vpow2.f32 %v813_v50  ;;  %v1107_v62 = vunpack.c.l.b16 %v895_v58 }
 0x121   : > { %v837_v53 = vmul.f32 %v15096_v48, %v825_v51  ;;  %1482 = vmatpush.bf16.msrb.mxu3 %v14203_v18 }
 0x123   : > { %v15098_v55 = vpop.eup %15097  ;;  %v861_v56 = vadd.f32 2.0, %v837_v53  ;;  %v849_v4 = vmul.f32 %v837_v53, %v775_v29  ;;  %v15018_v29 = vld [vmem:[%s16042_s19] ss:$0 sm:$0xff] }
 0x124   : > { %v884_v57 = vmul.f32 %v15098_v55, %v848_v54 }
 0x125   : > { %15101 = vrcp.f32 %v861_v56  ;;  %1483 = vmatpush.bf16.msrb.mxu3 %v14202_v19 }
 0x126   : > { %v15100_v59 = vpop.eup %15099  ;;  %v896_v15 = vpack.c.bf16 %v884_v57, %v884_v57 }
 0x127   : > { %v826_v61 = vadd.f32 2.0, %v15100_v59 }
 0x128   : > { %v1108_v63 = vunpack.c.l.b16 %v896_v15  ;;  %v14206_v15 = vld [vmem:[%s16005_s28 + $0x48] sm:$0xff] }
 0x129   : > { %v838_v1 = vmul.f32 %v15100_v59, %v826_v61  ;;  %1484 = vmatpush.bf16.msrb.mxu3 %v14201_v23 }
 0x12a   : > { %v1110_v2 = vpack.c.b16 %v1108_v63, %v1107_v62 }
 0x12b   : > { %v862_v3 = vadd.f32 2.0, %v838_v1  ;;  %v15102_v0 = vpop.eup %15101  ;;  %v850_v6 = vmul.f32 %v838_v1, %v777_v43  ;;  %v14209_v43 = vld [vmem:[%s16005_s28 + $0x60] sm:$0xff] }
 0x12c   : > { %1174 = vmatmul.bf16.gmra.mxu3 %v1110_v2  ;;  %1263 = vmatmul.bf16.vlgmr.msrb.gmra.mxu1 %v1110_v2  ;;  %v885_v5 = vmul.f32 %v15102_v0, %v849_v4  ;;  %v14205_v0 = vld [vmem:[%s16005_s28 + $0x40] sm:$0xff] }
 0x12d   : > { %15103 = vrcp.f32 %v862_v3  ;;  %1485 = vmatpush.bf16.msrb.mxu3 %v14200_v25  ;;  %1416 = vmatpush.bf16.msrb.mxu2 %v14209_v43 }
 0x12e   : > { %v897_v8 = vpack.c.bf16 %v885_v5, %v885_v5 }
 0x130   : > { %v1203_v10 = vunpack.c.l.b16 %v897_v8 }
 0x131   : > { %1486 = vmatpush.bf16.msrb.mxu3 %v14199_v34  ;;  %1417 = vmatpush.bf16.msrb.mxu2 %v14208_v49  ;;  %v14223_v49 = vld [vmem:[%s16022_s21 + $0x40] sm:$0xff] }
 0x133   : > { %v15104_v60 = vpop.eup %15103 }
 0x134   : > { %v886_v7 = vmul.f32 %v15104_v60, %v850_v6 }
 0x135   : > { %1487 = vmatpush.bf16.msrb.mxu3 %v14198_v38  ;;  %1418 = vmatpush.bf16.msrb.mxu2 %v14207_v52  ;;  %v14226_v52 = vld [vmem:[%s16022_s21 + $0x58] sm:$0xff] }
 0x136   : > { %v898_v9 = vpack.c.bf16 %v886_v7, %v886_v7 }
 0x138   : > { %v1204_v11 = vunpack.c.l.b16 %v898_v9 }
 0x139   : > { %1488 = vmatpush.bf16.msrb.mxu3 %v14197_v44  ;;  %1419 = vmatpush.bf16.msrb.mxu2 %v14206_v15 }
 0x13a   : > { %v1205_v13 = vpack.c.b16 %v1204_v11, %v1203_v10 }
 0x13c   : > { %1268 = vmatmul.bf16.gmra.mxu1 %v1205_v13 }
 0x13d   : > { %1420 = vmatpush.bf16.msrb.mxu2 %v14205_v0 }
 0x16f   : > { %v1074_v20 = vpop.f32.mrf.mxu2 }
 0x177   : > { %v1076_v27 = vpop.f32.mrf.mxu2 }
 0x179   : > { %v1001_v14 = vpop.f32.mrf.mxu1 }
 0x17a   : > { %v1075_v26 = vadd.f32 %v1074_v20, %v1001_v14  ;;  %v10717_v14 = vld [vmem:[%s16017_s23 + $0x4] sm:$0xf] }
 0x17b   : > { %v1683_v16 = vsel %vm736_vm1, %v10717_v14, 0 }
 0x17c   : > { %1692 = vmatpush.bf16.msra.mxu2 %v1683_v16  ;;  %v14241_v16 = vld [vmem:[%s16027_s9 + $0x170] sm:$0xff] }
 0x17f   : > { %v1079_v46 = vpop.f32.mrf.mxu2 }
 0x181   : > { %v1003_v12 = vpop.f32.mrf.mxu1 }
 0x182   : > { %v1077_v39 = vadd.f32 %v1076_v27, %v1003_v12 }
 0x187   : > { %v1081_v62 = vpop.f32.mrf.mxu2 }
 0x189   : > { %v1006_v17 = vpop.f32.mrf.mxu1 }
 0x18a   : > { %v1080_v50 = vadd.f32 %v1079_v46, %v1006_v17 }
 0x191   : > { %v1008_v22 = vpop.f32.mrf.mxu1 }
 0x192   : > { %v1082_v2 = vadd.f32 %v1081_v62, %v1008_v22  ;;  %v15019_v62 = vld [vmem:[%s16047_s20] ss:$0 sm:$0xff] }
 0x19f   : > { %v1170_v21 = vpop.f32.mrf.mxu3 }
 0x1a0   : > { %v1180_v28 = vadd.f32 %v1170_v21, %v1075_v26 }
 0x1a7   : > { %v1172_v31 = vpop.f32.mrf.mxu3 }
 0x1a8   : > { %v1181_v40 = vadd.f32 %v1172_v31, %v1077_v39 }
 0x1a9   : > { %v1264_v32 = vpop.f32.mrf.mxu1 }
 0x1aa   : > { %v1274_v35 = vadd.f32 %v1264_v32, %v1180_v28 }
 0x1ac   : > { %v1282_v36 = vadd.f32 %v15018_v29, %v1274_v35 }
 0x1ae   : > { %v1286_v30 = vmin.f32 %v1282_v36, 20.0 }
 0x1af   : > { %v1175_v47 = vpop.f32.mrf.mxu3 }
 0x1b0   : > { %v1290_v41 = vmul.f32 1.442695, %v1286_v30  ;;  %v1182_v54 = vadd.f32 %v1175_v47, %v1080_v50  ;;  %v14221_v47 = vld [vmem:[%s16022_s21 + $0x30] sm:$0xff]  ;;  %v14224_v50 = vld [vmem:[%s16022_s21 + $0x48] sm:$0xff] }
 0x1b1   : > { %v1266_v42 = vpop.f32.mrf.mxu1 }
 0x1b2   : > { %15105 = vpow2.f32 %v1290_v41  ;;  %v1275_v45 = vadd.f32 %v1266_v42, %v1181_v40 }
 0x1b4   : > { %v1283_v48 = vadd.f32 %v15018_v29, %v1275_v45 }
 0x1b6   : > { %v1287_v51 = vmin.f32 %v1283_v48, 20.0 }
 0x1b7   : > { %v1177_v1 = vpop.f32.mrf.mxu3 }
 0x1b8   : > { %v15106_v53 = vpop.eup %15105  ;;  %v1292_v55 = vmul.f32 1.442695, %v1287_v51  ;;  %v1183_v5 = vadd.f32 %v1177_v1, %v1082_v2  ;;  %v14225_v51 = vld [vmem:[%s16022_s21 + $0x50] sm:$0xff]  ;;  %v14214_v1 = vld [vmem:[%s16037_s18 + $0x8] sm:$0xff] }
 0x1b9   : > { %v1298_v56 = vadd.f32 2.0, %v15106_v53  ;;  %v1269_v57 = vpop.f32.mrf.mxu1 }
 0x1ba   : > { %15107 = vpow2.f32 %v1292_v55  ;;  %v1276_v58 = vadd.f32 %v1269_v57, %v1182_v54  ;;  %v14219_v54 = vld [vmem:[%s16037_s18 + $0x30] sm:$0xff]  ;;  %v14218_v55 = vld [vmem:[%s16037_s18 + $0x28] sm:$0xff]  ;;  %v14216_v57 = vld [vmem:[%s16037_s18 + $0x18] sm:$0xff] }
 0x1bb   : > { %v1302_v59 = vmul.f32 %v15106_v53, %v1298_v56  ;;  %v14220_v53 = vld [vmem:[%s16037_s18 + $0x38] sm:$0xff]  ;;  %v14217_v56 = vld [vmem:[%s16037_s18 + $0x20] sm:$0xff] }
 0x1bc   : > { %v1284_v61 = vadd.f32 %v15018_v29, %v1276_v58  ;;  %1588 = vmatpush.bf16.msra.mxu1 %v14220_v53  ;;  %v14234_v58 = vld [vmem:[%s16027_s9 + $0x138] sm:$0xff] }
 0x1bd   : > { %v1310_v63 = vadd.f32 2.0, %v1302_v59  ;;  %v1306_v18 = vmul.f32 %v1302_v59, %v1282_v36  ;;  %2011 = vmatpush.bf16.msrb.mxu0 %v14234_v58  ;;  %v14215_v59 = vld [vmem:[%s16037_s18 + $0x10] sm:$0xff]  ;;  %v14235_v58 = vld [vmem:[%s16027_s9 + $0x140] sm:$0xff] }
 0x1be   : > { %v1288_v3 = vmin.f32 %v1284_v61, 20.0 }
 0x1bf   : > { %15109 = vrcp.f32 %v1310_v63 }
 0x1c0   : > { %v15108_v4 = vpop.eup %15107  ;;  %v1294_v6 = vmul.f32 1.442695, %v1288_v3  ;;  %1589 = vmatpush.bf16.msra.mxu1 %v14219_v54  ;;  %v14232_v3 = vld [vmem:[%s16027_s9 + $0x128] sm:$0xff] }
 0x1c1   : > { %v1299_v60 = vadd.f32 2.0, %v15108_v4  ;;  %v1271_v7 = vpop.f32.mrf.mxu1 }
 0x1c2   : > { %15111 = vpow2.f32 %v1294_v6  ;;  %v1277_v8 = vadd.f32 %v1271_v7, %v1183_v5  ;;  %v14231_v6 = vld [vmem:[%s16027_s9 + $0x120] sm:$0xff] }
 0x1c3   : > { %v1303_v9 = vmul.f32 %v15108_v4, %v1299_v60  ;;  %v14213_v4 = vld [vmem:[%s16037_s18] sm:$0xff] }
 0x1c4   : > { %v1285_v10 = vadd.f32 %v15018_v29, %v1277_v8  ;;  %1590 = vmatpush.bf16.msra.mxu1 %v14218_v55 }
 0x1c5   : > { %v1311_v11 = vadd.f32 2.0, %v1303_v9  ;;  %v15110_v12 = vpop.eup %15109  ;;  %v1307_v23 = vmul.f32 %v1303_v9, %v1283_v48  ;;  %v14222_v48 = vld [vmem:[%s16022_s21 + $0x38] sm:$0xff] }
 0x1c6   : > { %v1289_v13 = vmin.f32 %v1285_v10, 20.0  ;;  %v1318_v21 = vmul.f32 %v15110_v12, %v1306_v18  ;;  %v16192_v12 = vld [vmem:[%s16032_s11 + $0x1] ss:$0 sm:$0xff] }
 0x1c7   : > { %15113 = vrcp.f32 %v1311_v11  ;;  %v14230_v11 = vld [vmem:[%s16027_s9 + $0x118] sm:$0xff] }
 0x1c8   : > { %v15112_v17 = vpop.eup %15111  ;;  %v1296_v19 = vmul.f32 1.442695, %v1289_v13  ;;  %v1322_v27 = vpack.c.bf16 %v1318_v21, %v1318_v21  ;;  %1591 = vmatpush.bf16.msra.mxu1 %v14217_v56 }
 0x1c9   : > { %v1300_v20 = vadd.f32 2.0, %v15112_v17 }
 0x1ca   : > { %15115 = vpow2.f32 %v1296_v19  ;;  %v1429_v32 = vunpack.c.l.b16 %v1322_v27 }
 0x1cb   : > { %v1304_v22 = vmul.f32 %v15112_v17, %v1300_v20  ;;  %v14229_v17 = vld [vmem:[%s16027_s9 + $0x110] sm:$0xff] }
 0x1cc   : > { %1592 = vmatpush.bf16.msra.mxu1 %v14216_v57 }
 0x1cd   : > { %v15114_v24 = vpop.eup %15113  ;;  %v1312_v25 = vadd.f32 2.0, %v1304_v22  ;;  %v1308_v38 = vmul.f32 %v1304_v22, %v1284_v61  ;;  %v14233_v61 = vld [vmem:[%s16027_s9 + $0x130] sm:$0xff] }
 0x1ce   : > { %v1319_v26 = vmul.f32 %v15114_v24, %v1307_v23  ;;  %2012 = vmatpush.bf16.msrb.mxu0 %v14233_v61  ;;  %v14240_v23 = vld [vmem:[%s16027_s9 + $0x168] sm:$0xff] }
 0x1cf   : > { %15117 = vrcp.f32 %v1312_v25  ;;  %v14228_v24 = vld [vmem:[%s16027_s9 + $0x108] sm:$0xff] }
 0x1d0   : > { %v15116_v28 = vpop.eup %15115  ;;  %v1323_v29 = vpack.c.bf16 %v1319_v26, %v1319_v26  ;;  %1593 = vmatpush.bf16.msra.mxu1 %v14215_v59 }
 0x1d1   : > { %v1301_v31 = vadd.f32 2.0, %v15116_v28 }
 0x1d2   : > { %v1430_v33 = vunpack.c.l.b16 %v1323_v29  ;;  %2013 = vmatpush.bf16.msrb.mxu0 %v14232_v3  ;;  %v14227_v29 = vld [vmem:[%s16027_s9 + $0x100] sm:$0xff] }
 0x1d3   : > { %v1305_v34 = vmul.f32 %v15116_v28, %v1301_v31  ;;  %v14239_v28 = vld [vmem:[%s16027_s9 + $0x160] sm:$0xff] }
 0x1d4   : > { %v1431_v35 = vpack.c.b16 %v1430_v33, %v1429_v32  ;;  %1594 = vmatpush.bf16.msra.mxu1 %v14214_v1  ;;  %v14250_v1 = vld [vmem:[%s16027_s9 + $0x1b8] sm:$0xff] }
 0x1d5   : > { %v1313_v36 = vadd.f32 2.0, %v1305_v34  ;;  %v15118_v37 = vpop.eup %15117  ;;  %v1309_v30 = vmul.f32 %v1305_v34, %v1285_v10  ;;  %v14242_v10 = vld [vmem:[%s16027_s9 + $0x178] sm:$0xff] }
 0x1d6   : > { %1489 = vmatmul.bf16.vlgmr.msrb.gmra.mxu3 %v1431_v35  ;;  %v1320_v39 = vmul.f32 %v15118_v37, %v1308_v38  ;;  %2014 = vmatpush.bf16.msrb.mxu0 %v14231_v6  ;;  %v14238_v37 = vld [vmem:[%s16027_s9 + $0x158] sm:$0xff] }
 0x1d7   : > { %15119 = vrcp.f32 %v1313_v36  ;;  %1938 = vmatpush.bf16.msra.mxu3 %v14242_v10 }
 0x1d8   : > { %v1324_v42 = vpack.c.bf16 %v1320_v39, %v1320_v39  ;;  %1595 = vmatpush.bf16.msra.mxu1 %v14213_v4 }
 0x1da   : > { %v1361_v44 = vunpack.c.l.b16 %v1324_v42  ;;  %2015 = vmatpush.bf16.msrb.mxu0 %v14230_v11  ;;  %v14237_v42 = vld [vmem:[%s16027_s9 + $0x150] sm:$0xff] }
 0x1db   : > { %1939 = vmatpush.bf16.msra.mxu3 %v14241_v16  ;;  %v14248_v16 = vld [vmem:[%s16027_s9 + $0x1a8] sm:$0xff] }
 0x1dc   : > { %2107 = vmatpush.bf16.msrb.mxu1 %v14250_v1 }
 0x1dd   : > { %v15120_v40 = vpop.eup %15119 }
 0x1de   : > { %v1321_v41 = vmul.f32 %v15120_v40, %v1309_v30  ;;  %2016 = vmatpush.bf16.msrb.mxu0 %v14229_v17 }
 0x1df   : > { %1940 = vmatpush.bf16.msra.mxu3 %v14240_v23 }
 0x1e0   : > { %v1325_v43 = vpack.c.bf16 %v1321_v41, %v1321_v41 }
 0x1e2   : > { %v1362_v45 = vunpack.c.l.b16 %v1325_v43  ;;  %2017 = vmatpush.bf16.msrb.mxu0 %v14228_v24  ;;  %v14247_v24 = vld [vmem:[%s16027_s9 + $0x1a0] sm:$0xff] }
 0x1e3   : > { %1941 = vmatpush.bf16.msra.mxu3 %v14239_v28 }
 0x1e4   : > { %v1363_v46 = vpack.c.b16 %v1362_v45, %v1361_v44 }
 0x1e6   : > { %1421 = vmatmul.bf16.vlgmr.msrb.gmra.mxu2 %v1363_v46  ;;  %2018 = vmatpush.bf16.msrb.mxu0 %v14227_v29 }
 0x1e7   : > { %1942 = vmatpush.bf16.msra.mxu3 %v14238_v37 }
 0x1eb   : > { %1943 = vmatpush.bf16.msra.mxu3 %v14237_v42 }
 0x1f6   : > { %10743 = vmatmul.msk.bf16.vlgmr.msra.gmra.mxu2 %vm717_vm2, %v14221_v47 }
 0x206   : > { %10744 = vmatmul.msk.bf16.gmra.mxu2 %vm717_vm2, %v14222_v48  ;;  %v14236_v48 = vld [vmem:[%s16027_s9 + $0x148] sm:$0xff] }
 0x207   : > { %1944 = vmatpush.bf16.msra.mxu3 %v14236_v48 }
 0x20b   : > { %1945 = vmatpush.bf16.msra.mxu3 %v14235_v58  ;;  %v14255_v58 = vld [vmem:[%s16027_s9 + $0x1e0] sm:$0xff] }
 0x216   : > { %10745 = vmatmul.msk.bf16.gmra.mxu2 %vm717_vm2, %v14223_v49 }
 0x226   : > { %10746 = vmatmul.msk.bf16.gmra.mxu2 %vm717_vm2, %v14224_v50 }
 0x236   : > { %10747 = vmatmul.msk.bf16.gmra.mxu2 %vm717_vm2, %v14225_v51 }
 0x246   : > { %10748 = vmatmul.msk.bf16.gmra.mxu2 %vm717_vm2, %v14226_v52 }
 0x259   : > { %v1490_v15 = vpop.f32.mrf.mxu3 }
 0x261   : > { %v1492_v7 = vpop.f32.mrf.mxu3 }
 0x269   : > { %v1422_v63 = vpop.f32.mrf.mxu2 }
 0x26a   : > { %v1491_v2 = vadd.f32 %v1490_v15, %v1422_v63 }
 0x26c   : > { %v16184_v0 = vadd.f32 %v15019_v62, %v1491_v2 }
 0x26e   : > { %v1501_v5 = vmin.f32 %v16184_v0, 20.0 }
 0x270   : > { %v1503_v60 = vmul.f32 1.442695, %v1501_v5 }
 0x271   : > { %v1424_v8 = vpop.f32.mrf.mxu2 }
 0x272   : > { %15121 = vpow2.f32 %v1503_v60  ;;  %v1493_v9 = vadd.f32 %v1492_v7, %v1424_v8  ;;  %v14249_v60 = vld [vmem:[%s16027_s9 + $0x1b0] sm:$0xff] }
 0x273   : > { %2108 = vmatpush.bf16.msrb.mxu1 %v14249_v60 }
 0x274   : > { %v1500_v13 = vadd.f32 %v15019_v62, %v1493_v9 }
 0x276   : > { %v1502_v14 = vmin.f32 %v1500_v13, 20.0 }
 0x277   : > { %2109 = vmatpush.bf16.msrb.mxu1 %v14248_v16 }
 0x278   : > { %v15122_v18 = vpop.eup %15121  ;;  %v1505_v19 = vmul.f32 1.442695, %v1502_v14 }
 0x279   : > { %v1507_v20 = vadd.f32 2.0, %v15122_v18  ;;  %v1694_v21 = vpop.f32.mrf.mxu2 }
 0x27a   : > { %15123 = vpow2.f32 %v1505_v19  ;;  %v16197_v22 = vadd.f32 %v16192_v12, %v1694_v21 }
 0x27b   : > { %v1509_v26 = vmul.f32 %v15122_v18, %v1507_v20  ;;  %2110 = vmatpush.bf16.msrb.mxu1 %v14247_v24 }
 0x27c   : > { %v1724_v25 = vmin.f32 %v16197_v22, 20.0 }
 0x27d   : > { %v1513_v32 = vadd.f32 2.0, %v1509_v26  ;;  %v1511_v49 = vmul.f32 %v1509_v26, %v16184_v0 }
 0x27e   : > { %v1736_v27 = vmul.f32 1.442695, %v1724_v25 }
 0x280   : > { %v15124_v31 = vpop.eup %15123  ;;  %15125 = vpow2.f32 %v1736_v27 }
 0x281   : > { %v1508_v33 = vadd.f32 2.0, %v15124_v31  ;;  %v1696_v34 = vpop.f32.mrf.mxu2  ;;  %15127 = vrcp.f32 %v1513_v32 }
 0x282   : > { %v1697_v35 = vadd.f32 %v16192_v12, %v1696_v34  ;;  %v14246_v34 = vld [vmem:[%s16027_s9 + $0x198] sm:$0xff] }
 0x283   : > { %v1510_v36 = vmul.f32 %v15124_v31, %v1508_v33  ;;  %v14258_v33 = vld [vmem:[%s16027_s9 + $0x1f8] sm:$0xff]  ;;  %2111 = vmatpush.bf16.msrb.mxu1 %v14246_v34 }
 0x284   : > { %v1725_v38 = vmin.f32 %v1697_v35, 20.0  ;;  %2201 = vmatpush.bf16.msrb.mxu3 %v14258_v33 }
 0x285   : > { %v1514_v39 = vadd.f32 2.0, %v1510_v36  ;;  %v1512_v50 = vmul.f32 %v1510_v36, %v1500_v13 }
 0x286   : > { %v15126_v30 = vpop.eup %15125  ;;  %v1738_v40 = vmul.f32 1.442695, %v1725_v38 }
 0x287   : > { %15129 = vrcp.f32 %v1514_v39  ;;  %v1760_v41 = vadd.f32 2.0, %v15126_v30  ;;  %v15128_v46 = vpop.eup %15127 }
 0x288   : > { %15131 = vpow2.f32 %v1738_v40  ;;  %v1517_v54 = vmul.f32 %v15128_v46, %v1511_v49  ;;  %v14257_v40 = vld [vmem:[%s16027_s9 + $0x1f0] sm:$0xff] }
 0x289   : > { %v1772_v43 = vmul.f32 %v15126_v30, %v1760_v41  ;;  %v1699_v44 = vpop.f32.mrf.mxu2  ;;  %v14245_v41 = vld [vmem:[%s16027_s9 + $0x190] sm:$0xff]  ;;  %2202 = vmatpush.bf16.msrb.mxu3 %v14257_v40 }
 0x28a   : > { %v16208_v45 = vadd.f32 %v16192_v12, %v1699_v44  ;;  %2112 = vmatpush.bf16.msrb.mxu1 %v14245_v41 }
 0x28b   : > { %v1796_v47 = vadd.f32 2.0, %v1772_v43  ;;  %v1784_v4 = vmul.f32 %v1772_v43, %v16197_v22 }
 0x28c   : > { %v1726_v51 = vmin.f32 %v16208_v45, 20.0 }
 0x28d   : > { %v15130_v52 = vpop.eup %15129  ;;  %15133 = vrcp.f32 %v1796_v47 }
 0x28e   : > { %v15132_v53 = vpop.eup %15131  ;;  %v1518_v55 = vmul.f32 %v15130_v52, %v1512_v50  ;;  %v1740_v56 = vmul.f32 1.442695, %v1726_v51  ;;  %v14244_v50 = vld [vmem:[%s16027_s9 + $0x188] sm:$0xff] }
 0x28f   : > { %v1761_v57 = vadd.f32 2.0, %v15132_v53  ;;  %2113 = vmatpush.bf16.msrb.mxu1 %v14244_v50 }
 0x290   : > { %15135 = vpow2.f32 %v1740_v56  ;;  %v1519_v59 = vpack.c.bf16 %v1518_v55, %v1517_v54 }
 0x291   : > { %v1773_v15 = vmul.f32 %v15132_v53, %v1761_v57  ;;  %v1701_v61 = vpop.f32.mrf.mxu2 }
 0x292   : > { %v1702_v62 = vadd.f32 %v16192_v12, %v1701_v61  ;;  %1596 = vmatmul.bf16.vlgmr.msra.gmra.mxu1 %v1519_v59  ;;  %v14243_v59 = vld [vmem:[%s16027_s9 + $0x180] sm:$0xff] }
 0x293   : > { %v1797_v63 = vadd.f32 2.0, %v1773_v15  ;;  %v15134_v3 = vpop.eup %15133  ;;  %v1785_v10 = vmul.f32 %v1773_v15, %v1697_v35  ;;  %2114 = vmatpush.bf16.msrb.mxu1 %v14243_v59 }
 0x294   : > { %v1727_v2 = vmin.f32 %v1702_v62, 20.0  ;;  %v1820_v7 = vmul.f32 %v15134_v3, %v1784_v4 }
 0x295   : > { %15137 = vrcp.f32 %v1797_v63 }
 0x296   : > { %v15136_v0 = vpop.eup %15135  ;;  %v1742_v5 = vmul.f32 1.442695, %v1727_v2  ;;  %v1832_v17 = vpack.c.bf16 %v1820_v7, %v1820_v7 }
 0x297   : > { %v1762_v6 = vadd.f32 2.0, %v15136_v0 }
 0x298   : > { %15139 = vpow2.f32 %v1742_v5  ;;  %v1959_v25 = vunpack.c.l.b16 %v1832_v17 }
 0x299   : > { %v1774_v8 = vmul.f32 %v15136_v0, %v1762_v6  ;;  %v1704_v9 = vpop.f32.mrf.mxu2  ;;  %v14254_v0 = vld [vmem:[%s16027_s9 + $0x1d8] sm:$0xff] }
 0x29a   : > { %v16219_v11 = vadd.f32 %v16192_v12, %v1704_v9  ;;  %v14253_v9 = vld [vmem:[%s16027_s9 + $0x1d0] sm:$0xff] }
 0x29b   : > { %v15138_v13 = vpop.eup %15137  ;;  %v1798_v14 = vadd.f32 2.0, %v1774_v8  ;;  %v1786_v38 = vmul.f32 %v1774_v8, %v16208_v45  ;;  %v14256_v45 = vld [vmem:[%s16027_s9 + $0x1e8] sm:$0xff] }
 0x29c   : > { %v1821_v18 = vmul.f32 %v15138_v13, %v1785_v10  ;;  %v1728_v19 = vmin.f32 %v16219_v11, 20.0  ;;  %2203 = vmatpush.bf16.msrb.mxu3 %v14256_v45 }
 0x29d   : > { %15141 = vrcp.f32 %v1798_v14 }
 0x29e   : > { %v15140_v20 = vpop.eup %15139  ;;  %v1833_v21 = vpack.c.bf16 %v1821_v18, %v1821_v18  ;;  %v1744_v22 = vmul.f32 1.442695, %v1728_v19 }
 0x29f   : > { %v1763_v23 = vadd.f32 2.0, %v15140_v20 }
 0x2a0   : > { %15143 = vpow2.f32 %v1744_v22  ;;  %v1960_v26 = vunpack.c.l.b16 %v1833_v21  ;;  %2204 = vmatpush.bf16.msrb.mxu3 %v14255_v58 }
 0x2a1   : > { %v1775_v27 = vmul.f32 %v15140_v20, %v1763_v23  ;;  %v1706_v28 = vpop.f32.mrf.mxu2  ;;  %v14252_v20 = vld [vmem:[%s16027_s9 + $0x1c8] sm:$0xff] }
 0x2a2   : > { %v16225_v29 = vadd.f32 %v16192_v12, %v1706_v28  ;;  %v1961_v31 = vpack.c.b16 %v1960_v26, %v1959_v25 }
 0x2a3   : > { %v1799_v32 = vadd.f32 2.0, %v1775_v27  ;;  %v15142_v36 = vpop.eup %15141  ;;  %v1787_v46 = vmul.f32 %v1775_v27, %v1702_v62  ;;  %v14251_v27 = vld [vmem:[%s16027_s9 + $0x1c0] sm:$0xff] }
 0x2a4   : > { %v1729_v35 = vmin.f32 %v16225_v29, 20.0  ;;  %2019 = vmatmul.bf16.vlgmr.msrb.gmra.mxu0 %v1961_v31  ;;  %v1822_v42 = vmul.f32 %v15142_v36, %v1786_v38  ;;  %2205 = vmatpush.bf16.msrb.mxu3 %v14254_v0 }
 0x2a5   : > { %15145 = vrcp.f32 %v1799_v32 }
 0x2a6   : > { %v15144_v37 = vpop.eup %15143  ;;  %v1746_v39 = vmul.f32 1.442695, %v1729_v35  ;;  %v1834_v51 = vpack.c.bf16 %v1822_v42, %v1822_v42 }
 0x2a7   : > { %v1764_v30 = vadd.f32 2.0, %v15144_v37 }
 0x2a8   : > { %15147 = vpow2.f32 %v1746_v39  ;;  %v1882_v15 = vunpack.c.l.b16 %v1834_v51  ;;  %2206 = vmatpush.bf16.msrb.mxu3 %v14253_v9 }
 0x2a9   : > { %v1776_v43 = vmul.f32 %v15144_v37, %v1764_v30  ;;  %v1709_v44 = vpop.f32.mrf.mxu2 }
 0x2aa   : > { %v16234_v47 = vadd.f32 %v16192_v12, %v1709_v44 }
 0x2ab   : > { %v15146_v48 = vpop.eup %15145  ;;  %v1800_v49 = vadd.f32 2.0, %v1776_v43  ;;  %v1788_v60 = vmul.f32 %v1776_v43, %v16219_v11 }
 0x2ac   : > { %v1823_v52 = vmul.f32 %v15146_v48, %v1787_v46  ;;  %v1730_v53 = vmin.f32 %v16234_v47, 20.0  ;;  %2207 = vmatpush.bf16.msrb.mxu3 %v14252_v20 }
 0x2ad   : > { %15149 = vrcp.f32 %v1800_v49 }
 0x2ae   : > { %v15148_v54 = vpop.eup %15147  ;;  %v1835_v55 = vpack.c.bf16 %v1823_v52, %v1823_v52  ;;  %v1748_v56 = vmul.f32 1.442695, %v1730_v53 }
 0x2af   : > { %v1765_v57 = vadd.f32 2.0, %v15148_v54 }
 0x2b0   : > { %v1883_v61 = vunpack.c.l.b16 %v1835_v55  ;;  %15151 = vpow2.f32 %v1748_v56  ;;  %2208 = vmatpush.bf16.msrb.mxu3 %v14251_v27 }
 0x2b1   : > { %v1777_v62 = vmul.f32 %v15148_v54, %v1765_v57  ;;  %v1711_v63 = vpop.f32.mrf.mxu2 }
 0x2b2   : > { %v1712_v1 = vadd.f32 %v16192_v12, %v1711_v63  ;;  %v1886_v2 = vpack.c.b16 %v1883_v61, %v1882_v15 }
 0x2b3   : > { %v1801_v3 = vadd.f32 2.0, %v1777_v62  ;;  %v15150_v5 = vpop.eup %15149  ;;  %v1789_v16 = vmul.f32 %v1777_v62, %v16225_v29 }
 0x2b4   : > { %v1731_v4 = vmin.f32 %v1712_v1, 20.0  ;;  %1946 = vmatmul.bf16.vlgmr.msra.gmra.mxu3 %v1886_v2  ;;  %2024 = vmatmul.bf16.gmra.mxu0 %v1886_v2  ;;  %v1824_v10 = vmul.f32 %v15150_v5, %v1788_v60 }
 0x2b5   : > { %15153 = vrcp.f32 %v1801_v3 }
 0x2b6   : > { %v15152_v6 = vpop.eup %15151  ;;  %v1750_v7 = vmul.f32 1.442695, %v1731_v4  ;;  %v1836_v23 = vpack.c.bf16 %v1824_v10, %v1824_v10 }
 0x2b7   : > { %v1766_v8 = vadd.f32 2.0, %v15152_v6 }
 0x2b8   : > { %15155 = vpow2.f32 %v1750_v7  ;;  %v1884_v28 = vunpack.c.l.b16 %v1836_v23 }
 0x2b9   : > { %v1778_v13 = vmul.f32 %v15152_v6, %v1766_v8  ;;  %v1714_v14 = vpop.f32.mrf.mxu2 }
 0x2ba   : > { %v1715_v17 = vadd.f32 %v16192_v12, %v1714_v14 }
 0x2bb   : > { %v15154_v18 = vpop.eup %15153  ;;  %v1802_v19 = vadd.f32 2.0, %v1778_v13  ;;  %v1790_v39 = vmul.f32 %v1778_v13, %v16234_v47 }
 0x2bc   : > { %v1732_v21 = vmin.f32 %v1715_v17, 20.0  ;;  %v1825_v22 = vmul.f32 %v15154_v18, %v1789_v16 }
 0x2bd   : > { %15157 = vrcp.f32 %v1802_v19 }
 0x2be   : > { %v15156_v11 = vpop.eup %15155  ;;  %v1752_v24 = vmul.f32 1.442695, %v1732_v21  ;;  %v1837_v25 = vpack.c.bf16 %v1825_v22, %v1825_v22 }
 0x2bf   : > { %v1767_v26 = vadd.f32 2.0, %v15156_v11 }
 0x2c0   : > { %15159 = vpow2.f32 %v1752_v24  ;;  %v1885_v31 = vunpack.c.l.b16 %v1837_v25 }
 0x2c1   : > { %v1779_v32 = vmul.f32 %v15156_v11, %v1767_v26  ;;  %v1716_v29 = vpop.f32.mrf.mxu2 }
 0x2c2   : > { %v1717_v33 = vadd.f32 %v16192_v12, %v1716_v29  ;;  %v1887_v34 = vpack.c.b16 %v1885_v31, %v1884_v28 }
 0x2c3   : > { %v1803_v35 = vadd.f32 2.0, %v1779_v32  ;;  %v15158_v37 = vpop.eup %15157  ;;  %v1791_v44 = vmul.f32 %v1779_v32, %v1712_v1 }
 0x2c4   : > { %v1733_v36 = vmin.f32 %v1717_v33, 20.0  ;;  %1951 = vmatmul.bf16.gmra.mxu3 %v1887_v34  ;;  %v1826_v41 = vmul.f32 %v15158_v37, %v1790_v39  ;;  %v14266_v34 = vld [vmem:[%s16005_s28 + $0xb8] sm:$0xff]  ;;  %v14265_v37 = vld [vmem:[%s16005_s28 + $0xb0] sm:$0xff] }
 0x2c5   : > { %15161 = vrcp.f32 %v1803_v35  ;;  %2429 = vmatpush.bf16.msra.mxu1 %v14266_v34  ;;  %v11100_v34 = vld [vmem:[%s16017_s23 + $0x8] sm:$0xf] }
 0x2c6   : > { %v15160_v38 = vpop.eup %15159  ;;  %v1754_v30 = vmul.f32 1.442695, %v1733_v36  ;;  %v1838_v45 = vpack.c.bf16 %v1826_v41, %v1826_v41  ;;  %v14263_v41 = vld [vmem:[%s16005_s28 + $0xa0] sm:$0xff] }
 0x2c7   : > { %v1768_v40 = vadd.f32 2.0, %v15160_v38 }
 0x2c8   : > { %15163 = vpow2.f32 %v1754_v30  ;;  %v2051_v47 = vunpack.c.l.b16 %v1838_v45 }
 0x2c9   : > { %v1780_v42 = vmul.f32 %v15160_v38, %v1768_v40  ;;  %v1719_v43 = vpop.f32.mrf.mxu2  ;;  %2430 = vmatpush.bf16.msra.mxu1 %v14265_v37  ;;  %v14264_v38 = vld [vmem:[%s16005_s28 + $0xa8] sm:$0xff]  ;;  %v2634_v37 = vsel %vm736_vm1, %v11100_v34, 0 }
 0x2ca   : > { %v1720_v46 = vadd.f32 %v16192_v12, %v1719_v43  ;;  %v14262_v43 = vld [vmem:[%s16005_s28 + $0x98] sm:$0xff] }
 0x2cb   : > { %v15162_v48 = vpop.eup %15161  ;;  %v1804_v49 = vadd.f32 2.0, %v1780_v42  ;;  %v1792_v2 = vmul.f32 %v1780_v42, %v1715_v17  ;;  %v14274_v42 = vld [vmem:[%s16005_s28 + $0xf8] sm:$0xff] }
 0x2cc   : > { %v1827_v50 = vmul.f32 %v15162_v48, %v1791_v44  ;;  %v1734_v51 = vmin.f32 %v1720_v46, 20.0  ;;  %2361 = vmatpush.bf16.msra.mxu0 %v14274_v42 }
 0x2cd   : > { %15165 = vrcp.f32 %v1804_v49  ;;  %2431 = vmatpush.bf16.msra.mxu1 %v14264_v38  ;;  %v15022_v49 = vld [vmem:[%s16042_s19 + $0x1] ss:$0 sm:$0xff] }
 0x2ce   : > { %v15164_v52 = vpop.eup %15163  ;;  %v1839_v53 = vpack.c.bf16 %v1827_v50, %v1827_v50  ;;  %v1756_v54 = vmul.f32 1.442695, %v1734_v51  ;;  %v14273_v51 = vld [vmem:[%s16005_s28 + $0xf0] sm:$0xff] }
 0x2cf   : > { %v1769_v55 = vadd.f32 2.0, %v15164_v52 }
 0x2d0   : > { %v2052_v56 = vunpack.c.l.b16 %v1839_v53  ;;  %15167 = vpow2.f32 %v1756_v54  ;;  %2362 = vmatpush.bf16.msra.mxu0 %v14273_v51 }
 0x2d1   : > { %v1781_v57 = vmul.f32 %v15164_v52, %v1769_v55  ;;  %v1721_v58 = vpop.f32.mrf.mxu2  ;;  %2432 = vmatpush.bf16.msra.mxu1 %v14263_v41  ;;  %v14261_v52 = vld [vmem:[%s16005_s28 + $0x90] sm:$0xff]  ;;  %v14272_v55 = vld [vmem:[%s16005_s28 + $0xe8] sm:$0xff] }
 0x2d2   : > { %v1722_v59 = vadd.f32 %v16192_v12, %v1721_v58  ;;  %v2055_v15 = vpack.c.b16 %v2052_v56, %v2051_v47  ;;  %v14260_v47 = vld [vmem:[%s16005_s28 + $0x88] sm:$0xff] }
 0x2d3   : > { %v1805_v61 = vadd.f32 2.0, %v1781_v57  ;;  %v15166_v63 = vpop.eup %15165  ;;  %v1793_v6 = vmul.f32 %v1781_v57, %v1717_v33 }
 0x2d4   : > { %v1735_v62 = vmin.f32 %v1722_v59, 20.0  ;;  %2115 = vmatmul.bf16.vlgmr.msrb.gmra.mxu1 %v2055_v15  ;;  %v1828_v4 = vmul.f32 %v15166_v63, %v1792_v2  ;;  %2363 = vmatpush.bf16.msra.mxu0 %v14272_v55 }
 0x2d5   : > { %15169 = vrcp.f32 %v1805_v61  ;;  %2433 = vmatpush.bf16.msra.mxu1 %v14262_v43  ;;  %v14271_v61 = vld [vmem:[%s16005_s28 + $0xe0] sm:$0xff] }
 0x2d6   : > { %v15168_v1 = vpop.eup %15167  ;;  %v1758_v3 = vmul.f32 1.442695, %v1735_v62  ;;  %v1840_v9 = vpack.c.bf16 %v1828_v4, %v1828_v4  ;;  %v14259_v62 = vld [vmem:[%s16005_s28 + $0x80] sm:$0xff] }
 0x2d7   : > { %v1770_v0 = vadd.f32 2.0, %v15168_v1 }
 0x2d8   : > { %15171 = vpow2.f32 %v1758_v3  ;;  %v2053_v14 = vunpack.c.l.b16 %v1840_v9  ;;  %2364 = vmatpush.bf16.msra.mxu0 %v14271_v61 }
 0x2d9   : > { %v1782_v5 = vmul.f32 %v15168_v1, %v1770_v0  ;;  %2434 = vmatpush.bf16.msra.mxu1 %v14261_v52  ;;  %v14270_v0 = vld [vmem:[%s16005_s28 + $0xd8] sm:$0xff] }
 0x2db   : > { %v15170_v60 = vpop.eup %15169  ;;  %v1806_v7 = vadd.f32 2.0, %v1782_v5  ;;  %v1794_v21 = vmul.f32 %v1782_v5, %v1720_v46 }
 0x2dc   : > { %v1829_v8 = vmul.f32 %v15170_v60, %v1793_v6  ;;  %2365 = vmatpush.bf16.msra.mxu0 %v14270_v0  ;;  %v14283_v0 = vld [vmem:[%s16022_s21 + $0x60] sm:$0xff] }
 0x2dd   : > { %15173 = vrcp.f32 %v1806_v7  ;;  %2435 = vmatpush.bf16.msra.mxu1 %v14260_v47 }
 0x2de   : > { %v15172_v10 = vpop.eup %15171  ;;  %v1841_v12 = vpack.c.bf16 %v1829_v8, %v1829_v8 }
 0x2df   : > { %v1771_v13 = vadd.f32 2.0, %v15172_v10 }
 0x2e0   : > { %v2054_v16 = vunpack.c.l.b16 %v1841_v12 }
 0x2e1   : > { %v1783_v18 = vmul.f32 %v15172_v10, %v1771_v13  ;;  %2436 = vmatpush.bf16.msra.mxu1 %v14259_v62  ;;  %v14269_v10 = vld [vmem:[%s16005_s28 + $0xd0] sm:$0xff] }
 0x2e2   : > { %v2056_v19 = vpack.c.b16 %v2054_v16, %v2053_v14  ;;  %2366 = vmatpush.bf16.msra.mxu0 %v14269_v10  ;;  %v14281_v10 = vld [vmem:[%s16037_s18 + $0x70] sm:$0xff] }
 0x2e3   : > { %v1807_v20 = vadd.f32 2.0, %v1783_v18  ;;  %v15174_v17 = vpop.eup %15173  ;;  %v1795_v23 = vmul.f32 %v1783_v18, %v1722_v59 }
 0x2e4   : > { %2120 = vmatmul.bf16.gmra.mxu1 %v2056_v19  ;;  %2209 = vmatmul.bf16.vlgmr.msrb.gmra.mxu3 %v2056_v19  ;;  %v1830_v22 = vmul.f32 %v15174_v17, %v1794_v21 }
 0x2e5   : > { %15175 = vrcp.f32 %v1807_v20  ;;  %v14268_v20 = vld [vmem:[%s16005_s28 + $0xc8] sm:$0xff] }
 0x2e6   : > { %v1842_v25 = vpack.c.bf16 %v1830_v22, %v1830_v22  ;;  %2367 = vmatpush.bf16.msra.mxu0 %v14268_v20 }
 0x2e8   : > { %v2149_v27 = vunpack.c.l.b16 %v1842_v25 }
 0x2eb   : > { %v15176_v11 = vpop.eup %15175 }
 0x2ec   : > { %v1831_v24 = vmul.f32 %v15176_v11, %v1795_v23 }
 0x2ee   : > { %v1843_v26 = vpack.c.bf16 %v1831_v24, %v1831_v24 }
 0x2f0   : > { %v2150_v28 = vunpack.c.l.b16 %v1843_v26  ;;  %v14267_v26 = vld [vmem:[%s16005_s28 + $0xc0] sm:$0xff] }
 0x2f1   : > { %2368 = vmatpush.bf16.msra.mxu0 %v14267_v26  ;;  %v14275_v26 = vld [vmem:[%s16037_s18 + $0x40] sm:$0xff] }
 0x2f2   : > { %v2151_v31 = vpack.c.b16 %v2150_v28, %v2149_v27 }
 0x2f4   : > { %2214 = vmatmul.bf16.gmra.mxu3 %v2151_v31 }
 0x2f5   : > { %2643 = vmatpush.bf16.msrb.mxu0 %v2634_v37 }
 0x30f   : > { %v16253_v29 = vpop.f32.mrf.mxu1 }
 0x317   : > { %v16256_v35 = vpop.f32.mrf.mxu1 }
 0x321   : > { %v2020_v39 = vpop.f32.mrf.mxu0 }
 0x329   : > { %v2022_v46 = vpop.f32.mrf.mxu0 }
 0x331   : > { %v2025_v1 = vpop.f32.mrf.mxu0 }
 0x337   : > { %v1947_v32 = vpop.f32.mrf.mxu3 }
 0x338   : > { %v2021_v44 = vadd.f32 %v2020_v39, %v1947_v32 }
 0x339   : > { %v2027_v16 = vpop.f32.mrf.mxu0 }
 0x33f   : > { %v1949_v33 = vpop.f32.mrf.mxu3 }
 0x340   : > { %v2023_v56 = vadd.f32 %v2022_v46, %v1949_v33 }
 0x347   : > { %v1952_v36 = vpop.f32.mrf.mxu3 }
 0x348   : > { %v2026_v4 = vadd.f32 %v2025_v1, %v1952_v36 }
 0x34f   : > { %v1954_v40 = vpop.f32.mrf.mxu3 }
 0x350   : > { %v2028_v17 = vadd.f32 %v2027_v16, %v1954_v40  ;;  %v14296_v16 = vld [vmem:[%s16027_s9 + $0x238] sm:$0xff] }
 0x351   : > { %v2116_v30 = vpop.f32.mrf.mxu1  ;;  %2962 = vmatpush.bf16.msrb.mxu1 %v14296_v16 }
 0x352   : > { %v2126_v48 = vadd.f32 %v2116_v30, %v2021_v44 }
 0x359   : > { %v2118_v45 = vpop.f32.mrf.mxu1 }
 0x35a   : > { %v2127_v58 = vadd.f32 %v2118_v45, %v2023_v56 }
 0x361   : > { %v2121_v2 = vpop.f32.mrf.mxu1 }
 0x362   : > { %v2128_v60 = vadd.f32 %v2121_v2, %v2026_v4  ;;  %v14284_v4 = vld [vmem:[%s16022_s21 + $0x68] sm:$0xff] }
 0x367   : > { %v2210_v50 = vpop.f32.mrf.mxu3 }
 0x368   : > { %v2220_v53 = vadd.f32 %v2210_v50, %v2126_v48 }
 0x369   : > { %v2123_v19 = vpop.f32.mrf.mxu1 }
 0x36a   : > { %v2229_v54 = vadd.f32 %v15022_v49, %v2220_v53  ;;  %v2129_v23 = vadd.f32 %v2123_v19, %v2028_v17  ;;  %v14303_v19 = vld [vmem:[%s16027_s9 + $0x270] sm:$0xff] }
 0x36b   : > { %v14295_v17 = vld [vmem:[%s16027_s9 + $0x230] sm:$0xff] }
 0x36c   : > { %v2233_v57 = vmin.f32 %v2229_v54, 20.0  ;;  %2963 = vmatpush.bf16.msrb.mxu1 %v14295_v17 }
 0x36e   : > { %v2237_v59 = vmul.f32 1.442695, %v2233_v57 }
 0x36f   : > { %v2212_v15 = vpop.f32.mrf.mxu3 }
 0x370   : > { %15177 = vpow2.f32 %v2237_v59  ;;  %v2221_v63 = vadd.f32 %v2212_v15, %v2127_v58 }
 0x372   : > { %v2230_v3 = vadd.f32 %v15022_v49, %v2221_v63 }
 0x374   : > { %v2234_v5 = vmin.f32 %v2230_v3, 20.0 }
 0x376   : > { %v15178_v6 = vpop.eup %15177  ;;  %v2239_v7 = vmul.f32 1.442695, %v2234_v5  ;;  %v14285_v5 = vld [vmem:[%s16022_s21 + $0x70] sm:$0xff] }
 0x377   : > { %v2245_v8 = vadd.f32 2.0, %v15178_v6  ;;  %v2215_v9 = vpop.f32.mrf.mxu3 }
 0x378   : > { %15179 = vpow2.f32 %v2239_v7  ;;  %v2222_v12 = vadd.f32 %v2215_v9, %v2128_v60  ;;  %v14287_v60 = vld [vmem:[%s16022_s21 + $0x80] sm:$0xff]  ;;  %v14304_v7 = vld [vmem:[%s16027_s9 + $0x278] sm:$0xff] }
 0x379   : > { %v2249_v13 = vmul.f32 %v15178_v6, %v2245_v8  ;;  %v14286_v6 = vld [vmem:[%s16022_s21 + $0x78] sm:$0xff]  ;;  %2889 = vmatpush.bf16.msrb.mxu2 %v14304_v7  ;;  %v14288_v8 = vld [vmem:[%s16022_s21 + $0x88] sm:$0xff] }
 0x37a   : > { %v2231_v14 = vadd.f32 %v15022_v49, %v2222_v12  ;;  %v14282_v9 = vld [vmem:[%s16037_s18 + $0x78] sm:$0xff]  ;;  %v14280_v12 = vld [vmem:[%s16037_s18 + $0x68] sm:$0xff] }
 0x37b   : > { %v2257_v18 = vadd.f32 2.0, %v2249_v13  ;;  %v2253_v39 = vmul.f32 %v2249_v13, %v2229_v54  ;;  %2539 = vmatpush.bf16.msra.mxu3 %v14282_v9  ;;  %v14279_v13 = vld [vmem:[%s16037_s18 + $0x60] sm:$0xff] }
 0x37c   : > { %v2235_v21 = vmin.f32 %v2231_v14, 20.0 }
 0x37d   : > { %15181 = vrcp.f32 %v2257_v18  ;;  %v14277_v18 = vld [vmem:[%s16037_s18 + $0x50] sm:$0xff]  ;;  %2890 = vmatpush.bf16.msrb.mxu2 %v14303_v19 }
 0x37e   : > { %v15180_v22 = vpop.eup %15179  ;;  %v2241_v11 = vmul.f32 1.442695, %v2235_v21  ;;  %v15023_v21 = vld [vmem:[%s16047_s20 + $0x1] ss:$0 sm:$0xff] }
 0x37f   : > { %v2246_v24 = vadd.f32 2.0, %v15180_v22  ;;  %v2217_v25 = vpop.f32.mrf.mxu3  ;;  %2540 = vmatpush.bf16.msra.mxu3 %v14281_v10 }
 0x380   : > { %15183 = vpow2.f32 %v2241_v11  ;;  %v2223_v27 = vadd.f32 %v2217_v25, %v2129_v23  ;;  %v14276_v23 = vld [vmem:[%s16037_s18 + $0x48] sm:$0xff] }
 0x381   : > { %v2250_v28 = vmul.f32 %v15180_v22, %v2246_v24  ;;  %v14294_v24 = vld [vmem:[%s16027_s9 + $0x228] sm:$0xff] }
 0x382   : > { %v2232_v31 = vadd.f32 %v15022_v49, %v2223_v27  ;;  %2964 = vmatpush.bf16.msrb.mxu1 %v14294_v24 }
 0x383   : > { %v2258_v32 = vadd.f32 2.0, %v2250_v28  ;;  %v15182_v36 = vpop.eup %15181  ;;  %v2254_v43 = vmul.f32 %v2250_v28, %v2230_v3  ;;  %2541 = vmatpush.bf16.msra.mxu3 %v14280_v12  ;;  %v14293_v28 = vld [vmem:[%s16027_s9 + $0x220] sm:$0xff] }
 0x384   : > { %v2236_v33 = vmin.f32 %v2232_v31, 20.0  ;;  %v2265_v41 = vmul.f32 %v15182_v36, %v2253_v39  ;;  %v14292_v36 = vld [vmem:[%s16027_s9 + $0x218] sm:$0xff]  ;;  %v16305_v39 = vld [vmem:[%s16032_s11 + $0x2] ss:$0 sm:$0xff] }
 0x385   : > { %15185 = vrcp.f32 %v2258_v32 }
 0x386   : > { %v15184_v38 = vpop.eup %15183  ;;  %v2243_v30 = vmul.f32 1.442695, %v2236_v33  ;;  %v2269_v48 = vpack.c.bf16 %v2265_v41, %v2265_v41  ;;  %2965 = vmatpush.bf16.msrb.mxu1 %v14293_v28 }
 0x387   : > { %v2247_v40 = vadd.f32 2.0, %v15184_v38  ;;  %2542 = vmatpush.bf16.msra.mxu3 %v14279_v13 }
 0x388   : > { %15187 = vpow2.f32 %v2243_v30  ;;  %v2377_v52 = vunpack.c.l.b16 %v2269_v48  ;;  %v14291_v30 = vld [vmem:[%s16027_s9 + $0x210] sm:$0xff]  ;;  %v14290_v48 = vld [vmem:[%s16027_s9 + $0x208] sm:$0xff] }
 0x389   : > { %v2251_v42 = vmul.f32 %v15184_v38, %v2247_v40 }
 0x38a   : > { %2966 = vmatpush.bf16.msrb.mxu1 %v14292_v36 }
 0x38b   : > { %v15186_v44 = vpop.eup %15185  ;;  %v2259_v46 = vadd.f32 2.0, %v2251_v42  ;;  %v2255_v57 = vmul.f32 %v2251_v42, %v2231_v14  ;;  %v14278_v14 = vld [vmem:[%s16037_s18 + $0x58] sm:$0xff]  ;;  %v14302_v42 = vld [vmem:[%s16027_s9 + $0x268] sm:$0xff] }
 0x38c   : > { %v2266_v49 = vmul.f32 %v15186_v44, %v2254_v43  ;;  %2543 = vmatpush.bf16.msra.mxu3 %v14278_v14  ;;  %2891 = vmatpush.bf16.msrb.mxu2 %v14302_v42 }
 0x38d   : > { %15189 = vrcp.f32 %v2259_v46 }
 0x38e   : > { %v15188_v45 = vpop.eup %15187  ;;  %v2270_v50 = vpack.c.bf16 %v2266_v49, %v2266_v49  ;;  %2967 = vmatpush.bf16.msrb.mxu1 %v14291_v30 }
 0x38f   : > { %v2248_v51 = vadd.f32 2.0, %v15188_v45 }
 0x390   : > { %v2378_v53 = vunpack.c.l.b16 %v2270_v50  ;;  %2544 = vmatpush.bf16.msra.mxu3 %v14277_v18  ;;  %v14297_v18 = vld [vmem:[%s16027_s9 + $0x240] sm:$0xff] }
 0x391   : > { %v2252_v55 = vmul.f32 %v15188_v45, %v2248_v51  ;;  %v14301_v51 = vld [vmem:[%s16027_s9 + $0x260] sm:$0xff] }
 0x392   : > { %v2379_v47 = vpack.c.b16 %v2378_v53, %v2377_v52  ;;  %2968 = vmatpush.bf16.msrb.mxu1 %v14290_v48  ;;  %v14289_v52 = vld [vmem:[%s16027_s9 + $0x200] sm:$0xff]  ;;  %2892 = vmatpush.bf16.msrb.mxu2 %v14301_v51 }
 0x393   : > { %v2260_v54 = vadd.f32 2.0, %v2252_v55  ;;  %v15190_v56 = vpop.eup %15189  ;;  %v2256_v59 = vmul.f32 %v2252_v55, %v2232_v31 }
 0x394   : > { %2437 = vmatmul.bf16.vlgmr.msra.gmra.mxu1 %v2379_v47  ;;  %v2267_v58 = vmul.f32 %v15190_v56, %v2255_v57  ;;  %2545 = vmatpush.bf16.msra.mxu3 %v14276_v23  ;;  %v14312_v23 = vld [vmem:[%s16027_s9 + $0x2b8] sm:$0xff] }
 0x395   : > { %15191 = vrcp.f32 %v2260_v54 }
 0x396   : > { %v2271_v61 = vpack.c.bf16 %v2267_v58, %v2267_v58  ;;  %2969 = vmatpush.bf16.msrb.mxu1 %v14289_v52  ;;  %v14300_v58 = vld [vmem:[%s16027_s9 + $0x258] sm:$0xff] }
 0x397   : > { %2893 = vmatpush.bf16.msrb.mxu2 %v14300_v58 }
 0x398   : > { %v2309_v1 = vunpack.c.l.b16 %v2271_v61  ;;  %2546 = vmatpush.bf16.msra.mxu3 %v14275_v26 }
 0x39b   : > { %v15192_v15 = vpop.eup %15191 }
 0x39c   : > { %v2268_v62 = vmul.f32 %v15192_v15, %v2256_v59  ;;  %3058 = vmatpush.bf16.msrb.mxu3 %v14312_v23 }
 0x39e   : > { %v2272_v63 = vpack.c.bf16 %v2268_v62, %v2268_v62 }
 0x3a0   : > { %v2310_v2 = vunpack.c.l.b16 %v2272_v63 }
 0x3a2   : > { %v2311_v3 = vpack.c.b16 %v2310_v2, %v2309_v1  ;;  %v14299_v1 = vld [vmem:[%s16027_s9 + $0x250] sm:$0xff] }
 0x3a3   : > { %2894 = vmatpush.bf16.msrb.mxu2 %v14299_v1  ;;  %v14319_v1 = vld [vmem:[%s16027_s9 + $0x2f0] sm:$0xff] }
 0x3a4   : > { %2369 = vmatmul.bf16.vlgmr.msra.gmra.mxu0 %v2311_v3 }
 0x3b4   : > { %11126 = vmatmul.msk.bf16.vlgmr.msrb.gmra.mxu0 %vm717_vm2, %v14283_v0 }
 0x3c4   : > { %11127 = vmatmul.msk.bf16.gmra.mxu0 %vm717_vm2, %v14284_v4 }
 0x3d4   : > { %11128 = vmatmul.msk.bf16.gmra.mxu0 %vm717_vm2, %v14285_v5 }
 0x3e4   : > { %11129 = vmatmul.msk.bf16.gmra.mxu0 %vm717_vm2, %v14286_v6  ;;  %v14298_v6 = vld [vmem:[%s16027_s9 + $0x248] sm:$0xff] }
 0x3e5   : > { %2895 = vmatpush.bf16.msrb.mxu2 %v14298_v6 }
 0x3e9   : > { %2896 = vmatpush.bf16.msrb.mxu2 %v14297_v18 }
 0x3f4   : > { %11130 = vmatmul.msk.bf16.gmra.mxu0 %vm717_vm2, %v14287_v60 }
 0x404   : > { %11131 = vmatmul.msk.bf16.gmra.mxu0 %vm717_vm2, %v14288_v8 }
 0x411   : > { %v2438_v20 = vpop.f32.mrf.mxu1 }
 0x419   : > { %v2440_v32 = vpop.f32.mrf.mxu1 }
 0x421   : > { %v2370_v22 = vpop.f32.mrf.mxu0 }
 0x422   : > { %v2439_v11 = vadd.f32 %v2438_v20, %v2370_v22 }
 0x424   : > { %v2448_v25 = vadd.f32 %v15023_v21, %v2439_v11 }
 0x426   : > { %v2450_v27 = vmin.f32 %v2448_v25, 20.0 }
 0x428   : > { %v2452_v31 = vmul.f32 1.442695, %v2450_v27 }
 0x429   : > { %v2372_v33 = vpop.f32.mrf.mxu0 }
 0x42a   : > { %15193 = vpow2.f32 %v2452_v31  ;;  %v2441_v34 = vadd.f32 %v2440_v32, %v2372_v33  ;;  %v14311_v31 = vld [vmem:[%s16027_s9 + $0x2b0] sm:$0xff] }
 0x42b   : > { %3059 = vmatpush.bf16.msrb.mxu3 %v14311_v31 }
 0x42c   : > { %v2449_v37 = vadd.f32 %v15023_v21, %v2441_v34 }
 0x42e   : > { %v2451_v38 = vmin.f32 %v2449_v37, 20.0 }
 0x430   : > { %v15194_v40 = vpop.eup %15193  ;;  %v2454_v41 = vmul.f32 1.442695, %v2451_v38 }
 0x431   : > { %v2456_v43 = vadd.f32 2.0, %v15194_v40  ;;  %v2645_v44 = vpop.f32.mrf.mxu0 }
 0x432   : > { %15195 = vpow2.f32 %v2454_v41  ;;  %v2646_v46 = vadd.f32 %v16305_v39, %v2645_v44 }
 0x433   : > { %v2458_v45 = vmul.f32 %v15194_v40, %v2456_v43  ;;  %v14310_v40 = vld [vmem:[%s16027_s9 + $0x2a8] sm:$0xff] }
 0x434   : > { %v2675_v49 = vmin.f32 %v2646_v46, 20.0  ;;  %3060 = vmatpush.bf16.msrb.mxu3 %v14310_v40 }
 0x435   : > { %v2462_v55 = vadd.f32 2.0, %v2458_v45  ;;  %v2460_v60 = vmul.f32 %v2458_v45, %v2448_v25  ;;  %v14309_v45 = vld [vmem:[%s16027_s9 + $0x2a0] sm:$0xff] }
 0x436   : > { %v2687_v50 = vmul.f32 1.442695, %v2675_v49 }
 0x438   : > { %v15196_v53 = vpop.eup %15195  ;;  %15197 = vpow2.f32 %v2687_v50  ;;  %3061 = vmatpush.bf16.msrb.mxu3 %v14309_v45 }
 0x439   : > { %v2457_v47 = vadd.f32 2.0, %v15196_v53  ;;  %v2647_v54 = vpop.f32.mrf.mxu0  ;;  %15199 = vrcp.f32 %v2462_v55 }
 0x43a   : > { %v2648_v56 = vadd.f32 %v16305_v39, %v2647_v54 }
 0x43b   : > { %v2459_v57 = vmul.f32 %v15196_v53, %v2457_v47 }
 0x43c   : > { %v2676_v59 = vmin.f32 %v2648_v56, 20.0 }
 0x43d   : > { %v2463_v15 = vadd.f32 2.0, %v2459_v57  ;;  %v2461_v7 = vmul.f32 %v2459_v57, %v2449_v37  ;;  %v14308_v57 = vld [vmem:[%s16027_s9 + $0x298] sm:$0xff] }
 0x43e   : > { %v15198_v61 = vpop.eup %15197  ;;  %v2689_v62 = vmul.f32 1.442695, %v2676_v59  ;;  %3062 = vmatpush.bf16.msrb.mxu3 %v14308_v57 }
 0x43f   : > { %15201 = vrcp.f32 %v2463_v15  ;;  %v2711_v63 = vadd.f32 2.0, %v15198_v61  ;;  %v15200_v4 = vpop.eup %15199 }
 0x440   : > { %15203 = vpow2.f32 %v2689_v62  ;;  %v2466_v12 = vmul.f32 %v15200_v4, %v2460_v60 }
 0x441   : > { %v2723_v2 = vmul.f32 %v15198_v61, %v2711_v63  ;;  %v2650_v3 = vpop.f32.mrf.mxu0 }
 0x442   : > { %v16317_v0 = vadd.f32 %v16305_v39, %v2650_v3 }
 0x443   : > { %v2747_v5 = vadd.f32 2.0, %v2723_v2  ;;  %v2735_v26 = vmul.f32 %v2723_v2, %v2646_v46  ;;  %v14307_v2 = vld [vmem:[%s16027_s9 + $0x290] sm:$0xff] }
 0x444   : > { %v2677_v8 = vmin.f32 %v16317_v0, 20.0  ;;  %3063 = vmatpush.bf16.msrb.mxu3 %v14307_v2 }
 0x445   : > { %v15202_v9 = vpop.eup %15201  ;;  %15205 = vrcp.f32 %v2747_v5 }
 0x446   : > { %v15204_v10 = vpop.eup %15203  ;;  %v2467_v13 = vmul.f32 %v15202_v9, %v2461_v7  ;;  %v2691_v14 = vmul.f32 1.442695, %v2677_v8  ;;  %v14306_v9 = vld [vmem:[%s16027_s9 + $0x288] sm:$0xff] }
 0x447   : > { %v2712_v16 = vadd.f32 2.0, %v15204_v10 }
 0x448   : > { %15207 = vpow2.f32 %v2691_v14  ;;  %v2468_v19 = vpack.c.bf16 %v2467_v13, %v2466_v12  ;;  %3064 = vmatpush.bf16.msrb.mxu3 %v14306_v9 }
 0x449   : > { %v2724_v20 = vmul.f32 %v15204_v10, %v2712_v16  ;;  %v2652_v17 = vpop.f32.mrf.mxu0 }
 0x44a   : > { %v2653_v21 = vadd.f32 %v16305_v39, %v2652_v17  ;;  %2547 = vmatmul.bf16.vlgmr.msra.gmra.mxu3 %v2468_v19  ;;  %v14305_v17 = vld [vmem:[%s16027_s9 + $0x280] sm:$0xff] }
 0x44b   : > { %v2748_v22 = vadd.f32 2.0, %v2724_v20  ;;  %v15206_v24 = vpop.eup %15205  ;;  %v2736_v36 = vmul.f32 %v2724_v20, %v2648_v56  ;;  %v14320_v56 = vld [vmem:[%s16027_s9 + $0x2f8] sm:$0xff]  ;;  %v14317_v20 = vld [vmem:[%s16027_s9 + $0x2e0] sm:$0xff] }
 0x44c   : > { %v2678_v11 = vmin.f32 %v2653_v21, 20.0  ;;  %v2771_v32 = vmul.f32 %v15206_v24, %v2735_v26  ;;  %3152 = vmatpush.bf16.msra.mxu2 %v14320_v56  ;;  %3065 = vmatpush.bf16.msrb.mxu3 %v14305_v17 }
 0x44d   : > { %15209 = vrcp.f32 %v2748_v22 }
 0x44e   : > { %v15208_v25 = vpop.eup %15207  ;;  %v2693_v27 = vmul.f32 1.442695, %v2678_v11  ;;  %v2783_v41 = vpack.c.bf16 %v2771_v32, %v2771_v32 }
 0x44f   : > { %v2713_v28 = vadd.f32 2.0, %v15208_v25 }
 0x450   : > { %15211 = vpow2.f32 %v2693_v27  ;;  %v2910_v50 = vunpack.c.l.b16 %v2783_v41  ;;  %3153 = vmatpush.bf16.msra.mxu2 %v14319_v1  ;;  %v14316_v27 = vld [vmem:[%s16027_s9 + $0x2d8] sm:$0xff] }
 0x451   : > { %v2725_v33 = vmul.f32 %v15208_v25, %v2713_v28  ;;  %v2655_v34 = vpop.f32.mrf.mxu0 }
 0x452   : > { %v16326_v37 = vadd.f32 %v16305_v39, %v2655_v34 }
 0x453   : > { %v15210_v38 = vpop.eup %15209  ;;  %v2749_v30 = vadd.f32 2.0, %v2725_v33  ;;  %v2737_v61 = vmul.f32 %v2725_v33, %v16317_v0  ;;  %v14318_v0 = vld [vmem:[%s16027_s9 + $0x2e8] sm:$0xff] }
 0x454   : > { %v2772_v42 = vmul.f32 %v15210_v38, %v2736_v36  ;;  %v2679_v43 = vmin.f32 %v16326_v37, 20.0  ;;  %3154 = vmatpush.bf16.msra.mxu2 %v14318_v0  ;;  %v14315_v38 = vld [vmem:[%s16027_s9 + $0x2d0] sm:$0xff] }
 0x455   : > { %15213 = vrcp.f32 %v2749_v30 }
 0x456   : > { %v15212_v44 = vpop.eup %15211  ;;  %v2784_v46 = vpack.c.bf16 %v2772_v42, %v2772_v42  ;;  %v2695_v48 = vmul.f32 1.442695, %v2679_v43 }
 0x457   : > { %v2714_v49 = vadd.f32 2.0, %v15212_v44 }
 0x458   : > { %v2911_v51 = vunpack.c.l.b16 %v2784_v46  ;;  %15215 = vpow2.f32 %v2695_v48  ;;  %3155 = vmatpush.bf16.msra.mxu2 %v14317_v20  ;;  %v14314_v48 = vld [vmem:[%s16027_s9 + $0x2c8] sm:$0xff] }
 0x459   : > { %v2726_v52 = vmul.f32 %v15212_v44, %v2714_v49  ;;  %v2657_v53 = vpop.f32.mrf.mxu0 }
 0x45a   : > { %v16332_v55 = vadd.f32 %v16305_v39, %v2657_v53  ;;  %v2912_v47 = vpack.c.b16 %v2911_v51, %v2910_v50 }
 0x45b   : > { %v2750_v54 = vadd.f32 2.0, %v2726_v52  ;;  %v15214_v59 = vpop.eup %15213  ;;  %v2738_v6 = vmul.f32 %v2726_v52, %v2653_v21 }
 0x45c   : > { %v2680_v58 = vmin.f32 %v16332_v55, 20.0  ;;  %2970 = vmatmul.bf16.vlgmr.msrb.gmra.mxu1 %v2912_v47  ;;  %v2773_v3 = vmul.f32 %v15214_v59, %v2737_v61  ;;  %3156 = vmatpush.bf16.msra.mxu2 %v14316_v27  ;;  %v14313_v47 = vld [vmem:[%s16027_s9 + $0x2c0] sm:$0xff] }
 0x45d   : > { %15217 = vrcp.f32 %v2750_v54 }
 0x45e   : > { %v15216_v15 = vpop.eup %15215  ;;  %v2697_v62 = vmul.f32 1.442695, %v2680_v58  ;;  %v2785_v10 = vpack.c.bf16 %v2773_v3, %v2773_v3 }
 0x45f   : > { %v2715_v63 = vadd.f32 2.0, %v15216_v15 }
 0x460   : > { %15219 = vpow2.f32 %v2697_v62  ;;  %v2833_v21 = vunpack.c.l.b16 %v2785_v10  ;;  %3157 = vmatpush.bf16.msra.mxu2 %v14315_v38 }
 0x461   : > { %v2727_v4 = vmul.f32 %v15216_v15, %v2715_v63  ;;  %v2660_v5 = vpop.f32.mrf.mxu0 }
 0x462   : > { %v16341_v60 = vadd.f32 %v16305_v39, %v2660_v5 }
 0x463   : > { %v15218_v7 = vpop.eup %15217  ;;  %v2751_v8 = vadd.f32 2.0, %v2727_v4  ;;  %v2739_v33 = vmul.f32 %v2727_v4, %v16326_v37 }
 0x464   : > { %v2774_v12 = vmul.f32 %v15218_v7, %v2738_v6  ;;  %v2681_v13 = vmin.f32 %v16341_v60, 20.0  ;;  %3158 = vmatpush.bf16.msra.mxu2 %v14314_v48 }
 0x465   : > { %15221 = vrcp.f32 %v2751_v8 }
 0x466   : > { %v15220_v14 = vpop.eup %15219  ;;  %v2786_v16 = vpack.c.bf16 %v2774_v12, %v2774_v12  ;;  %v2699_v18 = vmul.f32 1.442695, %v2681_v13 }
 0x467   : > { %v2716_v19 = vadd.f32 2.0, %v15220_v14 }
 0x468   : > { %v2834_v22 = vunpack.c.l.b16 %v2786_v16  ;;  %15223 = vpow2.f32 %v2699_v18  ;;  %3159 = vmatpush.bf16.msra.mxu2 %v14313_v47 }
 0x469   : > { %v2728_v23 = vmul.f32 %v15220_v14, %v2716_v19  ;;  %v2662_v11 = vpop.f32.mrf.mxu0 }
 0x46a   : > { %v2663_v24 = vadd.f32 %v16305_v39, %v2662_v11  ;;  %v2837_v25 = vpack.c.b16 %v2834_v22, %v2833_v21 }
 0x46b   : > { %v2752_v26 = vadd.f32 2.0, %v2728_v23  ;;  %v15222_v31 = vpop.eup %15221  ;;  %v2740_v42 = vmul.f32 %v2728_v23, %v16332_v55 }
 0x46c   : > { %v2682_v28 = vmin.f32 %v2663_v24, 20.0  ;;  %2897 = vmatmul.bf16.vlgmr.msrb.gmra.mxu2 %v2837_v25  ;;  %2975 = vmatmul.bf16.gmra.mxu1 %v2837_v25  ;;  %v2775_v30 = vmul.f32 %v15222_v31, %v2739_v33 }
 0x46d   : > { %15225 = vrcp.f32 %v2752_v26 }
 0x46e   : > { %v15224_v32 = vpop.eup %15223  ;;  %v2701_v34 = vmul.f32 1.442695, %v2682_v28  ;;  %v2787_v50 = vpack.c.bf16 %v2775_v30, %v2775_v30 }
 0x46f   : > { %v2717_v36 = vadd.f32 2.0, %v15224_v32 }
 0x470   : > { %15227 = vpow2.f32 %v2701_v34  ;;  %v2835_v54 = vunpack.c.l.b16 %v2787_v50 }
 0x471   : > { %v2729_v40 = vmul.f32 %v15224_v32, %v2717_v36  ;;  %v2665_v41 = vpop.f32.mrf.mxu0 }
 0x472   : > { %v2666_v43 = vadd.f32 %v16305_v39, %v2665_v41 }
 0x473   : > { %v15226_v44 = vpop.eup %15225  ;;  %v2753_v46 = vadd.f32 2.0, %v2729_v40  ;;  %v2741_v1 = vmul.f32 %v2729_v40, %v16341_v60 }
 0x474   : > { %v2683_v49 = vmin.f32 %v2666_v43, 20.0  ;;  %v2776_v45 = vmul.f32 %v15226_v44, %v2740_v42 }
 0x475   : > { %15229 = vrcp.f32 %v2753_v46 }
 0x476   : > { %v15228_v37 = vpop.eup %15227  ;;  %v2703_v51 = vmul.f32 1.442695, %v2683_v49  ;;  %v2788_v52 = vpack.c.bf16 %v2776_v45, %v2776_v45 }
 0x477   : > { %v2718_v53 = vadd.f32 2.0, %v15228_v37 }
 0x478   : > { %15231 = vpow2.f32 %v2703_v51  ;;  %v2836_v56 = vunpack.c.l.b16 %v2788_v52 }
 0x479   : > { %v2730_v57 = vmul.f32 %v15228_v37, %v2718_v53  ;;  %v2667_v55 = vpop.f32.mrf.mxu0 }
 0x47a   : > { %v2668_v58 = vadd.f32 %v16305_v39, %v2667_v55  ;;  %v2838_v59 = vpack.c.b16 %v2836_v56, %v2835_v54 }
 0x47b   : > { %v2754_v15 = vadd.f32 2.0, %v2730_v57  ;;  %v15230_v62 = vpop.eup %15229  ;;  %v2742_v7 = vmul.f32 %v2730_v57, %v2663_v24 }
 0x47c   : > { %v2684_v61 = vmin.f32 %v2668_v58, 20.0  ;;  %2902 = vmatmul.bf16.gmra.mxu2 %v2838_v59  ;;  %v2777_v4 = vmul.f32 %v15230_v62, %v2741_v1 }
 0x47d   : > { %15233 = vrcp.f32 %v2754_v15 }
 0x47e   : > { %v15232_v63 = vpop.eup %15231  ;;  %v2705_v2 = vmul.f32 1.442695, %v2684_v61  ;;  %v2789_v10 = vpack.c.bf16 %v2777_v4, %v2777_v4 }
 0x47f   : > { %v2719_v3 = vadd.f32 2.0, %v15232_v63 }
 0x480   : > { %15235 = vpow2.f32 %v2705_v2  ;;  %v3002_v60 = vunpack.c.l.b16 %v2789_v10 }
 0x481   : > { %v2731_v5 = vmul.f32 %v15232_v63, %v2719_v3  ;;  %v2670_v6 = vpop.f32.mrf.mxu0  ;;  %v15025_v63 = vld [vmem:[%s16052_s3 + $0x1] ss:$0 sm:$0xff] }
 0x482   : > { %v2671_v8 = vadd.f32 %v16305_v39, %v2670_v6 }
 0x483   : > { %v15234_v0 = vpop.eup %15233  ;;  %v2755_v9 = vadd.f32 2.0, %v2731_v5  ;;  %v2743_v27 = vmul.f32 %v2731_v5, %v2666_v43 }
 0x484   : > { %v2778_v12 = vmul.f32 %v15234_v0, %v2742_v7  ;;  %v2685_v13 = vmin.f32 %v2671_v8, 20.0 }
 0x485   : > { %15237 = vrcp.f32 %v2755_v9 }
 0x486   : > { %v15236_v14 = vpop.eup %15235  ;;  %v2790_v16 = vpack.c.bf16 %v2778_v12, %v2778_v12  ;;  %v2707_v18 = vmul.f32 1.442695, %v2685_v13 }
 0x487   : > { %v2720_v19 = vadd.f32 2.0, %v15236_v14 }
 0x488   : > { %v3003_v20 = vunpack.c.l.b16 %v2790_v16  ;;  %15239 = vpow2.f32 %v2707_v18 }
 0x489   : > { %v2732_v17 = vmul.f32 %v15236_v14, %v2720_v19  ;;  %v2672_v21 = vpop.f32.mrf.mxu0 }
 0x48a   : > { %v2673_v22 = vadd.f32 %v16305_v39, %v2672_v21  ;;  %v3006_v23 = vpack.c.b16 %v3003_v20, %v3002_v60 }
 0x48b   : > { %v2756_v11 = vadd.f32 2.0, %v2732_v17  ;;  %v15238_v25 = vpop.eup %15237  ;;  %v2744_v34 = vmul.f32 %v2732_v17, %v2668_v58  ;;  %v15021_v58 = vld [vmem:[%s16052_s3] ss:$0 sm:$0xff] }
 0x48c   : > { %v2686_v24 = vmin.f32 %v2673_v22, 20.0  ;;  %3066 = vmatmul.bf16.vlgmr.msrb.gmra.mxu3 %v3006_v23  ;;  %v2779_v32 = vmul.f32 %v15238_v25, %v2743_v27  ;;  %v1598_v59 = vadd.f32 %v15021_v58, %v16253_v29  ;;  %v14326_v27 = vld [vmem:[%s16005_s28 + $0x128] sm:$0xff] }
 0x48d   : > { %15241 = vrcp.f32 %v2756_v11  ;;  %v14328_v11 = vld [vmem:[%s16005_s28 + $0x138] sm:$0xff] }
 0x48e   : > { %v15240_v26 = vpop.eup %15239  ;;  %v2709_v28 = vmul.f32 1.442695, %v2686_v24  ;;  %v2791_v40 = vpack.c.bf16 %v2779_v32, %v2779_v32  ;;  %v1602_v15 = vmax.f32 %v1598_v59, -1.0  ;;  %3380 = vmatpush.bf16.msra.mxu3 %v14328_v11  ;;  %v14332_v59 = vld [vmem:[%s16005_s28 + $0x158] sm:$0xff] }
 0x48f   : > { %v2721_v31 = vadd.f32 2.0, %v15240_v26 }
 0x490   : > { %15243 = vpow2.f32 %v2709_v28  ;;  %v3004_v44 = vunpack.c.l.b16 %v2791_v40  ;;  %v1604_v61 = vmin.f32 %v1602_v15, 0.9921875 }
 0x491   : > { %v2733_v33 = vmul.f32 %v15240_v26, %v2721_v31  ;;  %v14327_v26 = vld [vmem:[%s16005_s28 + $0x130] sm:$0xff] }
 0x492   : > { %v1606_v62 = vmul.f32 128.0, %v1604_v61  ;;  %3381 = vmatpush.bf16.msra.mxu3 %v14327_v26 }
 0x493   : > { %v15242_v36 = vpop.eup %15241  ;;  %v2757_v38 = vadd.f32 2.0, %v2733_v33  ;;  %v2745_v50 = vmul.f32 %v2733_v33, %v2671_v8  ;;  %v14325_v33 = vld [vmem:[%s16005_s28 + $0x120] sm:$0xff] }
 0x494   : > { %v2780_v30 = vmul.f32 %v15242_v36, %v2744_v34  ;;  %v14785_v1 = vcvt.f32.s32 %v1606_v62  ;;  %v14788_v0 = vand.u32 2147483648, %v1606_v62  ;;  %v14783_v10 = vand.u32 2147483647, %v1606_v62  ;;  %v14336_v34 = vld [vmem:[%s16005_s28 + $0x178] sm:$0xff] }
 0x495   : > { %15245 = vrcp.f32 %v2757_v38  ;;  %v14324_v36 = vld [vmem:[%s16005_s28 + $0x118] sm:$0xff]  ;;  %3312 = vmatpush.bf16.msra.mxu1 %v14336_v34 }
 0x496   : > { %v15244_v41 = vpop.eup %15243  ;;  %v2792_v39 = vpack.c.bf16 %v2780_v30, %v2780_v30  ;;  %v14786_v4 = vcvt.s32.f32 %v14785_v1  ;;  %vm14784_vm3 = vcmp.lt.f32.partialorder %v14783_v10, 8388608.0  ;;  %3382 = vmatpush.bf16.msra.mxu3 %v14326_v27  ;;  %v14330_v10 = vld [vmem:[%s16005_s28 + $0x148] sm:$0xff] }
 0x497   : > { %v2722_v42 = vadd.f32 2.0, %v15244_v41 }
 0x498   : > { %v3005_v46 = vunpack.c.l.b16 %v2792_v39  ;;  %v14787_v7 = vand.u32 2147483647, %v14786_v4  ;;  %v14331_v4 = vld [vmem:[%s16005_s28 + $0x150] sm:$0xff] }
 0x499   : > { %v2734_v48 = vmul.f32 %v15244_v41, %v2722_v42  ;;  %v15026_v41 = vld [vmem:[%s16042_s19 + $0x2] ss:$0 sm:$0xff] }
 0x49a   : > { %v3007_v49 = vpack.c.b16 %v3005_v46, %v3004_v44  ;;  %v14789_v12 = vor.u32 %v14788_v0, %v14787_v7  ;;  %3383 = vmatpush.bf16.msra.mxu3 %v14325_v33  ;;  %v14335_v44 = vld [vmem:[%s16005_s28 + $0x170] sm:$0xff] }
 0x49b   : > { %v2758_v45 = vadd.f32 2.0, %v2734_v48  ;;  %v15246_v43 = vpop.eup %15245  ;;  %v2746_v51 = vmul.f32 %v2734_v48, %v2673_v22  ;;  %v14323_v46 = vld [vmem:[%s16005_s28 + $0x110] sm:$0xff]  ;;  %3313 = vmatpush.bf16.msra.mxu1 %v14335_v44 }
 0x49c   : > { %3071 = vmatmul.bf16.gmra.mxu3 %v3007_v49  ;;  %3160 = vmatmul.bf16.vlgmr.msra.gmra.mxu2 %v3007_v49  ;;  %v2781_v37 = vmul.f32 %v15246_v43, %v2745_v50  ;;  %v14790_v18 = vsel %vm14784_vm3, %v14789_v12, %v1606_v62  ;;  %v14322_v43 = vld [vmem:[%s16005_s28 + $0x108] sm:$0xff] }
 0x49d   : > { %15247 = vrcp.f32 %v2758_v45  ;;  %v1610_v20 = vmul.f32 0.0078125, %v14790_v18  ;;  %v14334_v45 = vld [vmem:[%s16005_s28 + $0x168] sm:$0xff] }
 0x49e   : > { %v2793_v53 = vpack.c.bf16 %v2781_v37, %v2781_v37  ;;  %3384 = vmatpush.bf16.msra.mxu3 %v14324_v36 }
 0x49f   : > { %3314 = vmatpush.bf16.msra.mxu1 %v14334_v45 }
 0x4a0   : > { %v3100_v56 = vunpack.c.l.b16 %v2793_v53 }
 0x4a2   : > { %3385 = vmatpush.bf16.msra.mxu3 %v14323_v46 }
 0x4a3   : > { %v15248_v52 = vpop.eup %15247 }
 0x4a4   : > { %v2782_v47 = vmul.f32 %v15248_v52, %v2746_v51 }
 0x4a6   : > { %v2794_v54 = vpack.c.bf16 %v2782_v47, %v2782_v47  ;;  %3386 = vmatpush.bf16.msra.mxu3 %v14322_v43  ;;  %v14333_v47 = vld [vmem:[%s16005_s28 + $0x160] sm:$0xff] }
 0x4a7   : > { %3315 = vmatpush.bf16.msra.mxu1 %v14333_v47 }
 0x4a8   : > { %v3101_v57 = vunpack.c.l.b16 %v2794_v54  ;;  %v14321_v54 = vld [vmem:[%s16005_s28 + $0x100] sm:$0xff] }
 0x4aa   : > { %v3102_v55 = vpack.c.b16 %v3101_v57, %v3100_v56  ;;  %3387 = vmatpush.bf16.msra.mxu3 %v14321_v54 }
 0x4ab   : > { %3316 = vmatpush.bf16.msra.mxu1 %v14332_v59 }
 0x4ac   : > { %3165 = vmatmul.bf16.gmra.mxu2 %v3102_v55 }
 0x4af   : > { %3317 = vmatpush.bf16.msra.mxu1 %v14331_v4  ;;  %v14344_v4 = vld [vmem:[%s16037_s18 + $0xb8] sm:$0xff] }
 0x4b0   : > { %3490 = vmatpush.bf16.msrb.mxu2 %v14344_v4 }
 0x4b3   : > { %3318 = vmatpush.bf16.msra.mxu1 %v14330_v10  ;;  %v14365_v10 = vld [vmem:[%s16027_s9 + $0x370] sm:$0xff] }
 0x4cd   : > { %v2548_v2 = vpop.f32.mrf.mxu3 }
 0x4ce   : > { %v2549_v3 = vadd.f32 %v15025_v63, %v2548_v2 }
 0x4d0   : > { %v2553_v5 = vmax.f32 %v2549_v3, -1.0 }
 0x4d2   : > { %v2555_v6 = vmin.f32 %v2553_v5, 0.9921875 }
 0x4d4   : > { %v2557_v8 = vmul.f32 128.0, %v2555_v6 }
 0x4d5   : > { %v16366_v24 = vpop.f32.mrf.mxu3 }
 0x4d6   : > { %v14801_v9 = vcvt.f32.s32 %v2557_v8  ;;  %v14799_v14 = vand.u32 2147483647, %v2557_v8  ;;  %v14804_v16 = vand.u32 2147483648, %v2557_v8 }
 0x4d8   : > { %v14802_v13 = vcvt.s32.f32 %v14801_v9  ;;  %vm14800_vm4 = vcmp.lt.f32.partialorder %v14799_v14, 8388608.0 }
 0x4d9   : > { %v2971_v28 = vpop.f32.mrf.mxu1 }
 0x4da   : > { %v14803_v29 = vand.u32 2147483647, %v14802_v13 }
 0x4dc   : > { %v14805_v19 = vor.u32 %v14804_v16, %v14803_v29 }
 0x4de   : > { %v14806_v60 = vsel %vm14800_vm4, %v14805_v19, %v2557_v8 }
 0x4df   : > { %v2561_v17 = vmul.f32 0.0078125, %v14806_v60  ;;  %v14329_v60 = vld [vmem:[%s16005_s28 + $0x140] sm:$0xff] }
 0x4e0   : > { %3319 = vmatpush.bf16.msra.mxu1 %v14329_v60 }
 0x4e1   : > { %v16363_v21 = vadd.f32 %v2561_v17, %v1610_v20  ;;  %v2973_v30 = vpop.f32.mrf.mxu1 }
 0x4e9   : > { %v2976_v57 = vpop.f32.mrf.mxu1 }
 0x4ef   : > { %v2898_v22 = vpop.f32.mrf.mxu2 }
 0x4f0   : > { %v2972_v38 = vadd.f32 %v2971_v28, %v2898_v22 }
 0x4f1   : > { %v2978_v8 = vpop.f32.mrf.mxu1 }
 0x4f7   : > { %v2900_v23 = vpop.f32.mrf.mxu2 }
 0x4f8   : > { %v2974_v50 = vadd.f32 %v2973_v30, %v2900_v23 }
 0x4ff   : > { %v2903_v25 = vpop.f32.mrf.mxu2 }
 0x500   : > { %v2977_v15 = vadd.f32 %v2976_v57, %v2903_v25  ;;  %v11483_v25 = vld [vmem:[%s16017_s23 + $0xc] sm:$0xf] }
 0x501   : > { %v3585_v27 = vsel %vm736_vm1, %v11483_v25, 0 }
 0x502   : > { %3594 = vmatpush.bf16.msrb.mxu1 %v3585_v27  ;;  %v14354_v27 = vld [vmem:[%s16027_s9 + $0x318] sm:$0xff] }
 0x507   : > { %v2905_v32 = vpop.f32.mrf.mxu2 }
 0x508   : > { %v2979_v12 = vadd.f32 %v2978_v8, %v2905_v32  ;;  %v14340_v8 = vld [vmem:[%s16037_s18 + $0x98] sm:$0xff] }
 0x50f   : > { %v3067_v31 = vpop.f32.mrf.mxu3 }
 0x510   : > { %v3077_v40 = vadd.f32 %v3067_v31, %v2972_v38 }
 0x517   : > { %v3069_v39 = vpop.f32.mrf.mxu3 }
 0x518   : > { %v3078_v51 = vadd.f32 %v3069_v39, %v2974_v50 }
 0x51f   : > { %v3161_v42 = vpop.f32.mrf.mxu2  ;;  %v3072_v55 = vpop.f32.mrf.mxu3 }
 0x520   : > { %v3171_v48 = vadd.f32 %v3161_v42, %v3077_v40  ;;  %v3079_v63 = vadd.f32 %v3072_v55, %v2977_v15  ;;  %v14345_v15 = vld [vmem:[%s16022_s21 + $0x90] sm:$0xff] }
 0x522   : > { %v3180_v49 = vadd.f32 %v15026_v41, %v3171_v48 }
 0x524   : > { %v3184_v37 = vmin.f32 %v3180_v49, 20.0 }
 0x526   : > { %v3188_v52 = vmul.f32 1.442695, %v3184_v37 }
 0x527   : > { %v3163_v53 = vpop.f32.mrf.mxu2  ;;  %v3074_v9 = vpop.f32.mrf.mxu3 }
 0x528   : > { %15249 = vpow2.f32 %v3188_v52  ;;  %v3172_v56 = vadd.f32 %v3163_v53, %v3078_v51  ;;  %v3080_v29 = vadd.f32 %v3074_v9, %v2979_v12  ;;  %v14339_v9 = vld [vmem:[%s16037_s18 + $0x90] sm:$0xff] }
 0x52a   : > { %v3181_v58 = vadd.f32 %v15026_v41, %v3172_v56 }
 0x52c   : > { %v3185_v61 = vmin.f32 %v3181_v58, 20.0 }
 0x52e   : > { %v15250_v62 = vpop.eup %15249  ;;  %v3190_v1 = vmul.f32 1.442695, %v3185_v61  ;;  %v14346_v61 = vld [vmem:[%s16022_s21 + $0x98] sm:$0xff] }
 0x52f   : > { %v3196_v2 = vadd.f32 2.0, %v15250_v62  ;;  %v3166_v3 = vpop.f32.mrf.mxu2 }
 0x530   : > { %15251 = vpow2.f32 %v3190_v1  ;;  %v3173_v5 = vadd.f32 %v3166_v3, %v3079_v63  ;;  %v14348_v63 = vld [vmem:[%s16022_s21 + $0xa8] sm:$0xff]  ;;  %v14349_v1 = vld [vmem:[%s16022_s21 + $0xb0] sm:$0xff]  ;;  %v14350_v3 = vld [vmem:[%s16022_s21 + $0xb8] sm:$0xff] }
 0x531   : > { %v3200_v6 = vmul.f32 %v15250_v62, %v3196_v2  ;;  %v14347_v62 = vld [vmem:[%s16022_s21 + $0xa0] sm:$0xff]  ;;  %v14366_v2 = vld [vmem:[%s16027_s9 + $0x378] sm:$0xff] }
 0x532   : > { %v3182_v7 = vadd.f32 %v15026_v41, %v3173_v5  ;;  %3840 = vmatpush.bf16.msra.mxu0 %v14366_v2  ;;  %v14343_v5 = vld [vmem:[%s16037_s18 + $0xb0] sm:$0xff] }
 0x533   : > { %v3208_v0 = vadd.f32 2.0, %v3200_v6  ;;  %v3204_v31 = vmul.f32 %v3200_v6, %v3180_v49  ;;  %3491 = vmatpush.bf16.msrb.mxu2 %v14343_v5  ;;  %v14342_v6 = vld [vmem:[%s16037_s18 + $0xa8] sm:$0xff] }
 0x534   : > { %v3186_v13 = vmin.f32 %v3182_v7, 20.0 }
 0x535   : > { %15253 = vrcp.f32 %v3208_v0  ;;  %v14358_v0 = vld [vmem:[%s16027_s9 + $0x338] sm:$0xff] }
 0x536   : > { %v15252_v14 = vpop.eup %15251  ;;  %v3192_v16 = vmul.f32 1.442695, %v3186_v13  ;;  %3913 = vmatpush.bf16.msrb.mxu3 %v14358_v0  ;;  %v14357_v13 = vld [vmem:[%s16027_s9 + $0x330] sm:$0xff]  ;;  %3841 = vmatpush.bf16.msra.mxu0 %v14365_v10  ;;  %v14359_v10 = vld [vmem:[%s16027_s9 + $0x340] sm:$0xff] }
 0x537   : > { %v3197_v18 = vadd.f32 2.0, %v15252_v14  ;;  %v3168_v19 = vpop.f32.mrf.mxu2  ;;  %3492 = vmatpush.bf16.msrb.mxu2 %v14342_v6 }
 0x538   : > { %15255 = vpow2.f32 %v3192_v16  ;;  %v3174_v20 = vadd.f32 %v3168_v19, %v3080_v29  ;;  %v14338_v16 = vld [vmem:[%s16037_s18 + $0x88] sm:$0xff] }
 0x539   : > { %v3201_v17 = vmul.f32 %v15252_v14, %v3197_v18  ;;  %v15027_v14 = vld [vmem:[%s16047_s20 + $0x2] ss:$0 sm:$0xff]  ;;  %v14356_v19 = vld [vmem:[%s16027_s9 + $0x328] sm:$0xff] }
 0x53a   : > { %v3183_v22 = vadd.f32 %v15026_v41, %v3174_v20  ;;  %3914 = vmatpush.bf16.msrb.mxu3 %v14357_v13  ;;  %v14337_v20 = vld [vmem:[%s16037_s18 + $0x80] sm:$0xff] }
 0x53b   : > { %v3209_v23 = vadd.f32 2.0, %v3201_v17  ;;  %v15254_v26 = vpop.eup %15253  ;;  %v3205_v38 = vmul.f32 %v3201_v17, %v3181_v58 }
 0x53c   : > { %v3187_v11 = vmin.f32 %v3183_v22, 20.0  ;;  %v3216_v34 = vmul.f32 %v15254_v26, %v3204_v31 }
 0x53d   : > { %15257 = vrcp.f32 %v3209_v23 }
 0x53e   : > { %v15256_v28 = vpop.eup %15255  ;;  %v3194_v32 = vmul.f32 1.442695, %v3187_v11  ;;  %v3220_v39 = vpack.c.bf16 %v3216_v34, %v3216_v34  ;;  %3915 = vmatpush.bf16.msrb.mxu3 %v14356_v19 }
 0x53f   : > { %v3198_v33 = vadd.f32 2.0, %v15256_v28 }
 0x540   : > { %15259 = vpow2.f32 %v3194_v32  ;;  %v3328_v48 = vunpack.c.l.b16 %v3220_v39  ;;  %v16415_v32 = vld [vmem:[%s16032_s11 + $0x3] ss:$0 sm:$0xff] }
 0x541   : > { %v3202_v36 = vmul.f32 %v15256_v28, %v3198_v33  ;;  %v14353_v33 = vld [vmem:[%s16027_s9 + $0x310] sm:$0xff] }
 0x543   : > { %v15258_v30 = vpop.eup %15257  ;;  %v3210_v40 = vadd.f32 2.0, %v3202_v36  ;;  %v3206_v51 = vmul.f32 %v3202_v36, %v3182_v7  ;;  %v14341_v7 = vld [vmem:[%s16037_s18 + $0xa0] sm:$0xff] }
 0x544   : > { %v3217_v41 = vmul.f32 %v15258_v30, %v3205_v38  ;;  %3493 = vmatpush.bf16.msrb.mxu2 %v14341_v7  ;;  %v14364_v38 = vld [vmem:[%s16027_s9 + $0x368] sm:$0xff] }
 0x545   : > { %15261 = vrcp.f32 %v3210_v40  ;;  %3842 = vmatpush.bf16.msra.mxu0 %v14364_v38 }
 0x546   : > { %v15260_v42 = vpop.eup %15259  ;;  %v3221_v44 = vpack.c.bf16 %v3217_v41, %v3217_v41  ;;  %v14352_v41 = vld [vmem:[%s16027_s9 + $0x308] sm:$0xff] }
 0x547   : > { %v3199_v46 = vadd.f32 2.0, %v15260_v42 }
 0x548   : > { %v3329_v45 = vunpack.c.l.b16 %v3221_v44  ;;  %3494 = vmatpush.bf16.msrb.mxu2 %v14340_v8 }
 0x549   : > { %v3203_v43 = vmul.f32 %v15260_v42, %v3199_v46 }
 0x54a   : > { %v3330_v50 = vpack.c.b16 %v3329_v45, %v3328_v48  ;;  %v14363_v48 = vld [vmem:[%s16027_s9 + $0x360] sm:$0xff] }
 0x54b   : > { %v3211_v49 = vadd.f32 2.0, %v3203_v43  ;;  %v15262_v37 = vpop.eup %15261  ;;  %v3207_v53 = vmul.f32 %v3203_v43, %v3183_v22  ;;  %v14355_v22 = vld [vmem:[%s16027_s9 + $0x320] sm:$0xff]  ;;  %3843 = vmatpush.bf16.msra.mxu0 %v14363_v48 }
 0x54c   : > { %3388 = vmatmul.bf16.vlgmr.msra.gmra.mxu3 %v3330_v50  ;;  %v3218_v52 = vmul.f32 %v15262_v37, %v3206_v51  ;;  %3495 = vmatpush.bf16.msrb.mxu2 %v14339_v9  ;;  %v14351_v45 = vld [vmem:[%s16027_s9 + $0x300] sm:$0xff] }
 0x54d   : > { %15263 = vrcp.f32 %v3211_v49  ;;  %3916 = vmatpush.bf16.msrb.mxu3 %v14355_v22 }
 0x54e   : > { %v3222_v54 = vpack.c.bf16 %v3218_v52, %v3218_v52 }
 0x550   : > { %v3260_v55 = vunpack.c.l.b16 %v3222_v54  ;;  %3496 = vmatpush.bf16.msrb.mxu2 %v14338_v16 }
 0x551   : > { %3917 = vmatpush.bf16.msrb.mxu3 %v14354_v27 }
 0x553   : > { %v15264_v47 = vpop.eup %15263 }
 0x554   : > { %v3219_v56 = vmul.f32 %v15264_v47, %v3207_v53  ;;  %3497 = vmatpush.bf16.msrb.mxu2 %v14337_v20  ;;  %v14362_v53 = vld [vmem:[%s16027_s9 + $0x358] sm:$0xff] }
 0x555   : > { %3918 = vmatpush.bf16.msrb.mxu3 %v14353_v33  ;;  %3844 = vmatpush.bf16.msra.mxu0 %v14362_v53  ;;  %v14370_v53 = vld [vmem:[%s16027_s9 + $0x398] sm:$0xff] }
 0x556   : > { %v3223_v57 = vpack.c.bf16 %v3219_v56, %v3219_v56 }
 0x558   : > { %v3261_v58 = vunpack.c.l.b16 %v3223_v57 }
 0x559   : > { %3919 = vmatpush.bf16.msrb.mxu3 %v14352_v41 }
 0x55a   : > { %v3262_v59 = vpack.c.b16 %v3261_v58, %v3260_v55  ;;  %v14361_v58 = vld [vmem:[%s16027_s9 + $0x350] sm:$0xff] }
 0x55b   : > { %3845 = vmatpush.bf16.msra.mxu0 %v14361_v58 }
 0x55c   : > { %3320 = vmatmul.bf16.vlgmr.msra.gmra.mxu1 %v3262_v59 }
 0x55d   : > { %3920 = vmatpush.bf16.msrb.mxu3 %v14351_v45 }
 0x56c   : > { %11509 = vmatmul.msk.bf16.vlgmr.msrb.gmra.mxu1 %vm717_vm2, %v14345_v15 }
 0x57c   : > { %11510 = vmatmul.msk.bf16.gmra.mxu1 %vm717_vm2, %v14346_v61 }
 0x58c   : > { %11511 = vmatmul.msk.bf16.gmra.mxu1 %vm717_vm2, %v14347_v62 }
 0x59c   : > { %11512 = vmatmul.msk.bf16.gmra.mxu1 %vm717_vm2, %v14348_v63 }
 0x5ac   : > { %11513 = vmatmul.msk.bf16.gmra.mxu1 %vm717_vm2, %v14349_v1  ;;  %v14360_v1 = vld [vmem:[%s16027_s9 + $0x348] sm:$0xff] }
 0x5ad   : > { %3846 = vmatpush.bf16.msra.mxu0 %v14360_v1 }
 0x5b1   : > { %3847 = vmatpush.bf16.msra.mxu0 %v14359_v10 }
 0x5bc   : > { %11514 = vmatmul.msk.bf16.gmra.mxu1 %vm717_vm2, %v14350_v3 }
 0x5cf   : > { %v3389_v12 = vpop.f32.mrf.mxu3 }
 0x5d7   : > { %v3391_v11 = vpop.f32.mrf.mxu3 }
 0x5d9   : > { %v3321_v29 = vpop.f32.mrf.mxu1 }
 0x5da   : > { %v3390_v18 = vadd.f32 %v3389_v12, %v3321_v29 }
 0x5dc   : > { %v3399_v60 = vadd.f32 %v15027_v14, %v3390_v18  ;;  %v14374_v18 = vld [vmem:[%s16027_s9 + $0x3b8] sm:$0xff] }
 0x5dd   : > { %4009 = vmatpush.bf16.msra.mxu2 %v14374_v18 }
 0x5de   : > { %v3401_v17 = vmin.f32 %v3399_v60, 20.0 }
 0x5e0   : > { %v3403_v23 = vmul.f32 1.442695, %v3401_v17 }
 0x5e1   : > { %v3323_v25 = vpop.f32.mrf.mxu1 }
 0x5e2   : > { %15265 = vpow2.f32 %v3403_v23  ;;  %v3392_v26 = vadd.f32 %v3391_v11, %v3323_v25  ;;  %v14373_v11 = vld [vmem:[%s16027_s9 + $0x3b0] sm:$0xff] }
 0x5e3   : > { %4010 = vmatpush.bf16.msra.mxu2 %v14373_v11 }
 0x5e4   : > { %v3400_v28 = vadd.f32 %v15027_v14, %v3392_v26 }
 0x5e6   : > { %v3402_v31 = vmin.f32 %v3400_v28, 20.0 }
 0x5e8   : > { %v15266_v34 = vpop.eup %15265  ;;  %v3405_v36 = vmul.f32 1.442695, %v3402_v31 }
 0x5e9   : > { %v3407_v30 = vadd.f32 2.0, %v15266_v34  ;;  %v3596_v40 = vpop.f32.mrf.mxu1 }
 0x5ea   : > { %15267 = vpow2.f32 %v3405_v36  ;;  %v3597_v39 = vadd.f32 %v16415_v32, %v3596_v40  ;;  %v14372_v36 = vld [vmem:[%s16027_s9 + $0x3a8] sm:$0xff] }
 0x5eb   : > { %v3409_v44 = vmul.f32 %v15266_v34, %v3407_v30  ;;  %4011 = vmatpush.bf16.msra.mxu2 %v14372_v36 }
 0x5ec   : > { %v3626_v42 = vmin.f32 %v3597_v39, 20.0 }
 0x5ed   : > { %v3413_v50 = vadd.f32 2.0, %v3409_v44  ;;  %v3411_v2 = vmul.f32 %v3409_v44, %v3399_v60 }
 0x5ee   : > { %v3638_v46 = vmul.f32 1.442695, %v3626_v42 }
 0x5f0   : > { %v15268_v43 = vpop.eup %15267  ;;  %15269 = vpow2.f32 %v3638_v46  ;;  %v14371_v46 = vld [vmem:[%s16027_s9 + $0x3a0] sm:$0xff] }
 0x5f1   : > { %v3408_v49 = vadd.f32 2.0, %v15268_v43  ;;  %v3598_v37 = vpop.f32.mrf.mxu1  ;;  %15271 = vrcp.f32 %v3413_v50  ;;  %4012 = vmatpush.bf16.msra.mxu2 %v14371_v46 }
 0x5f2   : > { %v3599_v51 = vadd.f32 %v16415_v32, %v3598_v37 }
 0x5f3   : > { %v3410_v52 = vmul.f32 %v15268_v43, %v3408_v49 }
 0x5f4   : > { %v3627_v47 = vmin.f32 %v3599_v51, 20.0 }
 0x5f5   : > { %v3414_v54 = vadd.f32 2.0, %v3410_v52  ;;  %v3412_v3 = vmul.f32 %v3410_v52, %v3400_v28  ;;  %v14382_v52 = vld [vmem:[%s16027_s9 + $0x3f8] sm:$0xff]  ;;  %4013 = vmatpush.bf16.msra.mxu2 %v14370_v53 }
 0x5f6   : > { %v15270_v56 = vpop.eup %15269  ;;  %v3640_v57 = vmul.f32 1.442695, %v3627_v47  ;;  %4103 = vmatpush.bf16.msrb.mxu0 %v14382_v52 }
 0x5f7   : > { %15273 = vrcp.f32 %v3414_v54  ;;  %v3662_v55 = vadd.f32 2.0, %v15270_v56  ;;  %v15272_v62 = vpop.eup %15271 }
 0x5f8   : > { %15275 = vpow2.f32 %v3640_v57  ;;  %v3417_v7 = vmul.f32 %v15272_v62, %v3411_v2 }
 0x5f9   : > { %v3674_v59 = vmul.f32 %v15270_v56, %v3662_v55  ;;  %v3601_v15 = vpop.f32.mrf.mxu1 }
 0x5fa   : > { %v16427_v61 = vadd.f32 %v16415_v32, %v3601_v15  ;;  %v14369_v15 = vld [vmem:[%s16027_s9 + $0x390] sm:$0xff] }
 0x5fb   : > { %v3698_v63 = vadd.f32 2.0, %v3674_v59  ;;  %v3686_v17 = vmul.f32 %v3674_v59, %v3597_v39  ;;  %v14381_v59 = vld [vmem:[%s16027_s9 + $0x3f0] sm:$0xff]  ;;  %4014 = vmatpush.bf16.msra.mxu2 %v14369_v15 }
 0x5fc   : > { %v3628_v4 = vmin.f32 %v16427_v61, 20.0  ;;  %4104 = vmatpush.bf16.msrb.mxu0 %v14381_v59 }
 0x5fd   : > { %v15274_v5 = vpop.eup %15273  ;;  %15277 = vrcp.f32 %v3698_v63 }
 0x5fe   : > { %v15276_v6 = vpop.eup %15275  ;;  %v3418_v8 = vmul.f32 %v15274_v5, %v3412_v3  ;;  %v3642_v0 = vmul.f32 1.442695, %v3628_v4 }
 0x5ff   : > { %v3663_v9 = vadd.f32 2.0, %v15276_v6 }
 0x600   : > { %v3419_v12 = vpack.c.bf16 %v3418_v8, %v3417_v7  ;;  %15279 = vpow2.f32 %v3642_v0 }
 0x601   : > { %v3675_v13 = vmul.f32 %v15276_v6, %v3663_v9  ;;  %v3603_v14 = vpop.f32.mrf.mxu1  ;;  %v14368_v6 = vld [vmem:[%s16027_s9 + $0x388] sm:$0xff] }
 0x602   : > { %v3604_v29 = vadd.f32 %v16415_v32, %v3603_v14  ;;  %3498 = vmatmul.bf16.vlgmr.msrb.gmra.mxu2 %v3419_v12  ;;  %v14379_v14 = vld [vmem:[%s16027_s9 + $0x3e0] sm:$0xff] }
 0x603   : > { %v3699_v16 = vadd.f32 2.0, %v3675_v13  ;;  %v15278_v60 = vpop.eup %15277  ;;  %v3687_v28 = vmul.f32 %v3675_v13, %v3599_v51  ;;  %4015 = vmatpush.bf16.msra.mxu2 %v14368_v6 }
 0x604   : > { %v3629_v19 = vmin.f32 %v3604_v29, 20.0  ;;  %v3722_v25 = vmul.f32 %v15278_v60, %v3686_v17 }
 0x605   : > { %15281 = vrcp.f32 %v3699_v16 }
 0x606   : > { %v15280_v20 = vpop.eup %15279  ;;  %v3644_v22 = vmul.f32 1.442695, %v3629_v19  ;;  %v3734_v38 = vpack.c.bf16 %v3722_v25, %v3722_v25 }
 0x607   : > { %v3664_v23 = vadd.f32 2.0, %v15280_v20 }
 0x608   : > { %15283 = vpow2.f32 %v3644_v22  ;;  %v3861_v48 = vunpack.c.l.b16 %v3734_v38 }
 0x609   : > { %v3676_v26 = vmul.f32 %v15280_v20, %v3664_v23  ;;  %v3606_v27 = vpop.f32.mrf.mxu1  ;;  %v14378_v23 = vld [vmem:[%s16027_s9 + $0x3d8] sm:$0xff] }
 0x60a   : > { %v16436_v31 = vadd.f32 %v16415_v32, %v3606_v27 }
 0x60b   : > { %v15282_v33 = vpop.eup %15281  ;;  %v3700_v34 = vadd.f32 2.0, %v3676_v26  ;;  %v3688_v57 = vmul.f32 %v3676_v26, %v16427_v61  ;;  %v14380_v61 = vld [vmem:[%s16027_s9 + $0x3e8] sm:$0xff] }
 0x60c   : > { %v3723_v30 = vmul.f32 %v15282_v33, %v3687_v28  ;;  %v3630_v40 = vmin.f32 %v16436_v31, 20.0  ;;  %4105 = vmatpush.bf16.msrb.mxu0 %v14380_v61 }
 0x60d   : > { %15285 = vrcp.f32 %v3700_v34  ;;  %v14377_v34 = vld [vmem:[%s16027_s9 + $0x3d0] sm:$0xff] }
 0x60e   : > { %v15284_v39 = vpop.eup %15283  ;;  %v3735_v41 = vpack.c.bf16 %v3723_v30, %v3723_v30  ;;  %v3646_v42 = vmul.f32 1.442695, %v3630_v40 }
 0x60f   : > { %v3665_v44 = vadd.f32 2.0, %v15284_v39 }
 0x610   : > { %v3862_v45 = vunpack.c.l.b16 %v3735_v41  ;;  %15287 = vpow2.f32 %v3646_v42  ;;  %4106 = vmatpush.bf16.msrb.mxu0 %v14379_v14 }
 0x611   : > { %v3677_v43 = vmul.f32 %v15284_v39, %v3665_v44  ;;  %v3608_v50 = vpop.f32.mrf.mxu1  ;;  %v14376_v44 = vld [vmem:[%s16027_s9 + $0x3c8] sm:$0xff] }
 0x612   : > { %v16442_v49 = vadd.f32 %v16415_v32, %v3608_v50  ;;  %v3863_v37 = vpack.c.b16 %v3862_v45, %v3861_v48 }
 0x613   : > { %v3701_v51 = vadd.f32 2.0, %v3677_v43  ;;  %v15286_v54 = vpop.eup %15285  ;;  %v3689_v2 = vmul.f32 %v3677_v43, %v3604_v29  ;;  %v14367_v29 = vld [vmem:[%s16027_s9 + $0x380] sm:$0xff] }
 0x614   : > { %v3631_v47 = vmin.f32 %v16442_v49, 20.0  ;;  %3921 = vmatmul.bf16.vlgmr.msrb.gmra.mxu3 %v3863_v37  ;;  %v3724_v62 = vmul.f32 %v15286_v54, %v3688_v57  ;;  %4016 = vmatpush.bf16.msra.mxu2 %v14367_v29 }
 0x615   : > { %15289 = vrcp.f32 %v3701_v51  ;;  %4107 = vmatpush.bf16.msrb.mxu0 %v14378_v23  ;;  %v14375_v51 = vld [vmem:[%s16027_s9 + $0x3c0] sm:$0xff] }
 0x616   : > { %v15288_v56 = vpop.eup %15287  ;;  %v3648_v55 = vmul.f32 1.442695, %v3631_v47  ;;  %v3736_v7 = vpack.c.bf16 %v3724_v62, %v3724_v62 }
 0x617   : > { %v3666_v58 = vadd.f32 2.0, %v15288_v56 }
 0x618   : > { %15291 = vpow2.f32 %v3648_v55  ;;  %v3784_v16 = vunpack.c.l.b16 %v3736_v7 }
 0x619   : > { %v3678_v63 = vmul.f32 %v15288_v56, %v3666_v58  ;;  %v3611_v1 = vpop.f32.mrf.mxu1  ;;  %4108 = vmatpush.bf16.msrb.mxu0 %v14377_v34 }
 0x61a   : > { %v16451_v3 = vadd.f32 %v16415_v32, %v3611_v1 }
 0x61b   : > { %v15290_v4 = vpop.eup %15289  ;;  %v3702_v5 = vadd.f32 2.0, %v3678_v63  ;;  %v3690_v27 = vmul.f32 %v3678_v63, %v16436_v31 }
 0x61c   : > { %v3725_v8 = vmul.f32 %v15290_v4, %v3689_v2  ;;  %v3632_v0 = vmin.f32 %v16451_v3, 20.0 }
 0x61d   : > { %15293 = vrcp.f32 %v3702_v5  ;;  %4109 = vmatpush.bf16.msrb.mxu0 %v14376_v44 }
 0x61e   : > { %v15292_v9 = vpop.eup %15291  ;;  %v3737_v10 = vpack.c.bf16 %v3725_v8, %v3725_v8  ;;  %v3650_v12 = vmul.f32 1.442695, %v3632_v0 }
 0x61f   : > { %v3667_v13 = vadd.f32 2.0, %v15292_v9 }
 0x620   : > { %v3785_v18 = vunpack.c.l.b16 %v3737_v10  ;;  %15295 = vpow2.f32 %v3650_v12 }
 0x621   : > { %v3679_v19 = vmul.f32 %v15292_v9, %v3667_v13  ;;  %v3613_v60 = vpop.f32.mrf.mxu1  ;;  %4110 = vmatpush.bf16.msrb.mxu0 %v14375_v51 }
 0x622   : > { %v3788_v20 = vpack.c.b16 %v3785_v18, %v3784_v16  ;;  %v3614_v17 = vadd.f32 %v16415_v32, %v3613_v60 }
 0x623   : > { %v3703_v22 = vadd.f32 2.0, %v3679_v19  ;;  %v15294_v25 = vpop.eup %15293  ;;  %v3691_v40 = vmul.f32 %v3679_v19, %v16442_v49 }
 0x624   : > { %v3633_v11 = vmin.f32 %v3614_v17, 20.0  ;;  %3848 = vmatmul.bf16.vlgmr.msra.gmra.mxu0 %v3788_v20  ;;  %3926 = vmatmul.bf16.gmra.mxu3 %v3788_v20  ;;  %v3726_v36 = vmul.f32 %v15294_v25, %v3690_v27 }
 0x625   : > { %15297 = vrcp.f32 %v3703_v22 }
 0x626   : > { %v15296_v26 = vpop.eup %15295  ;;  %v3652_v28 = vmul.f32 1.442695, %v3633_v11  ;;  %v3738_v46 = vpack.c.bf16 %v3726_v36, %v3726_v36 }
 0x627   : > { %v3668_v33 = vadd.f32 2.0, %v15296_v26 }
 0x628   : > { %15299 = vpow2.f32 %v3652_v28  ;;  %v3786_v52 = vunpack.c.l.b16 %v3738_v46 }
 0x629   : > { %v3680_v38 = vmul.f32 %v15296_v26, %v3668_v33  ;;  %v3616_v30 = vpop.f32.mrf.mxu1 }
 0x62a   : > { %v3617_v39 = vadd.f32 %v16415_v32, %v3616_v30 }
 0x62b   : > { %v15298_v41 = vpop.eup %15297  ;;  %v3704_v42 = vadd.f32 2.0, %v3680_v38  ;;  %v3692_v15 = vmul.f32 %v3680_v38, %v16451_v3 }
 0x62c   : > { %v3727_v48 = vmul.f32 %v15298_v41, %v3691_v40  ;;  %v3634_v45 = vmin.f32 %v3617_v39, 20.0 }
 0x62d   : > { %15301 = vrcp.f32 %v3704_v42 }
 0x62e   : > { %v15300_v31 = vpop.eup %15299  ;;  %v3739_v43 = vpack.c.bf16 %v3727_v48, %v3727_v48  ;;  %v3654_v50 = vmul.f32 1.442695, %v3634_v45 }
 0x62f   : > { %v3669_v37 = vadd.f32 2.0, %v15300_v31 }
 0x630   : > { %15303 = vpow2.f32 %v3654_v50  ;;  %v3787_v53 = vunpack.c.l.b16 %v3739_v43 }
 0x631   : > { %v3681_v47 = vmul.f32 %v15300_v31, %v3669_v37  ;;  %v3618_v49 = vpop.f32.mrf.mxu1 }
 0x632   : > { %v3619_v54 = vadd.f32 %v16415_v32, %v3618_v49  ;;  %v3789_v56 = vpack.c.b16 %v3787_v53, %v3786_v52 }
 0x633   : > { %v3705_v57 = vadd.f32 2.0, %v3681_v47  ;;  %v15302_v58 = vpop.eup %15301  ;;  %v3693_v5 = vmul.f32 %v3681_v47, %v3614_v17 }
 0x634   : > { %v3635_v55 = vmin.f32 %v3619_v54, 20.0  ;;  %3853 = vmatmul.bf16.gmra.mxu0 %v3789_v56  ;;  %v3728_v1 = vmul.f32 %v15302_v58, %v3692_v15  ;;  %v15029_v56 = vld [vmem:[%s16052_s3 + $0x2] ss:$0 sm:$0xff] }
 0x635   : > { %15305 = vrcp.f32 %v3705_v57 }
 0x636   : > { %v15304_v59 = vpop.eup %15303  ;;  %v3656_v62 = vmul.f32 1.442695, %v3635_v55  ;;  %v3740_v8 = vpack.c.bf16 %v3728_v1, %v3728_v1 }
 0x637   : > { %v3670_v63 = vadd.f32 2.0, %v15304_v59 }
 0x638   : > { %15307 = vpow2.f32 %v3656_v62  ;;  %v3953_v3 = vunpack.c.l.b16 %v3740_v8 }
 0x639   : > { %v3682_v2 = vmul.f32 %v15304_v59, %v3670_v63  ;;  %v3621_v4 = vpop.f32.mrf.mxu1 }
 0x63a   : > { %v3622_v61 = vadd.f32 %v16415_v32, %v3621_v4 }
 0x63b   : > { %v15306_v6 = vpop.eup %15305  ;;  %v3706_v7 = vadd.f32 2.0, %v3682_v2  ;;  %v3694_v11 = vmul.f32 %v3682_v2, %v3617_v39 }
 0x63c   : > { %v3729_v0 = vmul.f32 %v15306_v6, %v3693_v5  ;;  %v3636_v9 = vmin.f32 %v3622_v61, 20.0 }
 0x63d   : > { %15309 = vrcp.f32 %v3706_v7 }
 0x63e   : > { %v15308_v10 = vpop.eup %15307  ;;  %v3741_v12 = vpack.c.bf16 %v3729_v0, %v3729_v0  ;;  %v3658_v13 = vmul.f32 1.442695, %v3636_v9  ;;  %v14390_v9 = vld [vmem:[%s16005_s28 + $0x1b8] sm:$0xff] }
 0x63f   : > { %v3671_v14 = vadd.f32 2.0, %v15308_v10  ;;  %4331 = vmatpush.bf16.msrb.mxu2 %v14390_v9 }
 0x640   : > { %v3954_v29 = vunpack.c.l.b16 %v3741_v12  ;;  %15311 = vpow2.f32 %v3658_v13  ;;  %v14389_v13 = vld [vmem:[%s16005_s28 + $0x1b0] sm:$0xff] }
 0x641   : > { %v3683_v16 = vmul.f32 %v15308_v10, %v3671_v14  ;;  %v3623_v18 = vpop.f32.mrf.mxu1  ;;  %v14388_v14 = vld [vmem:[%s16005_s28 + $0x1a8] sm:$0xff] }
 0x642   : > { %v3957_v19 = vpack.c.b16 %v3954_v29, %v3953_v3  ;;  %v3624_v60 = vadd.f32 %v16415_v32, %v3623_v18  ;;  %v14398_v18 = vld [vmem:[%s16005_s28 + $0x1f8] sm:$0xff] }
 0x643   : > { %v3707_v20 = vadd.f32 2.0, %v3683_v16  ;;  %v15310_v22 = vpop.eup %15309  ;;  %v3695_v33 = vmul.f32 %v3683_v16, %v3619_v54  ;;  %4332 = vmatpush.bf16.msrb.mxu2 %v14389_v13  ;;  %v14387_v16 = vld [vmem:[%s16005_s28 + $0x1a0] sm:$0xff]  ;;  %4263 = vmatpush.bf16.msra.mxu3 %v14398_v18  ;;  %v11866_v13 = vld [vmem:[%s16017_s23 + $0x10] sm:$0xf] }
 0x644   : > { %v3637_v17 = vmin.f32 %v3624_v60, 20.0  ;;  %4017 = vmatmul.bf16.vlgmr.msra.gmra.mxu2 %v3957_v19  ;;  %v3730_v27 = vmul.f32 %v15310_v22, %v3694_v11  ;;  %v14386_v19 = vld [vmem:[%s16005_s28 + $0x198] sm:$0xff]  ;;  %v15030_v22 = vld [vmem:[%s16042_s19 + $0x3] ss:$0 sm:$0xff] }
 0x645   : > { %15313 = vrcp.f32 %v3707_v20 }
 0x646   : > { %v15312_v23 = vpop.eup %15311  ;;  %v3660_v25 = vmul.f32 1.442695, %v3637_v17  ;;  %v3742_v38 = vpack.c.bf16 %v3730_v27, %v3730_v27 }
 0x647   : > { %v3672_v26 = vadd.f32 2.0, %v15312_v23  ;;  %4333 = vmatpush.bf16.msrb.mxu2 %v14388_v14 }
 0x648   : > { %15315 = vpow2.f32 %v3660_v25  ;;  %v3955_v42 = vunpack.c.l.b16 %v3742_v38  ;;  %v14397_v25 = vld [vmem:[%s16005_s28 + $0x1f0] sm:$0xff] }
 0x649   : > { %v3684_v28 = vmul.f32 %v15312_v23, %v3672_v26  ;;  %v14385_v26 = vld [vmem:[%s16005_s28 + $0x190] sm:$0xff]  ;;  %4264 = vmatpush.bf16.msra.mxu3 %v14397_v25 }
 0x64b   : > { %v15314_v34 = vpop.eup %15313  ;;  %v3708_v36 = vadd.f32 2.0, %v3684_v28  ;;  %v3696_v31 = vmul.f32 %v3684_v28, %v3622_v61  ;;  %4334 = vmatpush.bf16.msrb.mxu2 %v14387_v16 }
 0x64c   : > { %v3731_v30 = vmul.f32 %v15314_v34, %v3695_v33  ;;  %v14396_v33 = vld [vmem:[%s16005_s28 + $0x1e8] sm:$0xff] }
 0x64d   : > { %15317 = vrcp.f32 %v3708_v36  ;;  %v14384_v34 = vld [vmem:[%s16005_s28 + $0x188] sm:$0xff]  ;;  %4265 = vmatpush.bf16.msra.mxu3 %v14396_v33 }
 0x64e   : > { %v15316_v40 = vpop.eup %15315  ;;  %v3743_v41 = vpack.c.bf16 %v3731_v30, %v3731_v30 }
 0x64f   : > { %v3673_v32 = vadd.f32 2.0, %v15316_v40  ;;  %4335 = vmatpush.bf16.msrb.mxu2 %v14386_v19 }
 0x650   : > { %v3956_v44 = vunpack.c.l.b16 %v3743_v41 }
 0x651   : > { %v3685_v46 = vmul.f32 %v15316_v40, %v3673_v32  ;;  %v14395_v32 = vld [vmem:[%s16005_s28 + $0x1e0] sm:$0xff] }
 0x652   : > { %v3958_v48 = vpack.c.b16 %v3956_v44, %v3955_v42  ;;  %v14383_v42 = vld [vmem:[%s16005_s28 + $0x180] sm:$0xff]  ;;  %4266 = vmatpush.bf16.msra.mxu3 %v14395_v32 }
 0x653   : > { %v3709_v45 = vadd.f32 2.0, %v3685_v46  ;;  %v15318_v39 = vpop.eup %15317  ;;  %v3697_v50 = vmul.f32 %v3685_v46, %v3624_v60  ;;  %4336 = vmatpush.bf16.msrb.mxu2 %v14385_v26 }
 0x654   : > { %4022 = vmatmul.bf16.gmra.mxu2 %v3958_v48  ;;  %4111 = vmatmul.bf16.vlgmr.msrb.gmra.mxu0 %v3958_v48  ;;  %v3732_v43 = vmul.f32 %v15318_v39, %v3696_v31  ;;  %v14394_v39 = vld [vmem:[%s16005_s28 + $0x1d8] sm:$0xff] }
 0x655   : > { %15319 = vrcp.f32 %v3709_v45 }
 0x656   : > { %v3744_v51 = vpack.c.bf16 %v3732_v43, %v3732_v43  ;;  %4267 = vmatpush.bf16.msra.mxu3 %v14394_v39 }
 0x657   : > { %4337 = vmatpush.bf16.msrb.mxu2 %v14384_v34 }
 0x658   : > { %v4051_v47 = vunpack.c.l.b16 %v3744_v51 }
 0x65b   : > { %v15320_v37 = vpop.eup %15319  ;;  %4338 = vmatpush.bf16.msrb.mxu2 %v14383_v42 }
 0x65c   : > { %v3733_v52 = vmul.f32 %v15320_v37, %v3697_v50 }
 0x65e   : > { %v3745_v53 = vpack.c.bf16 %v3733_v52, %v3733_v52 }
 0x660   : > { %v4052_v49 = vunpack.c.l.b16 %v3745_v53 }
 0x662   : > { %v4053_v54 = vpack.c.b16 %v4052_v49, %v4051_v47  ;;  %v14393_v47 = vld [vmem:[%s16005_s28 + $0x1d0] sm:$0xff] }
 0x663   : > { %4268 = vmatpush.bf16.msra.mxu3 %v14393_v47  ;;  %v14412_v47 = vld [vmem:[%s16022_s21 + $0xe8] sm:$0xff] }
 0x664   : > { %4116 = vmatmul.bf16.gmra.mxu0 %v4053_v54 }
 0x685   : > { %v3499_v57 = vpop.f32.mrf.mxu2 }
 0x686   : > { %v3500_v55 = vadd.f32 %v15029_v56, %v3499_v57 }
 0x688   : > { %v3504_v58 = vmax.f32 %v3500_v55, -1.0 }
 0x68a   : > { %v3506_v59 = vmin.f32 %v3504_v58, 0.9921875 }
 0x68c   : > { %v3508_v15 = vmul.f32 128.0, %v3506_v59  ;;  %v14392_v59 = vld [vmem:[%s16005_s28 + $0x1c8] sm:$0xff] }
 0x68d   : > { %v16475_v10 = vpop.f32.mrf.mxu2  ;;  %4269 = vmatpush.bf16.msra.mxu3 %v14392_v59  ;;  %v14401_v59 = vld [vmem:[%s16037_s18 + $0xd0] sm:$0xff] }
 0x68e   : > { %v14817_v62 = vcvt.f32.s32 %v3508_v15  ;;  %v14815_v1 = vand.u32 2147483647, %v3508_v15  ;;  %v14820_v4 = vand.u32 2147483648, %v3508_v15 }
 0x690   : > { %v14818_v63 = vcvt.s32.f32 %v14817_v62  ;;  %vm14816_vm5 = vcmp.lt.f32.partialorder %v14815_v1, 8388608.0 }
 0x692   : > { %v14819_v2 = vand.u32 2147483647, %v14818_v63 }
 0x694   : > { %v14821_v5 = vor.u32 %v14820_v4, %v14819_v2 }
 0x696   : > { %v14822_v61 = vsel %vm14816_vm5, %v14821_v5, %v3508_v15 }
 0x697   : > { %v3512_v6 = vmul.f32 0.0078125, %v14822_v61  ;;  %v3922_v3 = vpop.f32.mrf.mxu3  ;;  %v14391_v61 = vld [vmem:[%s16005_s28 + $0x1c0] sm:$0xff] }
 0x698   : > { %4270 = vmatpush.bf16.msra.mxu3 %v14391_v61  ;;  %v14418_v61 = vld [vmem:[%s16027_s9 + $0x428] sm:$0xff] }
 0x699   : > { %v16472_v7 = vadd.f32 %v3512_v6, %v16363_v21 }
 0x69f   : > { %v3924_v20 = vpop.f32.mrf.mxu3 }
 0x6a1   : > { %v3849_v8 = vpop.f32.mrf.mxu0 }
 0x6a2   : > { %v3923_v60 = vadd.f32 %v3922_v3, %v3849_v8  ;;  %v4536_v3 = vsel %vm736_vm1, %v11866_v13, 0 }
 0x6a3   : > { %4545 = vmatpush.bf16.msrb.mxu3 %v4536_v3 }
 0x6a7   : > { %v3927_v46 = vpop.f32.mrf.mxu3 }
 0x6a9   : > { %v3851_v0 = vpop.f32.mrf.mxu0 }
 0x6aa   : > { %v3925_v36 = vadd.f32 %v3924_v20, %v3851_v0 }
 0x6af   : > { %v3929_v57 = vpop.f32.mrf.mxu3 }
 0x6b1   : > { %v3854_v12 = vpop.f32.mrf.mxu0 }
 0x6b2   : > { %v3928_v31 = vadd.f32 %v3927_v46, %v3854_v12 }
 0x6b9   : > { %v3856_v21 = vpop.f32.mrf.mxu0 }
 0x6ba   : > { %v3930_v15 = vadd.f32 %v3929_v57, %v3856_v21  ;;  %v14403_v57 = vld [vmem:[%s16037_s18 + $0xe0] sm:$0xff] }
 0x6c7   : > { %v4018_v29 = vpop.f32.mrf.mxu2 }
 0x6c8   : > { %v4028_v17 = vadd.f32 %v4018_v29, %v3923_v60 }
 0x6cf   : > { %v4020_v23 = vpop.f32.mrf.mxu2 }
 0x6d0   : > { %v4029_v30 = vadd.f32 %v4020_v23, %v3925_v36 }
 0x6d1   : > { %v4112_v11 = vpop.f32.mrf.mxu0 }
 0x6d2   : > { %v4122_v27 = vadd.f32 %v4112_v11, %v4028_v17 }
 0x6d4   : > { %v4131_v28 = vadd.f32 %v15030_v22, %v4122_v27 }
 0x6d6   : > { %v4135_v38 = vmin.f32 %v4131_v28, 20.0 }
 0x6d7   : > { %v4023_v48 = vpop.f32.mrf.mxu2 }
 0x6d8   : > { %v4139_v40 = vmul.f32 1.442695, %v4135_v38  ;;  %v4030_v37 = vadd.f32 %v4023_v48, %v3928_v31 }
 0x6d9   : > { %v4114_v41 = vpop.f32.mrf.mxu0 }
 0x6da   : > { %15321 = vpow2.f32 %v4139_v40  ;;  %v4123_v44 = vadd.f32 %v4114_v41, %v4029_v30 }
 0x6dc   : > { %v4132_v45 = vadd.f32 %v15030_v22, %v4123_v44 }
 0x6de   : > { %v4136_v43 = vmin.f32 %v4132_v45, 20.0 }
 0x6df   : > { %v4025_v58 = vpop.f32.mrf.mxu2 }
 0x6e0   : > { %v15322_v50 = vpop.eup %15321  ;;  %v4141_v51 = vmul.f32 1.442695, %v4136_v43  ;;  %v4031_v1 = vadd.f32 %v4025_v58, %v3930_v15  ;;  %v14407_v43 = vld [vmem:[%s16022_s21 + $0xc0] sm:$0xff]  ;;  %v14420_v58 = vld [vmem:[%s16027_s9 + $0x438] sm:$0xff]  ;;  %v14427_v15 = vld [vmem:[%s16027_s9 + $0x470] sm:$0xff] }
 0x6e1   : > { %v4147_v52 = vadd.f32 2.0, %v15322_v50  ;;  %v4117_v53 = vpop.f32.mrf.mxu0  ;;  %4864 = vmatpush.bf16.msra.mxu2 %v14420_v58 }
 0x6e2   : > { %15323 = vpow2.f32 %v4141_v51  ;;  %v4124_v49 = vadd.f32 %v4117_v53, %v4030_v37  ;;  %v14409_v37 = vld [vmem:[%s16022_s21 + $0xd0] sm:$0xff]  ;;  %v14410_v51 = vld [vmem:[%s16022_s21 + $0xd8] sm:$0xff] }
 0x6e3   : > { %v4151_v54 = vmul.f32 %v15322_v50, %v4147_v52  ;;  %v14408_v50 = vld [vmem:[%s16022_s21 + $0xc8] sm:$0xff]  ;;  %v14411_v52 = vld [vmem:[%s16022_s21 + $0xe0] sm:$0xff]  ;;  %v14428_v53 = vld [vmem:[%s16027_s9 + $0x478] sm:$0xff] }
 0x6e4   : > { %v4133_v56 = vadd.f32 %v15030_v22, %v4124_v49  ;;  %4791 = vmatpush.bf16.msra.mxu1 %v14428_v53  ;;  %v14406_v49 = vld [vmem:[%s16037_s18 + $0xf8] sm:$0xff]  ;;  %v14422_v53 = vld [vmem:[%s16027_s9 + $0x448] sm:$0xff] }
 0x6e5   : > { %v4159_v55 = vadd.f32 2.0, %v4151_v54  ;;  %v4155_v21 = vmul.f32 %v4151_v54, %v4131_v28  ;;  %4441 = vmatpush.bf16.msra.mxu0 %v14406_v49  ;;  %v14405_v54 = vld [vmem:[%s16037_s18 + $0xf0] sm:$0xff] }
 0x6e6   : > { %v4137_v62 = vmin.f32 %v4133_v56, 20.0 }
 0x6e7   : > { %15325 = vrcp.f32 %v4159_v55  ;;  %v14402_v55 = vld [vmem:[%s16037_s18 + $0xd8] sm:$0xff] }
 0x6e8   : > { %v15324_v63 = vpop.eup %15323  ;;  %v4143_v2 = vmul.f32 1.442695, %v4137_v62  ;;  %4792 = vmatpush.bf16.msra.mxu1 %v14427_v15 }
 0x6e9   : > { %v4148_v4 = vadd.f32 2.0, %v15324_v63  ;;  %v4119_v5 = vpop.f32.mrf.mxu0  ;;  %4442 = vmatpush.bf16.msra.mxu0 %v14405_v54 }
 0x6ea   : > { %15327 = vpow2.f32 %v4143_v2  ;;  %v4125_v6 = vadd.f32 %v4119_v5, %v4031_v1  ;;  %v15031_v1 = vld [vmem:[%s16047_s20 + $0x3] ss:$0 sm:$0xff] }
 0x6eb   : > { %v4152_v8 = vmul.f32 %v15324_v63, %v4148_v4  ;;  %v14419_v63 = vld [vmem:[%s16027_s9 + $0x430] sm:$0xff]  ;;  %v14400_v4 = vld [vmem:[%s16037_s18 + $0xc8] sm:$0xff] }
 0x6ec   : > { %v4134_v0 = vadd.f32 %v15030_v22, %v4125_v6  ;;  %4865 = vmatpush.bf16.msra.mxu2 %v14419_v63 }
 0x6ed   : > { %v4160_v9 = vadd.f32 2.0, %v4152_v8  ;;  %v15326_v14 = vpop.eup %15325  ;;  %v4156_v20 = vmul.f32 %v4152_v8, %v4132_v45  ;;  %v14399_v8 = vld [vmem:[%s16037_s18 + $0xc0] sm:$0xff] }
 0x6ee   : > { %v4138_v12 = vmin.f32 %v4134_v0, 20.0  ;;  %v4167_v19 = vmul.f32 %v15326_v14, %v4155_v21 }
 0x6ef   : > { %15329 = vrcp.f32 %v4160_v9  ;;  %v14417_v9 = vld [vmem:[%s16027_s9 + $0x420] sm:$0xff] }
 0x6f0   : > { %v15328_v29 = vpop.eup %15327  ;;  %v4145_v16 = vmul.f32 1.442695, %v4138_v12  ;;  %v4171_v11 = vpack.c.bf16 %v4167_v19, %v4167_v19  ;;  %4866 = vmatpush.bf16.msra.mxu2 %v14418_v61  ;;  %v14415_v19 = vld [vmem:[%s16027_s9 + $0x410] sm:$0xff]  ;;  %v14436_v61 = vld [vmem:[%s16027_s9 + $0x4b8] sm:$0xff] }
 0x6f1   : > { %v4149_v18 = vadd.f32 2.0, %v15328_v29 }
 0x6f2   : > { %15331 = vpow2.f32 %v4145_v16  ;;  %v4279_v33 = vunpack.c.l.b16 %v4171_v11 }
 0x6f3   : > { %v4153_v60 = vmul.f32 %v15328_v29, %v4149_v18  ;;  %v14416_v29 = vld [vmem:[%s16027_s9 + $0x418] sm:$0xff]  ;;  %v16524_v18 = vld [vmem:[%s16032_s11 + $0x4] ss:$0 sm:$0xff] }
 0x6f4   : > { %4867 = vmatpush.bf16.msra.mxu2 %v14417_v9 }
 0x6f5   : > { %v15330_v17 = vpop.eup %15329  ;;  %v4161_v23 = vadd.f32 2.0, %v4153_v60  ;;  %v4157_v40 = vmul.f32 %v4153_v60, %v4133_v56  ;;  %v14404_v56 = vld [vmem:[%s16037_s18 + $0xe8] sm:$0xff] }
 0x6f6   : > { %v4168_v22 = vmul.f32 %v15330_v17, %v4156_v20  ;;  %4443 = vmatpush.bf16.msra.mxu0 %v14404_v56  ;;  %v14426_v17 = vld [vmem:[%s16027_s9 + $0x468] sm:$0xff] }
 0x6f7   : > { %15333 = vrcp.f32 %v4161_v23  ;;  %4793 = vmatpush.bf16.msra.mxu1 %v14426_v17  ;;  %v14434_v17 = vld [vmem:[%s16027_s9 + $0x4a8] sm:$0xff] }
 0x6f8   : > { %v15332_v25 = vpop.eup %15331  ;;  %v4172_v26 = vpack.c.bf16 %v4168_v22, %v4168_v22  ;;  %4868 = vmatpush.bf16.msra.mxu2 %v14416_v29 }
 0x6f9   : > { %v4150_v27 = vadd.f32 2.0, %v15332_v25 }
 0x6fa   : > { %v4280_v34 = vunpack.c.l.b16 %v4172_v26  ;;  %4444 = vmatpush.bf16.msra.mxu0 %v14403_v57 }
 0x6fb   : > { %v4154_v36 = vmul.f32 %v15332_v25, %v4150_v27  ;;  %v14414_v25 = vld [vmem:[%s16027_s9 + $0x408] sm:$0xff] }
 0x6fc   : > { %v4281_v38 = vpack.c.b16 %v4280_v34, %v4279_v33  ;;  %4869 = vmatpush.bf16.msra.mxu2 %v14415_v19  ;;  %v14425_v34 = vld [vmem:[%s16027_s9 + $0x460] sm:$0xff] }
 0x6fd   : > { %v4162_v28 = vadd.f32 2.0, %v4154_v36  ;;  %v15334_v30 = vpop.eup %15333  ;;  %v4158_v32 = vmul.f32 %v4154_v36, %v4134_v0  ;;  %v14413_v36 = vld [vmem:[%s16027_s9 + $0x400] sm:$0xff]  ;;  %4794 = vmatpush.bf16.msra.mxu1 %v14425_v34 }
 0x6fe   : > { %4339 = vmatmul.bf16.vlgmr.msrb.gmra.mxu2 %v4281_v38  ;;  %v4169_v41 = vmul.f32 %v15334_v30, %v4157_v40  ;;  %4445 = vmatpush.bf16.msra.mxu0 %v14402_v55  ;;  %v14433_v34 = vld [vmem:[%s16027_s9 + $0x4a0] sm:$0xff] }
 0x6ff   : > { %15335 = vrcp.f32 %v4162_v28 }
 0x700   : > { %v4173_v44 = vpack.c.bf16 %v4169_v41, %v4169_v41  ;;  %4870 = vmatpush.bf16.msra.mxu2 %v14414_v25 }
 0x702   : > { %v4211_v45 = vunpack.c.l.b16 %v4173_v44  ;;  %4446 = vmatpush.bf16.msra.mxu0 %v14401_v59 }
 0x704   : > { %4871 = vmatpush.bf16.msra.mxu2 %v14413_v36 }
 0x705   : > { %v15336_v42 = vpop.eup %15335 }
 0x706   : > { %v4170_v46 = vmul.f32 %v15336_v42, %v4158_v32  ;;  %4447 = vmatpush.bf16.msra.mxu0 %v14400_v4  ;;  %v14424_v42 = vld [vmem:[%s16027_s9 + $0x458] sm:$0xff] }
 0x707   : > { %4795 = vmatpush.bf16.msra.mxu1 %v14424_v42  ;;  %v14444_v42 = vld [vmem:[%s16027_s9 + $0x4f8] sm:$0xff] }
 0x708   : > { %v4174_v48 = vpack.c.bf16 %v4170_v46, %v4170_v46 }
 0x70a   : > { %v4212_v39 = vunpack.c.l.b16 %v4174_v48  ;;  %4448 = vmatpush.bf16.msra.mxu0 %v14399_v8 }
 0x70c   : > { %v4213_v31 = vpack.c.b16 %v4212_v39, %v4211_v45 }
 0x70e   : > { %4271 = vmatmul.bf16.vlgmr.msra.gmra.mxu3 %v4213_v31  ;;  %v14423_v31 = vld [vmem:[%s16027_s9 + $0x450] sm:$0xff]  ;;  %4960 = vmatpush.bf16.msrb.mxu0 %v14436_v61 }
 0x70f   : > { %4796 = vmatpush.bf16.msra.mxu1 %v14423_v31 }
 0x713   : > { %4797 = vmatpush.bf16.msra.mxu1 %v14422_v53 }
 0x71e   : > { %11892 = vmatmul.msk.bf16.vlgmr.msrb.gmra.mxu3 %vm717_vm2, %v14407_v43 }
 0x72e   : > { %11893 = vmatmul.msk.bf16.gmra.mxu3 %vm717_vm2, %v14408_v50 }
 0x73e   : > { %11894 = vmatmul.msk.bf16.gmra.mxu3 %vm717_vm2, %v14409_v37 }
 0x74e   : > { %11895 = vmatmul.msk.bf16.gmra.mxu3 %vm717_vm2, %v14410_v51 }
 0x75e   : > { %11896 = vmatmul.msk.bf16.gmra.mxu3 %vm717_vm2, %v14411_v52 }
 0x76e   : > { %11897 = vmatmul.msk.bf16.gmra.mxu3 %vm717_vm2, %v14412_v47 }
 0x781   : > { %v4340_v62 = vpop.f32.mrf.mxu2 }
 0x789   : > { %v4342_v13 = vpop.f32.mrf.mxu2 }
 0x791   : > { %v4272_v2 = vpop.f32.mrf.mxu3 }
 0x792   : > { %v4341_v5 = vadd.f32 %v4340_v62, %v4272_v2  ;;  %v14421_v62 = vld [vmem:[%s16027_s9 + $0x440] sm:$0xff] }
 0x793   : > { %4798 = vmatpush.bf16.msra.mxu1 %v14421_v62 }
 0x794   : > { %v4350_v6 = vadd.f32 %v15031_v1, %v4341_v5 }
 0x796   : > { %v4352_v0 = vmin.f32 %v4350_v6, 20.0 }
 0x797   : > { %5054 = vmatpush.bf16.msrb.mxu1 %v14444_v42  ;;  %v14437_v42 = vld [vmem:[%s16027_s9 + $0x4c0] sm:$0xff] }
 0x798   : > { %v4354_v12 = vmul.f32 1.442695, %v4352_v0 }
 0x799   : > { %v4274_v14 = vpop.f32.mrf.mxu3 }
 0x79a   : > { %15337 = vpow2.f32 %v4354_v12  ;;  %v4343_v3 = vadd.f32 %v4342_v13, %v4274_v14  ;;  %v14435_v14 = vld [vmem:[%s16027_s9 + $0x4b0] sm:$0xff] }
 0x79b   : > { %4961 = vmatpush.bf16.msrb.mxu0 %v14435_v14  ;;  %v14440_v14 = vld [vmem:[%s16027_s9 + $0x4d8] sm:$0xff] }
 0x79c   : > { %v4351_v21 = vadd.f32 %v15031_v1, %v4343_v3 }
 0x79e   : > { %v4353_v16 = vmin.f32 %v4351_v21, 20.0 }
 0x79f   : > { %4962 = vmatpush.bf16.msrb.mxu0 %v14434_v17  ;;  %v14439_v17 = vld [vmem:[%s16027_s9 + $0x4d0] sm:$0xff] }
 0x7a0   : > { %v15338_v60 = vpop.eup %15337  ;;  %v4356_v20 = vmul.f32 1.442695, %v4353_v16 }
 0x7a1   : > { %v4358_v23 = vadd.f32 2.0, %v15338_v60  ;;  %v4547_v11 = vpop.f32.mrf.mxu3 }
 0x7a2   : > { %15339 = vpow2.f32 %v4356_v20  ;;  %v4548_v22 = vadd.f32 %v16524_v18, %v4547_v11 }
 0x7a3   : > { %v4360_v27 = vmul.f32 %v15338_v60, %v4358_v23  ;;  %4963 = vmatpush.bf16.msrb.mxu0 %v14433_v34  ;;  %v14438_v34 = vld [vmem:[%s16027_s9 + $0x4c8] sm:$0xff] }
 0x7a4   : > { %v4577_v26 = vmin.f32 %v4548_v22, 20.0 }
 0x7a5   : > { %v4364_v28 = vadd.f32 2.0, %v4360_v27  ;;  %v4362_v47 = vmul.f32 %v4360_v27, %v4350_v6 }
 0x7a6   : > { %v4589_v33 = vmul.f32 1.442695, %v4577_v26 }
 0x7a8   : > { %v15340_v38 = vpop.eup %15339  ;;  %15341 = vpow2.f32 %v4589_v33 }
 0x7a9   : > { %v4359_v30 = vadd.f32 2.0, %v15340_v38  ;;  %v4549_v40 = vpop.f32.mrf.mxu3  ;;  %15343 = vrcp.f32 %v4364_v28 }
 0x7aa   : > { %v4550_v41 = vadd.f32 %v16524_v18, %v4549_v40 }
 0x7ab   : > { %v4361_v32 = vmul.f32 %v15340_v38, %v4359_v30 }
 0x7ac   : > { %v4578_v44 = vmin.f32 %v4550_v41, 20.0 }
 0x7ad   : > { %v4365_v46 = vadd.f32 2.0, %v4361_v32  ;;  %v4363_v49 = vmul.f32 %v4361_v32, %v4351_v21 }
 0x7ae   : > { %v15342_v48 = vpop.eup %15341  ;;  %v4591_v45 = vmul.f32 1.442695, %v4578_v44  ;;  %v14432_v44 = vld [vmem:[%s16027_s9 + $0x498] sm:$0xff] }
 0x7af   : > { %15345 = vrcp.f32 %v4365_v46  ;;  %v4613_v39 = vadd.f32 2.0, %v15342_v48  ;;  %v15344_v51 = vpop.eup %15343  ;;  %4964 = vmatpush.bf16.msrb.mxu0 %v14432_v44 }
 0x7b0   : > { %15347 = vpow2.f32 %v4591_v45  ;;  %v4368_v55 = vmul.f32 %v15344_v51, %v4362_v47  ;;  %v14431_v51 = vld [vmem:[%s16027_s9 + $0x490] sm:$0xff] }
 0x7b1   : > { %v4625_v43 = vmul.f32 %v15342_v48, %v4613_v39  ;;  %v4552_v50 = vpop.f32.mrf.mxu3 }
 0x7b2   : > { %v16536_v37 = vadd.f32 %v16524_v18, %v4552_v50  ;;  %v14443_v50 = vld [vmem:[%s16027_s9 + $0x4f0] sm:$0xff] }
 0x7b3   : > { %v4649_v52 = vadd.f32 2.0, %v4625_v43  ;;  %v4637_v9 = vmul.f32 %v4625_v43, %v4548_v22  ;;  %5055 = vmatpush.bf16.msrb.mxu1 %v14443_v50  ;;  %4965 = vmatpush.bf16.msrb.mxu0 %v14431_v51 }
 0x7b4   : > { %v4579_v54 = vmin.f32 %v16536_v37, 20.0 }
 0x7b5   : > { %v15346_v56 = vpop.eup %15345  ;;  %15349 = vrcp.f32 %v4649_v52 }
 0x7b6   : > { %v15348_v57 = vpop.eup %15347  ;;  %v4369_v58 = vmul.f32 %v15346_v56, %v4363_v49  ;;  %v4593_v59 = vmul.f32 1.442695, %v4579_v54 }
 0x7b7   : > { %v4614_v15 = vadd.f32 2.0, %v15348_v57 }
 0x7b8   : > { %v4370_v63 = vpack.c.bf16 %v4369_v58, %v4368_v55  ;;  %15351 = vpow2.f32 %v4593_v59  ;;  %v14430_v55 = vld [vmem:[%s16027_s9 + $0x488] sm:$0xff] }
 0x7b9   : > { %v4626_v1 = vmul.f32 %v15348_v57, %v4614_v15  ;;  %v4554_v2 = vpop.f32.mrf.mxu3  ;;  %4966 = vmatpush.bf16.msrb.mxu0 %v14430_v55 }
 0x7ba   : > { %v4555_v4 = vadd.f32 %v16524_v18, %v4554_v2  ;;  %4449 = vmatmul.bf16.vlgmr.msra.gmra.mxu0 %v4370_v63 }
 0x7bb   : > { %v4650_v5 = vadd.f32 2.0, %v4626_v1  ;;  %v15350_v8 = vpop.eup %15349  ;;  %v4638_v16 = vmul.f32 %v4626_v1, %v4550_v41 }
 0x7bc   : > { %v4580_v6 = vmin.f32 %v4555_v4, 20.0  ;;  %v4673_v3 = vmul.f32 %v15350_v8, %v4637_v9 }
 0x7bd   : > { %15353 = vrcp.f32 %v4650_v5  ;;  %v14429_v5 = vld [vmem:[%s16027_s9 + $0x480] sm:$0xff] }
 0x7be   : > { %v15352_v0 = vpop.eup %15351  ;;  %v4595_v12 = vmul.f32 1.442695, %v4580_v6  ;;  %v4685_v23 = vpack.c.bf16 %v4673_v3, %v4673_v3  ;;  %4967 = vmatpush.bf16.msrb.mxu0 %v14429_v5 }
 0x7bf   : > { %v4615_v13 = vadd.f32 2.0, %v15352_v0 }
 0x7c0   : > { %15355 = vpow2.f32 %v4595_v12  ;;  %v4812_v36 = vunpack.c.l.b16 %v4685_v23 }
 0x7c1   : > { %v4627_v29 = vmul.f32 %v15352_v0, %v4615_v13  ;;  %v4557_v21 = vpop.f32.mrf.mxu3 }
 0x7c2   : > { %v16545_v19 = vadd.f32 %v16524_v18, %v4557_v21 }
 0x7c3   : > { %v15354_v60 = vpop.eup %15353  ;;  %v4651_v20 = vadd.f32 2.0, %v4627_v29  ;;  %v4639_v39 = vmul.f32 %v4627_v29, %v16536_v37  ;;  %v14442_v37 = vld [vmem:[%s16027_s9 + $0x4e8] sm:$0xff] }
 0x7c4   : > { %v4674_v11 = vmul.f32 %v15354_v60, %v4638_v16  ;;  %v4581_v22 = vmin.f32 %v16545_v19, 20.0  ;;  %5056 = vmatpush.bf16.msrb.mxu1 %v14442_v37 }
 0x7c5   : > { %15357 = vrcp.f32 %v4651_v20 }
 0x7c6   : > { %v15356_v25 = vpop.eup %15355  ;;  %v4686_v26 = vpack.c.bf16 %v4674_v11, %v4674_v11  ;;  %v4597_v27 = vmul.f32 1.442695, %v4581_v22 }
 0x7c7   : > { %v4616_v33 = vadd.f32 2.0, %v15356_v25 }
 0x7c8   : > { %v4813_v38 = vunpack.c.l.b16 %v4686_v26  ;;  %15359 = vpow2.f32 %v4597_v27 }
 0x7c9   : > { %v4628_v28 = vmul.f32 %v15356_v25, %v4616_v33  ;;  %v4559_v30 = vpop.f32.mrf.mxu3 }
 0x7ca   : > { %v4814_v40 = vpack.c.b16 %v4813_v38, %v4812_v36  ;;  %v16551_v41 = vadd.f32 %v16524_v18, %v4559_v30 }
 0x7cb   : > { %v4652_v32 = vadd.f32 2.0, %v4628_v28  ;;  %v15358_v48 = vpop.eup %15357  ;;  %v4640_v49 = vmul.f32 %v4628_v28, %v4555_v4  ;;  %v14441_v4 = vld [vmem:[%s16027_s9 + $0x4e0] sm:$0xff] }
 0x7cc   : > { %v4582_v46 = vmin.f32 %v16551_v41, 20.0  ;;  %4872 = vmatmul.bf16.vlgmr.msra.gmra.mxu2 %v4814_v40  ;;  %v4675_v52 = vmul.f32 %v15358_v48, %v4639_v39  ;;  %5057 = vmatpush.bf16.msrb.mxu1 %v14441_v4 }
 0x7cd   : > { %15361 = vrcp.f32 %v4652_v32 }
 0x7ce   : > { %v15360_v45 = vpop.eup %15359  ;;  %v4599_v31 = vmul.f32 1.442695, %v4582_v46  ;;  %v4687_v58 = vpack.c.bf16 %v4675_v52, %v4675_v52 }
 0x7cf   : > { %v4617_v43 = vadd.f32 2.0, %v15360_v45 }
 0x7d0   : > { %15363 = vpow2.f32 %v4599_v31  ;;  %v4735_v61 = vunpack.c.l.b16 %v4687_v58  ;;  %5058 = vmatpush.bf16.msrb.mxu1 %v14440_v14 }
 0x7d1   : > { %v4629_v53 = vmul.f32 %v15360_v45, %v4617_v43  ;;  %v4562_v47 = vpop.f32.mrf.mxu3 }
 0x7d2   : > { %v16560_v54 = vadd.f32 %v16524_v18, %v4562_v47 }
 0x7d3   : > { %v15362_v56 = vpop.eup %15361  ;;  %v4653_v57 = vadd.f32 2.0, %v4629_v53  ;;  %v4641_v16 = vmul.f32 %v4629_v53, %v16545_v19 }
 0x7d4   : > { %v4676_v59 = vmul.f32 %v15362_v56, %v4640_v49  ;;  %v4583_v15 = vmin.f32 %v16560_v54, 20.0  ;;  %5059 = vmatpush.bf16.msrb.mxu1 %v14439_v17 }
 0x7d5   : > { %15365 = vrcp.f32 %v4653_v57 }
 0x7d6   : > { %v15364_v62 = vpop.eup %15363  ;;  %v4688_v63 = vpack.c.bf16 %v4676_v59, %v4676_v59  ;;  %v4601_v1 = vmul.f32 1.442695, %v4583_v15 }
 0x7d7   : > { %v4618_v2 = vadd.f32 2.0, %v15364_v62 }
 0x7d8   : > { %v4736_v6 = vunpack.c.l.b16 %v4688_v63  ;;  %15367 = vpow2.f32 %v4601_v1  ;;  %5060 = vmatpush.bf16.msrb.mxu1 %v14438_v34 }
 0x7d9   : > { %v4630_v8 = vmul.f32 %v15364_v62, %v4618_v2  ;;  %v4564_v0 = vpop.f32.mrf.mxu3 }
 0x7da   : > { %v4739_v9 = vpack.c.b16 %v4736_v6, %v4735_v61  ;;  %v4565_v12 = vadd.f32 %v16524_v18, %v4564_v0 }
 0x7db   : > { %v4654_v13 = vadd.f32 2.0, %v4630_v8  ;;  %v15366_v29 = vpop.eup %15365  ;;  %v4642_v25 = vmul.f32 %v4630_v8, %v16551_v41 }
 0x7dc   : > { %v4584_v3 = vmin.f32 %v4565_v12, 20.0  ;;  %4799 = vmatmul.bf16.vlgmr.msra.gmra.mxu1 %v4739_v9  ;;  %4877 = vmatmul.bf16.gmra.mxu2 %v4739_v9  ;;  %v4677_v23 = vmul.f32 %v15366_v29, %v4641_v16 }
 0x7dd   : > { %15369 = vrcp.f32 %v4654_v13  ;;  %5061 = vmatpush.bf16.msrb.mxu1 %v14437_v42 }
 0x7de   : > { %v15368_v21 = vpop.eup %15367  ;;  %v4603_v60 = vmul.f32 1.442695, %v4584_v3  ;;  %v4689_v36 = vpack.c.bf16 %v4677_v23, %v4677_v23 }
 0x7df   : > { %v4619_v20 = vadd.f32 2.0, %v15368_v21 }
 0x7e0   : > { %15371 = vpow2.f32 %v4603_v60  ;;  %v4737_v44 = vunpack.c.l.b16 %v4689_v36 }
 0x7e1   : > { %v4631_v11 = vmul.f32 %v15368_v21, %v4619_v20  ;;  %v4567_v22 = vpop.f32.mrf.mxu3 }
 0x7e2   : > { %v4568_v26 = vadd.f32 %v16524_v18, %v4567_v22 }
 0x7e3   : > { %v15370_v27 = vpop.eup %15369  ;;  %v4655_v33 = vadd.f32 2.0, %v4631_v11  ;;  %v4643_v52 = vmul.f32 %v4631_v11, %v16560_v54 }
 0x7e4   : > { %v4678_v38 = vmul.f32 %v15370_v27, %v4642_v25  ;;  %v4585_v28 = vmin.f32 %v4568_v26, 20.0 }
 0x7e5   : > { %15373 = vrcp.f32 %v4655_v33 }
 0x7e6   : > { %v15372_v19 = vpop.eup %15371  ;;  %v4690_v30 = vpack.c.bf16 %v4678_v38, %v4678_v38  ;;  %v4605_v40 = vmul.f32 1.442695, %v4585_v28 }
 0x7e7   : > { %v4620_v32 = vadd.f32 2.0, %v15372_v19 }
 0x7e8   : > { %15375 = vpow2.f32 %v4605_v40  ;;  %v4738_v46 = vunpack.c.l.b16 %v4690_v30 }
 0x7e9   : > { %v4632_v48 = vmul.f32 %v15372_v19, %v4620_v32  ;;  %v4569_v41 = vpop.f32.mrf.mxu3 }
 0x7ea   : > { %v4570_v45 = vadd.f32 %v16524_v18, %v4569_v41  ;;  %v4740_v39 = vpack.c.b16 %v4738_v46, %v4737_v44 }
 0x7eb   : > { %v4656_v31 = vadd.f32 2.0, %v4632_v48  ;;  %v15374_v50 = vpop.eup %15373  ;;  %v4644_v37 = vmul.f32 %v4632_v48, %v4565_v12 }
 0x7ec   : > { %v4586_v43 = vmin.f32 %v4570_v45, 20.0  ;;  %4804 = vmatmul.bf16.gmra.mxu1 %v4740_v39  ;;  %v4679_v49 = vmul.f32 %v15374_v50, %v4643_v52 }
 0x7ed   : > { %15377 = vrcp.f32 %v4656_v31  ;;  %v15033_v31 = vld [vmem:[%s16052_s3 + $0x3] ss:$0 sm:$0xff] }
 0x7ee   : > { %v15376_v51 = vpop.eup %15375  ;;  %v4607_v53 = vmul.f32 1.442695, %v4586_v43  ;;  %v4691_v15 = vpack.c.bf16 %v4679_v49, %v4679_v49 }
 0x7ef   : > { %v4621_v47 = vadd.f32 2.0, %v15376_v51 }
 0x7f0   : > { %15379 = vpow2.f32 %v4607_v53  ;;  %v4904_v54 = vunpack.c.l.b16 %v4691_v15 }
 0x7f1   : > { %v4633_v56 = vmul.f32 %v15376_v51, %v4621_v47  ;;  %v4572_v57 = vpop.f32.mrf.mxu3 }
 0x7f2   : > { %v4573_v55 = vadd.f32 %v16524_v18, %v4572_v57 }
 0x7f3   : > { %v15378_v58 = vpop.eup %15377  ;;  %v4657_v59 = vadd.f32 2.0, %v4633_v56  ;;  %v4645_v29 = vmul.f32 %v4633_v56, %v4568_v26 }
 0x7f4   : > { %v4680_v62 = vmul.f32 %v15378_v58, %v4644_v37  ;;  %v4587_v63 = vmin.f32 %v4573_v55, 20.0 }
 0x7f5   : > { %15381 = vrcp.f32 %v4657_v59 }
 0x7f6   : > { %v15380_v1 = vpop.eup %15379  ;;  %v4692_v2 = vpack.c.bf16 %v4680_v62, %v4680_v62  ;;  %v4609_v4 = vmul.f32 1.442695, %v4587_v63 }
 0x7f7   : > { %v4622_v5 = vadd.f32 2.0, %v15380_v1 }
 0x7f8   : > { %v4905_v61 = vunpack.c.l.b16 %v4692_v2  ;;  %15383 = vpow2.f32 %v4609_v4 }
 0x7f9   : > { %v4634_v6 = vmul.f32 %v15380_v1, %v4622_v5  ;;  %v4574_v8 = vpop.f32.mrf.mxu3  ;;  %v14452_v1 = vld [vmem:[%s16005_s28 + $0x238] sm:$0xff]  ;;  %v14451_v5 = vld [vmem:[%s16005_s28 + $0x230] sm:$0xff] }
 0x7fa   : > { %v4908_v0 = vpack.c.b16 %v4905_v61, %v4904_v54  ;;  %v4575_v9 = vadd.f32 %v16524_v18, %v4574_v8  ;;  %5282 = vmatpush.bf16.msra.mxu0 %v14452_v1  ;;  %v14450_v54 = vld [vmem:[%s16005_s28 + $0x228] sm:$0xff]  ;;  %v14449_v8 = vld [vmem:[%s16005_s28 + $0x220] sm:$0xff] }
 0x7fb   : > { %v4658_v12 = vadd.f32 2.0, %v4634_v6  ;;  %v15382_v14 = vpop.eup %15381  ;;  %v4646_v17 = vmul.f32 %v4634_v6, %v4570_v45 }
 0x7fc   : > { %v4588_v13 = vmin.f32 %v4575_v9, 20.0  ;;  %4968 = vmatmul.bf16.vlgmr.msrb.gmra.mxu0 %v4908_v0  ;;  %v4681_v60 = vmul.f32 %v15382_v14, %v4645_v29  ;;  %v14460_v0 = vld [vmem:[%s16005_s28 + $0x278] sm:$0xff] }
 0x7fd   : > { %15385 = vrcp.f32 %v4658_v12  ;;  %5214 = vmatpush.bf16.msrb.mxu2 %v14460_v0 }
 0x7fe   : > { %v15384_v3 = vpop.eup %15383  ;;  %v4611_v21 = vmul.f32 1.442695, %v4588_v13  ;;  %v4693_v22 = vpack.c.bf16 %v4681_v60, %v4681_v60  ;;  %5283 = vmatpush.bf16.msra.mxu0 %v14451_v5  ;;  %v14447_v60 = vld [vmem:[%s16005_s28 + $0x210] sm:$0xff] }
 0x7ff   : > { %v4623_v16 = vadd.f32 2.0, %v15384_v3 }
 0x800   : > { %15387 = vpow2.f32 %v4611_v21  ;;  %v4906_v34 = vunpack.c.l.b16 %v4693_v22 }
 0x801   : > { %v4635_v20 = vmul.f32 %v15384_v3, %v4623_v16  ;;  %v15034_v3 = vld [vmem:[%s16042_s19 + $0x4] ss:$0 sm:$0xff]  ;;  %v14459_v16 = vld [vmem:[%s16005_s28 + $0x270] sm:$0xff] }
 0x802   : > { %5284 = vmatpush.bf16.msra.mxu0 %v14450_v54  ;;  %5215 = vmatpush.bf16.msrb.mxu2 %v14459_v16  ;;  %v12249_v54 = vld [vmem:[%s16017_s23 + $0x14] sm:$0xf] }
 0x803   : > { %v15386_v23 = vpop.eup %15385  ;;  %v4659_v11 = vadd.f32 2.0, %v4635_v20  ;;  %v4647_v30 = vmul.f32 %v4635_v20, %v4573_v55 }
 0x804   : > { %v4682_v25 = vmul.f32 %v15386_v23, %v4646_v17  ;;  %v14458_v23 = vld [vmem:[%s16005_s28 + $0x268] sm:$0xff] }
 0x805   : > { %15389 = vrcp.f32 %v4659_v11  ;;  %v14446_v11 = vld [vmem:[%s16005_s28 + $0x208] sm:$0xff] }
 0x806   : > { %v15388_v27 = vpop.eup %15387  ;;  %v4694_v33 = vpack.c.bf16 %v4682_v25, %v4682_v25  ;;  %5285 = vmatpush.bf16.msra.mxu0 %v14449_v8  ;;  %5216 = vmatpush.bf16.msrb.mxu2 %v14458_v23 }
 0x807   : > { %v4624_v18 = vadd.f32 2.0, %v15388_v27 }
 0x808   : > { %v4907_v36 = vunpack.c.l.b16 %v4694_v33 }
 0x809   : > { %v4636_v38 = vmul.f32 %v15388_v27, %v4624_v18 }
 0x80a   : > { %v4909_v28 = vpack.c.b16 %v4907_v36, %v4906_v34  ;;  %v14457_v34 = vld [vmem:[%s16005_s28 + $0x260] sm:$0xff] }
 0x80b   : > { %v4660_v19 = vadd.f32 2.0, %v4636_v38  ;;  %v15390_v26 = vpop.eup %15389  ;;  %v4648_v32 = vmul.f32 %v4636_v38, %v4575_v9  ;;  %v14448_v9 = vld [vmem:[%s16005_s28 + $0x218] sm:$0xff]  ;;  %v14445_v36 = vld [vmem:[%s16005_s28 + $0x200] sm:$0xff]  ;;  %5217 = vmatpush.bf16.msrb.mxu2 %v14457_v34 }
 0x80c   : > { %4973 = vmatmul.bf16.gmra.mxu0 %v4909_v28  ;;  %5062 = vmatmul.bf16.vlgmr.msrb.gmra.mxu1 %v4909_v28  ;;  %v4683_v40 = vmul.f32 %v15390_v26, %v4647_v30  ;;  %v14456_v30 = vld [vmem:[%s16005_s28 + $0x258] sm:$0xff] }
 0x80d   : > { %15391 = vrcp.f32 %v4660_v19  ;;  %5286 = vmatpush.bf16.msra.mxu0 %v14448_v9 }
 0x80e   : > { %v4695_v44 = vpack.c.bf16 %v4683_v40, %v4683_v40 }
 0x80f   : > { %5218 = vmatpush.bf16.msrb.mxu2 %v14456_v30 }
 0x810   : > { %v5002_v41 = vunpack.c.l.b16 %v4695_v44 }
 0x811   : > { %5287 = vmatpush.bf16.msra.mxu0 %v14447_v60 }
 0x813   : > { %v15392_v42 = vpop.eup %15391 }
 0x814   : > { %v4684_v46 = vmul.f32 %v15392_v42, %v4648_v32 }
 0x815   : > { %5288 = vmatpush.bf16.msra.mxu0 %v14446_v11 }
 0x816   : > { %v4696_v48 = vpack.c.bf16 %v4684_v46, %v4684_v46 }
 0x818   : > { %v5003_v45 = vunpack.c.l.b16 %v4696_v48 }
 0x819   : > { %5289 = vmatpush.bf16.msra.mxu0 %v14445_v36 }
 0x81a   : > { %v5004_v39 = vpack.c.b16 %v5003_v45, %v5002_v41  ;;  %v14455_v45 = vld [vmem:[%s16005_s28 + $0x250] sm:$0xff] }
 0x81b   : > { %5219 = vmatpush.bf16.msrb.mxu2 %v14455_v45  ;;  %v14490_v45 = vld [vmem:[%s16027_s9 + $0x578] sm:$0xff] }
 0x81c   : > { %5067 = vmatmul.bf16.gmra.mxu1 %v5004_v39  ;;  %5742 = vmatpush.bf16.msra.mxu3 %v14490_v45 }
 0x837   : > { %v4450_v43 = vpop.f32.mrf.mxu0 }
 0x838   : > { %v4451_v50 = vadd.f32 %v15033_v31, %v4450_v43 }
 0x83a   : > { %v4455_v51 = vmax.f32 %v4451_v50, -1.0 }
 0x83c   : > { %v4457_v52 = vmin.f32 %v4455_v51, 0.9921875 }
 0x83e   : > { %v4459_v53 = vmul.f32 128.0, %v4457_v52 }
 0x83f   : > { %v16584_v2 = vpop.f32.mrf.mxu0 }
 0x840   : > { %v14833_v47 = vcvt.f32.s32 %v4459_v53  ;;  %v14831_v56 = vand.u32 2147483647, %v4459_v53  ;;  %v14836_v37 = vand.u32 2147483648, %v4459_v53 }
 0x842   : > { %v14834_v49 = vcvt.s32.f32 %v14833_v47  ;;  %vm14832_vm6 = vcmp.lt.f32.partialorder %v14831_v56, 8388608.0 }
 0x844   : > { %v14835_v57 = vand.u32 2147483647, %v14834_v49 }
 0x846   : > { %v14837_v55 = vor.u32 %v14836_v37, %v14835_v57 }
 0x848   : > { %v14838_v58 = vsel %vm14832_vm6, %v14837_v55, %v4459_v53  ;;  %v14454_v53 = vld [vmem:[%s16005_s28 + $0x248] sm:$0xff]  ;;  %vm10177_vm6 = vcmask 261120  }
 0x849   : > { %v4463_v59 = vmul.f32 0.0078125, %v14838_v58  ;;  %5220 = vmatpush.bf16.msrb.mxu2 %v14454_v53  ;;  %v14482_v53 = vld [vmem:[%s16027_s9 + $0x538] sm:$0xff] }
 0x84a   : > { %5815 = vmatpush.bf16.msrb.mxu0 %v14482_v53 }
 0x84b   : > { %v16581_v15 = vadd.f32 %v4463_v59, %v16472_v7  ;;  %v14453_v59 = vld [vmem:[%s16005_s28 + $0x240] sm:$0xff] }
 0x84d   : > { %5221 = vmatpush.bf16.msrb.mxu2 %v14453_v59 }
 0x84f   : > { %v4873_v61 = vpop.f32.mrf.mxu2 }
 0x857   : > { %v4875_v13 = vpop.f32.mrf.mxu2 }
 0x859   : > { %v4800_v62 = vpop.f32.mrf.mxu1 }
 0x85a   : > { %v4874_v12 = vadd.f32 %v4873_v61, %v4800_v62 }
 0x85f   : > { %v4878_v28 = vpop.f32.mrf.mxu2 }
 0x861   : > { %v4802_v63 = vpop.f32.mrf.mxu1 }
 0x862   : > { %v4876_v22 = vadd.f32 %v4875_v13, %v4802_v63 }
 0x867   : > { %v4880_v50 = vpop.f32.mrf.mxu2 }
 0x869   : > { %v4805_v4 = vpop.f32.mrf.mxu1 }
 0x86a   : > { %v4879_v40 = vadd.f32 %v4878_v28, %v4805_v4 }
 0x871   : > { %v4807_v7 = vpop.f32.mrf.mxu1 }
 0x872   : > { %v4881_v47 = vadd.f32 %v4880_v50, %v4807_v7  ;;  %v14466_v50 = vld [vmem:[%s16037_s18 + $0x128] sm:$0xff] }
 0x879   : > { %v4969_v6 = vpop.f32.mrf.mxu0 }
 0x87a   : > { %v4979_v14 = vadd.f32 %v4969_v6, %v4874_v12  ;;  %v5487_v6 = vsel %vm736_vm1, %v12249_v54, 0 }
 0x87b   : > { %5496 = vmatpush.bf16.msra.mxu2 %v5487_v6 }
 0x881   : > { %v4971_v29 = vpop.f32.mrf.mxu0 }
 0x882   : > { %v4980_v27 = vadd.f32 %v4971_v29, %v4876_v22 }
 0x889   : > { %v5063_v21 = vpop.f32.mrf.mxu1  ;;  %v4974_v19 = vpop.f32.mrf.mxu0 }
 0x88a   : > { %v5073_v20 = vadd.f32 %v5063_v21, %v4979_v14  ;;  %v4981_v44 = vadd.f32 %v4974_v19, %v4879_v40 }
 0x88c   : > { %v5082_v17 = vadd.f32 %v15034_v3, %v5073_v20 }
 0x88e   : > { %v5086_v25 = vmin.f32 %v5082_v17, 20.0 }
 0x890   : > { %v5090_v33 = vmul.f32 1.442695, %v5086_v25 }
 0x891   : > { %v5065_v18 = vpop.f32.mrf.mxu1  ;;  %v4976_v52 = vpop.f32.mrf.mxu0 }
 0x892   : > { %15393 = vpow2.f32 %v5090_v33  ;;  %v5074_v38 = vadd.f32 %v5065_v18, %v4980_v27  ;;  %v4982_v57 = vadd.f32 %v4976_v52, %v4881_v47  ;;  %v14464_v52 = vld [vmem:[%s16037_s18 + $0x118] sm:$0xff]  ;;  %v14463_v47 = vld [vmem:[%s16037_s18 + $0x110] sm:$0xff] }
 0x894   : > { %v5083_v26 = vadd.f32 %v15034_v3, %v5074_v38 }
 0x896   : > { %v5087_v32 = vmin.f32 %v5083_v26, 20.0 }
 0x898   : > { %v15394_v42 = vpop.eup %15393  ;;  %v5092_v46 = vmul.f32 1.442695, %v5087_v32 }
 0x899   : > { %v5098_v48 = vadd.f32 2.0, %v15394_v42  ;;  %v5068_v41 = vpop.f32.mrf.mxu1 }
 0x89a   : > { %15395 = vpow2.f32 %v5092_v46  ;;  %v5075_v39 = vadd.f32 %v5068_v41, %v4981_v44  ;;  %v14470_v44 = vld [vmem:[%s16022_s21 + $0xf8] sm:$0xff]  ;;  %v14471_v46 = vld [vmem:[%s16022_s21 + $0x100] sm:$0xff]  ;;  %v14473_v41 = vld [vmem:[%s16022_s21 + $0x110] sm:$0xff] }
 0x89b   : > { %v5102_v31 = vmul.f32 %v15394_v42, %v5098_v48  ;;  %v14469_v42 = vld [vmem:[%s16022_s21 + $0xf0] sm:$0xff]  ;;  %v14472_v48 = vld [vmem:[%s16022_s21 + $0x108] sm:$0xff] }
 0x89c   : > { %v5084_v43 = vadd.f32 %v15034_v3, %v5075_v39  ;;  %v14474_v39 = vld [vmem:[%s16022_s21 + $0x118] sm:$0xff] }
 0x89d   : > { %v5110_v51 = vadd.f32 2.0, %v5102_v31  ;;  %v5106_v8 = vmul.f32 %v5102_v31, %v5082_v17  ;;  %v14468_v31 = vld [vmem:[%s16037_s18 + $0x138] sm:$0xff] }
 0x89e   : > { %v5088_v49 = vmin.f32 %v5084_v43, 20.0  ;;  %5392 = vmatpush.bf16.msra.mxu1 %v14468_v31 }
 0x89f   : > { %15397 = vrcp.f32 %v5110_v51  ;;  %v14465_v51 = vld [vmem:[%s16037_s18 + $0x120] sm:$0xff] }
 0x8a0   : > { %v15396_v56 = vpop.eup %15395  ;;  %v5094_v37 = vmul.f32 1.442695, %v5088_v49  ;;  %v14489_v49 = vld [vmem:[%s16027_s9 + $0x570] sm:$0xff] }
 0x8a1   : > { %v5099_v55 = vadd.f32 2.0, %v15396_v56  ;;  %v5070_v58 = vpop.f32.mrf.mxu1  ;;  %5743 = vmatpush.bf16.msra.mxu3 %v14489_v49 }
 0x8a2   : > { %15399 = vpow2.f32 %v5094_v37  ;;  %v5076_v62 = vadd.f32 %v5070_v58, %v4982_v57  ;;  %v14481_v57 = vld [vmem:[%s16027_s9 + $0x530] sm:$0xff]  ;;  %v15035_v37 = vld [vmem:[%s16047_s20 + $0x4] ss:$0 sm:$0xff]  ;;  %v14462_v58 = vld [vmem:[%s16037_s18 + $0x108] sm:$0xff] }
 0x8a3   : > { %v5103_v63 = vmul.f32 %v15396_v56, %v5099_v55  ;;  %5816 = vmatpush.bf16.msrb.mxu0 %v14481_v57  ;;  %v14483_v57 = vld [vmem:[%s16027_s9 + $0x540] sm:$0xff] }
 0x8a4   : > { %v5085_v1 = vadd.f32 %v15034_v3, %v5076_v62  ;;  %v14480_v62 = vld [vmem:[%s16027_s9 + $0x528] sm:$0xff] }
 0x8a5   : > { %v5111_v4 = vadd.f32 2.0, %v5103_v63  ;;  %v15398_v61 = vpop.eup %15397  ;;  %v5107_v14 = vmul.f32 %v5103_v63, %v5083_v26 }
 0x8a6   : > { %v5089_v5 = vmin.f32 %v5085_v1, 20.0  ;;  %v5118_v12 = vmul.f32 %v15398_v61, %v5106_v8  ;;  %v14478_v8 = vld [vmem:[%s16027_s9 + $0x518] sm:$0xff] }
 0x8a7   : > { %15401 = vrcp.f32 %v5111_v4  ;;  %5817 = vmatpush.bf16.msrb.mxu0 %v14480_v62 }
 0x8a8   : > { %v15400_v7 = vpop.eup %15399  ;;  %v5096_v0 = vmul.f32 1.442695, %v5089_v5  ;;  %v5122_v16 = vpack.c.bf16 %v5118_v12, %v5118_v12  ;;  %v14479_v5 = vld [vmem:[%s16027_s9 + $0x520] sm:$0xff] }
 0x8a9   : > { %v5100_v9 = vadd.f32 2.0, %v15400_v7  ;;  %v16633_v12 = vld [vmem:[%s16032_s11 + $0x5] ss:$0 sm:$0xff] }
 0x8aa   : > { %15403 = vpow2.f32 %v5096_v0  ;;  %v5230_v11 = vunpack.c.l.b16 %v5122_v16 }
 0x8ab   : > { %v5104_v13 = vmul.f32 %v15400_v7, %v5100_v9  ;;  %5818 = vmatpush.bf16.msrb.mxu0 %v14479_v5 }
 0x8ad   : > { %v15402_v29 = vpop.eup %15401  ;;  %v5112_v21 = vadd.f32 2.0, %v5104_v13  ;;  %v5108_v18 = vmul.f32 %v5104_v13, %v5084_v43  ;;  %v14467_v43 = vld [vmem:[%s16037_s18 + $0x130] sm:$0xff] }
 0x8ae   : > { %v5119_v3 = vmul.f32 %v15402_v29, %v5107_v14  ;;  %5393 = vmatpush.bf16.msra.mxu1 %v14467_v43  ;;  %v14477_v13 = vld [vmem:[%s16027_s9 + $0x510] sm:$0xff] }
 0x8af   : > { %15405 = vrcp.f32 %v5112_v21  ;;  %5819 = vmatpush.bf16.msrb.mxu0 %v14478_v8  ;;  %v14488_v21 = vld [vmem:[%s16027_s9 + $0x568] sm:$0xff] }
 0x8b0   : > { %v15404_v60 = vpop.eup %15403  ;;  %v5123_v20 = vpack.c.bf16 %v5119_v3, %v5119_v3  ;;  %5744 = vmatpush.bf16.msra.mxu3 %v14488_v21 }
 0x8b1   : > { %v5101_v23 = vadd.f32 2.0, %v15404_v60 }
 0x8b2   : > { %v5231_v22 = vunpack.c.l.b16 %v5123_v20  ;;  %5394 = vmatpush.bf16.msra.mxu1 %v14466_v50  ;;  %v14476_v20 = vld [vmem:[%s16027_s9 + $0x508] sm:$0xff] }
 0x8b3   : > { %v5105_v25 = vmul.f32 %v15404_v60, %v5101_v23  ;;  %5820 = vmatpush.bf16.msrb.mxu0 %v14477_v13 }
 0x8b4   : > { %v5232_v27 = vpack.c.b16 %v5231_v22, %v5230_v11 }
 0x8b5   : > { %v5113_v17 = vadd.f32 2.0, %v5105_v25  ;;  %v15406_v33 = vpop.eup %15405  ;;  %v5109_v36 = vmul.f32 %v5105_v25, %v5085_v1  ;;  %v14461_v1 = vld [vmem:[%s16037_s18 + $0x100] sm:$0xff] }
 0x8b6   : > { %5290 = vmatmul.bf16.vlgmr.msra.gmra.mxu0 %v5232_v27  ;;  %v5120_v34 = vmul.f32 %v15406_v33, %v5108_v18  ;;  %5395 = vmatpush.bf16.msra.mxu1 %v14465_v51  ;;  %v14487_v25 = vld [vmem:[%s16027_s9 + $0x560] sm:$0xff] }
 0x8b7   : > { %15407 = vrcp.f32 %v5113_v17  ;;  %5821 = vmatpush.bf16.msrb.mxu0 %v14476_v20  ;;  %v14475_v27 = vld [vmem:[%s16027_s9 + $0x500] sm:$0xff]  ;;  %5745 = vmatpush.bf16.msra.mxu3 %v14487_v25 }
 0x8b8   : > { %v5124_v28 = vpack.c.bf16 %v5120_v34, %v5120_v34 }
 0x8ba   : > { %v5162_v30 = vunpack.c.l.b16 %v5124_v28  ;;  %5396 = vmatpush.bf16.msra.mxu1 %v14464_v52  ;;  %v14486_v28 = vld [vmem:[%s16027_s9 + $0x558] sm:$0xff] }
 0x8bb   : > { %5822 = vmatpush.bf16.msrb.mxu0 %v14475_v27  ;;  %5746 = vmatpush.bf16.msra.mxu3 %v14486_v28  ;;  %v14495_v27 = vld [vmem:[%s16027_s9 + $0x5a0] sm:$0xff] }
 0x8bd   : > { %v15408_v38 = vpop.eup %15407 }
 0x8be   : > { %v5121_v19 = vmul.f32 %v15408_v38, %v5109_v36  ;;  %5397 = vmatpush.bf16.msra.mxu1 %v14463_v47 }
 0x8c0   : > { %v5125_v26 = vpack.c.bf16 %v5121_v19, %v5121_v19 }
 0x8c2   : > { %v5163_v40 = vunpack.c.l.b16 %v5125_v26  ;;  %5398 = vmatpush.bf16.msra.mxu1 %v14462_v58 }
 0x8c4   : > { %v5164_v32 = vpack.c.b16 %v5163_v40, %v5162_v30 }
 0x8c6   : > { %5222 = vmatmul.bf16.vlgmr.msrb.gmra.mxu2 %v5164_v32  ;;  %5399 = vmatpush.bf16.msra.mxu1 %v14461_v1 }
 0x8d6   : > { %12275 = vmatmul.msk.bf16.vlgmr.msra.gmra.mxu2 %vm717_vm2, %v14469_v42  ;;  %v14485_v42 = vld [vmem:[%s16027_s9 + $0x550] sm:$0xff] }
 0x8d7   : > { %5747 = vmatpush.bf16.msra.mxu3 %v14485_v42 }
 0x8e6   : > { %12276 = vmatmul.msk.bf16.gmra.mxu2 %vm717_vm2, %v14470_v44 }
 0x8f6   : > { %12277 = vmatmul.msk.bf16.gmra.mxu2 %vm717_vm2, %v14471_v46 }
 0x906   : > { %12278 = vmatmul.msk.bf16.gmra.mxu2 %vm717_vm2, %v14472_v48 }
 0x916   : > { %12279 = vmatmul.msk.bf16.gmra.mxu2 %vm717_vm2, %v14473_v41 }
 0x926   : > { %12280 = vmatmul.msk.bf16.gmra.mxu2 %vm717_vm2, %v14474_v39  ;;  %v14484_v39 = vld [vmem:[%s16027_s9 + $0x548] sm:$0xff] }
 0x927   : > { %5748 = vmatpush.bf16.msra.mxu3 %v14484_v39 }
 0x92b   : > { %5749 = vmatpush.bf16.msra.mxu3 %v14483_v57 }
 0x933   : > { %v5291_v56 = vpop.f32.mrf.mxu0 }
 0x93b   : > { %v5293_v61 = vpop.f32.mrf.mxu0 }
 0x949   : > { %v5223_v55 = vpop.f32.mrf.mxu2 }
 0x94a   : > { %v5292_v59 = vadd.f32 %v5291_v56, %v5223_v55 }
 0x94c   : > { %v5301_v63 = vadd.f32 %v15035_v37, %v5292_v59 }
 0x94e   : > { %v5303_v4 = vmin.f32 %v5301_v63, 20.0 }
 0x950   : > { %v5305_v54 = vmul.f32 1.442695, %v5303_v4 }
 0x951   : > { %v5225_v6 = vpop.f32.mrf.mxu2 }
 0x952   : > { %15409 = vpow2.f32 %v5305_v54  ;;  %v5294_v7 = vadd.f32 %v5293_v61, %v5225_v6 }
 0x954   : > { %v5302_v0 = vadd.f32 %v15035_v37, %v5294_v7  ;;  %v14497_v7 = vld [vmem:[%s16027_s9 + $0x5b0] sm:$0xff] }
 0x956   : > { %v5304_v9 = vmin.f32 %v5302_v0, 20.0 }
 0x958   : > { %v15410_v14 = vpop.eup %15409  ;;  %v5307_v29 = vmul.f32 1.442695, %v5304_v9 }
 0x959   : > { %v5309_v16 = vadd.f32 2.0, %v15410_v14  ;;  %v5498_v3 = vpop.f32.mrf.mxu2 }
 0x95a   : > { %15411 = vpow2.f32 %v5307_v29  ;;  %v5499_v60 = vadd.f32 %v16633_v12, %v5498_v3 }
 0x95b   : > { %v5311_v11 = vmul.f32 %v15410_v14, %v5309_v16  ;;  %v14496_v16 = vld [vmem:[%s16027_s9 + $0x5a8] sm:$0xff] }
 0x95c   : > { %v5528_v23 = vmin.f32 %v5499_v60, 20.0 }
 0x95d   : > { %v5315_v33 = vadd.f32 2.0, %v5311_v11  ;;  %v5313_v31 = vmul.f32 %v5311_v11, %v5301_v63  ;;  %v14498_v63 = vld [vmem:[%s16027_s9 + $0x5b8] sm:$0xff] }
 0x95e   : > { %v5540_v22 = vmul.f32 1.442695, %v5528_v23  ;;  %5911 = vmatpush.bf16.msrb.mxu1 %v14498_v63  ;;  %v14491_v63 = vld [vmem:[%s16027_s9 + $0x580] sm:$0xff] }
 0x960   : > { %v15412_v17 = vpop.eup %15411  ;;  %15413 = vpow2.f32 %v5540_v22 }
 0x961   : > { %v5310_v18 = vadd.f32 2.0, %v15412_v17  ;;  %v5500_v34 = vpop.f32.mrf.mxu2  ;;  %15415 = vrcp.f32 %v5315_v33 }
 0x962   : > { %v5501_v36 = vadd.f32 %v16633_v12, %v5500_v34  ;;  %5912 = vmatpush.bf16.msrb.mxu1 %v14497_v7 }
 0x963   : > { %v5312_v38 = vmul.f32 %v15412_v17, %v5310_v18 }
 0x964   : > { %v5529_v19 = vmin.f32 %v5501_v36, 20.0 }
 0x965   : > { %v5316_v26 = vadd.f32 2.0, %v5312_v38  ;;  %v5314_v43 = vmul.f32 %v5312_v38, %v5302_v0 }
 0x966   : > { %v15414_v30 = vpop.eup %15413  ;;  %v5542_v40 = vmul.f32 1.442695, %v5529_v19  ;;  %5913 = vmatpush.bf16.msrb.mxu1 %v14496_v16  ;;  %v14506_v19 = vld [vmem:[%s16027_s9 + $0x5f8] sm:$0xff] }
 0x967   : > { %15417 = vrcp.f32 %v5316_v26  ;;  %v5564_v32 = vadd.f32 2.0, %v15414_v30  ;;  %v15416_v41 = vpop.eup %15415  ;;  %v14494_v26 = vld [vmem:[%s16027_s9 + $0x598] sm:$0xff]  ;;  %6005 = vmatpush.bf16.msrb.mxu3 %v14506_v19 }
 0x968   : > { %15419 = vpow2.f32 %v5542_v40  ;;  %v5319_v53 = vmul.f32 %v15416_v41, %v5313_v31  ;;  %v14505_v41 = vld [vmem:[%s16027_s9 + $0x5f0] sm:$0xff] }
 0x969   : > { %v5576_v44 = vmul.f32 %v15414_v30, %v5564_v32  ;;  %v5503_v46 = vpop.f32.mrf.mxu2 }
 0x96a   : > { %v16645_v48 = vadd.f32 %v16633_v12, %v5503_v46  ;;  %5914 = vmatpush.bf16.msrb.mxu1 %v14495_v27 }
 0x96b   : > { %v5600_v45 = vadd.f32 2.0, %v5576_v44  ;;  %v5588_v54 = vmul.f32 %v5576_v44, %v5499_v60  ;;  %6006 = vmatpush.bf16.msrb.mxu3 %v14505_v41 }
 0x96c   : > { %v5530_v50 = vmin.f32 %v16645_v48, 20.0 }
 0x96d   : > { %v15418_v51 = vpop.eup %15417  ;;  %15421 = vrcp.f32 %v5600_v45  ;;  %v14493_v45 = vld [vmem:[%s16027_s9 + $0x590] sm:$0xff] }
 0x96e   : > { %v15420_v52 = vpop.eup %15419  ;;  %v5320_v47 = vmul.f32 %v15418_v51, %v5314_v43  ;;  %v5544_v49 = vmul.f32 1.442695, %v5530_v50  ;;  %5915 = vmatpush.bf16.msrb.mxu1 %v14494_v26  ;;  %v14499_v26 = vld [vmem:[%s16027_s9 + $0x5c0] sm:$0xff] }
 0x96f   : > { %v5565_v56 = vadd.f32 2.0, %v15420_v52 }
 0x970   : > { %v5321_v37 = vpack.c.bf16 %v5320_v47, %v5319_v53  ;;  %15423 = vpow2.f32 %v5544_v49  ;;  %v14492_v47 = vld [vmem:[%s16027_s9 + $0x588] sm:$0xff] }
 0x971   : > { %v5577_v55 = vmul.f32 %v15420_v52, %v5565_v56  ;;  %v5505_v58 = vpop.f32.mrf.mxu2 }
 0x972   : > { %v5506_v59 = vadd.f32 %v16633_v12, %v5505_v58  ;;  %5400 = vmatmul.bf16.vlgmr.msra.gmra.mxu1 %v5321_v37 }
 0x973   : > { %v5601_v62 = vadd.f32 2.0, %v5577_v55  ;;  %v15422_v4 = vpop.eup %15421  ;;  %v5589_v13 = vmul.f32 %v5577_v55, %v5501_v36  ;;  %5916 = vmatpush.bf16.msrb.mxu1 %v14493_v45 }
 0x974   : > { %v5531_v1 = vmin.f32 %v5506_v59, 20.0  ;;  %v5624_v8 = vmul.f32 %v15422_v4, %v5588_v54 }
 0x975   : > { %15425 = vrcp.f32 %v5601_v62  ;;  %v14503_v62 = vld [vmem:[%s16027_s9 + $0x5e0] sm:$0xff] }
 0x976   : > { %v15424_v5 = vpop.eup %15423  ;;  %v5546_v61 = vmul.f32 1.442695, %v5531_v1  ;;  %v5636_v3 = vpack.c.bf16 %v5624_v8, %v5624_v8  ;;  %v14502_v8 = vld [vmem:[%s16027_s9 + $0x5d8] sm:$0xff] }
 0x977   : > { %v5566_v6 = vadd.f32 2.0, %v15424_v5  ;;  %5917 = vmatpush.bf16.msrb.mxu1 %v14492_v47 }
 0x978   : > { %15427 = vpow2.f32 %v5546_v61  ;;  %v5763_v17 = vunpack.c.l.b16 %v5636_v3  ;;  %v14501_v3 = vld [vmem:[%s16027_s9 + $0x5d0] sm:$0xff] }
 0x979   : > { %v5578_v0 = vmul.f32 %v15424_v5, %v5566_v6  ;;  %v5508_v9 = vpop.f32.mrf.mxu2 }
 0x97a   : > { %v16654_v14 = vadd.f32 %v16633_v12, %v5508_v9 }
 0x97b   : > { %v15426_v29 = vpop.eup %15425  ;;  %v5602_v21 = vadd.f32 2.0, %v5578_v0  ;;  %v5590_v42 = vmul.f32 %v5578_v0, %v16645_v48  ;;  %v14504_v48 = vld [vmem:[%s16027_s9 + $0x5e8] sm:$0xff]  ;;  %5918 = vmatpush.bf16.msrb.mxu1 %v14491_v63 }
 0x97c   : > { %v5625_v20 = vmul.f32 %v15426_v29, %v5589_v13  ;;  %v5532_v60 = vmin.f32 %v16654_v14, 20.0  ;;  %6007 = vmatpush.bf16.msrb.mxu3 %v14504_v48 }
 0x97d   : > { %15429 = vrcp.f32 %v5602_v21 }
 0x97e   : > { %v15428_v23 = vpop.eup %15427  ;;  %v5637_v11 = vpack.c.bf16 %v5625_v20, %v5625_v20  ;;  %v5548_v22 = vmul.f32 1.442695, %v5532_v60 }
 0x97f   : > { %v5567_v25 = vadd.f32 2.0, %v15428_v23 }
 0x980   : > { %v5764_v33 = vunpack.c.l.b16 %v5637_v11  ;;  %15431 = vpow2.f32 %v5548_v22  ;;  %6008 = vmatpush.bf16.msrb.mxu3 %v14503_v62 }
 0x981   : > { %v5579_v18 = vmul.f32 %v15428_v23, %v5567_v25  ;;  %v5510_v34 = vpop.f32.mrf.mxu2 }
 0x982   : > { %v5765_v36 = vpack.c.b16 %v5764_v33, %v5763_v17  ;;  %v16660_v38 = vadd.f32 %v16633_v12, %v5510_v34  ;;  %v14500_v17 = vld [vmem:[%s16027_s9 + $0x5c8] sm:$0xff] }
 0x983   : > { %v5603_v28 = vadd.f32 2.0, %v5579_v18  ;;  %v15430_v40 = vpop.eup %15429  ;;  %v5591_v50 = vmul.f32 %v5579_v18, %v5506_v59 }
 0x984   : > { %v5533_v30 = vmin.f32 %v16660_v38, 20.0  ;;  %5823 = vmatmul.bf16.vlgmr.msrb.gmra.mxu0 %v5765_v36  ;;  %v5626_v39 = vmul.f32 %v15430_v40, %v5590_v42  ;;  %6009 = vmatpush.bf16.msrb.mxu3 %v14502_v8 }
 0x985   : > { %15433 = vrcp.f32 %v5603_v28 }
 0x986   : > { %v15432_v32 = vpop.eup %15431  ;;  %v5550_v44 = vmul.f32 1.442695, %v5533_v30  ;;  %v5638_v49 = vpack.c.bf16 %v5626_v39, %v5626_v39 }
 0x987   : > { %v5568_v46 = vadd.f32 2.0, %v15432_v32 }
 0x988   : > { %15435 = vpow2.f32 %v5550_v44  ;;  %v5686_v1 = vunpack.c.l.b16 %v5638_v49  ;;  %6010 = vmatpush.bf16.msrb.mxu3 %v14501_v3 }
 0x989   : > { %v5580_v31 = vmul.f32 %v15432_v32, %v5568_v46  ;;  %v5513_v43 = vpop.f32.mrf.mxu2 }
 0x98a   : > { %v16669_v51 = vadd.f32 %v16633_v12, %v5513_v43 }
 0x98b   : > { %v15434_v52 = vpop.eup %15433  ;;  %v5604_v53 = vadd.f32 2.0, %v5580_v31  ;;  %v5592_v29 = vmul.f32 %v5580_v31, %v16654_v14 }
 0x98c   : > { %v5627_v56 = vmul.f32 %v15434_v52, %v5591_v50  ;;  %v5534_v57 = vmin.f32 %v16669_v51, 20.0  ;;  %6011 = vmatpush.bf16.msrb.mxu3 %v14500_v17 }
 0x98d   : > { %15437 = vrcp.f32 %v5604_v53 }
 0x98e   : > { %v15436_v37 = vpop.eup %15435  ;;  %v5639_v55 = vpack.c.bf16 %v5627_v56, %v5627_v56  ;;  %v5552_v58 = vmul.f32 1.442695, %v5534_v57 }
 0x98f   : > { %v5569_v59 = vadd.f32 2.0, %v15436_v37 }
 0x990   : > { %v5687_v4 = vunpack.c.l.b16 %v5639_v55  ;;  %15439 = vpow2.f32 %v5552_v58  ;;  %6012 = vmatpush.bf16.msrb.mxu3 %v14499_v26 }
 0x991   : > { %v5581_v5 = vmul.f32 %v15436_v37, %v5569_v59  ;;  %v5515_v54 = vpop.f32.mrf.mxu2 }
 0x992   : > { %v5690_v61 = vpack.c.b16 %v5687_v4, %v5686_v1  ;;  %v5516_v6 = vadd.f32 %v16633_v12, %v5515_v54 }
 0x993   : > { %v5605_v7 = vadd.f32 2.0, %v5581_v5  ;;  %v15438_v9 = vpop.eup %15437  ;;  %v5593_v11 = vmul.f32 %v5581_v5, %v16660_v38 }
 0x994   : > { %v5535_v0 = vmin.f32 %v5516_v6, 20.0  ;;  %5750 = vmatmul.bf16.vlgmr.msra.gmra.mxu3 %v5690_v61  ;;  %5828 = vmatmul.bf16.gmra.mxu0 %v5690_v61  ;;  %v5628_v20 = vmul.f32 %v15438_v9, %v5592_v29 }
 0x995   : > { %15441 = vrcp.f32 %v5605_v7 }
 0x996   : > { %v15440_v13 = vpop.eup %15439  ;;  %v5554_v21 = vmul.f32 1.442695, %v5535_v0  ;;  %v5640_v33 = vpack.c.bf16 %v5628_v20, %v5628_v20 }
 0x997   : > { %v5570_v16 = vadd.f32 2.0, %v15440_v13 }
 0x998   : > { %15443 = vpow2.f32 %v5554_v21  ;;  %v5688_v30 = vunpack.c.l.b16 %v5640_v33 }
 0x999   : > { %v5582_v60 = vmul.f32 %v15440_v13, %v5570_v16  ;;  %v5518_v23 = vpop.f32.mrf.mxu2 }
 0x99a   : > { %v5519_v22 = vadd.f32 %v16633_v12, %v5518_v23 }
 0x99b   : > { %v15442_v25 = vpop.eup %15441  ;;  %v5606_v27 = vadd.f32 2.0, %v5582_v60  ;;  %v5594_v31 = vmul.f32 %v5582_v60, %v16669_v51 }
 0x99c   : > { %v5629_v18 = vmul.f32 %v15442_v25, %v5593_v11  ;;  %v5536_v34 = vmin.f32 %v5519_v22, 20.0 }
 0x99d   : > { %15445 = vrcp.f32 %v5606_v27 }
 0x99e   : > { %v15444_v14 = vpop.eup %15443  ;;  %v5641_v36 = vpack.c.bf16 %v5629_v18, %v5629_v18  ;;  %v5556_v28 = vmul.f32 1.442695, %v5536_v34 }
 0x99f   : > { %v5571_v19 = vadd.f32 2.0, %v15444_v14 }
 0x9a0   : > { %15447 = vpow2.f32 %v5556_v28  ;;  %v5689_v40 = vunpack.c.l.b16 %v5641_v36 }
 0x9a1   : > { %v5583_v32 = vmul.f32 %v15444_v14, %v5571_v19  ;;  %v5520_v38 = vpop.f32.mrf.mxu2 }
 0x9a2   : > { %v5521_v42 = vadd.f32 %v16633_v12, %v5520_v38  ;;  %v5691_v44 = vpack.c.b16 %v5689_v40, %v5688_v30 }
 0x9a3   : > { %v5607_v46 = vadd.f32 2.0, %v5583_v32  ;;  %v15446_v45 = vpop.eup %15445  ;;  %v5595_v47 = vmul.f32 %v5583_v32, %v5516_v6 }
 0x9a4   : > { %v5537_v41 = vmin.f32 %v5521_v42, 20.0  ;;  %5755 = vmatmul.bf16.gmra.mxu3 %v5691_v44  ;;  %v5630_v52 = vmul.f32 %v15446_v45, %v5594_v31 }
 0x9a5   : > { %15449 = vrcp.f32 %v5607_v46 }
 0x9a6   : > { %v15448_v39 = vpop.eup %15447  ;;  %v5558_v43 = vmul.f32 1.442695, %v5537_v41  ;;  %v5642_v37 = vpack.c.bf16 %v5630_v52, %v5630_v52  ;;  %v15037_v41 = vld [vmem:[%s16052_s3 + $0x4] ss:$0 sm:$0xff] }
 0x9a7   : > { %v5572_v50 = vadd.f32 2.0, %v15448_v39 }
 0x9a8   : > { %15451 = vpow2.f32 %v5558_v43  ;;  %v5855_v51 = vunpack.c.l.b16 %v5642_v37 }
 0x9a9   : > { %v5584_v53 = vmul.f32 %v15448_v39, %v5572_v50  ;;  %v5523_v48 = vpop.f32.mrf.mxu2 }
 0x9aa   : > { %v5524_v49 = vadd.f32 %v16633_v12, %v5523_v48 }
 0x9ab   : > { %v15450_v56 = vpop.eup %15449  ;;  %v5608_v57 = vadd.f32 2.0, %v5584_v53  ;;  %v5596_v13 = vmul.f32 %v5584_v53, %v5519_v22 }
 0x9ac   : > { %v5631_v55 = vmul.f32 %v15450_v56, %v5595_v47  ;;  %v5538_v58 = vmin.f32 %v5524_v49, 20.0 }
 0x9ad   : > { %15453 = vrcp.f32 %v5608_v57 }
 0x9ae   : > { %v15452_v59 = vpop.eup %15451  ;;  %v5643_v62 = vpack.c.bf16 %v5631_v55, %v5631_v55  ;;  %v5560_v63 = vmul.f32 1.442695, %v5538_v58 }
 0x9af   : > { %v5573_v1 = vadd.f32 2.0, %v15452_v59 }
 0x9b0   : > { %v5856_v4 = vunpack.c.l.b16 %v5643_v62  ;;  %15455 = vpow2.f32 %v5560_v63  ;;  %v14514_v62 = vld [vmem:[%s16005_s28 + $0x2b8] sm:$0xff] }
 0x9b1   : > { %v5585_v5 = vmul.f32 %v15452_v59, %v5573_v1  ;;  %v5525_v54 = vpop.f32.mrf.mxu2  ;;  %6233 = vmatpush.bf16.msra.mxu1 %v14514_v62 }
 0x9b2   : > { %v5859_v61 = vpack.c.b16 %v5856_v4, %v5855_v51  ;;  %v5526_v6 = vadd.f32 %v16633_v12, %v5525_v54  ;;  %v14513_v51 = vld [vmem:[%s16005_s28 + $0x2b0] sm:$0xff]  ;;  %v14512_v4 = vld [vmem:[%s16005_s28 + $0x2a8] sm:$0xff] }
 0x9b3   : > { %v5609_v7 = vadd.f32 2.0, %v5585_v5  ;;  %v15454_v0 = vpop.eup %15453  ;;  %v5597_v20 = vmul.f32 %v5585_v5, %v5521_v42 }
 0x9b4   : > { %v5539_v8 = vmin.f32 %v5526_v6, 20.0  ;;  %5919 = vmatmul.bf16.vlgmr.msrb.gmra.mxu1 %v5859_v61  ;;  %v5632_v16 = vmul.f32 %v15454_v0, %v5596_v13  ;;  %v14511_v61 = vld [vmem:[%s16005_s28 + $0x2a0] sm:$0xff] }
 0x9b5   : > { %15457 = vrcp.f32 %v5609_v7  ;;  %6234 = vmatpush.bf16.msra.mxu1 %v14513_v51  ;;  %v14510_v7 = vld [vmem:[%s16005_s28 + $0x298] sm:$0xff]  ;;  %v15038_v13 = vld [vmem:[%s16042_s19 + $0x5] ss:$0 sm:$0xff] }
 0x9b6   : > { %v15456_v9 = vpop.eup %15455  ;;  %v5562_v29 = vmul.f32 1.442695, %v5539_v8  ;;  %v5644_v11 = vpack.c.bf16 %v5632_v16, %v5632_v16  ;;  %v14521_v16 = vld [vmem:[%s16005_s28 + $0x2f0] sm:$0xff] }
 0x9b7   : > { %v5574_v21 = vadd.f32 2.0, %v15456_v9 }
 0x9b8   : > { %15459 = vpow2.f32 %v5562_v29  ;;  %v5857_v33 = vunpack.c.l.b16 %v5644_v11  ;;  %v14508_v11 = vld [vmem:[%s16005_s28 + $0x288] sm:$0xff] }
 0x9b9   : > { %v5586_v3 = vmul.f32 %v15456_v9, %v5574_v21  ;;  %6235 = vmatpush.bf16.msra.mxu1 %v14512_v4 }
 0x9bb   : > { %v15458_v60 = vpop.eup %15457  ;;  %v5610_v23 = vadd.f32 2.0, %v5586_v3  ;;  %v5598_v28 = vmul.f32 %v5586_v3, %v5524_v49  ;;  %v14509_v3 = vld [vmem:[%s16005_s28 + $0x290] sm:$0xff] }
 0x9bc   : > { %v5633_v25 = vmul.f32 %v15458_v60, %v5597_v20 }
 0x9bd   : > { %15461 = vrcp.f32 %v5610_v23  ;;  %6236 = vmatpush.bf16.msra.mxu1 %v14511_v61  ;;  %v14520_v23 = vld [vmem:[%s16005_s28 + $0x2e8] sm:$0xff] }
 0x9be   : > { %v15460_v27 = vpop.eup %15459  ;;  %v5645_v17 = vpack.c.bf16 %v5633_v25, %v5633_v25 }
 0x9bf   : > { %v5575_v12 = vadd.f32 2.0, %v15460_v27 }
 0x9c0   : > { %v5858_v18 = vunpack.c.l.b16 %v5645_v17 }
 0x9c1   : > { %v5587_v34 = vmul.f32 %v15460_v27, %v5575_v12  ;;  %6237 = vmatpush.bf16.msra.mxu1 %v14510_v7 }
 0x9c2   : > { %v5860_v14 = vpack.c.b16 %v5858_v18, %v5857_v33  ;;  %v14519_v18 = vld [vmem:[%s16005_s28 + $0x2e0] sm:$0xff] }
 0x9c3   : > { %v5611_v36 = vadd.f32 2.0, %v5587_v34  ;;  %v15462_v22 = vpop.eup %15461  ;;  %v5599_v26 = vmul.f32 %v5587_v34, %v5526_v6  ;;  %v14522_v6 = vld [vmem:[%s16005_s28 + $0x2f8] sm:$0xff]  ;;  %v14507_v34 = vld [vmem:[%s16005_s28 + $0x280] sm:$0xff] }
 0x9c4   : > { %5924 = vmatmul.bf16.gmra.mxu1 %v5860_v14  ;;  %6013 = vmatmul.bf16.vlgmr.msrb.gmra.mxu3 %v5860_v14  ;;  %v5634_v19 = vmul.f32 %v15462_v22, %v5598_v28 }
 0x9c5   : > { %15463 = vrcp.f32 %v5611_v36  ;;  %6165 = vmatpush.bf16.msra.mxu0 %v14522_v6  ;;  %6238 = vmatpush.bf16.msra.mxu1 %v14509_v3 }
 0x9c6   : > { %v5646_v40 = vpack.c.bf16 %v5634_v19, %v5634_v19  ;;  %v14518_v19 = vld [vmem:[%s16005_s28 + $0x2d8] sm:$0xff] }
 0x9c8   : > { %v5953_v42 = vunpack.c.l.b16 %v5646_v40 }
 0x9c9   : > { %6166 = vmatpush.bf16.msra.mxu0 %v14521_v16  ;;  %6239 = vmatpush.bf16.msra.mxu1 %v14508_v11 }
 0x9cb   : > { %v15464_v30 = vpop.eup %15463 }
 0x9cc   : > { %v5635_v32 = vmul.f32 %v15464_v30, %v5599_v26 }
 0x9cd   : > { %6167 = vmatpush.bf16.msra.mxu0 %v14520_v23  ;;  %6240 = vmatpush.bf16.msra.mxu1 %v14507_v34 }
 0x9ce   : > { %v5647_v38 = vpack.c.bf16 %v5635_v32, %v5635_v32 }
 0x9d0   : > { %v5954_v44 = vunpack.c.l.b16 %v5647_v38 }
 0x9d1   : > { %6168 = vmatpush.bf16.msra.mxu0 %v14519_v18 }
 0x9d2   : > { %v5955_v46 = vpack.c.b16 %v5954_v44, %v5953_v42 }
 0x9d4   : > { %6018 = vmatmul.bf16.gmra.mxu3 %v5955_v46  ;;  %v14517_v46 = vld [vmem:[%s16005_s28 + $0x2d0] sm:$0xff] }
 0x9d5   : > { %6169 = vmatpush.bf16.msra.mxu0 %v14518_v19 }
 0x9d9   : > { %6170 = vmatpush.bf16.msra.mxu0 %v14517_v46  ;;  %v14535_v46 = vld [vmem:[%s16022_s21 + $0x140] sm:$0xff] }
 0x9ef   : > { %v5401_v45 = vpop.f32.mrf.mxu1 }
 0x9f0   : > { %v5402_v39 = vadd.f32 %v15037_v41, %v5401_v45 }
 0x9f2   : > { %v5406_v31 = vmax.f32 %v5402_v39, -1.0 }
 0x9f4   : > { %v5408_v43 = vmin.f32 %v5406_v31, 0.9921875 }
 0x9f6   : > { %v5410_v50 = vmul.f32 128.0, %v5408_v43 }
 0x9f7   : > { %v16693_v63 = vpop.f32.mrf.mxu1 }
 0x9f8   : > { %v14849_v52 = vcvt.f32.s32 %v5410_v50  ;;  %v14847_v48 = vand.u32 2147483647, %v5410_v50  ;;  %v14852_v49 = vand.u32 2147483648, %v5410_v50 }
 0x9fa   : > { %v14850_v53 = vcvt.s32.f32 %v14849_v52  ;;  %vm14848_vm7 = vcmp.lt.f32.partialorder %v14847_v48, 8388608.0  ;;  %v14516_v52 = vld [vmem:[%s16005_s28 + $0x2c8] sm:$0xff] }
 0x9fb   : > { %6171 = vmatpush.bf16.msra.mxu0 %v14516_v52  ;;  %v14526_v52 = vld [vmem:[%s16037_s18 + $0x158] sm:$0xff] }
 0x9fc   : > { %v14851_v47 = vand.u32 2147483647, %v14850_v53 }
 0x9fe   : > { %v14853_v56 = vor.u32 %v14852_v49, %v14851_v47 }
 0xa00   : > { %v14854_v57 = vsel %vm14848_vm7, %v14853_v56, %v5410_v50 }
 0xa01   : > { %v5414_v37 = vmul.f32 0.0078125, %v14854_v57  ;;  %v5824_v5 = vpop.f32.mrf.mxu0 }
 0xa03   : > { %v16690_v55 = vadd.f32 %v5414_v37, %v16581_v15 }
 0xa09   : > { %v5826_v0 = vpop.f32.mrf.mxu0 }
 0xa11   : > { %v5829_v36 = vpop.f32.mrf.mxu0 }
 0xa17   : > { %v5751_v58 = vpop.f32.mrf.mxu3 }
 0xa18   : > { %v5825_v8 = vadd.f32 %v5824_v5, %v5751_v58  ;;  %v14515_v58 = vld [vmem:[%s16005_s28 + $0x2c0] sm:$0xff]  ;;  %v12632_v5 = vld [vmem:[%s16017_s23 + $0x18] sm:$0xf] }
 0xa19   : > { %v5831_v31 = vpop.f32.mrf.mxu0  ;;  %6172 = vmatpush.bf16.msra.mxu0 %v14515_v58  ;;  %v14524_v58 = vld [vmem:[%s16037_s18 + $0x148] sm:$0xff] }
 0xa1f   : > { %v5753_v59 = vpop.f32.mrf.mxu3 }
 0xa20   : > { %v5827_v25 = vadd.f32 %v5826_v0, %v5753_v59 }
 0xa27   : > { %v5756_v1 = vpop.f32.mrf.mxu3 }
 0xa28   : > { %v5830_v26 = vadd.f32 %v5829_v36, %v5756_v1 }
 0xa2f   : > { %v5758_v15 = vpop.f32.mrf.mxu3 }
 0xa30   : > { %v5832_v53 = vadd.f32 %v5831_v31, %v5758_v15  ;;  %v6438_v15 = vsel %vm736_vm1, %v12632_v5, 0  ;;  %v14529_v31 = vld [vmem:[%s16037_s18 + $0x170] sm:$0xff]  ;;  %v14541_v5 = vld [vmem:[%s16027_s9 + $0x620] sm:$0xff] }
 0xa31   : > { %v5920_v54 = vpop.f32.mrf.mxu1  ;;  %6447 = vmatpush.bf16.msrb.mxu0 %v6438_v15 }
 0xa32   : > { %v5930_v9 = vadd.f32 %v5920_v54, %v5825_v8 }
 0xa39   : > { %v5922_v29 = vpop.f32.mrf.mxu1 }
 0xa3a   : > { %v5931_v17 = vadd.f32 %v5922_v29, %v5827_v25 }
 0xa41   : > { %v5925_v22 = vpop.f32.mrf.mxu1 }
 0xa42   : > { %v5932_v32 = vadd.f32 %v5925_v22, %v5830_v26 }
 0xa47   : > { %v6014_v21 = vpop.f32.mrf.mxu3 }
 0xa48   : > { %v6024_v20 = vadd.f32 %v6014_v21, %v5930_v9 }
 0xa49   : > { %v5927_v50 = vpop.f32.mrf.mxu1 }
 0xa4a   : > { %v6033_v60 = vadd.f32 %v15038_v13, %v6024_v20  ;;  %v5933_v49 = vadd.f32 %v5927_v50, %v5832_v53  ;;  %v14527_v50 = vld [vmem:[%s16037_s18 + $0x160] sm:$0xff]  ;;  %v14544_v53 = vld [vmem:[%s16027_s9 + $0x638] sm:$0xff] }
 0xa4b   : > { %6766 = vmatpush.bf16.msrb.mxu1 %v14544_v53 }
 0xa4c   : > { %v6037_v27 = vmin.f32 %v6033_v60, 20.0 }
 0xa4e   : > { %v6041_v12 = vmul.f32 1.442695, %v6037_v27 }
 0xa4f   : > { %v6016_v33 = vpop.f32.mrf.mxu3 }
 0xa50   : > { %15465 = vpow2.f32 %v6041_v12  ;;  %v6025_v14 = vadd.f32 %v6016_v33, %v5931_v17 }
 0xa52   : > { %v6034_v28 = vadd.f32 %v15038_v13, %v6025_v14 }
 0xa54   : > { %v6038_v30 = vmin.f32 %v6034_v28, 20.0 }
 0xa56   : > { %v15466_v40 = vpop.eup %15465  ;;  %v6043_v38 = vmul.f32 1.442695, %v6038_v30 }
 0xa57   : > { %v6049_v42 = vadd.f32 2.0, %v15466_v40  ;;  %v6019_v44 = vpop.f32.mrf.mxu3 }
 0xa58   : > { %15467 = vpow2.f32 %v6043_v38  ;;  %v6026_v41 = vadd.f32 %v6019_v44, %v5932_v32  ;;  %v14531_v32 = vld [vmem:[%s16022_s21 + $0x120] sm:$0xff]  ;;  %v14532_v38 = vld [vmem:[%s16022_s21 + $0x128] sm:$0xff]  ;;  %v14534_v44 = vld [vmem:[%s16022_s21 + $0x138] sm:$0xff] }
 0xa59   : > { %v6053_v45 = vmul.f32 %v15466_v40, %v6049_v42  ;;  %v14533_v42 = vld [vmem:[%s16022_s21 + $0x130] sm:$0xff] }
 0xa5a   : > { %v6035_v39 = vadd.f32 %v15038_v13, %v6026_v41  ;;  %v14552_v41 = vld [vmem:[%s16027_s9 + $0x678] sm:$0xff] }
 0xa5b   : > { %v6061_v43 = vadd.f32 2.0, %v6053_v45  ;;  %v6057_v6 = vmul.f32 %v6053_v45, %v6033_v60  ;;  %6693 = vmatpush.bf16.msrb.mxu2 %v14552_v41  ;;  %v14536_v45 = vld [vmem:[%s16022_s21 + $0x148] sm:$0xff] }
 0xa5c   : > { %v6039_v48 = vmin.f32 %v6035_v39, 20.0 }
 0xa5d   : > { %15469 = vrcp.f32 %v6061_v43  ;;  %v14528_v43 = vld [vmem:[%s16037_s18 + $0x168] sm:$0xff] }
 0xa5e   : > { %v15468_v47 = vpop.eup %15467  ;;  %v6045_v56 = vmul.f32 1.442695, %v6039_v48  ;;  %v14525_v48 = vld [vmem:[%s16037_s18 + $0x150] sm:$0xff] }
 0xa5f   : > { %v6050_v57 = vadd.f32 2.0, %v15468_v47  ;;  %v6021_v37 = vpop.f32.mrf.mxu3 }
 0xa60   : > { %15471 = vpow2.f32 %v6045_v56  ;;  %v6027_v59 = vadd.f32 %v6021_v37, %v5933_v49  ;;  %v14543_v56 = vld [vmem:[%s16027_s9 + $0x630] sm:$0xff] }
 0xa61   : > { %v6054_v62 = vmul.f32 %v15468_v47, %v6050_v57  ;;  %v14551_v47 = vld [vmem:[%s16027_s9 + $0x670] sm:$0xff]  ;;  %v15039_v57 = vld [vmem:[%s16047_s20 + $0x5] ss:$0 sm:$0xff]  ;;  %6767 = vmatpush.bf16.msrb.mxu1 %v14543_v56 }
 0xa62   : > { %v6036_v1 = vadd.f32 %v15038_v13, %v6027_v59  ;;  %6694 = vmatpush.bf16.msrb.mxu2 %v14551_v47 }
 0xa63   : > { %v6062_v51 = vadd.f32 2.0, %v6054_v62  ;;  %v15470_v54 = vpop.eup %15469  ;;  %v6058_v29 = vmul.f32 %v6054_v62, %v6034_v28  ;;  %v14542_v62 = vld [vmem:[%s16027_s9 + $0x628] sm:$0xff] }
 0xa64   : > { %v6040_v4 = vmin.f32 %v6036_v1, 20.0  ;;  %v6069_v0 = vmul.f32 %v15470_v54, %v6057_v6 }
 0xa65   : > { %15473 = vrcp.f32 %v6062_v51  ;;  %6768 = vmatpush.bf16.msrb.mxu1 %v14542_v62  ;;  %v14523_v51 = vld [vmem:[%s16037_s18 + $0x140] sm:$0xff] }
 0xa66   : > { %v15472_v61 = vpop.eup %15471  ;;  %v6047_v7 = vmul.f32 1.442695, %v6040_v4  ;;  %v6073_v3 = vpack.c.bf16 %v6069_v0, %v6069_v0 }
 0xa67   : > { %v6051_v8 = vadd.f32 2.0, %v15472_v61 }
 0xa68   : > { %15475 = vpow2.f32 %v6047_v7  ;;  %v6181_v25 = vunpack.c.l.b16 %v6073_v3  ;;  %v14540_v7 = vld [vmem:[%s16027_s9 + $0x618] sm:$0xff]  ;;  %v14550_v3 = vld [vmem:[%s16027_s9 + $0x668] sm:$0xff] }
 0xa69   : > { %v6055_v9 = vmul.f32 %v15472_v61, %v6051_v8  ;;  %6769 = vmatpush.bf16.msrb.mxu1 %v14541_v5  ;;  %6695 = vmatpush.bf16.msrb.mxu2 %v14550_v3 }
 0xa6b   : > { %v15474_v21 = vpop.eup %15473  ;;  %v6063_v16 = vadd.f32 2.0, %v6055_v9  ;;  %v6059_v18 = vmul.f32 %v6055_v9, %v6035_v39  ;;  %v14530_v39 = vld [vmem:[%s16037_s18 + $0x178] sm:$0xff]  ;;  %v16742_v9 = vld [vmem:[%s16032_s11 + $0x6] ss:$0 sm:$0xff] }
 0xa6c   : > { %v6070_v13 = vmul.f32 %v15474_v21, %v6058_v29  ;;  %6343 = vmatpush.bf16.msra.mxu3 %v14530_v39  ;;  %v14539_v29 = vld [vmem:[%s16027_s9 + $0x610] sm:$0xff]  ;;  %v14546_v39 = vld [vmem:[%s16027_s9 + $0x648] sm:$0xff] }
 0xa6d   : > { %15477 = vrcp.f32 %v6063_v16  ;;  %6770 = vmatpush.bf16.msrb.mxu1 %v14540_v7  ;;  %v14559_v7 = vld [vmem:[%s16027_s9 + $0x6b0] sm:$0xff] }
 0xa6e   : > { %v15476_v20 = vpop.eup %15475  ;;  %v6074_v23 = vpack.c.bf16 %v6070_v13, %v6070_v13 }
 0xa6f   : > { %v6052_v11 = vadd.f32 2.0, %v15476_v20 }
 0xa70   : > { %v6182_v27 = vunpack.c.l.b16 %v6074_v23  ;;  %6344 = vmatpush.bf16.msra.mxu3 %v14529_v31 }
 0xa71   : > { %v6056_v17 = vmul.f32 %v15476_v20, %v6052_v11  ;;  %6771 = vmatpush.bf16.msrb.mxu1 %v14539_v29  ;;  %v14538_v11 = vld [vmem:[%s16027_s9 + $0x608] sm:$0xff] }
 0xa72   : > { %v6183_v12 = vpack.c.b16 %v6182_v27, %v6181_v25 }
 0xa73   : > { %v6064_v60 = vadd.f32 2.0, %v6056_v17  ;;  %v15478_v33 = vpop.eup %15477  ;;  %v6060_v14 = vmul.f32 %v6056_v17, %v6036_v1 }
 0xa74   : > { %6241 = vmatmul.bf16.vlgmr.msra.gmra.mxu1 %v6183_v12  ;;  %v6071_v34 = vmul.f32 %v15478_v33, %v6059_v18  ;;  %6345 = vmatpush.bf16.msra.mxu3 %v14528_v43  ;;  %v14549_v12 = vld [vmem:[%s16027_s9 + $0x660] sm:$0xff] }
 0xa75   : > { %15479 = vrcp.f32 %v6064_v60  ;;  %6772 = vmatpush.bf16.msrb.mxu1 %v14538_v11  ;;  %v14537_v60 = vld [vmem:[%s16027_s9 + $0x600] sm:$0xff]  ;;  %6696 = vmatpush.bf16.msrb.mxu2 %v14549_v12 }
 0xa76   : > { %v6075_v22 = vpack.c.bf16 %v6071_v34, %v6071_v34 }
 0xa78   : > { %v6113_v26 = vunpack.c.l.b16 %v6075_v22  ;;  %6346 = vmatpush.bf16.msra.mxu3 %v14527_v50 }
 0xa79   : > { %6773 = vmatpush.bf16.msrb.mxu1 %v14537_v60 }
 0xa7b   : > { %v15480_v36 = vpop.eup %15479 }
 0xa7c   : > { %v6072_v28 = vmul.f32 %v15480_v36, %v6060_v14  ;;  %6347 = vmatpush.bf16.msra.mxu3 %v14526_v52 }
 0xa7e   : > { %v6076_v19 = vpack.c.bf16 %v6072_v28, %v6072_v28  ;;  %v14548_v28 = vld [vmem:[%s16027_s9 + $0x658] sm:$0xff] }
 0xa7f   : > { %6697 = vmatpush.bf16.msrb.mxu2 %v14548_v28 }
 0xa80   : > { %v6114_v30 = vunpack.c.l.b16 %v6076_v19  ;;  %6348 = vmatpush.bf16.msra.mxu3 %v14525_v48 }
 0xa82   : > { %v6115_v40 = vpack.c.b16 %v6114_v30, %v6113_v26 }
 0xa84   : > { %6173 = vmatmul.bf16.vlgmr.msra.gmra.mxu0 %v6115_v40  ;;  %6349 = vmatpush.bf16.msra.mxu3 %v14524_v58 }
 0xa88   : > { %6350 = vmatpush.bf16.msra.mxu3 %v14523_v51  ;;  %v14560_v51 = vld [vmem:[%s16027_s9 + $0x6b8] sm:$0xff] }
 0xa8c   : > { %6862 = vmatpush.bf16.msrb.mxu3 %v14560_v51  ;;  %v14565_v51 = vld [vmem:[%s16027_s9 + $0x6e0] sm:$0xff] }
 0xa90   : > { %6863 = vmatpush.bf16.msrb.mxu3 %v14559_v7 }
 0xa94   : > { %12658 = vmatmul.msk.bf16.vlgmr.msrb.gmra.mxu0 %vm717_vm2, %v14531_v32 }
 0xaa4   : > { %12659 = vmatmul.msk.bf16.gmra.mxu0 %vm717_vm2, %v14532_v38  ;;  %v14547_v38 = vld [vmem:[%s16027_s9 + $0x650] sm:$0xff] }
 0xaa5   : > { %6698 = vmatpush.bf16.msrb.mxu2 %v14547_v38 }
 0xaa9   : > { %6699 = vmatpush.bf16.msrb.mxu2 %v14546_v39  ;;  %v14555_v39 = vld [vmem:[%s16027_s9 + $0x690] sm:$0xff] }
 0xab4   : > { %12660 = vmatmul.msk.bf16.gmra.mxu0 %vm717_vm2, %v14533_v42 }
 0xac4   : > { %12661 = vmatmul.msk.bf16.gmra.mxu0 %vm717_vm2, %v14534_v44 }
 0xad4   : > { %12662 = vmatmul.msk.bf16.gmra.mxu0 %vm717_vm2, %v14535_v46 }
 0xae4   : > { %12663 = vmatmul.msk.bf16.gmra.mxu0 %vm717_vm2, %v14536_v45 }
 0xaf1   : > { %v6242_v49 = vpop.f32.mrf.mxu1 }
 0xaf9   : > { %v6244_v15 = vpop.f32.mrf.mxu1 }
 0xb01   : > { %v6174_v37 = vpop.f32.mrf.mxu0 }
 0xb02   : > { %v6243_v59 = vadd.f32 %v6242_v49, %v6174_v37 }
 0xb04   : > { %v6252_v1 = vadd.f32 %v15039_v57, %v6243_v59 }
 0xb06   : > { %v6254_v4 = vmin.f32 %v6252_v1, 20.0 }
 0xb08   : > { %v6256_v54 = vmul.f32 1.442695, %v6254_v4 }
 0xb09   : > { %v6176_v61 = vpop.f32.mrf.mxu0 }
 0xb0a   : > { %15481 = vpow2.f32 %v6256_v54  ;;  %v6245_v6 = vadd.f32 %v6244_v15, %v6176_v61 }
 0xb0c   : > { %v6253_v8 = vadd.f32 %v15039_v57, %v6245_v6  ;;  %v14545_v57 = vld [vmem:[%s16027_s9 + $0x640] sm:$0xff] }
 0xb0d   : > { %6700 = vmatpush.bf16.msrb.mxu2 %v14545_v57 }
 0xb0e   : > { %v6255_v0 = vmin.f32 %v6253_v8, 20.0 }
 0xb10   : > { %v15482_v21 = vpop.eup %15481  ;;  %v6258_v16 = vmul.f32 1.442695, %v6255_v0 }
 0xb11   : > { %v6260_v13 = vadd.f32 2.0, %v15482_v21  ;;  %v6449_v20 = vpop.f32.mrf.mxu0 }
 0xb12   : > { %15483 = vpow2.f32 %v6258_v16  ;;  %v6450_v23 = vadd.f32 %v16742_v9, %v6449_v20  ;;  %v14558_v20 = vld [vmem:[%s16027_s9 + $0x6a8] sm:$0xff] }
 0xb13   : > { %v6262_v27 = vmul.f32 %v15482_v21, %v6260_v13  ;;  %6864 = vmatpush.bf16.msrb.mxu3 %v14558_v20 }
 0xb14   : > { %v6479_v25 = vmin.f32 %v6450_v23, 20.0 }
 0xb15   : > { %v6266_v18 = vadd.f32 2.0, %v6262_v27  ;;  %v6264_v31 = vmul.f32 %v6262_v27, %v6252_v1 }
 0xb16   : > { %v6491_v17 = vmul.f32 1.442695, %v6479_v25 }
 0xb18   : > { %v15484_v33 = vpop.eup %15483  ;;  %15485 = vpow2.f32 %v6491_v17 }
 0xb19   : > { %v6261_v34 = vadd.f32 2.0, %v15484_v33  ;;  %v6451_v14 = vpop.f32.mrf.mxu0  ;;  %15487 = vrcp.f32 %v6266_v18 }
 0xb1a   : > { %v6452_v36 = vadd.f32 %v16742_v9, %v6451_v14 }
 0xb1b   : > { %v6263_v22 = vmul.f32 %v15484_v33, %v6261_v34  ;;  %v14557_v33 = vld [vmem:[%s16027_s9 + $0x6a0] sm:$0xff] }
 0xb1c   : > { %v6480_v19 = vmin.f32 %v6452_v36, 20.0  ;;  %6865 = vmatpush.bf16.msrb.mxu3 %v14557_v33 }
 0xb1d   : > { %v6267_v26 = vadd.f32 2.0, %v6263_v22  ;;  %v6265_v43 = vmul.f32 %v6263_v22, %v6253_v8 }
 0xb1e   : > { %v15486_v30 = vpop.eup %15485  ;;  %v6493_v40 = vmul.f32 1.442695, %v6480_v19 }
 0xb1f   : > { %15489 = vrcp.f32 %v6267_v26  ;;  %v6515_v32 = vadd.f32 2.0, %v15486_v30  ;;  %v15488_v41 = vpop.eup %15487  ;;  %v14568_v26 = vld [vmem:[%s16027_s9 + $0x6f8] sm:$0xff] }
 0xb20   : > { %15491 = vpow2.f32 %v6493_v40  ;;  %v6270_v48 = vmul.f32 %v15488_v41, %v6264_v31  ;;  %6956 = vmatpush.bf16.msra.mxu2 %v14568_v26 }
 0xb21   : > { %v6527_v42 = vmul.f32 %v15486_v30, %v6515_v32  ;;  %v6454_v44 = vpop.f32.mrf.mxu0  ;;  %v14556_v30 = vld [vmem:[%s16027_s9 + $0x698] sm:$0xff] }
 0xb22   : > { %v16754_v46 = vadd.f32 %v16742_v9, %v6454_v44  ;;  %6866 = vmatpush.bf16.msrb.mxu3 %v14556_v30 }
 0xb23   : > { %v6551_v45 = vadd.f32 2.0, %v6527_v42  ;;  %v6539_v15 = vmul.f32 %v6527_v42, %v6450_v23 }
 0xb24   : > { %v6481_v50 = vmin.f32 %v16754_v46, 20.0 }
 0xb25   : > { %v15490_v52 = vpop.eup %15489  ;;  %15493 = vrcp.f32 %v6551_v45  ;;  %v14567_v45 = vld [vmem:[%s16027_s9 + $0x6f0] sm:$0xff] }
 0xb26   : > { %v15492_v53 = vpop.eup %15491  ;;  %v6271_v47 = vmul.f32 %v15490_v52, %v6265_v43  ;;  %v6495_v49 = vmul.f32 1.442695, %v6481_v50  ;;  %6957 = vmatpush.bf16.msra.mxu2 %v14567_v45  ;;  %6867 = vmatpush.bf16.msrb.mxu3 %v14555_v39 }
 0xb27   : > { %v6516_v56 = vadd.f32 2.0, %v15492_v53 }
 0xb28   : > { %v6272_v37 = vpack.c.bf16 %v6271_v47, %v6270_v48  ;;  %15495 = vpow2.f32 %v6495_v49  ;;  %v14554_v49 = vld [vmem:[%s16027_s9 + $0x688] sm:$0xff] }
 0xb29   : > { %v6528_v58 = vmul.f32 %v15492_v53, %v6516_v56  ;;  %v6456_v59 = vpop.f32.mrf.mxu0 }
 0xb2a   : > { %v6457_v62 = vadd.f32 %v16742_v9, %v6456_v59  ;;  %6351 = vmatmul.bf16.vlgmr.msra.gmra.mxu3 %v6272_v37 }
 0xb2b   : > { %v6552_v1 = vadd.f32 2.0, %v6528_v58  ;;  %v15494_v5 = vpop.eup %15493  ;;  %v6540_v21 = vmul.f32 %v6528_v58, %v6452_v36  ;;  %6868 = vmatpush.bf16.msrb.mxu3 %v14554_v49 }
 0xb2c   : > { %v6482_v4 = vmin.f32 %v6457_v62, 20.0  ;;  %v6575_v8 = vmul.f32 %v15494_v5, %v6539_v15 }
 0xb2d   : > { %15497 = vrcp.f32 %v6552_v1 }
 0xb2e   : > { %v15496_v54 = vpop.eup %15495  ;;  %v6497_v61 = vmul.f32 1.442695, %v6482_v4  ;;  %v6587_v11 = vpack.c.bf16 %v6575_v8, %v6575_v8  ;;  %v14553_v4 = vld [vmem:[%s16027_s9 + $0x680] sm:$0xff] }
 0xb2f   : > { %v6517_v6 = vadd.f32 2.0, %v15496_v54  ;;  %6869 = vmatpush.bf16.msrb.mxu3 %v14553_v4 }
 0xb30   : > { %15499 = vpow2.f32 %v6497_v61  ;;  %v6714_v18 = vunpack.c.l.b16 %v6587_v11 }
 0xb31   : > { %v6529_v0 = vmul.f32 %v15496_v54, %v6517_v6  ;;  %v6459_v29 = vpop.f32.mrf.mxu0 }
 0xb32   : > { %v16763_v16 = vadd.f32 %v16742_v9, %v6459_v29 }
 0xb33   : > { %v15498_v3 = vpop.eup %15497  ;;  %v6553_v13 = vadd.f32 2.0, %v6529_v0  ;;  %v6541_v42 = vmul.f32 %v6529_v0, %v16754_v46  ;;  %v14566_v46 = vld [vmem:[%s16027_s9 + $0x6e8] sm:$0xff]  ;;  %v14564_v0 = vld [vmem:[%s16027_s9 + $0x6d8] sm:$0xff] }
 0xb34   : > { %v6576_v25 = vmul.f32 %v15498_v3, %v6540_v21  ;;  %v6483_v23 = vmin.f32 %v16763_v16, 20.0  ;;  %6958 = vmatpush.bf16.msra.mxu2 %v14566_v46 }
 0xb35   : > { %15501 = vrcp.f32 %v6553_v13 }
 0xb36   : > { %v15500_v27 = vpop.eup %15499  ;;  %v6588_v17 = vpack.c.bf16 %v6576_v25, %v6576_v25  ;;  %v6499_v12 = vmul.f32 1.442695, %v6483_v23  ;;  %v14563_v25 = vld [vmem:[%s16027_s9 + $0x6d0] sm:$0xff] }
 0xb37   : > { %v6518_v60 = vadd.f32 2.0, %v15500_v27 }
 0xb38   : > { %v6715_v34 = vunpack.c.l.b16 %v6588_v17  ;;  %15503 = vpow2.f32 %v6499_v12  ;;  %6959 = vmatpush.bf16.msra.mxu2 %v14565_v51 }
 0xb39   : > { %v6530_v14 = vmul.f32 %v15500_v27, %v6518_v60  ;;  %v6461_v36 = vpop.f32.mrf.mxu0 }
 0xb3a   : > { %v6716_v22 = vpack.c.b16 %v6715_v34, %v6714_v18  ;;  %v16769_v28 = vadd.f32 %v16742_v9, %v6461_v36  ;;  %v14562_v34 = vld [vmem:[%s16027_s9 + $0x6c8] sm:$0xff] }
 0xb3b   : > { %v6554_v19 = vadd.f32 2.0, %v6530_v14  ;;  %v15502_v32 = vpop.eup %15501  ;;  %v6542_v52 = vmul.f32 %v6530_v14, %v6457_v62 }
 0xb3c   : > { %v6484_v40 = vmin.f32 %v16769_v28, 20.0  ;;  %6774 = vmatmul.bf16.vlgmr.msrb.gmra.mxu1 %v6716_v22  ;;  %v6577_v31 = vmul.f32 %v15502_v32, %v6541_v42  ;;  %6960 = vmatpush.bf16.msra.mxu2 %v14564_v0 }
 0xb3d   : > { %15505 = vrcp.f32 %v6554_v19 }
 0xb3e   : > { %v15504_v38 = vpop.eup %15503  ;;  %v6501_v44 = vmul.f32 1.442695, %v6484_v40  ;;  %v6589_v56 = vpack.c.bf16 %v6577_v31, %v6577_v31  ;;  %v14561_v40 = vld [vmem:[%s16027_s9 + $0x6c0] sm:$0xff] }
 0xb3f   : > { %v6519_v41 = vadd.f32 2.0, %v15504_v38 }
 0xb40   : > { %15507 = vpow2.f32 %v6501_v44  ;;  %v6637_v5 = vunpack.c.l.b16 %v6589_v56  ;;  %6961 = vmatpush.bf16.msra.mxu2 %v14563_v25 }
 0xb41   : > { %v6531_v43 = vmul.f32 %v15504_v38, %v6519_v41  ;;  %v6464_v50 = vpop.f32.mrf.mxu0 }
 0xb42   : > { %v16778_v53 = vadd.f32 %v16742_v9, %v6464_v50 }
 0xb43   : > { %v15506_v48 = vpop.eup %15505  ;;  %v6555_v47 = vadd.f32 2.0, %v6531_v43  ;;  %v6543_v13 = vmul.f32 %v6531_v43, %v16763_v16 }
 0xb44   : > { %v6578_v57 = vmul.f32 %v15506_v48, %v6542_v52  ;;  %v6485_v37 = vmin.f32 %v16778_v53, 20.0  ;;  %6962 = vmatpush.bf16.msra.mxu2 %v14562_v34 }
 0xb45   : > { %15509 = vrcp.f32 %v6555_v47 }
 0xb46   : > { %v15508_v58 = vpop.eup %15507  ;;  %v6590_v59 = vpack.c.bf16 %v6578_v57, %v6578_v57  ;;  %v6503_v1 = vmul.f32 1.442695, %v6485_v37 }
 0xb47   : > { %v6520_v62 = vadd.f32 2.0, %v15508_v58 }
 0xb48   : > { %v6638_v54 = vunpack.c.l.b16 %v6590_v59  ;;  %15511 = vpow2.f32 %v6503_v1  ;;  %6963 = vmatpush.bf16.msra.mxu2 %v14561_v40 }
 0xb49   : > { %v6532_v15 = vmul.f32 %v15508_v58, %v6520_v62  ;;  %v6466_v61 = vpop.f32.mrf.mxu0 }
 0xb4a   : > { %v6641_v6 = vpack.c.b16 %v6638_v54, %v6637_v5  ;;  %v6467_v7 = vadd.f32 %v16742_v9, %v6466_v61 }
 0xb4b   : > { %v6556_v8 = vadd.f32 2.0, %v6532_v15  ;;  %v15510_v21 = vpop.eup %15509  ;;  %v6544_v12 = vmul.f32 %v6532_v15, %v16769_v28 }
 0xb4c   : > { %v6486_v29 = vmin.f32 %v6467_v7, 20.0  ;;  %6701 = vmatmul.bf16.vlgmr.msrb.gmra.mxu2 %v6641_v6  ;;  %6779 = vmatmul.bf16.gmra.mxu1 %v6641_v6  ;;  %v6579_v23 = vmul.f32 %v15510_v21, %v6543_v13 }
 0xb4d   : > { %15513 = vrcp.f32 %v6556_v8 }
 0xb4e   : > { %v15512_v3 = vpop.eup %15511  ;;  %v6505_v20 = vmul.f32 1.442695, %v6486_v29  ;;  %v6591_v14 = vpack.c.bf16 %v6579_v23, %v6579_v23 }
 0xb4f   : > { %v6521_v11 = vadd.f32 2.0, %v15512_v3 }
 0xb50   : > { %15515 = vpow2.f32 %v6505_v20  ;;  %v6639_v32 = vunpack.c.l.b16 %v6591_v14 }
 0xb51   : > { %v6533_v27 = vmul.f32 %v15512_v3, %v6521_v11  ;;  %v6469_v17 = vpop.f32.mrf.mxu0 }
 0xb52   : > { %v6470_v60 = vadd.f32 %v16742_v9, %v6469_v17 }
 0xb53   : > { %v15514_v33 = vpop.eup %15513  ;;  %v6557_v18 = vadd.f32 2.0, %v6533_v27  ;;  %v6545_v50 = vmul.f32 %v6533_v27, %v16778_v53 }
 0xb54   : > { %v6580_v36 = vmul.f32 %v15514_v33, %v6544_v12  ;;  %v6487_v22 = vmin.f32 %v6470_v60, 20.0 }
 0xb55   : > { %15517 = vrcp.f32 %v6557_v18 }
 0xb56   : > { %v15516_v16 = vpop.eup %15515  ;;  %v6592_v19 = vpack.c.bf16 %v6580_v36, %v6580_v36  ;;  %v6507_v26 = vmul.f32 1.442695, %v6487_v22 }
 0xb57   : > { %v6522_v30 = vadd.f32 2.0, %v15516_v16 }
 0xb58   : > { %15519 = vpow2.f32 %v6507_v26  ;;  %v6640_v38 = vunpack.c.l.b16 %v6592_v19 }
 0xb59   : > { %v6534_v42 = vmul.f32 %v15516_v16, %v6522_v30  ;;  %v6471_v28 = vpop.f32.mrf.mxu0 }
 0xb5a   : > { %v6472_v44 = vadd.f32 %v16742_v9, %v6471_v28  ;;  %v6642_v41 = vpack.c.b16 %v6640_v38, %v6639_v32 }
 0xb5b   : > { %v6558_v45 = vadd.f32 2.0, %v6534_v42  ;;  %v15518_v31 = vpop.eup %15517  ;;  %v6546_v56 = vmul.f32 %v6534_v42, %v6467_v7 }
 0xb5c   : > { %v6488_v39 = vmin.f32 %v6472_v44, 20.0  ;;  %6706 = vmatmul.bf16.gmra.mxu2 %v6642_v41  ;;  %v6581_v47 = vmul.f32 %v15518_v31, %v6545_v50  ;;  %v15041_v31 = vld [vmem:[%s16052_s3 + $0x5] ss:$0 sm:$0xff] }
 0xb5d   : > { %15521 = vrcp.f32 %v6558_v45 }
 0xb5e   : > { %v15520_v43 = vpop.eup %15519  ;;  %v6509_v52 = vmul.f32 1.442695, %v6488_v39  ;;  %v6593_v59 = vpack.c.bf16 %v6581_v47, %v6581_v47 }
 0xb5f   : > { %v6523_v48 = vadd.f32 2.0, %v15520_v43 }
 0xb60   : > { %15523 = vpow2.f32 %v6509_v52  ;;  %v6806_v53 = vunpack.c.l.b16 %v6593_v59 }
 0xb61   : > { %v6535_v46 = vmul.f32 %v15520_v43, %v6523_v48  ;;  %v6474_v49 = vpop.f32.mrf.mxu0 }
 0xb62   : > { %v6475_v57 = vadd.f32 %v16742_v9, %v6474_v49 }
 0xb63   : > { %v15522_v37 = vpop.eup %15521  ;;  %v6559_v58 = vadd.f32 2.0, %v6535_v46  ;;  %v6547_v13 = vmul.f32 %v6535_v46, %v6470_v60 }
 0xb64   : > { %v6582_v1 = vmul.f32 %v15522_v37, %v6546_v56  ;;  %v6489_v62 = vmin.f32 %v6475_v57, 20.0 }
 0xb65   : > { %15525 = vrcp.f32 %v6559_v58 }
 0xb66   : > { %v15524_v51 = vpop.eup %15523  ;;  %v6594_v4 = vpack.c.bf16 %v6582_v1, %v6582_v1  ;;  %v6511_v5 = vmul.f32 1.442695, %v6489_v62 }
 0xb67   : > { %v6524_v54 = vadd.f32 2.0, %v15524_v51 }
 0xb68   : > { %v6807_v15 = vunpack.c.l.b16 %v6594_v4  ;;  %15527 = vpow2.f32 %v6511_v5  ;;  %v14576_v5 = vld [vmem:[%s16005_s28 + $0x338] sm:$0xff] }
 0xb69   : > { %v6536_v61 = vmul.f32 %v15524_v51, %v6524_v54  ;;  %v6476_v6 = vpop.f32.mrf.mxu0  ;;  %7184 = vmatpush.bf16.msra.mxu3 %v14576_v5 }
 0xb6a   : > { %v6810_v8 = vpack.c.b16 %v6807_v15, %v6806_v53  ;;  %v6477_v7 = vadd.f32 %v16742_v9, %v6476_v6  ;;  %v14575_v15 = vld [vmem:[%s16005_s28 + $0x330] sm:$0xff] }
 0xb6b   : > { %v6560_v0 = vadd.f32 2.0, %v6536_v61  ;;  %v15526_v21 = vpop.eup %15525  ;;  %v6548_v27 = vmul.f32 %v6536_v61, %v6472_v44  ;;  %v14574_v61 = vld [vmem:[%s16005_s28 + $0x328] sm:$0xff] }
 0xb6c   : > { %v6490_v29 = vmin.f32 %v6477_v7, 20.0  ;;  %6870 = vmatmul.bf16.vlgmr.msrb.gmra.mxu3 %v6810_v8  ;;  %v6583_v25 = vmul.f32 %v15526_v21, %v6547_v13 }
 0xb6d   : > { %15529 = vrcp.f32 %v6560_v0  ;;  %7185 = vmatpush.bf16.msra.mxu3 %v14575_v15  ;;  %v14584_v0 = vld [vmem:[%s16005_s28 + $0x378] sm:$0xff] }
 0xb6e   : > { %v15528_v3 = vpop.eup %15527  ;;  %v6513_v20 = vmul.f32 1.442695, %v6490_v29  ;;  %v6595_v33 = vpack.c.bf16 %v6583_v25, %v6583_v25  ;;  %v14572_v29 = vld [vmem:[%s16005_s28 + $0x318] sm:$0xff]  ;;  %7116 = vmatpush.bf16.msra.mxu1 %v14584_v0 }
 0xb6f   : > { %v6525_v11 = vadd.f32 2.0, %v15528_v3 }
 0xb70   : > { %15531 = vpow2.f32 %v6513_v20  ;;  %v6808_v36 = vunpack.c.l.b16 %v6595_v33  ;;  %v15042_v20 = vld [vmem:[%s16042_s19 + $0x6] ss:$0 sm:$0xff]  ;;  %v14582_v33 = vld [vmem:[%s16005_s28 + $0x368] sm:$0xff] }
 0xb71   : > { %v6537_v23 = vmul.f32 %v15528_v3, %v6525_v11  ;;  %7186 = vmatpush.bf16.msra.mxu3 %v14574_v61 }
 0xb73   : > { %v15530_v17 = vpop.eup %15529  ;;  %v6561_v12 = vadd.f32 2.0, %v6537_v23  ;;  %v6549_v30 = vmul.f32 %v6537_v23, %v6475_v57  ;;  %v14583_v23 = vld [vmem:[%s16005_s28 + $0x370] sm:$0xff] }
 0xb74   : > { %v6584_v18 = vmul.f32 %v15530_v17, %v6548_v27  ;;  %v14571_v27 = vld [vmem:[%s16005_s28 + $0x310] sm:$0xff]  ;;  %7117 = vmatpush.bf16.msra.mxu1 %v14583_v23 }
 0xb75   : > { %15533 = vrcp.f32 %v6561_v12 }
 0xb76   : > { %v15532_v34 = vpop.eup %15531  ;;  %v6596_v14 = vpack.c.bf16 %v6584_v18, %v6584_v18  ;;  %v14570_v18 = vld [vmem:[%s16005_s28 + $0x308] sm:$0xff] }
 0xb77   : > { %v6526_v9 = vadd.f32 2.0, %v15532_v34 }
 0xb78   : > { %v6809_v22 = vunpack.c.l.b16 %v6596_v14  ;;  %7118 = vmatpush.bf16.msra.mxu1 %v14582_v33 }
 0xb79   : > { %v6538_v16 = vmul.f32 %v15532_v34, %v6526_v9 }
 0xb7a   : > { %v6811_v19 = vpack.c.b16 %v6809_v22, %v6808_v36 }
 0xb7b   : > { %v6562_v26 = vadd.f32 2.0, %v6538_v16  ;;  %v15534_v60 = vpop.eup %15533  ;;  %v6550_v32 = vmul.f32 %v6538_v16, %v6477_v7  ;;  %v14573_v7 = vld [vmem:[%s16005_s28 + $0x320] sm:$0xff] }
 0xb7c   : > { %6875 = vmatmul.bf16.gmra.mxu3 %v6811_v19  ;;  %6964 = vmatmul.bf16.vlgmr.msra.gmra.mxu2 %v6811_v19  ;;  %v6585_v40 = vmul.f32 %v15534_v60, %v6549_v30  ;;  %v14581_v16 = vld [vmem:[%s16005_s28 + $0x360] sm:$0xff] }
 0xb7d   : > { %15535 = vrcp.f32 %v6562_v26  ;;  %7187 = vmatpush.bf16.msra.mxu3 %v14573_v7  ;;  %v14569_v19 = vld [vmem:[%s16005_s28 + $0x300] sm:$0xff]  ;;  %7119 = vmatpush.bf16.msra.mxu1 %v14581_v16 }
 0xb7e   : > { %v6597_v42 = vpack.c.bf16 %v6585_v40, %v6585_v40 }
 0xb80   : > { %v6904_v41 = vunpack.c.l.b16 %v6597_v42 }
 0xb81   : > { %7188 = vmatpush.bf16.msra.mxu3 %v14572_v29 }
 0xb83   : > { %v15536_v38 = vpop.eup %15535 }
 0xb84   : > { %v6586_v28 = vmul.f32 %v15536_v38, %v6550_v32  ;;  %v14580_v32 = vld [vmem:[%s16005_s28 + $0x358] sm:$0xff] }
 0xb85   : > { %7189 = vmatpush.bf16.msra.mxu3 %v14571_v27  ;;  %7120 = vmatpush.bf16.msra.mxu1 %v14580_v32 }
 0xb86   : > { %v6598_v44 = vpack.c.bf16 %v6586_v28, %v6586_v28 }
 0xb88   : > { %v6905_v45 = vunpack.c.l.b16 %v6598_v44 }
 0xb89   : > { %7190 = vmatpush.bf16.msra.mxu3 %v14570_v18 }
 0xb8a   : > { %v6906_v39 = vpack.c.b16 %v6905_v45, %v6904_v41 }
 0xb8c   : > { %6969 = vmatmul.bf16.gmra.mxu2 %v6906_v39 }
 0xb8d   : > { %7191 = vmatpush.bf16.msra.mxu3 %v14569_v19 }
 0xbad   : > { %v6352_v43 = vpop.f32.mrf.mxu3 }
 0xbae   : > { %v6353_v50 = vadd.f32 %v15041_v31, %v6352_v43  ;;  %v14579_v31 = vld [vmem:[%s16005_s28 + $0x350] sm:$0xff] }
 0xbaf   : > { %7121 = vmatpush.bf16.msra.mxu1 %v14579_v31  ;;  %v14596_v31 = vld [vmem:[%s16022_s21 + $0x168] sm:$0xff] }
 0xbb0   : > { %v6357_v52 = vmax.f32 %v6353_v50, -1.0 }
 0xbb2   : > { %v6359_v48 = vmin.f32 %v6357_v52, 0.9921875 }
 0xbb4   : > { %v6361_v47 = vmul.f32 128.0, %v6359_v48 }
 0xbb5   : > { %v16802_v54 = vpop.f32.mrf.mxu3 }
 0xbb6   : > { %v14865_v46 = vcvt.f32.s32 %v6361_v47  ;;  %v14863_v56 = vand.u32 2147483647, %v6361_v47  ;;  %v14868_v37 = vand.u32 2147483648, %v6361_v47 }
 0xbb8   : > { %v14866_v49 = vcvt.s32.f32 %v14865_v46  ;;  %vm14864_vm8 = vcmp.lt.f32.partialorder %v14863_v56, 8388608.0 }
 0xbb9   : > { %v6775_v6 = vpop.f32.mrf.mxu1 }
 0xbba   : > { %v14867_v57 = vand.u32 2147483647, %v14866_v49  ;;  %v14578_v49 = vld [vmem:[%s16005_s28 + $0x348] sm:$0xff] }
 0xbbb   : > { %7122 = vmatpush.bf16.msra.mxu1 %v14578_v49  ;;  %v14589_v49 = vld [vmem:[%s16037_s18 + $0x1a0] sm:$0xff] }
 0xbbc   : > { %v14869_v58 = vor.u32 %v14868_v37, %v14867_v57 }
 0xbbe   : > { %v14870_v59 = vsel %vm14864_vm8, %v14869_v58, %v6361_v47 }
 0xbbf   : > { %v6365_v1 = vmul.f32 0.0078125, %v14870_v59 }
 0xbc1   : > { %v16799_v62 = vadd.f32 %v6365_v1, %v16690_v55  ;;  %v6777_v3 = vpop.f32.mrf.mxu1 }
 0xbc9   : > { %v6780_v60 = vpop.f32.mrf.mxu1 }
 0xbcf   : > { %v6702_v51 = vpop.f32.mrf.mxu2 }
 0xbd0   : > { %v6776_v21 = vadd.f32 %v6775_v6, %v6702_v51 }
 0xbd1   : > { %v6782_v48 = vpop.f32.mrf.mxu1 }
 0xbd7   : > { %v6704_v4 = vpop.f32.mrf.mxu2 }
 0xbd8   : > { %v6778_v34 = vadd.f32 %v6777_v3, %v6704_v4  ;;  %v14577_v4 = vld [vmem:[%s16005_s28 + $0x340] sm:$0xff] }
 0xbd9   : > { %7123 = vmatpush.bf16.msra.mxu1 %v14577_v4 }
 0xbdf   : > { %v6707_v53 = vpop.f32.mrf.mxu2 }
 0xbe0   : > { %v6781_v38 = vadd.f32 %v6780_v60, %v6707_v53 }
 0xbe7   : > { %v6709_v55 = vpop.f32.mrf.mxu2 }
 0xbe8   : > { %v6783_v56 = vadd.f32 %v6782_v48, %v6709_v55  ;;  %v14592_v48 = vld [vmem:[%s16037_s18 + $0x1b8] sm:$0xff] }
 0xbe9   : > { %7294 = vmatpush.bf16.msrb.mxu2 %v14592_v48 }
 0xbef   : > { %v6871_v8 = vpop.f32.mrf.mxu3 }
 0xbf0   : > { %v6881_v13 = vadd.f32 %v6871_v8, %v6776_v21  ;;  %v13015_v8 = vld [vmem:[%s16017_s23 + $0x1c] sm:$0xf] }
 0xbf1   : > { %v7389_v55 = vsel %vm736_vm1, %v13015_v8, 0 }
 0xbf2   : > { %7398 = vmatpush.bf16.msrb.mxu1 %v7389_v55 }
 0xbf7   : > { %v6873_v11 = vpop.f32.mrf.mxu3 }
 0xbf8   : > { %v6882_v9 = vadd.f32 %v6873_v11, %v6778_v34 }
 0xbff   : > { %v6965_v25 = vpop.f32.mrf.mxu2  ;;  %v6876_v30 = vpop.f32.mrf.mxu3 }
 0xc00   : > { %v6975_v17 = vadd.f32 %v6965_v25, %v6881_v13  ;;  %v6883_v44 = vadd.f32 %v6876_v30, %v6781_v38 }
 0xc02   : > { %v6984_v12 = vadd.f32 %v15042_v20, %v6975_v17 }
 0xc04   : > { %v6988_v14 = vmin.f32 %v6984_v12, 20.0 }
 0xc06   : > { %v6992_v36 = vmul.f32 1.442695, %v6988_v14 }
 0xc07   : > { %v6967_v22 = vpop.f32.mrf.mxu2  ;;  %v6878_v46 = vpop.f32.mrf.mxu3 }
 0xc08   : > { %15537 = vpow2.f32 %v6992_v36  ;;  %v6976_v26 = vadd.f32 %v6967_v22, %v6882_v9  ;;  %v6884_v58 = vadd.f32 %v6878_v46, %v6783_v56  ;;  %v14590_v46 = vld [vmem:[%s16037_s18 + $0x1a8] sm:$0xff]  ;;  %v14588_v56 = vld [vmem:[%s16037_s18 + $0x198] sm:$0xff] }
 0xc0a   : > { %v6985_v40 = vadd.f32 %v15042_v20, %v6976_v26 }
 0xc0c   : > { %v6989_v42 = vmin.f32 %v6985_v40, 20.0 }
 0xc0e   : > { %v15538_v28 = vpop.eup %15537  ;;  %v6994_v41 = vmul.f32 1.442695, %v6989_v42 }
 0xc0f   : > { %v7000_v45 = vadd.f32 2.0, %v15538_v28  ;;  %v6970_v39 = vpop.f32.mrf.mxu2 }
 0xc10   : > { %15539 = vpow2.f32 %v6994_v41  ;;  %v6977_v43 = vadd.f32 %v6970_v39, %v6883_v44  ;;  %v14593_v41 = vld [vmem:[%s16022_s21 + $0x150] sm:$0xff]  ;;  %v14595_v39 = vld [vmem:[%s16022_s21 + $0x160] sm:$0xff] }
 0xc11   : > { %v7004_v50 = vmul.f32 %v15538_v28, %v7000_v45  ;;  %v14594_v45 = vld [vmem:[%s16022_s21 + $0x158] sm:$0xff] }
 0xc12   : > { %v6986_v52 = vadd.f32 %v15042_v20, %v6977_v43  ;;  %v14597_v43 = vld [vmem:[%s16022_s21 + $0x170] sm:$0xff] }
 0xc13   : > { %v7012_v47 = vadd.f32 2.0, %v7004_v50  ;;  %v7008_v29 = vmul.f32 %v7004_v50, %v6984_v12  ;;  %v14614_v50 = vld [vmem:[%s16027_s9 + $0x778] sm:$0xff] }
 0xc14   : > { %v6990_v57 = vmin.f32 %v6986_v52, 20.0  ;;  %7644 = vmatpush.bf16.msra.mxu0 %v14614_v50 }
 0xc15   : > { %15541 = vrcp.f32 %v7012_v47  ;;  %v14591_v47 = vld [vmem:[%s16037_s18 + $0x1b0] sm:$0xff] }
 0xc16   : > { %v15540_v37 = vpop.eup %15539  ;;  %v6996_v59 = vmul.f32 1.442695, %v6990_v57  ;;  %7295 = vmatpush.bf16.msrb.mxu2 %v14591_v47  ;;  %v14606_v57 = vld [vmem:[%s16027_s9 + $0x738] sm:$0xff]  ;;  %v14608_v47 = vld [vmem:[%s16027_s9 + $0x748] sm:$0xff] }
 0xc17   : > { %v7001_v1 = vadd.f32 2.0, %v15540_v37  ;;  %v6972_v51 = vpop.f32.mrf.mxu2  ;;  %7717 = vmatpush.bf16.msrb.mxu3 %v14606_v57 }
 0xc18   : > { %15543 = vpow2.f32 %v6996_v59  ;;  %v6978_v5 = vadd.f32 %v6972_v51, %v6884_v58  ;;  %v14613_v58 = vld [vmem:[%s16027_s9 + $0x770] sm:$0xff]  ;;  %v15043_v51 = vld [vmem:[%s16047_s20 + $0x6] ss:$0 sm:$0xff] }
 0xc19   : > { %v7005_v53 = vmul.f32 %v15540_v37, %v7001_v1  ;;  %v14587_v37 = vld [vmem:[%s16037_s18 + $0x190] sm:$0xff]  ;;  %7645 = vmatpush.bf16.msra.mxu0 %v14613_v58 }
 0xc1a   : > { %v6987_v15 = vadd.f32 %v15042_v20, %v6978_v5  ;;  %7296 = vmatpush.bf16.msrb.mxu2 %v14590_v46  ;;  %v14605_v1 = vld [vmem:[%s16027_s9 + $0x730] sm:$0xff]  ;;  %v14586_v5 = vld [vmem:[%s16037_s18 + $0x188] sm:$0xff] }
 0xc1b   : > { %v7013_v61 = vadd.f32 2.0, %v7005_v53  ;;  %v15542_v7 = vpop.eup %15541  ;;  %v7009_v25 = vmul.f32 %v7005_v53, %v6985_v40  ;;  %7718 = vmatpush.bf16.msrb.mxu3 %v14605_v1 }
 0xc1c   : > { %v6991_v6 = vmin.f32 %v6987_v15, 20.0  ;;  %v7020_v13 = vmul.f32 %v15542_v7, %v7008_v29  ;;  %v14603_v7 = vld [vmem:[%s16027_s9 + $0x720] sm:$0xff] }
 0xc1d   : > { %15545 = vrcp.f32 %v7013_v61 }
 0xc1e   : > { %v15544_v0 = vpop.eup %15543  ;;  %v6998_v21 = vmul.f32 1.442695, %v6991_v6  ;;  %v7024_v17 = vpack.c.bf16 %v7020_v13, %v7020_v13  ;;  %7297 = vmatpush.bf16.msrb.mxu2 %v14589_v49  ;;  %v14585_v6 = vld [vmem:[%s16037_s18 + $0x180] sm:$0xff] }
 0xc1f   : > { %v7002_v3 = vadd.f32 2.0, %v15544_v0 }
 0xc20   : > { %15547 = vpow2.f32 %v6998_v21  ;;  %v7132_v14 = vunpack.c.l.b16 %v7024_v17 }
 0xc21   : > { %v7006_v11 = vmul.f32 %v15544_v0, %v7002_v3  ;;  %v14602_v3 = vld [vmem:[%s16027_s9 + $0x718] sm:$0xff] }
 0xc22   : > { %7298 = vmatpush.bf16.msrb.mxu2 %v14588_v56 }
 0xc23   : > { %v15546_v23 = vpop.eup %15545  ;;  %v7014_v27 = vadd.f32 2.0, %v7006_v11  ;;  %v7010_v19 = vmul.f32 %v7006_v11, %v6986_v52  ;;  %v14598_v52 = vld [vmem:[%s16022_s21 + $0x178] sm:$0xff] }
 0xc24   : > { %v7021_v20 = vmul.f32 %v15546_v23, %v7009_v25  ;;  %v16851_v25 = vld [vmem:[%s16032_s11 + $0x7] ss:$0 sm:$0xff]  ;;  %v14601_v23 = vld [vmem:[%s16027_s9 + $0x710] sm:$0xff] }
 0xc25   : > { %15549 = vrcp.f32 %v7014_v27 }
 0xc26   : > { %v15548_v33 = vpop.eup %15547  ;;  %v7025_v18 = vpack.c.bf16 %v7021_v20, %v7021_v20  ;;  %7299 = vmatpush.bf16.msrb.mxu2 %v14587_v37  ;;  %v14612_v20 = vld [vmem:[%s16027_s9 + $0x768] sm:$0xff] }
 0xc27   : > { %v7003_v34 = vadd.f32 2.0, %v15548_v33  ;;  %7646 = vmatpush.bf16.msra.mxu0 %v14612_v20 }
 0xc28   : > { %v7133_v9 = vunpack.c.l.b16 %v7025_v18 }
 0xc29   : > { %v7007_v36 = vmul.f32 %v15548_v33, %v7003_v34 }
 0xc2a   : > { %v7134_v22 = vpack.c.b16 %v7133_v9, %v7132_v14  ;;  %7300 = vmatpush.bf16.msrb.mxu2 %v14586_v5  ;;  %v14600_v14 = vld [vmem:[%s16027_s9 + $0x708] sm:$0xff] }
 0xc2b   : > { %v7015_v12 = vadd.f32 2.0, %v7007_v36  ;;  %v15550_v16 = vpop.eup %15549  ;;  %v7011_v60 = vmul.f32 %v7007_v36, %v6987_v15  ;;  %v14604_v15 = vld [vmem:[%s16027_s9 + $0x728] sm:$0xff] }
 0xc2c   : > { %7192 = vmatmul.bf16.vlgmr.msra.gmra.mxu3 %v7134_v22  ;;  %v7022_v26 = vmul.f32 %v15550_v16, %v7010_v19  ;;  %v14599_v16 = vld [vmem:[%s16027_s9 + $0x700] sm:$0xff] }
 0xc2d   : > { %15551 = vrcp.f32 %v7015_v12  ;;  %7719 = vmatpush.bf16.msrb.mxu3 %v14604_v15  ;;  %v14611_v12 = vld [vmem:[%s16027_s9 + $0x760] sm:$0xff] }
 0xc2e   : > { %v7026_v40 = vpack.c.bf16 %v7022_v26, %v7022_v26  ;;  %7301 = vmatpush.bf16.msrb.mxu2 %v14585_v6  ;;  %7647 = vmatpush.bf16.msra.mxu0 %v14611_v12 }
 0xc30   : > { %v7064_v42 = vunpack.c.l.b16 %v7026_v40 }
 0xc31   : > { %7720 = vmatpush.bf16.msrb.mxu3 %v14603_v7 }
 0xc33   : > { %v15552_v30 = vpop.eup %15551 }
 0xc34   : > { %v7023_v32 = vmul.f32 %v15552_v30, %v7011_v60 }
 0xc35   : > { %7721 = vmatpush.bf16.msrb.mxu3 %v14602_v3 }
 0xc36   : > { %v7027_v38 = vpack.c.bf16 %v7023_v32, %v7023_v32 }
 0xc38   : > { %v7065_v28 = vunpack.c.l.b16 %v7027_v38  ;;  %v14610_v38 = vld [vmem:[%s16027_s9 + $0x758] sm:$0xff] }
 0xc39   : > { %7722 = vmatpush.bf16.msrb.mxu3 %v14601_v23  ;;  %7648 = vmatpush.bf16.msra.mxu0 %v14610_v38 }
 0xc3a   : > { %v7066_v44 = vpack.c.b16 %v7065_v28, %v7064_v42 }
 0xc3c   : > { %7124 = vmatmul.bf16.vlgmr.msra.gmra.mxu1 %v7066_v44 }
 0xc3d   : > { %7723 = vmatpush.bf16.msrb.mxu3 %v14600_v14  ;;  %v14620_v14 = vld [vmem:[%s16027_s9 + $0x7a8] sm:$0xff] }
 0xc41   : > { %7724 = vmatpush.bf16.msrb.mxu3 %v14599_v16 }
 0xc4c   : > { %13041 = vmatmul.msk.bf16.vlgmr.msrb.gmra.mxu1 %vm717_vm2, %v14593_v41 }
 0xc5c   : > { %13042 = vmatmul.msk.bf16.gmra.mxu1 %vm717_vm2, %v14594_v45 }
 0xc6c   : > { %13043 = vmatmul.msk.bf16.gmra.mxu1 %vm717_vm2, %v14595_v39  ;;  %v14609_v39 = vld [vmem:[%s16027_s9 + $0x750] sm:$0xff] }
 0xc6d   : > { %7649 = vmatpush.bf16.msra.mxu0 %v14609_v39 }
 0xc71   : > { %7650 = vmatpush.bf16.msra.mxu0 %v14608_v47  ;;  %v14629_v47 = vld [vmem:[%s16027_s9 + $0x7f0] sm:$0xff] }
 0xc7c   : > { %13044 = vmatmul.msk.bf16.gmra.mxu1 %vm717_vm2, %v14596_v31 }
 0xc8c   : > { %13045 = vmatmul.msk.bf16.gmra.mxu1 %vm717_vm2, %v14597_v43 }
 0xc9c   : > { %13046 = vmatmul.msk.bf16.gmra.mxu1 %vm717_vm2, %v14598_v52 }
 0xcaf   : > { %v7193_v59 = vpop.f32.mrf.mxu3 }
 0xcb7   : > { %v7195_v0 = vpop.f32.mrf.mxu3 }
 0xcb9   : > { %v7125_v4 = vpop.f32.mrf.mxu1 }
 0xcba   : > { %v7194_v53 = vadd.f32 %v7193_v59, %v7125_v4  ;;  %v14607_v4 = vld [vmem:[%s16027_s9 + $0x740] sm:$0xff] }
 0xcbb   : > { %7651 = vmatpush.bf16.msra.mxu0 %v14607_v4 }
 0xcbc   : > { %v7203_v61 = vadd.f32 %v15043_v51, %v7194_v53 }
 0xcbe   : > { %v7205_v8 = vmin.f32 %v7203_v61, 20.0 }
 0xcc0   : > { %v7207_v55 = vmul.f32 1.442695, %v7205_v8  ;;  %v14622_v8 = vld [vmem:[%s16027_s9 + $0x7b8] sm:$0xff] }
 0xcc1   : > { %v7127_v29 = vpop.f32.mrf.mxu1  ;;  %7813 = vmatpush.bf16.msra.mxu2 %v14622_v8 }
 0xcc2   : > { %15553 = vpow2.f32 %v7207_v55  ;;  %v7196_v21 = vadd.f32 %v7195_v0, %v7127_v29 }
 0xcc4   : > { %v7204_v13 = vadd.f32 %v15043_v51, %v7196_v21 }
 0xcc6   : > { %v7206_v11 = vmin.f32 %v7204_v13, 20.0 }
 0xcc8   : > { %v15554_v27 = vpop.eup %15553  ;;  %v7209_v17 = vmul.f32 1.442695, %v7206_v11 }
 0xcc9   : > { %v7211_v33 = vadd.f32 2.0, %v15554_v27  ;;  %v7400_v18 = vpop.f32.mrf.mxu1 }
 0xcca   : > { %15555 = vpow2.f32 %v7209_v17  ;;  %v7401_v34 = vadd.f32 %v16851_v25, %v7400_v18 }
 0xccb   : > { %v7213_v36 = vmul.f32 %v15554_v27, %v7211_v33 }
 0xccc   : > { %v7430_v9 = vmin.f32 %v7401_v34, 20.0 }
 0xccd   : > { %v7217_v26 = vadd.f32 2.0, %v7213_v36  ;;  %v7215_v46 = vmul.f32 %v7213_v36, %v7203_v61 }
 0xcce   : > { %v7442_v22 = vmul.f32 1.442695, %v7430_v9 }
 0xcd0   : > { %v15556_v19 = vpop.eup %15555  ;;  %15557 = vpow2.f32 %v7442_v22 }
 0xcd1   : > { %v7212_v60 = vadd.f32 2.0, %v15556_v19  ;;  %v7402_v30 = vpop.f32.mrf.mxu1  ;;  %15559 = vrcp.f32 %v7217_v26  ;;  %v14619_v26 = vld [vmem:[%s16027_s9 + $0x7a0] sm:$0xff] }
 0xcd2   : > { %v7403_v40 = vadd.f32 %v16851_v25, %v7402_v30 }
 0xcd3   : > { %v7214_v32 = vmul.f32 %v15556_v19, %v7212_v60 }
 0xcd4   : > { %v7431_v42 = vmin.f32 %v7403_v40, 20.0 }
 0xcd5   : > { %v7218_v28 = vadd.f32 2.0, %v7214_v32  ;;  %v7216_v49 = vmul.f32 %v7214_v32, %v7204_v13  ;;  %v14621_v13 = vld [vmem:[%s16027_s9 + $0x7b0] sm:$0xff] }
 0xcd6   : > { %v15558_v44 = vpop.eup %15557  ;;  %v7444_v41 = vmul.f32 1.442695, %v7431_v42  ;;  %7814 = vmatpush.bf16.msra.mxu2 %v14621_v13 }
 0xcd7   : > { %15561 = vrcp.f32 %v7218_v28  ;;  %v7466_v45 = vadd.f32 2.0, %v15558_v44  ;;  %v15560_v52 = vpop.eup %15559 }
 0xcd8   : > { %15563 = vpow2.f32 %v7444_v41  ;;  %v7221_v58 = vmul.f32 %v15560_v52, %v7215_v46  ;;  %v14618_v41 = vld [vmem:[%s16027_s9 + $0x798] sm:$0xff]  ;;  %v14617_v46 = vld [vmem:[%s16027_s9 + $0x790] sm:$0xff] }
 0xcd9   : > { %v7478_v31 = vmul.f32 %v15558_v44, %v7466_v45  ;;  %v7405_v43 = vpop.f32.mrf.mxu1  ;;  %v14630_v44 = vld [vmem:[%s16027_s9 + $0x7f8] sm:$0xff] }
 0xcda   : > { %v16863_v50 = vadd.f32 %v16851_v25, %v7405_v43  ;;  %7815 = vmatpush.bf16.msra.mxu2 %v14620_v14  ;;  %7907 = vmatpush.bf16.msrb.mxu0 %v14630_v44 }
 0xcdb   : > { %v7502_v48 = vadd.f32 2.0, %v7478_v31  ;;  %v7490_v29 = vmul.f32 %v7478_v31, %v7401_v34 }
 0xcdc   : > { %v7432_v56 = vmin.f32 %v16863_v50, 20.0 }
 0xcdd   : > { %v15562_v57 = vpop.eup %15561  ;;  %15565 = vrcp.f32 %v7502_v48 }
 0xcde   : > { %v15564_v37 = vpop.eup %15563  ;;  %v7222_v59 = vmul.f32 %v15562_v57, %v7216_v49  ;;  %v7446_v1 = vmul.f32 1.442695, %v7432_v56  ;;  %7816 = vmatpush.bf16.msra.mxu2 %v14619_v26  ;;  %7908 = vmatpush.bf16.msrb.mxu0 %v14629_v47 }
 0xcdf   : > { %v7467_v51 = vadd.f32 2.0, %v15564_v37 }
 0xce0   : > { %v7223_v5 = vpack.c.bf16 %v7222_v59, %v7221_v58  ;;  %15567 = vpow2.f32 %v7446_v1 }
 0xce1   : > { %v7479_v53 = vmul.f32 %v15564_v37, %v7467_v51  ;;  %v7407_v15 = vpop.f32.mrf.mxu1  ;;  %v14616_v51 = vld [vmem:[%s16027_s9 + $0x788] sm:$0xff] }
 0xce2   : > { %v7408_v61 = vadd.f32 %v16851_v25, %v7407_v15  ;;  %7302 = vmatmul.bf16.vlgmr.msrb.gmra.mxu2 %v7223_v5 }
 0xce3   : > { %v7503_v6 = vadd.f32 2.0, %v7479_v53  ;;  %v15566_v55 = vpop.eup %15565  ;;  %v7491_v17 = vmul.f32 %v7479_v53, %v7403_v40  ;;  %7817 = vmatpush.bf16.msra.mxu2 %v14618_v41 }
 0xce4   : > { %v7433_v7 = vmin.f32 %v7408_v61, 20.0  ;;  %v7526_v11 = vmul.f32 %v15566_v55, %v7490_v29  ;;  %v14615_v55 = vld [vmem:[%s16027_s9 + $0x780] sm:$0xff] }
 0xce5   : > { %15569 = vrcp.f32 %v7503_v6 }
 0xce6   : > { %v15568_v0 = vpop.eup %15567  ;;  %v7448_v21 = vmul.f32 1.442695, %v7433_v7  ;;  %v7538_v9 = vpack.c.bf16 %v7526_v11, %v7526_v11  ;;  %v14627_v7 = vld [vmem:[%s16027_s9 + $0x7e0] sm:$0xff] }
 0xce7   : > { %v7468_v3 = vadd.f32 2.0, %v15568_v0  ;;  %7818 = vmatpush.bf16.msra.mxu2 %v14617_v46 }
 0xce8   : > { %15571 = vpow2.f32 %v7448_v21  ;;  %v7665_v60 = vunpack.c.l.b16 %v7538_v9 }
 0xce9   : > { %v7480_v23 = vmul.f32 %v15568_v0, %v7468_v3  ;;  %v7410_v27 = vpop.f32.mrf.mxu1 }
 0xcea   : > { %v16872_v20 = vadd.f32 %v16851_v25, %v7410_v27  ;;  %v14626_v27 = vld [vmem:[%s16027_s9 + $0x7d8] sm:$0xff] }
 0xceb   : > { %v15570_v33 = vpop.eup %15569  ;;  %v7504_v18 = vadd.f32 2.0, %v7480_v23  ;;  %v7492_v43 = vmul.f32 %v7480_v23, %v16863_v50  ;;  %v14628_v50 = vld [vmem:[%s16027_s9 + $0x7e8] sm:$0xff]  ;;  %7819 = vmatpush.bf16.msra.mxu2 %v14616_v51 }
 0xcec   : > { %v7527_v36 = vmul.f32 %v15570_v33, %v7491_v17  ;;  %v7434_v34 = vmin.f32 %v16872_v20, 20.0  ;;  %7909 = vmatpush.bf16.msrb.mxu0 %v14628_v50 }
 0xced   : > { %15573 = vrcp.f32 %v7504_v18 }
 0xcee   : > { %v15572_v22 = vpop.eup %15571  ;;  %v7539_v12 = vpack.c.bf16 %v7527_v36, %v7527_v36  ;;  %v7450_v16 = vmul.f32 1.442695, %v7434_v34  ;;  %v14625_v34 = vld [vmem:[%s16027_s9 + $0x7d0] sm:$0xff] }
 0xcef   : > { %v7469_v19 = vadd.f32 2.0, %v15572_v22  ;;  %7820 = vmatpush.bf16.msra.mxu2 %v14615_v55 }
 0xcf0   : > { %v7666_v30 = vunpack.c.l.b16 %v7539_v12  ;;  %15575 = vpow2.f32 %v7450_v16  ;;  %7910 = vmatpush.bf16.msrb.mxu0 %v14627_v7 }
 0xcf1   : > { %v7481_v40 = vmul.f32 %v15572_v22, %v7469_v19  ;;  %v7412_v32 = vpop.f32.mrf.mxu1 }
 0xcf2   : > { %v7667_v38 = vpack.c.b16 %v7666_v30, %v7665_v60  ;;  %v16878_v42 = vadd.f32 %v16851_v25, %v7412_v32 }
 0xcf3   : > { %v7505_v28 = vadd.f32 2.0, %v7481_v40  ;;  %v15574_v39 = vpop.eup %15573  ;;  %v7493_v37 = vmul.f32 %v7481_v40, %v7408_v61  ;;  %v14624_v40 = vld [vmem:[%s16027_s9 + $0x7c8] sm:$0xff] }
 0xcf4   : > { %v7435_v45 = vmin.f32 %v16878_v42, 20.0  ;;  %7725 = vmatmul.bf16.vlgmr.msrb.gmra.mxu3 %v7667_v38  ;;  %v7528_v49 = vmul.f32 %v15574_v39, %v7492_v43  ;;  %7911 = vmatpush.bf16.msrb.mxu0 %v14626_v27  ;;  %v14623_v39 = vld [vmem:[%s16027_s9 + $0x7c0] sm:$0xff] }
 0xcf5   : > { %15577 = vrcp.f32 %v7505_v28 }
 0xcf6   : > { %v15576_v31 = vpop.eup %15575  ;;  %v7452_v52 = vmul.f32 1.442695, %v7435_v45  ;;  %v7540_v4 = vpack.c.bf16 %v7528_v49, %v7528_v49 }
 0xcf7   : > { %v7470_v48 = vadd.f32 2.0, %v15576_v31 }
 0xcf8   : > { %15579 = vpow2.f32 %v7452_v52  ;;  %v7588_v0 = vunpack.c.l.b16 %v7540_v4  ;;  %7912 = vmatpush.bf16.msrb.mxu0 %v14625_v34 }
 0xcf9   : > { %v7482_v56 = vmul.f32 %v15576_v31, %v7470_v48  ;;  %v7415_v57 = vpop.f32.mrf.mxu1 }
 0xcfa   : > { %v16887_v58 = vadd.f32 %v16851_v25, %v7415_v57 }
 0xcfb   : > { %v15578_v59 = vpop.eup %15577  ;;  %v7506_v1 = vadd.f32 2.0, %v7482_v56  ;;  %v7494_v14 = vmul.f32 %v7482_v56, %v16872_v20 }
 0xcfc   : > { %v7529_v5 = vmul.f32 %v15578_v59, %v7493_v37  ;;  %v7436_v53 = vmin.f32 %v16887_v58, 20.0  ;;  %7913 = vmatpush.bf16.msrb.mxu0 %v14624_v40 }
 0xcfd   : > { %15581 = vrcp.f32 %v7506_v1 }
 0xcfe   : > { %v15580_v15 = vpop.eup %15579  ;;  %v7541_v6 = vpack.c.bf16 %v7529_v5, %v7529_v5  ;;  %v7454_v8 = vmul.f32 1.442695, %v7436_v53 }
 0xcff   : > { %v7471_v61 = vadd.f32 2.0, %v15580_v15 }
 0xd00   : > { %v7589_v29 = vunpack.c.l.b16 %v7541_v6  ;;  %15583 = vpow2.f32 %v7454_v8  ;;  %7914 = vmatpush.bf16.msrb.mxu0 %v14623_v39 }
 0xd01   : > { %v7483_v21 = vmul.f32 %v15580_v15, %v7471_v61  ;;  %v7417_v3 = vpop.f32.mrf.mxu1 }
 0xd02   : > { %v7592_v13 = vpack.c.b16 %v7589_v29, %v7588_v0  ;;  %v7418_v11 = vadd.f32 %v16851_v25, %v7417_v3 }
 0xd03   : > { %v7507_v23 = vadd.f32 2.0, %v7483_v21  ;;  %v15582_v33 = vpop.eup %15581  ;;  %v7495_v19 = vmul.f32 %v7483_v21, %v16878_v42 }
 0xd04   : > { %v7437_v17 = vmin.f32 %v7418_v11, 20.0  ;;  %7652 = vmatmul.bf16.vlgmr.msra.gmra.mxu0 %v7592_v13  ;;  %7730 = vmatmul.bf16.gmra.mxu3 %v7592_v13  ;;  %v7530_v22 = vmul.f32 %v15582_v33, %v7494_v14 }
 0xd05   : > { %15585 = vrcp.f32 %v7507_v23 }
 0xd06   : > { %v15584_v18 = vpop.eup %15583  ;;  %v7456_v9 = vmul.f32 1.442695, %v7437_v17  ;;  %v7542_v32 = vpack.c.bf16 %v7530_v22, %v7530_v22 }
 0xd07   : > { %v7472_v36 = vadd.f32 2.0, %v15584_v18 }
 0xd08   : > { %15587 = vpow2.f32 %v7456_v9  ;;  %v7590_v31 = vunpack.c.l.b16 %v7542_v32 }
 0xd09   : > { %v7484_v12 = vmul.f32 %v15584_v18, %v7472_v36  ;;  %v7420_v16 = vpop.f32.mrf.mxu1 }
 0xd0a   : > { %v7421_v26 = vadd.f32 %v16851_v25, %v7420_v16 }
 0xd0b   : > { %v15586_v60 = vpop.eup %15585  ;;  %v7508_v30 = vadd.f32 2.0, %v7484_v12  ;;  %v7496_v37 = vmul.f32 %v7484_v12, %v16887_v58 }
 0xd0c   : > { %v7531_v38 = vmul.f32 %v15586_v60, %v7495_v19  ;;  %v7438_v28 = vmin.f32 %v7421_v26, 20.0 }
 0xd0d   : > { %15589 = vrcp.f32 %v7508_v30 }
 0xd0e   : > { %v15588_v20 = vpop.eup %15587  ;;  %v7543_v44 = vpack.c.bf16 %v7531_v38, %v7531_v38  ;;  %v7458_v41 = vmul.f32 1.442695, %v7438_v28 }
 0xd0f   : > { %v7473_v45 = vadd.f32 2.0, %v15588_v20 }
 0xd10   : > { %v7591_v43 = vunpack.c.l.b16 %v7543_v44  ;;  %15591 = vpow2.f32 %v7458_v41 }
 0xd11   : > { %v7485_v52 = vmul.f32 %v15588_v20, %v7473_v45  ;;  %v7422_v42 = vpop.f32.mrf.mxu1 }
 0xd12   : > { %v7423_v48 = vadd.f32 %v16851_v25, %v7422_v42  ;;  %v7593_v47 = vpack.c.b16 %v7591_v43, %v7590_v31 }
 0xd13   : > { %v7509_v46 = vadd.f32 2.0, %v7485_v52  ;;  %v15590_v56 = vpop.eup %15589  ;;  %v7497_v5 = vmul.f32 %v7485_v52, %v7418_v11 }
 0xd14   : > { %v7439_v49 = vmin.f32 %v7423_v48, 20.0  ;;  %7657 = vmatmul.bf16.gmra.mxu0 %v7593_v47  ;;  %v7532_v50 = vmul.f32 %v15590_v56, %v7496_v37 }
 0xd15   : > { %15593 = vrcp.f32 %v7509_v46 }
 0xd16   : > { %v15592_v57 = vpop.eup %15591  ;;  %v7460_v59 = vmul.f32 1.442695, %v7439_v49  ;;  %v7544_v8 = vpack.c.bf16 %v7532_v50, %v7532_v50 }
 0xd17   : > { %v7474_v1 = vadd.f32 2.0, %v15592_v57 }
 0xd18   : > { %15595 = vpow2.f32 %v7460_v59  ;;  %v7757_v58 = vunpack.c.l.b16 %v7544_v8 }
 0xd19   : > { %v7486_v51 = vmul.f32 %v15592_v57, %v7474_v1  ;;  %v7425_v4 = vpop.f32.mrf.mxu1  ;;  %v15045_v57 = vld [vmem:[%s16052_s3 + $0x6] ss:$0 sm:$0xff] }
 0xd1a   : > { %v7426_v53 = vadd.f32 %v16851_v25, %v7425_v4 }
 0xd1b   : > { %v15594_v15 = vpop.eup %15593  ;;  %v7510_v6 = vadd.f32 2.0, %v7486_v51  ;;  %v7498_v9 = vmul.f32 %v7486_v51, %v7421_v26 }
 0xd1c   : > { %v7533_v61 = vmul.f32 %v15594_v15, %v7497_v5  ;;  %v7440_v7 = vmin.f32 %v7426_v53, 20.0 }
 0xd1d   : > { %15597 = vrcp.f32 %v7510_v6 }
 0xd1e   : > { %v15596_v55 = vpop.eup %15595  ;;  %v7545_v0 = vpack.c.bf16 %v7533_v61, %v7533_v61  ;;  %v7462_v29 = vmul.f32 1.442695, %v7440_v7 }
 0xd1f   : > { %v7475_v21 = vadd.f32 2.0, %v15596_v55 }
 0xd20   : > { %v7758_v3 = vunpack.c.l.b16 %v7545_v0  ;;  %15599 = vpow2.f32 %v7462_v29 }
 0xd21   : > { %v7487_v13 = vmul.f32 %v15596_v55, %v7475_v21  ;;  %v7427_v23 = vpop.f32.mrf.mxu1  ;;  %v14638_v21 = vld [vmem:[%s16005_s28 + $0x3b8] sm:$0xff] }
 0xd22   : > { %v7761_v27 = vpack.c.b16 %v7758_v3, %v7757_v58  ;;  %v7428_v11 = vadd.f32 %v16851_v25, %v7427_v23  ;;  %8135 = vmatpush.bf16.msrb.mxu2 %v14638_v21  ;;  %v14636_v23 = vld [vmem:[%s16005_s28 + $0x3a8] sm:$0xff]  ;;  %v14639_v21 = vld [vmem:[%s16005_s28 + $0x3c0] sm:$0xff] }
 0xd23   : > { %v7511_v17 = vadd.f32 2.0, %v7487_v13  ;;  %v15598_v18 = vpop.eup %15597  ;;  %v7499_v16 = vmul.f32 %v7487_v13, %v7423_v48  ;;  %v14637_v13 = vld [vmem:[%s16005_s28 + $0x3b0] sm:$0xff] }
 0xd24   : > { %v7441_v33 = vmin.f32 %v7428_v11, 20.0  ;;  %7821 = vmatmul.bf16.vlgmr.msra.gmra.mxu2 %v7761_v27  ;;  %v7534_v22 = vmul.f32 %v15598_v18, %v7498_v9  ;;  %v14634_v18 = vld [vmem:[%s16005_s28 + $0x398] sm:$0xff] }
 0xd25   : > { %15601 = vrcp.f32 %v7511_v17  ;;  %v14635_v17 = vld [vmem:[%s16005_s28 + $0x3a0] sm:$0xff] }
 0xd26   : > { %v15600_v14 = vpop.eup %15599  ;;  %v7464_v36 = vmul.f32 1.442695, %v7441_v33  ;;  %v7546_v30 = vpack.c.bf16 %v7534_v22, %v7534_v22  ;;  %8136 = vmatpush.bf16.msrb.mxu2 %v14637_v13  ;;  %v14646_v33 = vld [vmem:[%s16005_s28 + $0x3f8] sm:$0xff] }
 0xd27   : > { %v7476_v34 = vadd.f32 2.0, %v15600_v14  ;;  %8067 = vmatpush.bf16.msra.mxu3 %v14646_v33 }
 0xd28   : > { %15603 = vpow2.f32 %v7464_v36  ;;  %v7759_v28 = vunpack.c.l.b16 %v7546_v30 }
 0xd29   : > { %v7488_v12 = vmul.f32 %v15600_v14, %v7476_v34  ;;  %v15046_v34 = vld [vmem:[%s16042_s19 + $0x7] ss:$0 sm:$0xff] }
 0xd2a   : > { %8137 = vmatpush.bf16.msrb.mxu2 %v14636_v23 }
 0xd2b   : > { %v15602_v19 = vpop.eup %15601  ;;  %v7512_v60 = vadd.f32 2.0, %v7488_v12  ;;  %v7500_v39 = vmul.f32 %v7488_v12, %v7426_v53 }
 0xd2c   : > { %v7535_v40 = vmul.f32 %v15602_v19, %v7499_v16  ;;  %v14645_v16 = vld [vmem:[%s16005_s28 + $0x3f0] sm:$0xff] }
 0xd2d   : > { %15605 = vrcp.f32 %v7512_v60  ;;  %v14633_v19 = vld [vmem:[%s16005_s28 + $0x390] sm:$0xff]  ;;  %8068 = vmatpush.bf16.msra.mxu3 %v14645_v16 }
 0xd2e   : > { %v15604_v32 = vpop.eup %15603  ;;  %v7547_v38 = vpack.c.bf16 %v7535_v40, %v7535_v40  ;;  %8138 = vmatpush.bf16.msrb.mxu2 %v14635_v17  ;;  %v14644_v40 = vld [vmem:[%s16005_s28 + $0x3e8] sm:$0xff]  ;;  %v13398_v17 = vld [vmem:[%s16017_s23 + $0x20] sm:$0xf] }
 0xd2f   : > { %v7477_v25 = vadd.f32 2.0, %v15604_v32 }
 0xd30   : > { %v7760_v20 = vunpack.c.l.b16 %v7547_v38 }
 0xd31   : > { %v7489_v44 = vmul.f32 %v15604_v32, %v7477_v25  ;;  %v14632_v32 = vld [vmem:[%s16005_s28 + $0x388] sm:$0xff]  ;;  %8069 = vmatpush.bf16.msra.mxu3 %v14644_v40 }
 0xd32   : > { %v7762_v41 = vpack.c.b16 %v7760_v20, %v7759_v28  ;;  %8139 = vmatpush.bf16.msrb.mxu2 %v14634_v18 }
 0xd33   : > { %v7513_v45 = vadd.f32 2.0, %v7489_v44  ;;  %v15606_v26 = vpop.eup %15605  ;;  %v7501_v43 = vmul.f32 %v7489_v44, %v7428_v11 }
 0xd34   : > { %7826 = vmatmul.bf16.gmra.mxu2 %v7762_v41  ;;  %7915 = vmatmul.bf16.vlgmr.msrb.gmra.mxu0 %v7762_v41  ;;  %v7536_v31 = vmul.f32 %v15606_v26, %v7500_v39  ;;  %v14643_v41 = vld [vmem:[%s16005_s28 + $0x3e0] sm:$0xff] }
 0xd35   : > { %15607 = vrcp.f32 %v7513_v45  ;;  %v14631_v45 = vld [vmem:[%s16005_s28 + $0x380] sm:$0xff]  ;;  %8070 = vmatpush.bf16.msra.mxu3 %v14643_v41 }
 0xd36   : > { %v7548_v42 = vpack.c.bf16 %v7536_v31, %v7536_v31  ;;  %8140 = vmatpush.bf16.msrb.mxu2 %v14633_v19 }
 0xd38   : > { %v7855_v46 = vunpack.c.l.b16 %v7548_v42 }
 0xd3a   : > { %8141 = vmatpush.bf16.msrb.mxu2 %v14632_v32 }
 0xd3b   : > { %v15608_v52 = vpop.eup %15607 }
 0xd3c   : > { %v7537_v48 = vmul.f32 %v15608_v52, %v7501_v43  ;;  %v14642_v52 = vld [vmem:[%s16005_s28 + $0x3d8] sm:$0xff] }
 0xd3d   : > { %8071 = vmatpush.bf16.msra.mxu3 %v14642_v52 }
 0xd3e   : > { %v7549_v47 = vpack.c.bf16 %v7537_v48, %v7537_v48  ;;  %8142 = vmatpush.bf16.msrb.mxu2 %v14631_v45 }
 0xd40   : > { %v7856_v49 = vunpack.c.l.b16 %v7549_v47 }
 0xd42   : > { %v7857_v56 = vpack.c.b16 %v7856_v49, %v7855_v46 }
 0xd44   : > { %7920 = vmatmul.bf16.gmra.mxu0 %v7857_v56 }
 0xd65   : > { %v7303_v37 = vpop.f32.mrf.mxu2 }
 0xd66   : > { %v7304_v59 = vadd.f32 %v15045_v57, %v7303_v37  ;;  %v14641_v37 = vld [vmem:[%s16005_s28 + $0x3d0] sm:$0xff] }
 0xd67   : > { %8072 = vmatpush.bf16.msra.mxu3 %v14641_v37  ;;  %v14657_v37 = vld [vmem:[%s16022_s21 + $0x190] sm:$0xff] }
 0xd68   : > { %v7308_v1 = vmax.f32 %v7304_v59, -1.0 }
 0xd6a   : > { %v7310_v50 = vmin.f32 %v7308_v1, 0.9921875 }
 0xd6c   : > { %v7312_v51 = vmul.f32 128.0, %v7310_v50 }
 0xd6d   : > { %v16911_v58 = vpop.f32.mrf.mxu2 }
 0xd6e   : > { %v14881_v4 = vcvt.f32.s32 %v7312_v51  ;;  %v14879_v53 = vand.u32 2147483647, %v7312_v51  ;;  %v14884_v6 = vand.u32 2147483648, %v7312_v51 }
 0xd70   : > { %v14882_v5 = vcvt.s32.f32 %v14881_v4  ;;  %vm14880_vm9 = vcmp.lt.f32.partialorder %v14879_v53, 8388608.0  ;;  %v14640_v53 = vld [vmem:[%s16005_s28 + $0x3c8] sm:$0xff] }
 0xd71   : > { %8073 = vmatpush.bf16.msra.mxu3 %v14640_v53  ;;  %v14652_v53 = vld [vmem:[%s16037_s18 + $0x1e8] sm:$0xff] }
 0xd72   : > { %v14883_v15 = vand.u32 2147483647, %v14882_v5 }
 0xd74   : > { %v14885_v8 = vor.u32 %v14884_v6, %v14883_v15 }
 0xd75   : > { %8074 = vmatpush.bf16.msra.mxu3 %v14639_v21  ;;  %v15047_v21 = vld [vmem:[%s16047_s20 + $0x7] ss:$0 sm:$0xff] }
 0xd76   : > { %v14886_v61 = vsel %vm14880_vm9, %v14885_v8, %v7312_v51 }
 0xd77   : > { %v7316_v7 = vmul.f32 0.0078125, %v14886_v61  ;;  %v7726_v27 = vpop.f32.mrf.mxu3 }
 0xd79   : > { %v16908_v55 = vadd.f32 %v7316_v7, %v16799_v62 }
 0xd7f   : > { %v7728_v9 = vpop.f32.mrf.mxu3 }
 0xd81   : > { %v7653_v0 = vpop.f32.mrf.mxu0 }
 0xd82   : > { %v7727_v14 = vadd.f32 %v7726_v27, %v7653_v0 }
 0xd87   : > { %v7731_v39 = vpop.f32.mrf.mxu3 }
 0xd89   : > { %v7655_v29 = vpop.f32.mrf.mxu0 }
 0xd8a   : > { %v7729_v38 = vadd.f32 %v7728_v9, %v7655_v29 }
 0xd8f   : > { %v7733_v51 = vpop.f32.mrf.mxu3 }
 0xd91   : > { %v7658_v3 = vpop.f32.mrf.mxu0 }
 0xd92   : > { %v7732_v42 = vadd.f32 %v7731_v39, %v7658_v3 }
 0xd99   : > { %v7660_v62 = vpop.f32.mrf.mxu0 }
 0xd9a   : > { %v7734_v15 = vadd.f32 %v7733_v51, %v7660_v62  ;;  %v8340_v62 = vsel %vm736_vm1, %v13398_v17, 0  ;;  %v14660_v51 = vld [vmem:[%s16022_s21 + $0x1a8] sm:$0xff]  ;;  %v14647_v17 = vld [vmem:[%s16037_s18 + $0x1c0] sm:$0xff] }
 0xd9b   : > { %8349 = vmatpush.bf16.msrb.mxu3 %v8340_v62  ;;  %v14665_v62 = vld [vmem:[%s16027_s9 + $0x820] sm:$0xff] }
 0xda7   : > { %v7822_v11 = vpop.f32.mrf.mxu2 }
 0xda8   : > { %v7832_v36 = vadd.f32 %v7822_v11, %v7727_v14 }
 0xdaf   : > { %v7824_v22 = vpop.f32.mrf.mxu2 }
 0xdb0   : > { %v7833_v28 = vadd.f32 %v7824_v22, %v7729_v38 }
 0xdb1   : > { %v7916_v12 = vpop.f32.mrf.mxu0 }
 0xdb2   : > { %v7926_v60 = vadd.f32 %v7916_v12, %v7832_v36 }
 0xdb4   : > { %v7935_v30 = vadd.f32 %v15046_v34, %v7926_v60 }
 0xdb6   : > { %v7939_v25 = vmin.f32 %v7935_v30, 20.0 }
 0xdb7   : > { %v7827_v31 = vpop.f32.mrf.mxu2 }
 0xdb8   : > { %v7943_v20 = vmul.f32 1.442695, %v7939_v25  ;;  %v7834_v46 = vadd.f32 %v7827_v31, %v7732_v42 }
 0xdb9   : > { %v7918_v44 = vpop.f32.mrf.mxu0 }
 0xdba   : > { %15609 = vpow2.f32 %v7943_v20  ;;  %v7927_v26 = vadd.f32 %v7918_v44, %v7833_v28 }
 0xdbc   : > { %v7936_v43 = vadd.f32 %v15046_v34, %v7927_v26 }
 0xdbe   : > { %v7940_v48 = vmin.f32 %v7936_v43, 20.0 }
 0xdbf   : > { %v7829_v5 = vpop.f32.mrf.mxu2 }
 0xdc0   : > { %v15610_v47 = vpop.eup %15609  ;;  %v7945_v49 = vmul.f32 1.442695, %v7940_v48  ;;  %v7835_v61 = vadd.f32 %v7829_v5, %v7734_v15  ;;  %v14653_v5 = vld [vmem:[%s16037_s18 + $0x1f0] sm:$0xff]  ;;  %v14651_v15 = vld [vmem:[%s16037_s18 + $0x1e0] sm:$0xff] }
 0xdc1   : > { %v7951_v56 = vadd.f32 2.0, %v15610_v47  ;;  %v7921_v57 = vpop.f32.mrf.mxu0 }
 0xdc2   : > { %15611 = vpow2.f32 %v7945_v49  ;;  %v7928_v59 = vadd.f32 %v7921_v57, %v7834_v46  ;;  %v14656_v57 = vld [vmem:[%s16022_s21 + $0x188] sm:$0xff] }
 0xdc3   : > { %v7955_v1 = vmul.f32 %v15610_v47, %v7951_v56  ;;  %v14655_v56 = vld [vmem:[%s16022_s21 + $0x180] sm:$0xff] }
 0xdc4   : > { %v7937_v50 = vadd.f32 %v15046_v34, %v7928_v59  ;;  %v14658_v59 = vld [vmem:[%s16022_s21 + $0x198] sm:$0xff] }
 0xdc5   : > { %v7963_v4 = vadd.f32 2.0, %v7955_v1  ;;  %v7959_v14 = vmul.f32 %v7955_v1, %v7935_v30  ;;  %v14659_v1 = vld [vmem:[%s16022_s21 + $0x1a0] sm:$0xff] }
 0xdc6   : > { %v7941_v6 = vmin.f32 %v7937_v50, 20.0 }
 0xdc7   : > { %15613 = vrcp.f32 %v7963_v4  ;;  %v14654_v4 = vld [vmem:[%s16037_s18 + $0x1f8] sm:$0xff] }
 0xdc8   : > { %v15612_v8 = vpop.eup %15611  ;;  %v7947_v7 = vmul.f32 1.442695, %v7941_v6  ;;  %8245 = vmatpush.bf16.msra.mxu0 %v14654_v4  ;;  %v14650_v6 = vld [vmem:[%s16037_s18 + $0x1d8] sm:$0xff] }
 0xdc9   : > { %v7952_v0 = vadd.f32 2.0, %v15612_v8  ;;  %v7923_v29 = vpop.f32.mrf.mxu0 }
 0xdca   : > { %15615 = vpow2.f32 %v7947_v7  ;;  %v7929_v3 = vadd.f32 %v7923_v29, %v7835_v61  ;;  %v14649_v61 = vld [vmem:[%s16037_s18 + $0x1d0] sm:$0xff] }
 0xdcb   : > { %v7956_v13 = vmul.f32 %v15612_v8, %v7952_v0  ;;  %v14668_v8 = vld [vmem:[%s16027_s9 + $0x838] sm:$0xff]  ;;  %v14675_v7 = vld [vmem:[%s16027_s9 + $0x870] sm:$0xff] }
 0xdcc   : > { %v7938_v23 = vadd.f32 %v15046_v34, %v7929_v3  ;;  %8246 = vmatpush.bf16.msra.mxu0 %v14653_v5  ;;  %8668 = vmatpush.bf16.msra.mxu2 %v14668_v8  ;;  %v14667_v29 = vld [vmem:[%s16027_s9 + $0x830] sm:$0xff] }
 0xdcd   : > { %v7964_v27 = vadd.f32 2.0, %v7956_v13  ;;  %v15614_v33 = vpop.eup %15613  ;;  %v7960_v16 = vmul.f32 %v7956_v13, %v7936_v43  ;;  %v14648_v13 = vld [vmem:[%s16037_s18 + $0x1c8] sm:$0xff] }
 0xdce   : > { %v7942_v11 = vmin.f32 %v7938_v23, 20.0  ;;  %v7971_v22 = vmul.f32 %v15614_v33, %v7959_v14 }
 0xdcf   : > { %15617 = vrcp.f32 %v7964_v27  ;;  %v14666_v27 = vld [vmem:[%s16027_s9 + $0x828] sm:$0xff] }
 0xdd0   : > { %v15616_v18 = vpop.eup %15615  ;;  %v7949_v9 = vmul.f32 1.442695, %v7942_v11  ;;  %v7975_v40 = vpack.c.bf16 %v7971_v22, %v7971_v22  ;;  %8247 = vmatpush.bf16.msra.mxu0 %v14652_v53  ;;  %8669 = vmatpush.bf16.msra.mxu2 %v14667_v29  ;;  %v14664_v22 = vld [vmem:[%s16027_s9 + $0x818] sm:$0xff]  ;;  %v14670_v53 = vld [vmem:[%s16027_s9 + $0x848] sm:$0xff] }
 0xdd1   : > { %v7953_v36 = vadd.f32 2.0, %v15616_v18 }
 0xdd2   : > { %15619 = vpow2.f32 %v7949_v9  ;;  %v8083_v28 = vunpack.c.l.b16 %v7975_v40 }
 0xdd3   : > { %v7957_v12 = vmul.f32 %v15616_v18, %v7953_v36 }
 0xdd4   : > { %8248 = vmatpush.bf16.msra.mxu0 %v14651_v15  ;;  %8670 = vmatpush.bf16.msra.mxu2 %v14666_v27 }
 0xdd5   : > { %v15618_v19 = vpop.eup %15617  ;;  %v7965_v60 = vadd.f32 2.0, %v7957_v12  ;;  %v7961_v26 = vmul.f32 %v7957_v12, %v7937_v50  ;;  %v14676_v50 = vld [vmem:[%s16027_s9 + $0x878] sm:$0xff] }
 0xdd6   : > { %v7972_v34 = vmul.f32 %v15618_v19, %v7960_v16  ;;  %8595 = vmatpush.bf16.msra.mxu1 %v14676_v50  ;;  %v16960_v19 = vld [vmem:[%s16032_s11 + $0x8] ss:$0 sm:$0xff] }
 0xdd7   : > { %15621 = vrcp.f32 %v7965_v60  ;;  %v14663_v60 = vld [vmem:[%s16027_s9 + $0x810] sm:$0xff] }
 0xdd8   : > { %v15620_v32 = vpop.eup %15619  ;;  %v7976_v38 = vpack.c.bf16 %v7972_v34, %v7972_v34  ;;  %8249 = vmatpush.bf16.msra.mxu0 %v14650_v6  ;;  %8671 = vmatpush.bf16.msra.mxu2 %v14665_v62  ;;  %v14684_v62 = vld [vmem:[%s16027_s9 + $0x8b8] sm:$0xff] }
 0xdd9   : > { %v7954_v25 = vadd.f32 2.0, %v15620_v32 }
 0xdda   : > { %v8084_v20 = vunpack.c.l.b16 %v7976_v38  ;;  %8596 = vmatpush.bf16.msra.mxu1 %v14675_v7 }
 0xddb   : > { %v7958_v44 = vmul.f32 %v15620_v32, %v7954_v25  ;;  %v14674_v32 = vld [vmem:[%s16027_s9 + $0x868] sm:$0xff] }
 0xddc   : > { %v8085_v41 = vpack.c.b16 %v8084_v20, %v8083_v28  ;;  %8250 = vmatpush.bf16.msra.mxu0 %v14649_v61  ;;  %8672 = vmatpush.bf16.msra.mxu2 %v14664_v22  ;;  %v14662_v20 = vld [vmem:[%s16027_s9 + $0x808] sm:$0xff] }
 0xddd   : > { %v7966_v30 = vadd.f32 2.0, %v7958_v44  ;;  %v15622_v45 = vpop.eup %15621  ;;  %v7962_v31 = vmul.f32 %v7958_v44, %v7938_v23 }
 0xdde   : > { %8143 = vmatmul.bf16.vlgmr.msrb.gmra.mxu2 %v8085_v41  ;;  %v7973_v39 = vmul.f32 %v15622_v45, %v7961_v26  ;;  %8597 = vmatpush.bf16.msra.mxu1 %v14674_v32  ;;  %v14673_v45 = vld [vmem:[%s16027_s9 + $0x860] sm:$0xff] }
 0xddf   : > { %15623 = vrcp.f32 %v7966_v30  ;;  %v14661_v26 = vld [vmem:[%s16027_s9 + $0x800] sm:$0xff] }
 0xde0   : > { %v7977_v52 = vpack.c.bf16 %v7973_v39, %v7973_v39  ;;  %8251 = vmatpush.bf16.msra.mxu0 %v14648_v13  ;;  %8673 = vmatpush.bf16.msra.mxu2 %v14663_v60  ;;  %v14669_v13 = vld [vmem:[%s16027_s9 + $0x840] sm:$0xff] }
 0xde2   : > { %v8015_v47 = vunpack.c.l.b16 %v7977_v52  ;;  %8598 = vmatpush.bf16.msra.mxu1 %v14673_v45 }
 0xde4   : > { %8252 = vmatpush.bf16.msra.mxu0 %v14647_v17  ;;  %8674 = vmatpush.bf16.msra.mxu2 %v14662_v20 }
 0xde5   : > { %v15624_v43 = vpop.eup %15623 }
 0xde6   : > { %v7974_v42 = vmul.f32 %v15624_v43, %v7962_v31 }
 0xde8   : > { %v7978_v48 = vpack.c.bf16 %v7974_v42, %v7974_v42  ;;  %8675 = vmatpush.bf16.msra.mxu2 %v14661_v26  ;;  %8764 = vmatpush.bf16.msrb.mxu0 %v14684_v62 }
 0xdea   : > { %v8016_v46 = vunpack.c.l.b16 %v7978_v48 }
 0xdec   : > { %v8017_v49 = vpack.c.b16 %v8016_v46, %v8015_v47  ;;  %v14672_v47 = vld [vmem:[%s16027_s9 + $0x858] sm:$0xff] }
 0xded   : > { %8599 = vmatpush.bf16.msra.mxu1 %v14672_v47 }
 0xdee   : > { %8075 = vmatmul.bf16.vlgmr.msra.gmra.mxu3 %v8017_v49 }
 0xdfe   : > { %13424 = vmatmul.msk.bf16.vlgmr.msrb.gmra.mxu3 %vm717_vm2, %v14655_v56 }
 0xe0e   : > { %13425 = vmatmul.msk.bf16.gmra.mxu3 %vm717_vm2, %v14656_v57 }
 0xe1e   : > { %13426 = vmatmul.msk.bf16.gmra.mxu3 %vm717_vm2, %v14657_v37 }
 0xe2e   : > { %13427 = vmatmul.msk.bf16.gmra.mxu3 %vm717_vm2, %v14658_v59  ;;  %v14671_v59 = vld [vmem:[%s16027_s9 + $0x850] sm:$0xff] }
 0xe2f   : > { %8600 = vmatpush.bf16.msra.mxu1 %v14671_v59 }
 0xe33   : > { %8601 = vmatpush.bf16.msra.mxu1 %v14670_v53 }
 0xe37   : > { %8602 = vmatpush.bf16.msra.mxu1 %v14669_v13  ;;  %v14678_v13 = vld [vmem:[%s16027_s9 + $0x888] sm:$0xff] }
 0xe3e   : > { %13428 = vmatmul.msk.bf16.gmra.mxu3 %vm717_vm2, %v14659_v1 }
 0xe4e   : > { %13429 = vmatmul.msk.bf16.gmra.mxu3 %vm717_vm2, %v14660_v51 }
 0xe61   : > { %v8144_v0 = vpop.f32.mrf.mxu2 }
 0xe69   : > { %v8146_v14 = vpop.f32.mrf.mxu2 }
 0xe71   : > { %v8076_v3 = vpop.f32.mrf.mxu3 }
 0xe72   : > { %v8145_v23 = vadd.f32 %v8144_v0, %v8076_v3 }
 0xe74   : > { %v8154_v11 = vadd.f32 %v15047_v21, %v8145_v23 }
 0xe76   : > { %v8156_v33 = vmin.f32 %v8154_v11, 20.0 }
 0xe78   : > { %v8158_v18 = vmul.f32 1.442695, %v8156_v33 }
 0xe79   : > { %v8078_v9 = vpop.f32.mrf.mxu3 }
 0xe7a   : > { %15625 = vpow2.f32 %v8158_v18  ;;  %v8147_v36 = vadd.f32 %v8146_v14, %v8078_v9 }
 0xe7c   : > { %v8155_v12 = vadd.f32 %v15047_v21, %v8147_v36 }
 0xe7e   : > { %v8157_v16 = vmin.f32 %v8155_v12, 20.0 }
 0xe80   : > { %v15626_v40 = vpop.eup %15625  ;;  %v8160_v34 = vmul.f32 1.442695, %v8157_v16  ;;  %v14683_v16 = vld [vmem:[%s16027_s9 + $0x8b0] sm:$0xff] }
 0xe81   : > { %v8162_v38 = vadd.f32 2.0, %v15626_v40  ;;  %v8351_v25 = vpop.f32.mrf.mxu3  ;;  %8765 = vmatpush.bf16.msrb.mxu0 %v14683_v16 }
 0xe82   : > { %15627 = vpow2.f32 %v8160_v34  ;;  %v8352_v28 = vadd.f32 %v16960_v19, %v8351_v25 }
 0xe83   : > { %v8164_v41 = vmul.f32 %v15626_v40, %v8162_v38 }
 0xe84   : > { %v8381_v44 = vmin.f32 %v8352_v28, 20.0 }
 0xe85   : > { %v8168_v31 = vadd.f32 2.0, %v8164_v41  ;;  %v8166_v15 = vmul.f32 %v8164_v41, %v8154_v11 }
 0xe86   : > { %v8393_v30 = vmul.f32 1.442695, %v8381_v44  ;;  %v14682_v44 = vld [vmem:[%s16027_s9 + $0x8a8] sm:$0xff] }
 0xe87   : > { %8766 = vmatpush.bf16.msrb.mxu0 %v14682_v44 }
 0xe88   : > { %v15628_v39 = vpop.eup %15627  ;;  %15629 = vpow2.f32 %v8393_v30 }
 0xe89   : > { %v8163_v43 = vadd.f32 2.0, %v15628_v39  ;;  %v8353_v52 = vpop.f32.mrf.mxu3  ;;  %15631 = vrcp.f32 %v8168_v31 }
 0xe8a   : > { %v8354_v42 = vadd.f32 %v16960_v19, %v8353_v52 }
 0xe8b   : > { %v8165_v48 = vmul.f32 %v15628_v39, %v8163_v43  ;;  %v14681_v43 = vld [vmem:[%s16027_s9 + $0x8a0] sm:$0xff] }
 0xe8c   : > { %v8382_v46 = vmin.f32 %v8354_v42, 20.0  ;;  %8767 = vmatpush.bf16.msrb.mxu0 %v14681_v43 }
 0xe8d   : > { %v8169_v49 = vadd.f32 2.0, %v8165_v48  ;;  %v8167_v6 = vmul.f32 %v8165_v48, %v8155_v12 }
 0xe8e   : > { %v15630_v56 = vpop.eup %15629  ;;  %v8395_v57 = vmul.f32 1.442695, %v8382_v46 }
 0xe8f   : > { %15633 = vrcp.f32 %v8169_v49  ;;  %v8417_v37 = vadd.f32 2.0, %v15630_v56  ;;  %v15632_v4 = vpop.eup %15631 }
 0xe90   : > { %15635 = vpow2.f32 %v8395_v57  ;;  %v8172_v0 = vmul.f32 %v15632_v4, %v8166_v15  ;;  %v14692_v57 = vld [vmem:[%s16027_s9 + $0x8f8] sm:$0xff]  ;;  %v14691_v15 = vld [vmem:[%s16027_s9 + $0x8f0] sm:$0xff] }
 0xe91   : > { %v8429_v1 = vmul.f32 %v15630_v56, %v8417_v37  ;;  %v8356_v50 = vpop.f32.mrf.mxu3  ;;  %v14680_v37 = vld [vmem:[%s16027_s9 + $0x898] sm:$0xff]  ;;  %8858 = vmatpush.bf16.msrb.mxu1 %v14692_v57 }
 0xe92   : > { %v16972_v51 = vadd.f32 %v16960_v19, %v8356_v50  ;;  %8768 = vmatpush.bf16.msrb.mxu0 %v14680_v37 }
 0xe93   : > { %v8453_v5 = vadd.f32 2.0, %v8429_v1  ;;  %v8441_v36 = vmul.f32 %v8429_v1, %v8352_v28 }
 0xe94   : > { %v8383_v8 = vmin.f32 %v16972_v51, 20.0 }
 0xe95   : > { %v15634_v61 = vpop.eup %15633  ;;  %15637 = vrcp.f32 %v8453_v5  ;;  %8859 = vmatpush.bf16.msrb.mxu1 %v14691_v15 }
 0xe96   : > { %v15636_v7 = vpop.eup %15635  ;;  %v8173_v29 = vmul.f32 %v15634_v61, %v8167_v6  ;;  %v8397_v21 = vmul.f32 1.442695, %v8383_v8  ;;  %v14679_v6 = vld [vmem:[%s16027_s9 + $0x890] sm:$0xff] }
 0xe97   : > { %v8418_v3 = vadd.f32 2.0, %v15636_v7  ;;  %8769 = vmatpush.bf16.msrb.mxu0 %v14679_v6 }
 0xe98   : > { %v8174_v23 = vpack.c.bf16 %v8173_v29, %v8172_v0  ;;  %15639 = vpow2.f32 %v8397_v21 }
 0xe99   : > { %v8430_v27 = vmul.f32 %v15636_v7, %v8418_v3  ;;  %v8358_v17 = vpop.f32.mrf.mxu3 }
 0xe9a   : > { %v8359_v11 = vadd.f32 %v16960_v19, %v8358_v17  ;;  %8253 = vmatmul.bf16.vlgmr.msra.gmra.mxu0 %v8174_v23 }
 0xe9b   : > { %v8454_v33 = vadd.f32 2.0, %v8430_v27  ;;  %v15638_v14 = vpop.eup %15637  ;;  %v8442_v32 = vmul.f32 %v8430_v27, %v8354_v42  ;;  %8770 = vmatpush.bf16.msrb.mxu0 %v14678_v13 }
 0xe9c   : > { %v8384_v18 = vmin.f32 %v8359_v11, 20.0  ;;  %v8477_v60 = vmul.f32 %v15638_v14, %v8441_v36  ;;  %v14689_v14 = vld [vmem:[%s16027_s9 + $0x8e0] sm:$0xff] }
 0xe9d   : > { %15641 = vrcp.f32 %v8454_v33 }
 0xe9e   : > { %v15640_v9 = vpop.eup %15639  ;;  %v8399_v22 = vmul.f32 1.442695, %v8384_v18  ;;  %v8489_v41 = vpack.c.bf16 %v8477_v60, %v8477_v60 }
 0xe9f   : > { %v8419_v12 = vadd.f32 2.0, %v15640_v9 }
 0xea0   : > { %15643 = vpow2.f32 %v8399_v22  ;;  %v8616_v52 = vunpack.c.l.b16 %v8489_v41 }
 0xea1   : > { %v8431_v40 = vmul.f32 %v15640_v9, %v8419_v12  ;;  %v8361_v34 = vpop.f32.mrf.mxu3  ;;  %v14677_v9 = vld [vmem:[%s16027_s9 + $0x880] sm:$0xff] }
 0xea2   : > { %v16981_v38 = vadd.f32 %v16960_v19, %v8361_v34  ;;  %8771 = vmatpush.bf16.msrb.mxu0 %v14677_v9 }
 0xea3   : > { %v15642_v25 = vpop.eup %15641  ;;  %v8455_v20 = vadd.f32 2.0, %v8431_v40  ;;  %v8443_v4 = vmul.f32 %v8431_v40, %v16972_v51  ;;  %v14690_v51 = vld [vmem:[%s16027_s9 + $0x8e8] sm:$0xff] }
 0xea4   : > { %v8478_v30 = vmul.f32 %v15642_v25, %v8442_v32  ;;  %v8385_v28 = vmin.f32 %v16981_v38, 20.0  ;;  %8860 = vmatpush.bf16.msrb.mxu1 %v14690_v51  ;;  %v14688_v32 = vld [vmem:[%s16027_s9 + $0x8d8] sm:$0xff] }
 0xea5   : > { %15645 = vrcp.f32 %v8455_v20 }
 0xea6   : > { %v15644_v45 = vpop.eup %15643  ;;  %v8490_v26 = vpack.c.bf16 %v8478_v30, %v8478_v30  ;;  %v8401_v39 = vmul.f32 1.442695, %v8385_v28 }
 0xea7   : > { %v8420_v31 = vadd.f32 2.0, %v15644_v45 }
 0xea8   : > { %v8617_v42 = vunpack.c.l.b16 %v8490_v26  ;;  %15647 = vpow2.f32 %v8401_v39  ;;  %8861 = vmatpush.bf16.msrb.mxu1 %v14689_v14 }
 0xea9   : > { %v8432_v48 = vmul.f32 %v15644_v45, %v8420_v31  ;;  %v8363_v47 = vpop.f32.mrf.mxu3  ;;  %v14687_v45 = vld [vmem:[%s16027_s9 + $0x8d0] sm:$0xff] }
 0xeaa   : > { %v8618_v46 = vpack.c.b16 %v8617_v42, %v8616_v52  ;;  %v16987_v49 = vadd.f32 %v16960_v19, %v8363_v47  ;;  %v14686_v47 = vld [vmem:[%s16027_s9 + $0x8c8] sm:$0xff] }
 0xeab   : > { %v8456_v56 = vadd.f32 2.0, %v8432_v48  ;;  %v15646_v1 = vpop.eup %15645  ;;  %v8444_v0 = vmul.f32 %v8432_v48, %v8359_v11 }
 0xeac   : > { %v8386_v59 = vmin.f32 %v16987_v49, 20.0  ;;  %8676 = vmatmul.bf16.vlgmr.msra.gmra.mxu2 %v8618_v46  ;;  %v8479_v8 = vmul.f32 %v15646_v1, %v8443_v4  ;;  %8862 = vmatpush.bf16.msrb.mxu1 %v14688_v32 }
 0xead   : > { %15649 = vrcp.f32 %v8456_v56 }
 0xeae   : > { %v15648_v50 = vpop.eup %15647  ;;  %v8403_v5 = vmul.f32 1.442695, %v8386_v59  ;;  %v8491_v23 = vpack.c.bf16 %v8479_v8, %v8479_v8 }
 0xeaf   : > { %v8421_v53 = vadd.f32 2.0, %v15648_v50 }
 0xeb0   : > { %15651 = vpow2.f32 %v8403_v5  ;;  %v8539_v36 = vunpack.c.l.b16 %v8491_v23  ;;  %8863 = vmatpush.bf16.msrb.mxu1 %v14687_v45 }
 0xeb1   : > { %v8433_v61 = vmul.f32 %v15648_v50, %v8421_v53  ;;  %v8366_v7 = vpop.f32.mrf.mxu3  ;;  %v14685_v50 = vld [vmem:[%s16027_s9 + $0x8c0] sm:$0xff] }
 0xeb2   : > { %v16996_v29 = vadd.f32 %v16960_v19, %v8366_v7 }
 0xeb3   : > { %v15650_v21 = vpop.eup %15649  ;;  %v8457_v3 = vadd.f32 2.0, %v8433_v61  ;;  %v8445_v41 = vmul.f32 %v8433_v61, %v16981_v38 }
 0xeb4   : > { %v8480_v27 = vmul.f32 %v15650_v21, %v8444_v0  ;;  %v8387_v17 = vmin.f32 %v16996_v29, 20.0  ;;  %8864 = vmatpush.bf16.msrb.mxu1 %v14686_v47 }
 0xeb5   : > { %15653 = vrcp.f32 %v8457_v3 }
 0xeb6   : > { %v15652_v33 = vpop.eup %15651  ;;  %v8492_v62 = vpack.c.bf16 %v8480_v27, %v8480_v27  ;;  %v8405_v18 = vmul.f32 1.442695, %v8387_v17 }
 0xeb7   : > { %v8422_v11 = vadd.f32 2.0, %v15652_v33 }
 0xeb8   : > { %v8540_v22 = vunpack.c.l.b16 %v8492_v62  ;;  %15655 = vpow2.f32 %v8405_v18  ;;  %8865 = vmatpush.bf16.msrb.mxu1 %v14685_v50 }
 0xeb9   : > { %v8434_v12 = vmul.f32 %v15652_v33, %v8422_v11  ;;  %v8368_v16 = vpop.f32.mrf.mxu3 }
 0xeba   : > { %v8543_v60 = vpack.c.b16 %v8540_v22, %v8539_v36  ;;  %v8369_v40 = vadd.f32 %v16960_v19, %v8368_v16 }
 0xebb   : > { %v8458_v34 = vadd.f32 2.0, %v8434_v12  ;;  %v15654_v20 = vpop.eup %15653  ;;  %v8446_v43 = vmul.f32 %v8434_v12, %v16987_v49 }
 0xebc   : > { %v8388_v25 = vmin.f32 %v8369_v40, 20.0  ;;  %8603 = vmatmul.bf16.vlgmr.msra.gmra.mxu1 %v8543_v60  ;;  %8681 = vmatmul.bf16.gmra.mxu2 %v8543_v60  ;;  %v8481_v26 = vmul.f32 %v15654_v20, %v8445_v41 }
 0xebd   : > { %15657 = vrcp.f32 %v8458_v34 }
 0xebe   : > { %v15656_v44 = vpop.eup %15655  ;;  %v8407_v30 = vmul.f32 1.442695, %v8388_v25  ;;  %v8493_v46 = vpack.c.bf16 %v8481_v26, %v8481_v26 }
 0xebf   : > { %v8423_v28 = vadd.f32 2.0, %v15656_v44 }
 0xec0   : > { %15659 = vpow2.f32 %v8407_v30  ;;  %v8541_v4 = vunpack.c.l.b16 %v8493_v46 }
 0xec1   : > { %v8435_v39 = vmul.f32 %v15656_v44, %v8423_v28  ;;  %v8371_v31 = vpop.f32.mrf.mxu3 }
 0xec2   : > { %v8372_v52 = vadd.f32 %v16960_v19, %v8371_v31 }
 0xec3   : > { %v15658_v42 = vpop.eup %15657  ;;  %v8459_v48 = vadd.f32 2.0, %v8435_v39  ;;  %v8447_v21 = vmul.f32 %v8435_v39, %v16996_v29 }
 0xec4   : > { %v8482_v56 = vmul.f32 %v15658_v42, %v8446_v43  ;;  %v8389_v57 = vmin.f32 %v8372_v52, 20.0 }
 0xec5   : > { %15661 = vrcp.f32 %v8459_v48 }
 0xec6   : > { %v15660_v38 = vpop.eup %15659  ;;  %v8494_v37 = vpack.c.bf16 %v8482_v56, %v8482_v56  ;;  %v8409_v59 = vmul.f32 1.442695, %v8389_v57 }
 0xec7   : > { %v8424_v1 = vadd.f32 2.0, %v15660_v38 }
 0xec8   : > { %v8542_v5 = vunpack.c.l.b16 %v8494_v37  ;;  %15663 = vpow2.f32 %v8409_v59 }
 0xec9   : > { %v8436_v53 = vmul.f32 %v15660_v38, %v8424_v1  ;;  %v8373_v49 = vpop.f32.mrf.mxu3 }
 0xeca   : > { %v8374_v15 = vadd.f32 %v16960_v19, %v8373_v49  ;;  %v8544_v6 = vpack.c.b16 %v8542_v5, %v8541_v4 }
 0xecb   : > { %v8460_v8 = vadd.f32 2.0, %v8436_v53  ;;  %v15662_v7 = vpop.eup %15661  ;;  %v8448_v17 = vmul.f32 %v8436_v53, %v8369_v40 }
 0xecc   : > { %v8390_v61 = vmin.f32 %v8374_v15, 20.0  ;;  %8608 = vmatmul.bf16.gmra.mxu1 %v8544_v6  ;;  %v8483_v13 = vmul.f32 %v15662_v7, %v8447_v21  ;;  %v17016_v21 = vld [vmem:[%s16052_s3 + $0x7] ss:$0 sm:$0xff] }
 0xecd   : > { %15665 = vrcp.f32 %v8460_v8 }
 0xece   : > { %v15664_v0 = vpop.eup %15663  ;;  %v8411_v3 = vmul.f32 1.442695, %v8390_v61  ;;  %v8495_v11 = vpack.c.bf16 %v8483_v13, %v8483_v13 }
 0xecf   : > { %v8425_v51 = vadd.f32 2.0, %v15664_v0 }
 0xed0   : > { %15667 = vpow2.f32 %v8411_v3  ;;  %v8708_v29 = vunpack.c.l.b16 %v8495_v11 }
 0xed1   : > { %v8437_v23 = vmul.f32 %v15664_v0, %v8425_v51  ;;  %v8376_v27 = vpop.f32.mrf.mxu3 }
 0xed2   : > { %v8377_v33 = vadd.f32 %v16960_v19, %v8376_v27 }
 0xed3   : > { %v15666_v62 = vpop.eup %15665  ;;  %v8461_v18 = vadd.f32 2.0, %v8437_v23  ;;  %v8449_v28 = vmul.f32 %v8437_v23, %v8372_v52 }
 0xed4   : > { %v8484_v14 = vmul.f32 %v15666_v62, %v8448_v17  ;;  %v8391_v9 = vmin.f32 %v8377_v33, 20.0 }
 0xed5   : > { %15669 = vrcp.f32 %v8461_v18 }
 0xed6   : > { %v15668_v36 = vpop.eup %15667  ;;  %v8496_v22 = vpack.c.bf16 %v8484_v14, %v8484_v14  ;;  %v8413_v12 = vmul.f32 1.442695, %v8391_v9 }
 0xed7   : > { %v8426_v16 = vadd.f32 2.0, %v15668_v36 }
 0xed8   : > { %v8709_v60 = vunpack.c.l.b16 %v8496_v22  ;;  %15671 = vpow2.f32 %v8413_v12 }
 0xed9   : > { %v8438_v34 = vmul.f32 %v15668_v36, %v8426_v16  ;;  %v8378_v32 = vpop.f32.mrf.mxu3 }
 0xeda   : > { %v8712_v25 = vpack.c.b16 %v8709_v60, %v8708_v29  ;;  %v8379_v40 = vadd.f32 %v16960_v19, %v8378_v32  ;;  %v14700_v29 = vld [vmem:[%s16005_s28 + $0x438] sm:$0xff]  ;;  %v14699_v32 = vld [vmem:[%s16005_s28 + $0x430] sm:$0xff] }
 0xedb   : > { %v8462_v20 = vadd.f32 2.0, %v8438_v34  ;;  %v15670_v41 = vpop.eup %15669  ;;  %v8450_v43 = vmul.f32 %v8438_v34, %v8374_v15  ;;  %9086 = vmatpush.bf16.msra.mxu0 %v14700_v29 }
 0xedc   : > { %v8392_v44 = vmin.f32 %v8379_v40, 20.0  ;;  %8772 = vmatmul.bf16.vlgmr.msrb.gmra.mxu0 %v8712_v25  ;;  %v8485_v39 = vmul.f32 %v15670_v41, %v8449_v28  ;;  %v14698_v25 = vld [vmem:[%s16005_s28 + $0x428] sm:$0xff]  ;;  %v14708_v41 = vld [vmem:[%s16005_s28 + $0x478] sm:$0xff] }
 0xedd   : > { %15673 = vrcp.f32 %v8462_v20  ;;  %9018 = vmatpush.bf16.msrb.mxu2 %v14708_v41 }
 0xede   : > { %v15672_v30 = vpop.eup %15671  ;;  %v8415_v45 = vmul.f32 1.442695, %v8392_v44  ;;  %v8497_v47 = vpack.c.bf16 %v8485_v39, %v8485_v39  ;;  %v14697_v44 = vld [vmem:[%s16005_s28 + $0x420] sm:$0xff]  ;;  %v15050_v39 = vld [vmem:[%s16042_s19 + $0x8] ss:$0 sm:$0xff] }
 0xedf   : > { %v8427_v26 = vadd.f32 2.0, %v15672_v30  ;;  %9087 = vmatpush.bf16.msra.mxu0 %v14699_v32  ;;  %v14701_v32 = vld [vmem:[%s16005_s28 + $0x440] sm:$0xff] }
 0xee0   : > { %15675 = vpow2.f32 %v8415_v45  ;;  %v8710_v38 = vunpack.c.l.b16 %v8497_v47 }
 0xee1   : > { %v8439_v31 = vmul.f32 %v15672_v30, %v8427_v26  ;;  %v14696_v30 = vld [vmem:[%s16005_s28 + $0x418] sm:$0xff] }
 0xee3   : > { %v15674_v42 = vpop.eup %15673  ;;  %v8463_v48 = vadd.f32 2.0, %v8439_v31  ;;  %v8451_v4 = vmul.f32 %v8439_v31, %v8377_v33  ;;  %9088 = vmatpush.bf16.msra.mxu0 %v14698_v25 }
 0xee4   : > { %v8486_v46 = vmul.f32 %v15674_v42, %v8450_v43  ;;  %v14707_v42 = vld [vmem:[%s16005_s28 + $0x470] sm:$0xff] }
 0xee5   : > { %15677 = vrcp.f32 %v8463_v48  ;;  %v14695_v48 = vld [vmem:[%s16005_s28 + $0x410] sm:$0xff]  ;;  %9019 = vmatpush.bf16.msrb.mxu2 %v14707_v42 }
 0xee6   : > { %v15676_v56 = vpop.eup %15675  ;;  %v8498_v57 = vpack.c.bf16 %v8486_v46, %v8486_v46 }
 0xee7   : > { %v8428_v19 = vadd.f32 2.0, %v15676_v56  ;;  %9089 = vmatpush.bf16.msra.mxu0 %v14697_v44 }
 0xee8   : > { %v8711_v37 = vunpack.c.l.b16 %v8498_v57  ;;  %v14694_v57 = vld [vmem:[%s16005_s28 + $0x408] sm:$0xff] }
 0xee9   : > { %v8440_v59 = vmul.f32 %v15676_v56, %v8428_v19  ;;  %v14706_v56 = vld [vmem:[%s16005_s28 + $0x468] sm:$0xff] }
 0xeea   : > { %v8713_v1 = vpack.c.b16 %v8711_v37, %v8710_v38  ;;  %9020 = vmatpush.bf16.msrb.mxu2 %v14706_v56 }
 0xeeb   : > { %v8464_v50 = vadd.f32 2.0, %v8440_v59  ;;  %v15678_v52 = vpop.eup %15677  ;;  %v8452_v53 = vmul.f32 %v8440_v59, %v8379_v40  ;;  %9090 = vmatpush.bf16.msra.mxu0 %v14696_v30  ;;  %v13781_v30 = vld [vmem:[%s16017_s23 + $0x24] sm:$0xf] }
 0xeec   : > { %8777 = vmatmul.bf16.gmra.mxu0 %v8713_v1  ;;  %8866 = vmatmul.bf16.vlgmr.msrb.gmra.mxu1 %v8713_v1  ;;  %v8487_v5 = vmul.f32 %v15678_v52, %v8451_v4  ;;  %v14693_v52 = vld [vmem:[%s16005_s28 + $0x400] sm:$0xff] }
 0xeed   : > { %15679 = vrcp.f32 %v8464_v50  ;;  %v14705_v50 = vld [vmem:[%s16005_s28 + $0x460] sm:$0xff] }
 0xeee   : > { %v8499_v15 = vpack.c.bf16 %v8487_v5, %v8487_v5  ;;  %9021 = vmatpush.bf16.msrb.mxu2 %v14705_v50 }
 0xeef   : > { %9091 = vmatpush.bf16.msra.mxu0 %v14695_v48 }
 0xef0   : > { %v8806_v61 = vunpack.c.l.b16 %v8499_v15  ;;  %v14704_v15 = vld [vmem:[%s16005_s28 + $0x458] sm:$0xff] }
 0xef2   : > { %9022 = vmatpush.bf16.msrb.mxu2 %v14704_v15 }
 0xef3   : > { %v15680_v49 = vpop.eup %15679  ;;  %9092 = vmatpush.bf16.msra.mxu0 %v14694_v57 }
 0xef4   : > { %v8488_v6 = vmul.f32 %v15680_v49, %v8452_v53 }
 0xef6   : > { %v8500_v8 = vpack.c.bf16 %v8488_v6, %v8488_v6 }
 0xef7   : > { %9093 = vmatpush.bf16.msra.mxu0 %v14693_v52 }
 0xef8   : > { %v8807_v7 = vunpack.c.l.b16 %v8500_v8 }
 0xefa   : > { %v8808_v0 = vpack.c.b16 %v8807_v7, %v8806_v61 }
 0xefc   : > { %8871 = vmatmul.bf16.gmra.mxu1 %v8808_v0 }
 0xf17   : > { %v8254_v3 = vpop.f32.mrf.mxu0 }
 0xf18   : > { %v8255_v51 = vadd.f32 %v17016_v21, %v8254_v3 }
 0xf1a   : > { %v8259_v13 = vmax.f32 %v8255_v51, -1.0 }
 0xf1c   : > { %v8261_v23 = vmin.f32 %v8259_v13, 0.9921875  ;;  %v14703_v13 = vld [vmem:[%s16005_s28 + $0x450] sm:$0xff] }
 0xf1d   : > { %9023 = vmatpush.bf16.msrb.mxu2 %v14703_v13  ;;  %v14717_v13 = vld [vmem:[%s16022_s21 + $0x1b0] sm:$0xff] }
 0xf1e   : > { %v8263_v27 = vmul.f32 128.0, %v8261_v23 }
 0xf1f   : > { %v17023_v60 = vpop.f32.mrf.mxu0 }
 0xf20   : > { %v14897_v17 = vcvt.f32.s32 %v8263_v27  ;;  %v14895_v62 = vand.u32 2147483647, %v8263_v27  ;;  %v14900_v11 = vand.u32 2147483648, %v8263_v27 }
 0xf22   : > { %v14898_v33 = vcvt.s32.f32 %v14897_v17  ;;  %vm14896_vm10 = vcmp.lt.f32.partialorder %v14895_v62, 8388608.0 }
 0xf24   : > { %v14899_v18 = vand.u32 2147483647, %v14898_v33 }
 0xf26   : > { %v14901_v14 = vor.u32 %v14900_v11, %v14899_v18  ;;  %v14702_v11 = vld [vmem:[%s16005_s28 + $0x448] sm:$0xff] }
 0xf27   : > { %9024 = vmatpush.bf16.msrb.mxu2 %v14702_v11  ;;  %v14716_v11 = vld [vmem:[%s16037_s18 + $0x238] sm:$0xff] }
 0xf28   : > { %v14902_v9 = vsel %vm14896_vm10, %v14901_v14, %v8263_v27  ;;  %9196 = vmatpush.bf16.msra.mxu1 %v14716_v11 }
 0xf29   : > { %v8267_v36 = vmul.f32 0.0078125, %v14902_v9 }
 0xf2b   : > { %v17020_v22 = vadd.f32 %v8267_v36, %v16908_v55  ;;  %9025 = vmatpush.bf16.msrb.mxu2 %v14701_v32 }
 0xf2f   : > { %v8677_v40 = vpop.f32.mrf.mxu2 }
 0xf37   : > { %v8679_v45 = vpop.f32.mrf.mxu2 }
 0xf39   : > { %v8604_v12 = vpop.f32.mrf.mxu1 }
 0xf3a   : > { %v8678_v28 = vadd.f32 %v8677_v40, %v8604_v12 }
 0xf3f   : > { %v8682_v5 = vpop.f32.mrf.mxu2 }
 0xf41   : > { %v8606_v16 = vpop.f32.mrf.mxu1 }
 0xf42   : > { %v8680_v19 = vadd.f32 %v8679_v45, %v8606_v16 }
 0xf47   : > { %v8684_v33 = vpop.f32.mrf.mxu2 }
 0xf49   : > { %v8609_v34 = vpop.f32.mrf.mxu1 }
 0xf4a   : > { %v8683_v6 = vadd.f32 %v8682_v5, %v8609_v34 }
 0xf51   : > { %v8611_v55 = vpop.f32.mrf.mxu1 }
 0xf52   : > { %v8685_v14 = vadd.f32 %v8684_v33, %v8611_v55  ;;  %v9291_v55 = vsel %vm736_vm1, %v13781_v30, 0  ;;  %v14721_v33 = vld [vmem:[%s16022_s21 + $0x1d0] sm:$0xff]  ;;  %v14728_v30 = vld [vmem:[%s16027_s9 + $0x928] sm:$0xff] }
 0xf53   : > { %9300 = vmatpush.bf16.msra.mxu2 %v9291_v55  ;;  %v14709_v55 = vld [vmem:[%s16037_s18 + $0x200] sm:$0xff] }
 0xf59   : > { %v8773_v20 = vpop.f32.mrf.mxu0 }
 0xf5a   : > { %v8783_v26 = vadd.f32 %v8773_v20, %v8678_v28 }
 0xf61   : > { %v8775_v31 = vpop.f32.mrf.mxu0 }
 0xf62   : > { %v8784_v37 = vadd.f32 %v8775_v31, %v8680_v19 }
 0xf69   : > { %v8867_v43 = vpop.f32.mrf.mxu1  ;;  %v8778_v53 = vpop.f32.mrf.mxu0 }
 0xf6a   : > { %v8877_v47 = vadd.f32 %v8867_v43, %v8783_v26  ;;  %v8785_v7 = vadd.f32 %v8778_v53, %v8683_v6 }
 0xf6c   : > { %v8886_v46 = vadd.f32 %v15050_v39, %v8877_v47 }
 0xf6e   : > { %v8890_v38 = vmin.f32 %v8886_v46, 20.0 }
 0xf70   : > { %v8894_v59 = vmul.f32 1.442695, %v8890_v38 }
 0xf71   : > { %v8869_v1 = vpop.f32.mrf.mxu1  ;;  %v8780_v18 = vpop.f32.mrf.mxu0 }
 0xf72   : > { %15681 = vpow2.f32 %v8894_v59  ;;  %v8878_v4 = vadd.f32 %v8869_v1, %v8784_v37  ;;  %v8786_v12 = vadd.f32 %v8780_v18, %v8685_v14  ;;  %v14722_v18 = vld [vmem:[%s16022_s21 + $0x1d8] sm:$0xff]  ;;  %v14715_v14 = vld [vmem:[%s16037_s18 + $0x230] sm:$0xff] }
 0xf73   : > { %9197 = vmatpush.bf16.msra.mxu1 %v14715_v14 }
 0xf74   : > { %v8887_v49 = vadd.f32 %v15050_v39, %v8878_v4 }
 0xf76   : > { %v8891_v8 = vmin.f32 %v8887_v49, 20.0 }
 0xf78   : > { %v15682_v61 = vpop.eup %15681  ;;  %v8896_v0 = vmul.f32 1.442695, %v8891_v8 }
 0xf79   : > { %v8902_v3 = vadd.f32 2.0, %v15682_v61  ;;  %v8872_v51 = vpop.f32.mrf.mxu1 }
 0xf7a   : > { %15683 = vpow2.f32 %v8896_v0  ;;  %v8879_v23 = vadd.f32 %v8872_v51, %v8785_v7 }
 0xf7b   : > { %v8906_v27 = vmul.f32 %v15682_v61, %v8902_v3 }
 0xf7c   : > { %v8888_v17 = vadd.f32 %v15050_v39, %v8879_v23  ;;  %v14718_v23 = vld [vmem:[%s16022_s21 + $0x1b8] sm:$0xff] }
 0xf7d   : > { %v8914_v62 = vadd.f32 2.0, %v8906_v27  ;;  %v8910_v26 = vmul.f32 %v8906_v27, %v8886_v46  ;;  %v14719_v27 = vld [vmem:[%s16022_s21 + $0x1c0] sm:$0xff] }
 0xf7e   : > { %v8892_v9 = vmin.f32 %v8888_v17, 20.0 }
 0xf7f   : > { %15685 = vrcp.f32 %v8914_v62  ;;  %v14738_v62 = vld [vmem:[%s16027_s9 + $0x978] sm:$0xff] }
 0xf80   : > { %v15684_v36 = vpop.eup %15683  ;;  %v8898_v16 = vmul.f32 1.442695, %v8892_v9  ;;  %9546 = vmatpush.bf16.msra.mxu3 %v14738_v62  ;;  %v14714_v9 = vld [vmem:[%s16037_s18 + $0x228] sm:$0xff]  ;;  %v14733_v62 = vld [vmem:[%s16027_s9 + $0x950] sm:$0xff] }
 0xf81   : > { %v8903_v29 = vadd.f32 2.0, %v15684_v36  ;;  %v8874_v34 = vpop.f32.mrf.mxu1  ;;  %9198 = vmatpush.bf16.msra.mxu1 %v14714_v9 }
 0xf82   : > { %15687 = vpow2.f32 %v8898_v16  ;;  %v8880_v25 = vadd.f32 %v8874_v34, %v8786_v12  ;;  %v14712_v12 = vld [vmem:[%s16037_s18 + $0x218] sm:$0xff]  ;;  %v14737_v34 = vld [vmem:[%s16027_s9 + $0x970] sm:$0xff] }
 0xf83   : > { %v8907_v40 = vmul.f32 %v15684_v36, %v8903_v29  ;;  %v14713_v36 = vld [vmem:[%s16037_s18 + $0x220] sm:$0xff]  ;;  %v14730_v16 = vld [vmem:[%s16027_s9 + $0x938] sm:$0xff]  ;;  %v14711_v29 = vld [vmem:[%s16037_s18 + $0x210] sm:$0xff] }
 0xf84   : > { %v8889_v20 = vadd.f32 %v15050_v39, %v8880_v25  ;;  %9619 = vmatpush.bf16.msrb.mxu0 %v14730_v16  ;;  %v14729_v25 = vld [vmem:[%s16027_s9 + $0x930] sm:$0xff]  ;;  %9547 = vmatpush.bf16.msra.mxu3 %v14737_v34 }
 0xf85   : > { %v8915_v44 = vadd.f32 2.0, %v8907_v40  ;;  %v15686_v28 = vpop.eup %15685  ;;  %v8911_v47 = vmul.f32 %v8907_v40, %v8887_v49  ;;  %9199 = vmatpush.bf16.msra.mxu1 %v14713_v36  ;;  %v15051_v40 = vld [vmem:[%s16047_s20 + $0x8] ss:$0 sm:$0xff] }
 0xf86   : > { %v8893_v41 = vmin.f32 %v8889_v20, 20.0  ;;  %v8922_v42 = vmul.f32 %v15686_v28, %v8910_v26  ;;  %v14727_v26 = vld [vmem:[%s16027_s9 + $0x920] sm:$0xff] }
 0xf87   : > { %15689 = vrcp.f32 %v8915_v44  ;;  %v14710_v44 = vld [vmem:[%s16037_s18 + $0x208] sm:$0xff] }
 0xf88   : > { %v15688_v45 = vpop.eup %15687  ;;  %v8900_v31 = vmul.f32 1.442695, %v8893_v41  ;;  %v8926_v19 = vpack.c.bf16 %v8922_v42, %v8922_v42  ;;  %9620 = vmatpush.bf16.msrb.mxu0 %v14729_v25 }
 0xf89   : > { %v8904_v43 = vadd.f32 2.0, %v15688_v45  ;;  %9200 = vmatpush.bf16.msra.mxu1 %v14712_v12  ;;  %v14732_v12 = vld [vmem:[%s16027_s9 + $0x948] sm:$0xff] }
 0xf8a   : > { %15691 = vpow2.f32 %v8900_v31  ;;  %v9034_v1 = vunpack.c.l.b16 %v8926_v19  ;;  %v17072_v19 = vld [vmem:[%s16032_s11 + $0x9] ss:$0 sm:$0xff] }
 0xf8b   : > { %v8908_v48 = vmul.f32 %v15688_v45, %v8904_v43 }
 0xf8c   : > { %9621 = vmatpush.bf16.msrb.mxu0 %v14728_v30  ;;  %v14731_v30 = vld [vmem:[%s16027_s9 + $0x940] sm:$0xff] }
 0xf8d   : > { %v15690_v56 = vpop.eup %15689  ;;  %v8916_v57 = vadd.f32 2.0, %v8908_v48  ;;  %v8912_v53 = vmul.f32 %v8908_v48, %v8888_v17  ;;  %v14720_v17 = vld [vmem:[%s16022_s21 + $0x1c8] sm:$0xff]  ;;  %9201 = vmatpush.bf16.msra.mxu1 %v14711_v29 }
 0xf8e   : > { %v8923_v39 = vmul.f32 %v15690_v56, %v8911_v47  ;;  %v14726_v47 = vld [vmem:[%s16027_s9 + $0x918] sm:$0xff] }
 0xf8f   : > { %15693 = vrcp.f32 %v8916_v57 }
 0xf90   : > { %v15692_v38 = vpop.eup %15691  ;;  %v8927_v37 = vpack.c.bf16 %v8923_v39, %v8923_v39  ;;  %9622 = vmatpush.bf16.msrb.mxu0 %v14727_v26  ;;  %v14725_v39 = vld [vmem:[%s16027_s9 + $0x910] sm:$0xff] }
 0xf91   : > { %v8905_v59 = vadd.f32 2.0, %v15692_v38  ;;  %9202 = vmatpush.bf16.msra.mxu1 %v14710_v44 }
 0xf92   : > { %v9035_v50 = vunpack.c.l.b16 %v8927_v37 }
 0xf93   : > { %v8909_v52 = vmul.f32 %v15692_v38, %v8905_v59  ;;  %v14736_v59 = vld [vmem:[%s16027_s9 + $0x968] sm:$0xff] }
 0xf94   : > { %v9036_v4 = vpack.c.b16 %v9035_v50, %v9034_v1  ;;  %9623 = vmatpush.bf16.msrb.mxu0 %v14726_v47  ;;  %9548 = vmatpush.bf16.msra.mxu3 %v14736_v59 }
 0xf95   : > { %v8917_v46 = vadd.f32 2.0, %v8909_v52  ;;  %v15694_v5 = vpop.eup %15693  ;;  %v8913_v15 = vmul.f32 %v8909_v52, %v8889_v20  ;;  %9203 = vmatpush.bf16.msra.mxu1 %v14709_v55 }
 0xf96   : > { %9094 = vmatmul.bf16.vlgmr.msra.gmra.mxu0 %v9036_v4  ;;  %v8924_v49 = vmul.f32 %v15694_v5, %v8912_v53  ;;  %v14724_v4 = vld [vmem:[%s16027_s9 + $0x908] sm:$0xff] }
 0xf97   : > { %15695 = vrcp.f32 %v8917_v46 }
 0xf98   : > { %v8928_v8 = vpack.c.bf16 %v8924_v49, %v8924_v49  ;;  %9624 = vmatpush.bf16.msrb.mxu0 %v14725_v39  ;;  %v14735_v49 = vld [vmem:[%s16027_s9 + $0x960] sm:$0xff] }
 0xf99   : > { %9549 = vmatpush.bf16.msra.mxu3 %v14735_v49 }
 0xf9a   : > { %v8966_v0 = vunpack.c.l.b16 %v8928_v8 }
 0xf9c   : > { %9625 = vmatpush.bf16.msrb.mxu0 %v14724_v4 }
 0xf9d   : > { %v15696_v6 = vpop.eup %15695 }
 0xf9e   : > { %v8925_v61 = vmul.f32 %v15696_v6, %v8913_v15  ;;  %v14723_v15 = vld [vmem:[%s16027_s9 + $0x900] sm:$0xff] }
 0xfa0   : > { %v8929_v7 = vpack.c.bf16 %v8925_v61, %v8925_v61  ;;  %9626 = vmatpush.bf16.msrb.mxu0 %v14723_v15 }
 0xfa2   : > { %v8967_v3 = vunpack.c.l.b16 %v8929_v7 }
 0xfa4   : > { %v8968_v51 = vpack.c.b16 %v8967_v3, %v8966_v0 }
 0xfa6   : > { %9026 = vmatmul.bf16.vlgmr.msrb.gmra.mxu2 %v8968_v51  ;;  %v14734_v51 = vld [vmem:[%s16027_s9 + $0x958] sm:$0xff] }
 0xfa7   : > { %9550 = vmatpush.bf16.msra.mxu3 %v14734_v51 }
 0xfab   : > { %9551 = vmatpush.bf16.msra.mxu3 %v14733_v62  ;;  %v14754_v62 = vld [vmem:[%s16027_s9 + $0x9f8] sm:$0xff] }
 0xfaf   : > { %9552 = vmatpush.bf16.msra.mxu3 %v14732_v12 }
 0xfb3   : > { %9553 = vmatpush.bf16.msra.mxu3 %v14731_v30 }
 0xfb6   : > { %13807 = vmatmul.msk.bf16.vlgmr.msra.gmra.mxu2 %vm717_vm2, %v14717_v13 }
 0xfb7   : > { %9809 = vmatpush.bf16.msrb.mxu3 %v14754_v62 }
 0xfc6   : > { %13808 = vmatmul.msk.bf16.gmra.mxu2 %vm717_vm2, %v14718_v23 }
 0xfd6   : > { %13809 = vmatmul.msk.bf16.gmra.mxu2 %vm717_vm2, %v14719_v27 }
 0xfe6   : > { %13810 = vmatmul.msk.bf16.gmra.mxu2 %vm717_vm2, %v14720_v17 }
 0xff6   : > { %13811 = vmatmul.msk.bf16.gmra.mxu2 %vm717_vm2, %v14721_v33 }
0x1006   : > { %13812 = vmatmul.msk.bf16.gmra.mxu2 %vm717_vm2, %v14722_v18 }
0x1013   : > { %v9095_v32 = vpop.f32.mrf.mxu0 }
0x101b   : > { %v9097_v43 = vpop.f32.mrf.mxu0 }
0x1029   : > { %v9027_v20 = vpop.f32.mrf.mxu2 }
0x102a   : > { %v9096_v41 = vadd.f32 %v9095_v32, %v9027_v20 }
0x102c   : > { %v9105_v28 = vadd.f32 %v15051_v40, %v9096_v41 }
0x102e   : > { %v9107_v45 = vmin.f32 %v9105_v28, 20.0 }
0x1030   : > { %v9109_v31 = vmul.f32 1.442695, %v9107_v45 }
0x1031   : > { %v9029_v42 = vpop.f32.mrf.mxu2 }
0x1032   : > { %15697 = vpow2.f32 %v9109_v31  ;;  %v9098_v48 = vadd.f32 %v9097_v43, %v9029_v42  ;;  %v14746_v43 = vld [vmem:[%s16027_s9 + $0x9b8] sm:$0xff] }
0x1033   : > { %9715 = vmatpush.bf16.msrb.mxu1 %v14746_v43 }
0x1034   : > { %v9106_v56 = vadd.f32 %v15051_v40, %v9098_v48 }
0x1036   : > { %v9108_v57 = vmin.f32 %v9106_v56, 20.0 }
0x1038   : > { %v15698_v38 = vpop.eup %15697  ;;  %v9111_v37 = vmul.f32 1.442695, %v9108_v57 }
0x1039   : > { %v9113_v1 = vadd.f32 2.0, %v15698_v38  ;;  %v9302_v50 = vpop.f32.mrf.mxu2 }
0x103a   : > { %15699 = vpow2.f32 %v9111_v37  ;;  %v9303_v52 = vadd.f32 %v17072_v19, %v9302_v50 }
0x103b   : > { %v9115_v5 = vmul.f32 %v15698_v38, %v9113_v1  ;;  %v14745_v38 = vld [vmem:[%s16027_s9 + $0x9b0] sm:$0xff] }
0x103c   : > { %v9332_v46 = vmin.f32 %v9303_v52, 20.0  ;;  %9716 = vmatpush.bf16.msrb.mxu1 %v14745_v38 }
0x103d   : > { %v9119_v8 = vadd.f32 2.0, %v9115_v5  ;;  %v9117_v16 = vmul.f32 %v9115_v5, %v9105_v28 }
0x103e   : > { %v9344_v53 = vmul.f32 1.442695, %v9332_v46 }
0x1040   : > { %v15700_v6 = vpop.eup %15699  ;;  %15701 = vpow2.f32 %v9344_v53  ;;  %v14744_v53 = vld [vmem:[%s16027_s9 + $0x9a8] sm:$0xff] }
0x1041   : > { %v9114_v61 = vadd.f32 2.0, %v15700_v6  ;;  %v9304_v7 = vpop.f32.mrf.mxu2  ;;  %15703 = vrcp.f32 %v9119_v8  ;;  %9717 = vmatpush.bf16.msrb.mxu1 %v14744_v53 }
0x1042   : > { %v9305_v0 = vadd.f32 %v17072_v19, %v9304_v7 }
0x1043   : > { %v9116_v3 = vmul.f32 %v15700_v6, %v9114_v61 }
0x1044   : > { %v9333_v13 = vmin.f32 %v9305_v0, 20.0 }
0x1045   : > { %v9120_v23 = vadd.f32 2.0, %v9116_v3  ;;  %v9118_v29 = vmul.f32 %v9116_v3, %v9106_v56  ;;  %v14743_v3 = vld [vmem:[%s16027_s9 + $0x9a0] sm:$0xff] }
0x1046   : > { %v15702_v27 = vpop.eup %15701  ;;  %v9346_v17 = vmul.f32 1.442695, %v9333_v13  ;;  %9718 = vmatpush.bf16.msrb.mxu1 %v14743_v3 }
0x1047   : > { %15705 = vrcp.f32 %v9120_v23  ;;  %v9368_v33 = vadd.f32 2.0, %v15702_v27  ;;  %v15704_v9 = vpop.eup %15703 }
0x1048   : > { %15707 = vpow2.f32 %v9346_v17  ;;  %v9123_v40 = vmul.f32 %v15704_v9, %v9117_v16 }
0x1049   : > { %v9380_v18 = vmul.f32 %v15702_v27, %v9368_v33  ;;  %v9307_v11 = vpop.f32.mrf.mxu2 }
0x104a   : > { %v17084_v14 = vadd.f32 %v17072_v19, %v9307_v11 }
0x104b   : > { %v9404_v36 = vadd.f32 2.0, %v9380_v18  ;;  %v9392_v56 = vmul.f32 %v9380_v18, %v9303_v52  ;;  %v14742_v18 = vld [vmem:[%s16027_s9 + $0x998] sm:$0xff] }
0x104c   : > { %v9334_v34 = vmin.f32 %v17084_v14, 20.0  ;;  %9719 = vmatpush.bf16.msrb.mxu1 %v14742_v18 }
0x104d   : > { %v15706_v32 = vpop.eup %15705  ;;  %15709 = vrcp.f32 %v9404_v36 }
0x104e   : > { %v15708_v25 = vpop.eup %15707  ;;  %v9124_v20 = vmul.f32 %v15706_v32, %v9118_v29  ;;  %v9348_v44 = vmul.f32 1.442695, %v9334_v34  ;;  %v14753_v34 = vld [vmem:[%s16027_s9 + $0x9f0] sm:$0xff] }
0x104f   : > { %v9369_v41 = vadd.f32 2.0, %v15708_v25  ;;  %v14741_v32 = vld [vmem:[%s16027_s9 + $0x990] sm:$0xff]  ;;  %9810 = vmatpush.bf16.msrb.mxu3 %v14753_v34 }
0x1050   : > { %v9125_v55 = vpack.c.bf16 %v9124_v20, %v9123_v40  ;;  %15711 = vpow2.f32 %v9348_v44  ;;  %9720 = vmatpush.bf16.msrb.mxu1 %v14741_v32 }
0x1051   : > { %v9381_v45 = vmul.f32 %v15708_v25, %v9369_v41  ;;  %v9309_v26 = vpop.f32.mrf.mxu2 }
0x1052   : > { %v9310_v28 = vadd.f32 %v17072_v19, %v9309_v26  ;;  %9204 = vmatmul.bf16.vlgmr.msra.gmra.mxu1 %v9125_v55 }
0x1053   : > { %v9405_v31 = vadd.f32 2.0, %v9381_v45  ;;  %v15710_v48 = vpop.eup %15709  ;;  %v9393_v50 = vmul.f32 %v9381_v45, %v9305_v0  ;;  %v14740_v45 = vld [vmem:[%s16027_s9 + $0x988] sm:$0xff] }
0x1054   : > { %v9335_v42 = vmin.f32 %v9310_v28, 20.0  ;;  %v9428_v37 = vmul.f32 %v15710_v48, %v9392_v56  ;;  %9721 = vmatpush.bf16.msrb.mxu1 %v14740_v45  ;;  %v14751_v56 = vld [vmem:[%s16027_s9 + $0x9e0] sm:$0xff] }
0x1055   : > { %15713 = vrcp.f32 %v9405_v31 }
0x1056   : > { %v15712_v47 = vpop.eup %15711  ;;  %v9350_v57 = vmul.f32 1.442695, %v9335_v42  ;;  %v9440_v49 = vpack.c.bf16 %v9428_v37, %v9428_v37 }
0x1057   : > { %v9370_v39 = vadd.f32 2.0, %v15712_v47 }
0x1058   : > { %15715 = vpow2.f32 %v9350_v57  ;;  %v9567_v0 = vunpack.c.l.b16 %v9440_v49  ;;  %v14739_v57 = vld [vmem:[%s16027_s9 + $0x980] sm:$0xff] }
0x1059   : > { %v9382_v59 = vmul.f32 %v15712_v47, %v9370_v39  ;;  %v9312_v1 = vpop.f32.mrf.mxu2  ;;  %9722 = vmatpush.bf16.msrb.mxu1 %v14739_v57 }
0x105a   : > { %v17093_v4 = vadd.f32 %v17072_v19, %v9312_v1 }
0x105b   : > { %v15714_v46 = vpop.eup %15713  ;;  %v9406_v5 = vadd.f32 2.0, %v9382_v59  ;;  %v9394_v12 = vmul.f32 %v9382_v59, %v17084_v14  ;;  %v14752_v14 = vld [vmem:[%s16027_s9 + $0x9e8] sm:$0xff] }
0x105c   : > { %v9429_v15 = vmul.f32 %v15714_v46, %v9393_v50  ;;  %v9336_v52 = vmin.f32 %v17093_v4, 20.0  ;;  %9811 = vmatpush.bf16.msrb.mxu3 %v14752_v14 }
0x105d   : > { %15717 = vrcp.f32 %v9406_v5  ;;  %v14750_v5 = vld [vmem:[%s16027_s9 + $0x9d8] sm:$0xff] }
0x105e   : > { %v15716_v6 = vpop.eup %15715  ;;  %v9441_v8 = vpack.c.bf16 %v9429_v15, %v9429_v15  ;;  %v9352_v61 = vmul.f32 1.442695, %v9336_v52 }
0x105f   : > { %v9371_v7 = vadd.f32 2.0, %v15716_v6 }
0x1060   : > { %v9568_v51 = vunpack.c.l.b16 %v9441_v8  ;;  %15719 = vpow2.f32 %v9352_v61  ;;  %9812 = vmatpush.bf16.msrb.mxu3 %v14751_v56  ;;  %v14749_v61 = vld [vmem:[%s16027_s9 + $0x9d0] sm:$0xff] }
0x1061   : > { %v9383_v13 = vmul.f32 %v15716_v6, %v9371_v7  ;;  %v9314_v23 = vpop.f32.mrf.mxu2 }
0x1062   : > { %v9569_v27 = vpack.c.b16 %v9568_v51, %v9567_v0  ;;  %v17099_v17 = vadd.f32 %v17072_v19, %v9314_v23 }
0x1063   : > { %v9407_v33 = vadd.f32 2.0, %v9383_v13  ;;  %v15718_v9 = vpop.eup %15717  ;;  %v9395_v44 = vmul.f32 %v9383_v13, %v9310_v28 }
0x1064   : > { %v9337_v11 = vmin.f32 %v17099_v17, 20.0  ;;  %9627 = vmatmul.bf16.vlgmr.msrb.gmra.mxu0 %v9569_v27  ;;  %v9430_v25 = vmul.f32 %v15718_v9, %v9394_v12  ;;  %9813 = vmatpush.bf16.msrb.mxu3 %v14750_v5 }
0x1065   : > { %15721 = vrcp.f32 %v9407_v33  ;;  %v14748_v33 = vld [vmem:[%s16027_s9 + $0x9c8] sm:$0xff] }
0x1066   : > { %v15720_v36 = vpop.eup %15719  ;;  %v9354_v16 = vmul.f32 1.442695, %v9337_v11  ;;  %v9442_v26 = vpack.c.bf16 %v9430_v25, %v9430_v25 }
0x1067   : > { %v9372_v29 = vadd.f32 2.0, %v15720_v36 }
0x1068   : > { %15723 = vpow2.f32 %v9354_v16  ;;  %v9490_v39 = vunpack.c.l.b16 %v9442_v26  ;;  %9814 = vmatpush.bf16.msrb.mxu3 %v14749_v61  ;;  %v14747_v16 = vld [vmem:[%s16027_s9 + $0x9c0] sm:$0xff] }
0x1069   : > { %v9384_v40 = vmul.f32 %v15720_v36, %v9372_v29  ;;  %v9317_v20 = vpop.f32.mrf.mxu2 }
0x106a   : > { %v17108_v41 = vadd.f32 %v17072_v19, %v9317_v20 }
0x106b   : > { %v15722_v30 = vpop.eup %15721  ;;  %v9408_v55 = vadd.f32 2.0, %v9384_v40  ;;  %v9396_v52 = vmul.f32 %v9384_v40, %v17093_v4 }
0x106c   : > { %v9431_v31 = vmul.f32 %v15722_v30, %v9395_v44  ;;  %v9338_v43 = vmin.f32 %v17108_v41, 20.0  ;;  %9815 = vmatpush.bf16.msrb.mxu3 %v14748_v33 }
0x106d   : > { %15725 = vrcp.f32 %v9408_v55 }
0x106e   : > { %v15724_v42 = vpop.eup %15723  ;;  %v9443_v48 = vpack.c.bf16 %v9431_v31, %v9431_v31  ;;  %v9356_v47 = vmul.f32 1.442695, %v9338_v43 }
0x106f   : > { %v9373_v28 = vadd.f32 2.0, %v15724_v42 }
0x1070   : > { %v9491_v38 = vunpack.c.l.b16 %v9443_v48  ;;  %15727 = vpow2.f32 %v9356_v47  ;;  %9816 = vmatpush.bf16.msrb.mxu3 %v14747_v16 }
0x1071   : > { %v9385_v37 = vmul.f32 %v15724_v42, %v9373_v28  ;;  %v9319_v59 = vpop.f32.mrf.mxu2 }
0x1072   : > { %v9494_v1 = vpack.c.b16 %v9491_v38, %v9490_v39  ;;  %v9320_v50 = vadd.f32 %v17072_v19, %v9319_v59 }
0x1073   : > { %v9409_v46 = vadd.f32 2.0, %v9385_v37  ;;  %v15726_v49 = vpop.eup %15725  ;;  %v9397_v51 = vmul.f32 %v9385_v37, %v17099_v17 }
0x1074   : > { %v9339_v53 = vmin.f32 %v9320_v50, 20.0  ;;  %9554 = vmatmul.bf16.vlgmr.msra.gmra.mxu3 %v9494_v1  ;;  %9632 = vmatmul.bf16.gmra.mxu0 %v9494_v1  ;;  %v9432_v7 = vmul.f32 %v15726_v49, %v9396_v52 }
0x1075   : > { %15729 = vrcp.f32 %v9409_v46 }
0x1076   : > { %v15728_v15 = vpop.eup %15727  ;;  %v9358_v6 = vmul.f32 1.442695, %v9339_v53  ;;  %v9444_v62 = vpack.c.bf16 %v9432_v7, %v9432_v7 }
0x1077   : > { %v9374_v8 = vadd.f32 2.0, %v15728_v15 }
0x1078   : > { %15731 = vpow2.f32 %v9358_v6  ;;  %v9492_v29 = vunpack.c.l.b16 %v9444_v62 }
0x1079   : > { %v9386_v3 = vmul.f32 %v15728_v15, %v9374_v8  ;;  %v9322_v0 = vpop.f32.mrf.mxu2 }
0x107a   : > { %v9323_v13 = vadd.f32 %v17072_v19, %v9322_v0 }
0x107b   : > { %v15730_v23 = vpop.eup %15729  ;;  %v9410_v27 = vadd.f32 2.0, %v9386_v3  ;;  %v9398_v14 = vmul.f32 %v9386_v3, %v17108_v41 }
0x107c   : > { %v9433_v18 = vmul.f32 %v15730_v23, %v9397_v51  ;;  %v9340_v11 = vmin.f32 %v9323_v13, 20.0 }
0x107d   : > { %15733 = vrcp.f32 %v9410_v27 }
0x107e   : > { %v15732_v4 = vpop.eup %15731  ;;  %v9445_v9 = vpack.c.bf16 %v9433_v18, %v9433_v18  ;;  %v9360_v36 = vmul.f32 1.442695, %v9340_v11 }
0x107f   : > { %v9375_v12 = vadd.f32 2.0, %v15732_v4 }
0x1080   : > { %v9493_v34 = vunpack.c.l.b16 %v9445_v9  ;;  %15735 = vpow2.f32 %v9360_v36 }
0x1081   : > { %v9387_v32 = vmul.f32 %v15732_v4, %v9375_v12  ;;  %v9324_v17 = vpop.f32.mrf.mxu2 }
0x1082   : > { %v9325_v25 = vadd.f32 %v17072_v19, %v9324_v17  ;;  %v9495_v40 = vpack.c.b16 %v9493_v34, %v9492_v29 }
0x1083   : > { %v9411_v20 = vadd.f32 2.0, %v9387_v32  ;;  %v15734_v30 = vpop.eup %15733  ;;  %v9399_v48 = vmul.f32 %v9387_v32, %v9320_v50 }
0x1084   : > { %v9341_v44 = vmin.f32 %v9325_v25, 20.0  ;;  %9559 = vmatmul.bf16.gmra.mxu3 %v9495_v40  ;;  %v9434_v31 = vmul.f32 %v15734_v30, %v9398_v14 }
0x1085   : > { %15737 = vrcp.f32 %v9411_v20 }
0x1086   : > { %v15736_v55 = vpop.eup %15735  ;;  %v9362_v45 = vmul.f32 1.442695, %v9341_v44  ;;  %v9446_v57 = vpack.c.bf16 %v9434_v31, %v9434_v31 }
0x1087   : > { %v9376_v26 = vadd.f32 2.0, %v15736_v55 }
0x1088   : > { %15739 = vpow2.f32 %v9362_v45  ;;  %v9659_v41 = vunpack.c.l.b16 %v9446_v57  ;;  %v15777_v45 = vld [vmem:[%s16052_s3] ss:$0 sm:$0xff] }
0x1089   : > { %v9388_v43 = vmul.f32 %v15736_v55, %v9376_v26  ;;  %v9327_v42 = vpop.f32.mrf.mxu2  ;;  %v1600_v26 = vadd.f32 %v15777_v45, %v16256_v35 }
0x108a   : > { %v9328_v47 = vadd.f32 %v17072_v19, %v9327_v42 }
0x108b   : > { %v15738_v28 = vpop.eup %15737  ;;  %v9412_v56 = vadd.f32 2.0, %v9388_v43  ;;  %v9400_v7 = vmul.f32 %v9388_v43, %v9323_v13  ;;  %v15778_v43 = vld [vmem:[%s16052_s3 + $0x1] ss:$0 sm:$0xff] }
0x108c   : > { %v9435_v39 = vmul.f32 %v15738_v28, %v9399_v48  ;;  %v9342_v38 = vmin.f32 %v9328_v47, 20.0  ;;  %v2551_v42 = vadd.f32 %v15778_v43, %v16366_v24  ;;  %v15779_v48 = vld [vmem:[%s16052_s3 + $0x2] ss:$0 sm:$0xff]  ;;  %v1603_v28 = vmax.f32 %v1600_v26, -1.0 }
0x108d   : > { %15741 = vrcp.f32 %v9412_v56 }
0x108e   : > { %v15740_v37 = vpop.eup %15739  ;;  %v9447_v59 = vpack.c.bf16 %v9435_v39, %v9435_v39  ;;  %v9364_v1 = vmul.f32 1.442695, %v9342_v38  ;;  %v2554_v56 = vmax.f32 %v2551_v42, -1.0  ;;  %v1605_v39 = vmin.f32 %v1603_v28, 0.9921875  ;;  %v15780_v38 = vld [vmem:[%s16052_s3 + $0x3] ss:$0 sm:$0xff] }
0x108f   : > { %v9377_v46 = vadd.f32 2.0, %v15740_v37 }
0x1090   : > { %v9660_v5 = vunpack.c.l.b16 %v9447_v59  ;;  %15743 = vpow2.f32 %v9364_v1  ;;  %v15781_v59 = vld [vmem:[%s16052_s3 + $0x4] ss:$0 sm:$0xff]  ;;  %v2556_v1 = vmin.f32 %v2554_v56, 0.9921875 }
0x1091   : > { %v9389_v53 = vmul.f32 %v15740_v37, %v9377_v46  ;;  %v9329_v49 = vpop.f32.mrf.mxu2  ;;  %v4453_v37 = vadd.f32 %v15780_v38, %v16584_v2  ;;  %v5404_v35 = vadd.f32 %v15781_v59, %v16693_v63 }
0x1092   : > { %v9663_v15 = vpack.c.b16 %v9660_v5, %v9659_v41  ;;  %v9330_v50 = vadd.f32 %v17072_v19, %v9329_v49  ;;  %v17137_v41 = vmul.f32 128.0, %v1605_v39  ;;  %v15782_v5 = vld [vmem:[%s16052_s3 + $0x5] ss:$0 sm:$0xff]  ;;  %v15783_v49 = vld [vmem:[%s16052_s3 + $0x6] ss:$0 sm:$0xff] }
0x1093   : > { %v9413_v52 = vadd.f32 2.0, %v9389_v53  ;;  %v15742_v8 = vpop.eup %15741  ;;  %v9401_v27 = vmul.f32 %v9389_v53, %v9325_v25  ;;  %v4456_v24 = vmax.f32 %v4453_v37, -1.0  ;;  %v5407_v53 = vmax.f32 %v5404_v35, -1.0 }
0x1094   : > { %v9343_v6 = vmin.f32 %v9330_v50, 20.0  ;;  %9723 = vmatmul.bf16.vlgmr.msrb.gmra.mxu1 %v9663_v15  ;;  %v9436_v51 = vmul.f32 %v15742_v8, %v9400_v7  ;;  %v7306_v15 = vadd.f32 %v15783_v49, %v16911_v58  ;;  %v14793_v2 = vcvt.f32.s32 %v17137_v41 }
0x1095   : > { %15745 = vrcp.f32 %v9413_v52  ;;  %v8257_v8 = vadd.f32 %v17016_v21, %v17023_v60 }
0x1096   : > { %v15744_v61 = vpop.eup %15743  ;;  %v9366_v3 = vmul.f32 1.442695, %v9343_v6  ;;  %v9448_v18 = vpack.c.bf16 %v9436_v51, %v9436_v51  ;;  %v4458_v6 = vmin.f32 %v4456_v24, 0.9921875  ;;  %v7309_v7 = vmax.f32 %v7306_v15, -1.0 }
0x1097   : > { %v9378_v0 = vadd.f32 2.0, %v15744_v61 }
0x1098   : > { %15747 = vpow2.f32 %v9366_v3  ;;  %v9661_v36 = vunpack.c.l.b16 %v9448_v18  ;;  %v17152_v51 = vmul.f32 128.0, %v4458_v6 }
0x1099   : > { %v9390_v23 = vmul.f32 %v15744_v61, %v9378_v0  ;;  %v5409_v61 = vmin.f32 %v5407_v53, 0.9921875  ;;  %v14794_v0 = vcvt.s32.f32 %v14793_v2 }
0x109a   : > { %v14841_v21 = vcvt.f32.s32 %v17152_v51  ;;  %v14844_v37 = vand.u32 2147483648, %v17152_v51 }
0x109b   : > { %v15746_v33 = vpop.eup %15745  ;;  %v9414_v62 = vadd.f32 2.0, %v9390_v23  ;;  %v9402_v32 = vmul.f32 %v9390_v23, %v9328_v47  ;;  %v3502_v47 = vadd.f32 %v15779_v48, %v16475_v10  ;;  %v6355_v10 = vadd.f32 %v15782_v5, %v16802_v54 }
0x109c   : > { %v9437_v11 = vmul.f32 %v15746_v33, %v9401_v27  ;;  %v8260_v23 = vmax.f32 %v8257_v8, -1.0  ;;  %v17154_v27 = vmul.f32 128.0, %v5409_v61  ;;  %v7311_v33 = vmin.f32 %v7309_v7, 0.9921875 }
0x109d   : > { %15749 = vrcp.f32 %v9414_v62  ;;  %v3505_v57 = vmax.f32 %v3502_v47, -1.0  ;;  %v6358_v63 = vmax.f32 %v6355_v10, -1.0 }
0x109e   : > { %v15748_v4 = vpop.eup %15747  ;;  %v9449_v9 = vpack.c.bf16 %v9437_v11, %v9437_v11  ;;  %v14795_v11 = vand.u32 2147483647, %v14794_v0  ;;  %v14855_v10 = vand.u32 2147483647, %v17154_v27  ;;  %v14860_v53 = vand.u32 2147483648, %v17154_v27 }
0x109f   : > { %v9379_v19 = vadd.f32 2.0, %v15748_v4  ;;  %v3507_v46 = vmin.f32 %v3505_v57, 0.9921875  ;;  %v6360_v58 = vmin.f32 %v6358_v63, 0.9921875 }
0x10a0   : > { %v9662_v12 = vunpack.c.l.b16 %v9449_v9  ;;  %v14791_v9 = vand.u32 2147483647, %v17137_v41  ;;  %vm17207_vm15 = vcmp.lt.f32.partialorder %v14855_v10, 8388608.0  ;;  %v14762_v10 = vld [vmem:[%s16005_s28 + $0x4b8] sm:$0xff] }
0x10a1   : > { %v9391_v16 = vmul.f32 %v15748_v4, %v9379_v19  ;;  %v17145_v52 = vmul.f32 128.0, %v3507_v46  ;;  %v17157_v60 = vmul.f32 128.0, %v6360_v58  ;;  %v8262_v4 = vmin.f32 %v8260_v23, 0.9921875  ;;  %10037 = vmatpush.bf16.msra.mxu1 %v14762_v10  ;;  %v14769_v23 = vld [vmem:[%s16005_s28 + $0x4f0] sm:$0xff] }
0x10a2   : > { %v9664_v29 = vpack.c.b16 %v9662_v12, %v9661_v36  ;;  %v14796_v19 = vand.u32 2147483648, %v17137_v41  ;;  %v14857_v36 = vcvt.f32.s32 %v17154_v27  ;;  %v17162_v12 = vmul.f32 128.0, %v7311_v33 }
0x10a3   : > { %v9415_v13 = vadd.f32 2.0, %v9391_v16  ;;  %v15750_v34 = vpop.eup %15749  ;;  %v9403_v25 = vmul.f32 %v9391_v16, %v9330_v50  ;;  %v17143_v50 = vmul.f32 128.0, %v2556_v1  ;;  %v14825_v54 = vcvt.f32.s32 %v17145_v52 }
0x10a4   : > { %9728 = vmatmul.bf16.gmra.mxu1 %v9664_v29  ;;  %9817 = vmatmul.bf16.vlgmr.msrb.gmra.mxu3 %v9664_v29  ;;  %v9438_v17 = vmul.f32 %v15750_v34, %v9402_v32  ;;  %v14797_v34 = vor.u32 %v14796_v19, %v14795_v11  ;;  %vm17173_vm11 = vcmp.lt.f32.partialorder %v14791_v9, 8388608.0  ;;  %v14871_v33 = vand.u32 2147483647, %v17157_v60 }
0x10a5   : > { %15751 = vrcp.f32 %v9415_v13  ;;  %v14809_v3 = vcvt.f32.s32 %v17143_v50  ;;  %v14826_v18 = vcvt.s32.f32 %v14825_v54  ;;  %v15053_v13 = vld [vmem:[%s16052_s3 + $0x8] ss:$0 sm:$0xff]  ;;  %v14807_v32 = vand.u32 2147483647, %v17143_v50 }
0x10a6   : > { %v9450_v20 = vpack.c.bf16 %v9438_v17, %v9438_v17  ;;  %v14842_v17 = vcvt.s32.f32 %v14841_v21  ;;  %v14798_v48 = vsel %vm17173_vm11, %v14797_v34, %v17137_v41  ;;  %v14839_v41 = vand.u32 2147483647, %v17152_v51 }
0x10a7   : > { %v14810_v62 = vcvt.s32.f32 %v14809_v3  ;;  %v14827_v29 = vand.u32 2147483647, %v14826_v18  ;;  %vm17180_vm12 = vcmp.lt.f32.partialorder %v14807_v32, 8388608.0  ;;  %v1611_v49 = vmul.f32 0.0078125, %v14798_v48 }
0x10a8   : > { %v9757_v55 = vunpack.c.l.b16 %v9450_v20  ;;  %v14873_v20 = vcvt.f32.s32 %v17157_v60  ;;  %v14843_v47 = vand.u32 2147483647, %v14842_v17  ;;  %vm17199_vm14 = vcmp.lt.f32.partialorder %v14839_v41, 8388608.0 }
0x10a9   : > { %v14811_v16 = vand.u32 2147483647, %v14810_v62  ;;  %v14892_v62 = vand.u32 2147483648, %v17162_v12  ;;  %v14887_v19 = vand.u32 2147483647, %v17162_v12  ;;  %vm14872_vm0 = vcmp.lt.f32.partialorder %v14871_v33, 8388608.0 }
0x10aa   : > { %v14874_v56 = vcvt.s32.f32 %v14873_v20  ;;  %v14845_v5 = vor.u32 %v14844_v37, %v14843_v47  ;;  %v14757_v33 = vld [vmem:[%s16005_s28 + $0x490] sm:$0xff] }
0x10ab   : > { %v15752_v40 = vpop.eup %15751  ;;  %vm14888_vm1 = vcmp.lt.f32.partialorder %v14887_v19, 8388608.0 }
0x10ac   : > { %v9439_v44 = vmul.f32 %v15752_v40, %v9403_v25  ;;  %v14812_v25 = vand.u32 2147483648, %v17143_v50  ;;  %v14828_v40 = vand.u32 2147483648, %v17145_v52  ;;  %v14875_v15 = vand.u32 2147483647, %v14874_v56 }
0x10ad   : > { %v14846_v58 = vsel %vm17199_vm14, %v14845_v5, %v17152_v51 }
0x10ae   : > { %v9451_v30 = vpack.c.bf16 %v9439_v44, %v9439_v44  ;;  %v17169_v44 = vmul.f32 128.0, %v8262_v4  ;;  %v14829_v43 = vor.u32 %v14828_v40, %v14827_v29  ;;  %v4464_v17 = vmul.f32 0.0078125, %v14846_v58 }
0x10b0   : > { %v9758_v14 = vunpack.c.l.b16 %v9451_v30  ;;  %v14823_v30 = vand.u32 2147483647, %v17145_v52  ;;  %v14905_v57 = vcvt.f32.s32 %v17169_v44 }
0x10b2   : > { %v9759_v31 = vpack.c.b16 %v9758_v14, %v9757_v55  ;;  %v14858_v55 = vcvt.s32.f32 %v14857_v36  ;;  %v14889_v14 = vcvt.f32.s32 %v17162_v12  ;;  %vm17185_vm13 = vcmp.lt.f32.partialorder %v14823_v30, 8388608.0 }
0x10b3   : > { %v14830_v46 = vsel %vm17185_vm13, %v14829_v43, %v17145_v52  ;;  %v14906_v2 = vcvt.s32.f32 %v14905_v57  ;;  %v14876_v52 = vand.u32 2147483648, %v17157_v60 }
0x10b4   : > { %9822 = vmatmul.bf16.gmra.mxu3 %v9759_v31  ;;  %v14813_v31 = vor.u32 %v14812_v25, %v14811_v16  ;;  %v14859_v59 = vand.u32 2147483647, %v14858_v55  ;;  %v14890_v35 = vcvt.s32.f32 %v14889_v14  ;;  %v3513_v8 = vmul.f32 0.0078125, %v14830_v46 }
0x10b5   : > { %v14877_v18 = vor.u32 %v14876_v52, %v14875_v15  ;;  %v14907_v11 = vand.u32 2147483647, %v14906_v2  ;;  %v14908_v16 = vand.u32 2147483648, %v17169_v44  ;;  %v14903_v25 = vand.u32 2147483647, %v17169_v44  ;;  %v14760_v15 = vld [vmem:[%s16005_s28 + $0x4a8] sm:$0xff] }
0x10b6   : > { %v14814_v1 = vsel %vm17180_vm12, %v14813_v31, %v17143_v50  ;;  %v14861_v61 = vor.u32 %v14860_v53, %v14859_v59  ;;  %v14891_v50 = vand.u32 2147483647, %v14890_v35 }
0x10b7   : > { %v2562_v63 = vmul.f32 0.0078125, %v14814_v1  ;;  %v14878_v40 = vsel %vm14872_vm0, %v14877_v18, %v17157_v60  ;;  %v14909_v20 = vor.u32 %v14908_v16, %v14907_v11  ;;  %vm14904_vm3 = vcmp.lt.f32.partialorder %v14903_v25, 8388608.0  ;;  %v14768_v11 = vld [vmem:[%s16005_s28 + $0x4e8] sm:$0xff]  ;;  %v14767_v16 = vld [vmem:[%s16005_s28 + $0x4e0] sm:$0xff]  ;;  %v14766_v25 = vld [vmem:[%s16005_s28 + $0x4d8] sm:$0xff] }
0x10b8   : > { %v14862_v9 = vsel %vm17207_vm15, %v14861_v61, %v17154_v27  ;;  %v14893_v36 = vor.u32 %v14892_v62, %v14891_v50  ;;  %v14770_v61 = vld [vmem:[%s16005_s28 + $0x4f8] sm:$0xff] }
0x10b9   : > { %v2564_v32 = vadd.f32 %v2562_v63, %v1611_v49  ;;  %v5415_v14 = vmul.f32 0.0078125, %v14862_v9  ;;  %v14910_v47 = vsel %vm14904_vm3, %v14909_v20, %v17169_v44  ;;  %v14761_v49 = vld [vmem:[%s16005_s28 + $0x4b0] sm:$0xff]  ;;  %v14758_v50 = vld [vmem:[%s16005_s28 + $0x498] sm:$0xff]  ;;  %9969 = vmatpush.bf16.msra.mxu0 %v14770_v61 }
0x10ba   : > { %v8268_v59 = vmul.f32 0.0078125, %v14910_v47  ;;  %10038 = vmatpush.bf16.msra.mxu1 %v14761_v49 }
0x10bb   : > { %v3515_v27 = vadd.f32 %v3513_v8, %v2564_v32  ;;  %v14759_v8 = vld [vmem:[%s16005_s28 + $0x4a0] sm:$0xff] }
0x10bd   : > { %v4466_v43 = vadd.f32 %v4464_v17, %v3515_v27  ;;  %9970 = vmatpush.bf16.msra.mxu0 %v14769_v23 }
0x10be   : > { %10039 = vmatpush.bf16.msra.mxu1 %v14760_v15 }
0x10bf   : > { %v5417_v56 = vadd.f32 %v5415_v14, %v4466_v43 }
0x10c1   : > { %9971 = vmatpush.bf16.msra.mxu0 %v14768_v11 }
0x10c2   : > { %10040 = vmatpush.bf16.msra.mxu1 %v14759_v8 }
0x10c5   : > { %9972 = vmatpush.bf16.msra.mxu0 %v14767_v16 }
0x10c6   : > { %10041 = vmatpush.bf16.msra.mxu1 %v14758_v50 }
0x10c9   : > { %9973 = vmatpush.bf16.msra.mxu0 %v14766_v25  ;;  %v14776_v25 = vld [vmem:[%s16037_s18 + $0x268] sm:$0xff] }
0x10ca   : > { %10042 = vmatpush.bf16.msra.mxu1 %v14757_v33 }
0x10cf   : > { %v9205_v45 = vpop.f32.mrf.mxu1 }
0x10d0   : > { %v9206_v42 = vadd.f32 %v15053_v13, %v9205_v45  ;;  %v14894_v45 = vsel %vm14888_vm1, %v14893_v36, %v17162_v12 }
0x10d1   : > { %v7317_v60 = vmul.f32 0.0078125, %v14894_v45 }
0x10d2   : > { %v9210_v39 = vmax.f32 %v9206_v42, -1.0  ;;  %v6366_v42 = vmul.f32 0.0078125, %v14878_v40 }
0x10d4   : > { %v9212_v24 = vmin.f32 %v9210_v39, 0.9921875  ;;  %v6368_v12 = vadd.f32 %v6366_v42, %v5417_v56  ;;  %v14764_v56 = vld [vmem:[%s16005_s28 + $0x4c8] sm:$0xff] }
0x10d6   : > { %v9214_v6 = vmul.f32 128.0, %v9212_v24  ;;  %v7319_v1 = vadd.f32 %v7317_v60, %v6368_v12 }
0x10d7   : > { %v9207_v7 = vpop.f32.mrf.mxu1 }
0x10d8   : > { %v14913_v54 = vcvt.f32.s32 %v9214_v6  ;;  %v9208_v0 = vadd.f32 %v15053_v13, %v9207_v7  ;;  %v14911_v51 = vand.u32 2147483647, %v9214_v6  ;;  %v14916_v13 = vand.u32 2147483648, %v9214_v6 }
0x10d9   : > { %v8270_v44 = vadd.f32 %v8268_v59, %v7319_v1  ;;  %v14763_v1 = vld [vmem:[%s16005_s28 + $0x4c0] sm:$0xff] }
0x10da   : > { %v14914_v21 = vcvt.s32.f32 %v14913_v54  ;;  %v9211_v4 = vmax.f32 %v9208_v0, -1.0  ;;  %vm14912_vm2 = vcmp.lt.f32.partialorder %v14911_v51, 8388608.0  ;;  %v15054_v54 = vld [vmem:[%s16042_s19 + $0x9] ss:$0 sm:$0xff] }
0x10dc   : > { %v14915_v29 = vand.u32 2147483647, %v14914_v21  ;;  %v9213_v34 = vmin.f32 %v9211_v4, 0.9921875  ;;  %v14756_v21 = vld [vmem:[%s16005_s28 + $0x488] sm:$0xff] }
0x10dd   : > { %10043 = vmatpush.bf16.msra.mxu1 %v14756_v21 }
0x10de   : > { %v14917_v30 = vor.u32 %v14916_v13, %v14915_v29  ;;  %v9215_v55 = vmul.f32 128.0, %v9213_v34  ;;  %v14755_v29 = vld [vmem:[%s16005_s28 + $0x480] sm:$0xff] }
0x10e0   : > { %v14918_v26 = vsel %vm14912_vm2, %v14917_v30, %v9214_v6  ;;  %v14921_v31 = vcvt.f32.s32 %v9215_v55  ;;  %v14919_v39 = vand.u32 2147483647, %v9215_v55  ;;  %v14924_v37 = vand.u32 2147483648, %v9215_v55 }
0x10e1   : > { %v9218_v48 = vmul.f32 0.0078125, %v14918_v26  ;;  %v9628_v2 = vpop.f32.mrf.mxu0  ;;  %10044 = vmatpush.bf16.msra.mxu1 %v14755_v29  ;;  %v14765_v26 = vld [vmem:[%s16005_s28 + $0x4d0] sm:$0xff] }
0x10e2   : > { %v14922_v28 = vcvt.s32.f32 %v14921_v31  ;;  %vm14920_vm4 = vcmp.lt.f32.partialorder %v14919_v39, 8388608.0  ;;  %9974 = vmatpush.bf16.msra.mxu0 %v14765_v26 }
0x10e3   : > { %v17223_v57 = vadd.f32 %v9218_v48, %v17020_v22 }
0x10e4   : > { %v14923_v38 = vand.u32 2147483647, %v14922_v28 }
0x10e6   : > { %v14925_v35 = vor.u32 %v14924_v37, %v14923_v38  ;;  %9975 = vmatpush.bf16.msra.mxu0 %v14764_v56 }
0x10e8   : > { %v14926_v46 = vsel %vm14920_vm4, %v14925_v35, %v9215_v55 }
0x10e9   : > { %v9219_v41 = vmul.f32 0.0078125, %v14926_v46  ;;  %v9630_v3 = vpop.f32.mrf.mxu0 }
0x10ea   : > { %9976 = vmatpush.bf16.msra.mxu0 %v14763_v1 }
0x10eb   : > { %v17225_v24 = vadd.f32 %v9219_v41, %v8270_v44 }
0x10f1   : > { %v9633_v34 = vpop.f32.mrf.mxu0 }
0x10f7   : > { %v9555_v22 = vpop.f32.mrf.mxu3 }
0x10f8   : > { %v9629_v7 = vadd.f32 %v9628_v2, %v9555_v22 }
0x10f9   : > { %v9635_v48 = vpop.f32.mrf.mxu0 }
0x10ff   : > { %v9557_v5 = vpop.f32.mrf.mxu3 }
0x1100   : > { %v9631_v4 = vadd.f32 %v9630_v3, %v9557_v5 }
0x1107   : > { %v9560_v53 = vpop.f32.mrf.mxu3 }
0x1108   : > { %v9634_v40 = vadd.f32 %v9633_v34, %v9560_v53 }
0x110f   : > { %v9562_v63 = vpop.f32.mrf.mxu3 }
0x1110   : > { %v9636_v60 = vadd.f32 %v9635_v48, %v9562_v63 }
0x1111   : > { %v9724_v6 = vpop.f32.mrf.mxu1 }
0x1112   : > { %v9734_v52 = vadd.f32 %v9724_v6, %v9629_v7 }
0x1119   : > { %v9726_v0 = vpop.f32.mrf.mxu1 }
0x111a   : > { %v9735_v19 = vadd.f32 %v9726_v0, %v9631_v4 }
0x1121   : > { %v9729_v32 = vpop.f32.mrf.mxu1 }
0x1122   : > { %v9736_v55 = vadd.f32 %v9729_v32, %v9634_v40  ;;  %v14778_v32 = vld [vmem:[%s16037_s18 + $0x278] sm:$0xff]  ;;  %v14775_v40 = vld [vmem:[%s16037_s18 + $0x260] sm:$0xff] }
0x1123   : > { %10147 = vmatpush.bf16.msra.mxu3 %v14778_v32 }
0x1127   : > { %v9818_v58 = vpop.f32.mrf.mxu3 }
0x1128   : > { %v9828_v62 = vadd.f32 %v9818_v58, %v9734_v52 }
0x1129   : > { %v9731_v28 = vpop.f32.mrf.mxu1 }
0x112a   : > { %v9837_v18 = vadd.f32 %v15054_v54, %v9828_v62  ;;  %v9737_v37 = vadd.f32 %v9731_v28, %v9636_v60 }
0x112c   : > { %v9841_v9 = vmin.f32 %v9837_v18, 20.0 }
0x112e   : > { %v9845_v36 = vmul.f32 1.442695, %v9841_v9 }
0x112f   : > { %v9820_v51 = vpop.f32.mrf.mxu3 }
0x1130   : > { %15753 = vpow2.f32 %v9845_v36  ;;  %v9829_v13 = vadd.f32 %v9820_v51, %v9735_v19 }
0x1132   : > { %v9838_v17 = vadd.f32 %v15054_v54, %v9829_v13 }
0x1134   : > { %v9842_v20 = vmin.f32 %v9838_v17, 20.0 }
0x1136   : > { %v15754_v30 = vpop.eup %15753  ;;  %v9847_v27 = vmul.f32 1.442695, %v9842_v20  ;;  %v14774_v20 = vld [vmem:[%s16037_s18 + $0x258] sm:$0xff] }
0x1137   : > { %v9853_v14 = vadd.f32 2.0, %v15754_v30  ;;  %v9823_v45 = vpop.f32.mrf.mxu3 }
0x1138   : > { %15755 = vpow2.f32 %v9847_v27  ;;  %v9830_v31 = vadd.f32 %v9823_v45, %v9736_v55  ;;  %v15055_v27 = vld [vmem:[%s16047_s20 + $0x9] ss:$0 sm:$0xff] }
0x1139   : > { %v9857_v43 = vmul.f32 %v15754_v30, %v9853_v14  ;;  %v14773_v30 = vld [vmem:[%s16037_s18 + $0x250] sm:$0xff]  ;;  %v14772_v45 = vld [vmem:[%s16037_s18 + $0x248] sm:$0xff] }
0x113a   : > { %v9839_v42 = vadd.f32 %v15054_v54, %v9830_v31 }
0x113b   : > { %v9865_v47 = vadd.f32 2.0, %v9857_v43  ;;  %v9861_v49 = vmul.f32 %v9857_v43, %v9837_v18  ;;  %v14771_v43 = vld [vmem:[%s16037_s18 + $0x240] sm:$0xff] }
0x113c   : > { %v9843_v39 = vmin.f32 %v9839_v42, 20.0 }
0x113d   : > { %15757 = vrcp.f32 %v9865_v47 }
0x113e   : > { %v15756_v38 = vpop.eup %15755  ;;  %v9849_v12 = vmul.f32 1.442695, %v9843_v39 }
0x113f   : > { %v9854_v59 = vadd.f32 2.0, %v15756_v38  ;;  %v9825_v35 = vpop.f32.mrf.mxu3 }
0x1140   : > { %15759 = vpow2.f32 %v9849_v12  ;;  %v9831_v46 = vadd.f32 %v9825_v35, %v9737_v37 }
0x1141   : > { %v9858_v44 = vmul.f32 %v15756_v38, %v9854_v59 }
0x1142   : > { %v9840_v41 = vadd.f32 %v15054_v54, %v9831_v46 }
0x1143   : > { %v9866_v22 = vadd.f32 2.0, %v9858_v44  ;;  %v15758_v10 = vpop.eup %15757  ;;  %v9862_v8 = vmul.f32 %v9858_v44, %v9838_v17  ;;  %v14777_v17 = vld [vmem:[%s16037_s18 + $0x270] sm:$0xff] }
0x1144   : > { %v9844_v5 = vmin.f32 %v9840_v41, 20.0  ;;  %v9873_v6 = vmul.f32 %v15758_v10, %v9861_v49  ;;  %10148 = vmatpush.bf16.msra.mxu3 %v14777_v17 }
0x1145   : > { %15761 = vrcp.f32 %v9866_v22 }
0x1146   : > { %v15760_v53 = vpop.eup %15759  ;;  %v9851_v15 = vmul.f32 1.442695, %v9844_v5  ;;  %v9877_v7 = vpack.c.bf16 %v9873_v6, %v9873_v6  ;;  %v15056_v6 = vld [vmem:[%s16052_s3 + $0x9] ss:$0 sm:$0xff] }
0x1147   : > { %v9855_v2 = vadd.f32 2.0, %v15760_v53 }
0x1148   : > { %15763 = vpow2.f32 %v9851_v15  ;;  %v9985_v58 = vunpack.c.l.b16 %v9877_v7  ;;  %10149 = vmatpush.bf16.msra.mxu3 %v14776_v25 }
0x1149   : > { %v9859_v63 = vmul.f32 %v15760_v53, %v9855_v2 }
0x114b   : > { %v15762_v61 = vpop.eup %15761  ;;  %v9867_v50 = vadd.f32 2.0, %v9859_v63  ;;  %v9863_v21 = vmul.f32 %v9859_v63, %v9839_v42 }
0x114c   : > { %v9874_v3 = vmul.f32 %v15762_v61, %v9862_v8  ;;  %10150 = vmatpush.bf16.msra.mxu3 %v14775_v40 }
0x114d   : > { %15765 = vrcp.f32 %v9867_v50 }
0x114e   : > { %v15764_v52 = vpop.eup %15763  ;;  %v9878_v0 = vpack.c.bf16 %v9874_v3, %v9874_v3 }
0x114f   : > { %v9856_v54 = vadd.f32 2.0, %v15764_v52 }
0x1150   : > { %v9986_v23 = vunpack.c.l.b16 %v9878_v0  ;;  %10151 = vmatpush.bf16.msra.mxu3 %v14774_v20  ;;  %v10174_v20 = vld [vmem:[%s16060_s1 + $0x8] sm:$0xff] }
0x1151   : > { %v9860_v33 = vmul.f32 %v15764_v52, %v9856_v54 }
0x1152   : > { %v9987_v62 = vpack.c.b16 %v9986_v23, %v9985_v58 }
0x1153   : > { %v9868_v18 = vadd.f32 2.0, %v9860_v33  ;;  %v15766_v11 = vpop.eup %15765  ;;  %v9864_v9 = vmul.f32 %v9860_v33, %v9840_v41 }
0x1154   : > { %10045 = vmatmul.bf16.vlgmr.msra.gmra.mxu1 %v9987_v62  ;;  %v9875_v4 = vmul.f32 %v15766_v11, %v9863_v21  ;;  %10152 = vmatpush.bf16.msra.mxu3 %v14773_v30 }
0x1155   : > { %15767 = vrcp.f32 %v9868_v18 }
0x1156   : > { %v9879_v36 = vpack.c.bf16 %v9875_v4, %v9875_v4 }
0x1158   : > { %v9917_v29 = vunpack.c.l.b16 %v9879_v36  ;;  %10153 = vmatpush.bf16.msra.mxu3 %v14772_v45  ;;  %v10173_v36 = vld [vmem:[%s16060_s1] sm:$0xff] }
0x115b   : > { %v15768_v19 = vpop.eup %15767 }
0x115c   : > { %v9876_v51 = vmul.f32 %v15768_v19, %v9864_v9  ;;  %10154 = vmatpush.bf16.msra.mxu3 %v14771_v43 }
0x115e   : > { %v9880_v16 = vpack.c.bf16 %v9876_v51, %v9876_v51 }
0x1160   : > { %v9918_v13 = vunpack.c.l.b16 %v9880_v16 }
0x1162   : > { %v9919_v34 = vpack.c.b16 %v9918_v13, %v9917_v29 }
0x1164   : > { %9977 = vmatmul.bf16.vlgmr.msra.gmra.mxu0 %v9919_v34 }
0x11d1   : > { %v10046_v55 = vpop.f32.mrf.mxu1 }
0x11d9   : > { %v10048_v47 = vpop.f32.mrf.mxu1 }
0x11e1   : > { %v9978_v14 = vpop.f32.mrf.mxu0 }
0x11e2   : > { %v10047_v26 = vadd.f32 %v10046_v55, %v9978_v14 }
0x11e4   : > { %v10056_v31 = vadd.f32 %v15055_v27, %v10047_v26 }
0x11e6   : > { %v10058_v42 = vmin.f32 %v10056_v31, 20.0 }
0x11e8   : > { %v10060_v48 = vmul.f32 1.442695, %v10058_v42 }
0x11e9   : > { %v9980_v28 = vpop.f32.mrf.mxu0 }
0x11ea   : > { %15769 = vpow2.f32 %v10060_v48  ;;  %v10049_v56 = vadd.f32 %v10048_v47, %v9980_v28 }
0x11ec   : > { %v10057_v60 = vadd.f32 %v15055_v27, %v10049_v56 }
0x11ee   : > { %v10059_v39 = vmin.f32 %v10057_v60, 20.0 }
0x11f0   : > { %v15770_v38 = vpop.eup %15769  ;;  %v10062_v37 = vmul.f32 1.442695, %v10059_v39 }
0x11f1   : > { %v10064_v12 = vadd.f32 2.0, %v15770_v38 }
0x11f2   : > { %15771 = vpow2.f32 %v10062_v37 }
0x11f3   : > { %v10066_v59 = vmul.f32 %v15770_v38, %v10064_v12 }
0x11f5   : > { %v10070_v1 = vadd.f32 2.0, %v10066_v59  ;;  %v10068_v5 = vmul.f32 %v10066_v59, %v10056_v31 }
0x11f7   : > { %15773 = vrcp.f32 %v10070_v1 }
0x11f8   : > { %v15772_v35 = vpop.eup %15771 }
0x11f9   : > { %v10065_v46 = vadd.f32 2.0, %v15772_v35 }
0x11fb   : > { %v10067_v44 = vmul.f32 %v15772_v35, %v10065_v46 }
0x11fd   : > { %v10071_v41 = vadd.f32 2.0, %v10067_v44  ;;  %v15774_v22 = vpop.eup %15773  ;;  %v10069_v10 = vmul.f32 %v10067_v44, %v10057_v60 }
0x11fe   : > { %v10074_v49 = vmul.f32 %v15774_v22, %v10068_v5 }
0x11ff   : > { %15775 = vrcp.f32 %v10071_v41 }
0x1205   : > { %v15776_v53 = vpop.eup %15775 }
0x1206   : > { %v10075_v15 = vmul.f32 %v15776_v53, %v10069_v10 }
0x1208   : > { %v10076_v2 = vpack.c.bf16 %v10075_v15, %v10074_v49 }
0x120a   : > { %10155 = vmatmul.bf16.vlgmr.msra.gmra.mxu3 %v10076_v2 }
0x128d   : > { %v10156_v63 = vpop.f32.mrf.mxu3 }
0x128e   : > { %v10157_v8 = vadd.f32 %v15056_v6, %v10156_v63 }
0x1290   : > { %v10161_v61 = vmax.f32 %v10157_v8, -1.0 }
0x1292   : > { %v10163_v50 = vmin.f32 %v10161_v61, 0.9921875 }
0x1294   : > { %v10165_v7 = vmul.f32 128.0, %v10163_v50 }
0x1295   : > { %v10158_v3 = vpop.f32.mrf.mxu3 }
0x1296   : > { %v14929_v52 = vcvt.f32.s32 %v10165_v7  ;;  %v10159_v0 = vadd.f32 %v15056_v6, %v10158_v3  ;;  %v14927_v23 = vand.u32 2147483647, %v10165_v7  ;;  %v14932_v62 = vand.u32 2147483648, %v10165_v7 }
0x1298   : > { %v14930_v54 = vcvt.s32.f32 %v14929_v52  ;;  %v10162_v58 = vmax.f32 %v10159_v0, -1.0  ;;  %vm14928_vm5 = vcmp.lt.f32.partialorder %v14927_v23, 8388608.0 }
0x129a   : > { %v14931_v33 = vand.u32 2147483647, %v14930_v54  ;;  %v10164_v18 = vmin.f32 %v10162_v58, 0.9921875 }
0x129c   : > { %v14933_v11 = vor.u32 %v14932_v62, %v14931_v33  ;;  %v10166_v21 = vmul.f32 128.0, %v10164_v18 }
0x129e   : > { %v14934_v4 = vsel %vm14928_vm5, %v14933_v11, %v10165_v7  ;;  %v14937_v9 = vcvt.f32.s32 %v10166_v21  ;;  %v14935_v29 = vand.u32 2147483647, %v10166_v21  ;;  %v14940_v34 = vand.u32 2147483648, %v10166_v21 }
0x129f   : > { %v10169_v19 = vmul.f32 0.0078125, %v14934_v4 }
0x12a0   : > { %v14938_v51 = vcvt.s32.f32 %v14937_v9  ;;  %vm14936_vm7 = vcmp.lt.f32.partialorder %v14935_v29, 8388608.0 }
0x12a1   : > { %v10171_v16 = vadd.f32 %v10169_v19, %v17223_v57 }
0x12a2   : > { %v14939_v13 = vand.u32 2147483647, %v14938_v51 }
0x12a3   : > { %v10175_v32 = vadd.f32 %v10173_v36, %v10171_v16 }
0x12a4   : > { %v14941_v17 = vor.u32 %v14940_v34, %v14939_v13 }
0x12a5   : > { %10178 = vst.msk [vmem:[%s16060_s1] sm:$0xff] %vm10177_vm6, %v10175_v32 }
0x12a6   : > { %v14942_v25 = vsel %vm14936_vm7, %v14941_v17, %v10166_v21 }
0x12a7   : > { %v10170_v40 = vmul.f32 0.0078125, %v14942_v25 }
0x12a9   : > { %v10172_v30 = vadd.f32 %v10170_v40, %v17225_v24 }
0x12ab   : > { %v10176_v55 = vadd.f32 %v10174_v20, %v10172_v30 }
0x12ad   : > { %10179 = vst.msk [vmem:[%s16060_s1 + $0x8] sm:$0xff] %vm10177_vm6, %v10176_v55 }
0x12ae PF: > { %s22_s16 = sadd.s32 1, %s15880_s16   ;;  %s17324_s0 = sld [smem:[#allocation5_spill]] }
0x12af   : > { %p19_p4 = scmp.ge.s32.totalorder %s22_s16, 6   ;;  %s17325_s11 = sld [smem:[#allocation10_spill]] }
0x12b0   : > { %s17326_s12 = sld [smem:[#allocation6_spill]]  ;;  %s17330_s30 = smov %s15856_s10 }
0x12b1   : > { %s17327_s13 = sld [smem:[#allocation7_spill]]  ;;  %21 = sbr.rel (!%p19_p4) target bundleno = 10 (0xa), region = 245 }
0x12b2   : > { %s17328_s14 = sld [smem:[#allocation8_spill]] }
0x12b3   : > { %s17329_s15 = sld [smem:[#allocation9_spill]] }
0x12b4   : > { %s17331_s10 = smov %s17324_s0 }
0x12b6   :  { %10201 = vsyncpa [#allocation3], 1 }
0x12b7   :  { %10203 = vsyncpa [#allocation3 + $0x1], 1 }

</bundles_post_ra>
